<compile_context>
chip_gen: v5e
topology: v5e:2x2
jax: 0.10.0
libtpu: 0.0.40
codegen_flags: <defaults>
</compile_context>

<pallas_src>
import functools

import jax
import jax.numpy as jnp
from jax.experimental import pallas as pl
from jax.experimental.pallas import tpu as pltpu

_HIGHEST = jax.lax.Precision.HIGHEST


def _ritznet_kernel(*refs, depth, width, has_sel, tanh_bf16):
    # refs (has_sel=False): x, w, b, wout, bout, o
    # refs (has_sel=True) : x, w, b, wout, bout, sel, o
    #   x_ref    : (tm_p, P)        packed input tile (P = 128 lanes)
    #   w_ref    : (depth, P, P)    block-diagonal hidden weights (x @ W form)
    #   b_ref    : (depth, 1, P)    lane-tiled hidden biases (sublane broadcast)
    #   wout_ref : (P, P)           block-diag output weight, Wout in cols 0:dd
    #   bout_ref : (1, P)           lane-tiled output bias
    #   sel_ref  : (P, P)           (dd > 1 only) one-hot selector for x[:, 0]
    #   o_ref    : (tm_p, P)        lane-dense packed output tile
    if has_sel:
        x_ref, w_ref, b_ref, wout_ref, bout_ref, sel_ref, o_ref = refs
    else:
        x_ref, w_ref, b_ref, wout_ref, bout_ref, o_ref = refs

    x = x_ref[...].astype(jnp.float32)

    h = x
    for l in range(depth):  # depth is a small static constant -> unrolled
        z = jnp.dot(h, w_ref[l], preferred_element_type=jnp.float32,
                    precision=_HIGHEST) + b_ref[l]
        if tanh_bf16:
            # v6e/v7x only: bf16 EUP path (~2x transcendental throughput).
            t = jnp.tanh(z.astype(jnp.bfloat16)).astype(jnp.float32)
        else:
            t = jnp.tanh(z)
        h = t * t * t + h

    out = jnp.dot(h, wout_ref[...], preferred_element_type=jnp.float32,
                  precision=_HIGHEST) + bout_ref[...]

    if has_sel:
        # dd > 1: exact one-hot selector matmul (HIGHEST precision -> f32 exact).
        xxx = jnp.dot(x, sel_ref[...], preferred_element_type=jnp.float32,
                      precision=_HIGHEST)
    else:
        # dd == 1: boundary coordinate x[:, 0] of each packed sub-row, extracted
        # bit-exactly on the VPU with a static lane mask (no MXU pass at all).
        lane = jax.lax.broadcasted_iota(jnp.int32, x.shape, dimension=1)
        xxx = jnp.where(lane % width == 0, x, 0.0)

    # At lanes outside cols 0:dd of each block, xxx == 0 and out == 0, so the
    # stored value is 0 there; the wrapper slices the useful columns.
    o_ref[...] = (out * xxx * (1.0 - xxx) + xxx).astype(o_ref.dtype)


def pack_ritznet_params(Ws, bs, Wout, bout):
    """Pack parameters into lane-dense block-diagonal form.

    Call ONCE per parameter update (not per forward call): the packing is a
    handful of tiny XLA ops that would otherwise sit on the latency-critical
    path of this latency-bound kernel.

    Ws   : (depth, width, width)  hidden weights in `x @ W` orientation
    bs   : (depth, width)
    Wout : (width, dd)            output weight in `x @ W` orientation
    bout : (1, dd) or (dd,)
    """
    Ws = jnp.asarray(Ws, jnp.float32)
    bs = jnp.asarray(bs, jnp.float32)
    Wout = jnp.asarray(Wout, jnp.float32)
    bout = jnp.asarray(bout, jnp.float32).reshape(1, -1)

    depth, width, _ = Ws.shape
    dd = Wout.shape[1]
    assert 128 % width == 0, "width must divide 128 for lane packing"
    assert dd <= width
    pack = 128 // width
    P = pack * width  # 128

    eye = jnp.eye(pack, dtype=jnp.float32)
    # Block-diagonal hidden weights: `pack` copies of W_l on the diagonal.
    w_bd = jnp.einsum("ab,lij->laibj", eye, Ws).reshape(depth, P, P)
    # Hidden biases tiled across the `pack` lane segments.
    b_p = jnp.tile(bs, (1, pack))[:, None, :]                       # (depth,1,P)
    # Output weight embedded in a full (width, width) block so the kernel's
    # output tile is a lane-dense (tm_p, 128) slab (unmasked stores).
    wout_blk = jnp.zeros((width, width), jnp.float32).at[:, :dd].set(Wout)
    wout_full = jnp.einsum("ab,ij->aibj", eye, wout_blk).reshape(P, P)
    bout_blk = jnp.zeros((1, width), jnp.float32).at[:, :dd].set(bout)
    bout_full = jnp.tile(bout_blk, (1, pack))                       # (1, P)
    if dd > 1:
        sel_blk = jnp.zeros((width, width), jnp.float32).at[0, :dd].set(1.0)
        sel_full = jnp.einsum("ab,ij->aibj", eye, sel_blk).reshape(P, P)
    else:
        sel_full = None  # dd == 1 uses the in-kernel lane mask instead

    return dict(w_bd=w_bd, b_p=b_p, wout_full=wout_full, bout_full=bout_full,
                sel_full=sel_full, width=width, dd=dd)


@functools.partial(jax.jit, static_argnames=("width", "dd", "tm", "tanh_bf16"))
def ritznet_forward(x, w_bd, b_p, wout_full, bout_full, sel_full, *,
                    width, dd, tm=1024, tanh_bf16=False):
    """RitzNet forward pass.

    x: (N, width) f32; packed params from pack_ritznet_params.
    tm: batch rows per grid step (multiple of 8 * (128 // width)).  Choose tm so
        the grid has 1-2 steps per TensorCore; on v7x keep the grid >= 2 and
        even so ("parallel",) dimension semantics can use both TCs.
    tanh_bf16: route tanh through the bf16 EUP path (v6e/v7x only; validate
        accuracy before enabling).
    Returns (N, dd).
    """
    out_dtype = x.dtype
    N = x.shape[0]
    assert x.shape[1] == width
    depth, P, _ = w_bd.shape
    pack = P // width
    assert tm % (8 * pack) == 0, "tm must be a multiple of 8 * (128 // width)"
    tm_p = tm // pack                      # packed rows per grid step

    # Pad the batch to a multiple of tm (padded rows dropped at the end).
    n_pad = pl.cdiv(N, tm) * tm
    if n_pad != N:
        x = jnp.pad(x, ((0, n_pad - N), (0, 0)))
    np_rows = n_pad // pack

    # Free, contiguous reshape: `pack` consecutive batch rows per packed row.
    x_p = x.astype(jnp.float32).reshape(np_rows, P)

    has_sel = sel_full is not None
    kernel = functools.partial(_ritznet_kernel, depth=depth, width=width,
                               has_sel=has_sel, tanh_bf16=tanh_bf16)

    in_specs = [
        pl.BlockSpec((tm_p, P), lambda i: (i, 0)),
        # Grid-invariant parameters: constant index maps -> fetched once, stay
        # resident in VMEM across the grid (~330 KiB total).
        pl.BlockSpec((depth, P, P), lambda i: (0, 0, 0)),
        pl.BlockSpec((depth, 1, P), lambda i: (0, 0, 0)),
        pl.BlockSpec((P, P), lambda i: (0, 0)),
        pl.BlockSpec((1, P), lambda i: (0, 0)),
    ]
    args = [x_p, w_bd, b_p, wout_full, bout_full]
    if has_sel:
        in_specs.append(pl.BlockSpec((P, P), lambda i: (0, 0)))
        args.append(sel_full)

    out_p = pl.pallas_call(
        kernel,
        out_shape=jax.ShapeDtypeStruct((np_rows, P), jnp.float32),
        grid_spec=pltpu.PrefetchScalarGridSpec(
            num_scalar_prefetch=0,
            grid=(n_pad // tm,),
            in_specs=in_specs,
            # Lane-dense (tm_p, 128) output tile -> unmasked vst stores.
            out_specs=pl.BlockSpec((tm_p, P), lambda i: (i, 0)),
        ),
        compiler_params=pltpu.CompilerParams(
            dimension_semantics=("parallel",),
            # Tiles are tiny even at tm=8192 (~1 MiB/buffer) -> default scoped
            # VMEM limit is ample on v5e/v6e and on v7x's 64 MiB VMEM.
        ),
    )(*args)

    # Free reshape back to one width-lane block per original batch row; keep
    # the dd useful columns and drop padding rows.
    return out_p.reshape(n_pad, width)[:N, :dd].astype(out_dtype)


def ritznet_reference(x, Ws, bs, Wout, bout):
    # Pure-JAX reference at full f32 precision (matches the kernel's HIGHEST-
    # precision matmuls and the PyTorch f32 semantics).
    xxx = x[:, 0:1]
    h = x
    for l in range(Ws.shape[0]):
        z = jnp.dot(h, Ws[l], precision=_HIGHEST) + bs[l]
        h = jnp.tanh(z) ** 3 + h
    out = jnp.dot(h, Wout, precision=_HIGHEST) + bout
    return out * xxx * (1.0 - xxx) + xxx


if __name__ == "__main__":
    # Shapes implied by the module: params = {'depth': 4, 'width': 32, 'dd': 1}
    depth, width, dd = 4, 32, 1
    N = 2048           # tm=1024 -> grid of 2 parallel steps (both v7x TCs busy)

    key = jax.random.PRNGKey(0)
    kx, kw, kb, kwo, kbo = jax.random.split(key, 5)

    x = jax.random.uniform(kx, (N, width), dtype=jnp.float32)  # x[:,0] in (0,1)
    # Synthetic parameters already in "x @ W" orientation.
    Ws = 0.1 * jax.random.normal(kw, (depth, width, width), dtype=jnp.float32)
    bs = 0.1 * jax.random.normal(kb, (depth, width), dtype=jnp.float32)
    Wout = 0.1 * jax.random.normal(kwo, (width, dd), dtype=jnp.float32)
    bout = 0.1 * jax.random.normal(kbo, (1, dd), dtype=jnp.float32)

    # Pack parameters once (hoisted off the per-call path).
    packed = pack_ritznet_params(Ws, bs, Wout, bout)

    out = ritznet_forward(
        x, packed["w_bd"], packed["b_p"], packed["wout_full"],
        packed["bout_full"], packed["sel_full"],
        width=packed["width"], dd=packed["dd"], tm=1024)
    out = jax.block_until_ready(out)

    ref = ritznet_reference(x, Ws, bs, Wout, bout)
    assert out.shape == (N, dd)
    assert jnp.allclose(out, ref, atol=1e-5, rtol=1e-5), "mismatch vs reference"

    print("KERNEL_OK")
</pallas_src>

<mosaic_0001>
module attributes {stable_mosaic.version = 11 : i64} {
  func.func @_ritznet_kernel(%arg0: i32, %arg1: memref<256x128xf32, #tpu.memory_space<vmem>>, %arg2: memref<4x128x128xf32, #tpu.memory_space<vmem>>, %arg3: memref<4x1x128xf32, #tpu.memory_space<vmem>>, %arg4: memref<128x128xf32, #tpu.memory_space<vmem>>, %arg5: memref<1x128xf32, #tpu.memory_space<vmem>>, %arg6: memref<256x128xf32, #tpu.memory_space<vmem>>) attributes {dimension_semantics = [#tpu.dimension_semantics<parallel>], iteration_bounds = array<i64: 2>, scalar_prefetch = 0 : i64, scratch_operands = 0 : i64, tpu.core_type = #tpu.core_type<tc>, window_params = [{transform_indices = @transform_0, window_bounds = array<i64: 256, 128>}, {pipeline_mode = #tpu.pipeline_mode<synchronous>, transform_indices = @transform_1, window_bounds = array<i64: 4, 128, 128>}, {pipeline_mode = #tpu.pipeline_mode<synchronous>, transform_indices = @transform_2, window_bounds = array<i64: 4, 1, 128>}, {pipeline_mode = #tpu.pipeline_mode<synchronous>, transform_indices = @transform_3, window_bounds = array<i64: 128, 128>}, {pipeline_mode = #tpu.pipeline_mode<synchronous>, transform_indices = @transform_4, window_bounds = array<i64: 1, 128>}, {transform_indices = @transform_5, window_bounds = array<i64: 256, 128>}]} {
    %c0 = arith.constant 0 : index
    %c0_0 = arith.constant 0 : index
    %0 = vector.load %arg1[%c0, %c0_0] : memref<256x128xf32, #tpu.memory_space<vmem>>, vector<256x128xf32>
    %c0_1 = arith.constant 0 : index
    %c0_2 = arith.constant 0 : index
    %c0_3 = arith.constant 0 : index
    %1 = vector.load %arg2[%c0_1, %c0_2, %c0_3] : memref<4x128x128xf32, #tpu.memory_space<vmem>>, vector<1x128x128xf32>
    %2 = vector.shape_cast %1 : vector<1x128x128xf32> to vector<128x128xf32>
    %cst = arith.constant dense<0.000000e+00> : vector<256x128xf32>
    %3 = tpu.matmul %0, %2, %cst {dimension_numbers = #tpu.dot_dimension_numbers<[1], [0], [0], [1], [0, 0, 1, 1], [], []>, precision = #tpu.contract_precision<fp32>} : vector<256x128xf32>, vector<128x128xf32>, vector<256x128xf32> -> vector<256x128xf32>
    %c0_4 = arith.constant 0 : index
    %c0_5 = arith.constant 0 : index
    %c0_6 = arith.constant 0 : index
    %4 = vector.load %arg3[%c0_4, %c0_5, %c0_6] : memref<4x1x128xf32, #tpu.memory_space<vmem>>, vector<1x1x128xf32>
    %5 = vector.shape_cast %4 : vector<1x1x128xf32> to vector<1x128xf32>
    %6 = vector.broadcast %5 : vector<1x128xf32> to vector<256x128xf32>
    %7 = arith.addf %3, %6 : vector<256x128xf32>
    %8 = math.tanh %7 : vector<256x128xf32>
    %9 = arith.mulf %8, %8 : vector<256x128xf32>
    %10 = arith.mulf %9, %8 : vector<256x128xf32>
    %11 = arith.addf %10, %0 : vector<256x128xf32>
    %c1 = arith.constant 1 : index
    %c0_7 = arith.constant 0 : index
    %c0_8 = arith.constant 0 : index
    %12 = vector.load %arg2[%c1, %c0_7, %c0_8] : memref<4x128x128xf32, #tpu.memory_space<vmem>>, vector<1x128x128xf32>
    %13 = vector.shape_cast %12 : vector<1x128x128xf32> to vector<128x128xf32>
    %cst_9 = arith.constant dense<0.000000e+00> : vector<256x128xf32>
    %14 = tpu.matmul %11, %13, %cst_9 {dimension_numbers = #tpu.dot_dimension_numbers<[1], [0], [0], [1], [0, 0, 1, 1], [], []>, precision = #tpu.contract_precision<fp32>} : vector<256x128xf32>, vector<128x128xf32>, vector<256x128xf32> -> vector<256x128xf32>
    %c1_10 = arith.constant 1 : index
    %c0_11 = arith.constant 0 : index
    %c0_12 = arith.constant 0 : index
    %15 = vector.load %arg3[%c1_10, %c0_11, %c0_12] : memref<4x1x128xf32, #tpu.memory_space<vmem>>, vector<1x1x128xf32>
    %16 = vector.shape_cast %15 : vector<1x1x128xf32> to vector<1x128xf32>
    %17 = vector.broadcast %16 : vector<1x128xf32> to vector<256x128xf32>
    %18 = arith.addf %14, %17 : vector<256x128xf32>
    %19 = math.tanh %18 : vector<256x128xf32>
    %20 = arith.mulf %19, %19 : vector<256x128xf32>
    %21 = arith.mulf %20, %19 : vector<256x128xf32>
    %22 = arith.addf %21, %11 : vector<256x128xf32>
    %c2 = arith.constant 2 : index
    %c0_13 = arith.constant 0 : index
    %c0_14 = arith.constant 0 : index
    %23 = vector.load %arg2[%c2, %c0_13, %c0_14] : memref<4x128x128xf32, #tpu.memory_space<vmem>>, vector<1x128x128xf32>
    %24 = vector.shape_cast %23 : vector<1x128x128xf32> to vector<128x128xf32>
    %cst_15 = arith.constant dense<0.000000e+00> : vector<256x128xf32>
    %25 = tpu.matmul %22, %24, %cst_15 {dimension_numbers = #tpu.dot_dimension_numbers<[1], [0], [0], [1], [0, 0, 1, 1], [], []>, precision = #tpu.contract_precision<fp32>} : vector<256x128xf32>, vector<128x128xf32>, vector<256x128xf32> -> vector<256x128xf32>
    %c2_16 = arith.constant 2 : index
    %c0_17 = arith.constant 0 : index
    %c0_18 = arith.constant 0 : index
    %26 = vector.load %arg3[%c2_16, %c0_17, %c0_18] : memref<4x1x128xf32, #tpu.memory_space<vmem>>, vector<1x1x128xf32>
    %27 = vector.shape_cast %26 : vector<1x1x128xf32> to vector<1x128xf32>
    %28 = vector.broadcast %27 : vector<1x128xf32> to vector<256x128xf32>
    %29 = arith.addf %25, %28 : vector<256x128xf32>
    %30 = math.tanh %29 : vector<256x128xf32>
    %31 = arith.mulf %30, %30 : vector<256x128xf32>
    %32 = arith.mulf %31, %30 : vector<256x128xf32>
    %33 = arith.addf %32, %22 : vector<256x128xf32>
    %c3 = arith.constant 3 : index
    %c0_19 = arith.constant 0 : index
    %c0_20 = arith.constant 0 : index
    %34 = vector.load %arg2[%c3, %c0_19, %c0_20] : memref<4x128x128xf32, #tpu.memory_space<vmem>>, vector<1x128x128xf32>
    %35 = vector.shape_cast %34 : vector<1x128x128xf32> to vector<128x128xf32>
    %cst_21 = arith.constant dense<0.000000e+00> : vector<256x128xf32>
    %36 = tpu.matmul %33, %35, %cst_21 {dimension_numbers = #tpu.dot_dimension_numbers<[1], [0], [0], [1], [0, 0, 1, 1], [], []>, precision = #tpu.contract_precision<fp32>} : vector<256x128xf32>, vector<128x128xf32>, vector<256x128xf32> -> vector<256x128xf32>
    %c3_22 = arith.constant 3 : index
    %c0_23 = arith.constant 0 : index
    %c0_24 = arith.constant 0 : index
    %37 = vector.load %arg3[%c3_22, %c0_23, %c0_24] : memref<4x1x128xf32, #tpu.memory_space<vmem>>, vector<1x1x128xf32>
    %38 = vector.shape_cast %37 : vector<1x1x128xf32> to vector<1x128xf32>
    %39 = vector.broadcast %38 : vector<1x128xf32> to vector<256x128xf32>
    %40 = arith.addf %36, %39 : vector<256x128xf32>
    %41 = math.tanh %40 : vector<256x128xf32>
    %42 = arith.mulf %41, %41 : vector<256x128xf32>
    %43 = arith.mulf %42, %41 : vector<256x128xf32>
    %44 = arith.addf %43, %33 : vector<256x128xf32>
    %c0_25 = arith.constant 0 : index
    %c0_26 = arith.constant 0 : index
    %45 = vector.load %arg4[%c0_25, %c0_26] : memref<128x128xf32, #tpu.memory_space<vmem>>, vector<128x128xf32>
    %cst_27 = arith.constant dense<0.000000e+00> : vector<256x128xf32>
    %46 = tpu.matmul %44, %45, %cst_27 {dimension_numbers = #tpu.dot_dimension_numbers<[1], [0], [0], [1], [0, 0, 1, 1], [], []>, precision = #tpu.contract_precision<fp32>} : vector<256x128xf32>, vector<128x128xf32>, vector<256x128xf32> -> vector<256x128xf32>
    %c0_28 = arith.constant 0 : index
    %c0_29 = arith.constant 0 : index
    %47 = vector.load %arg5[%c0_28, %c0_29] : memref<1x128xf32, #tpu.memory_space<vmem>>, vector<1x128xf32>
    %48 = vector.broadcast %47 : vector<1x128xf32> to vector<256x128xf32>
    %49 = arith.addf %46, %48 : vector<256x128xf32>
    %50 = tpu.iota {dimensions = array<i32: 1>} : vector<256x128xi32>
    %c32_i32 = arith.constant 32 : i32
    %c0_i32 = arith.constant 0 : i32
    %51 = arith.cmpi eq, %c32_i32, %c0_i32 : i32
    %c1_i32 = arith.constant 1 : i32
    %52 = arith.select %51, %c1_i32, %c32_i32 : i32
    %53 = vector.broadcast %52 : i32 to vector<256x128xi32>
    %54 = arith.remsi %50, %53 : vector<256x128xi32>
    %c0_i32_30 = arith.constant 0 : i32
    %55 = vector.broadcast %c0_i32_30 : i32 to vector<256x128xi32>
    %56 = arith.cmpi ne, %54, %55 : vector<256x128xi32>
    %c0_i32_31 = arith.constant 0 : i32
    %57 = vector.broadcast %c0_i32_31 : i32 to vector<256x128xi32>
    %58 = arith.cmpi slt, %54, %57 : vector<256x128xi32>
    %c0_i32_32 = arith.constant 0 : i32
    %59 = arith.cmpi slt, %52, %c0_i32_32 : i32
    %60 = vector.broadcast %59 : i1 to vector<256x128xi1>
    %61 = vector.broadcast %60 : vector<256x128xi1> to vector<256x128xi1>
    %62 = arith.xori %58, %61 : vector<256x128xi1>
    %63 = arith.andi %62, %56 : vector<256x128xi1>
    %64 = vector.broadcast %52 : i32 to vector<256x128xi32>
    %65 = arith.addi %54, %64 : vector<256x128xi32>
    %66 = arith.select %63, %65, %54 : vector<256x128xi1>, vector<256x128xi32>
    %c0_i32_33 = arith.constant 0 : i32
    %67 = vector.broadcast %c0_i32_33 : i32 to vector<256x128xi32>
    %68 = arith.cmpi eq, %66, %67 : vector<256x128xi32>
    %cst_34 = arith.constant 0.000000e+00 : f32
    %69 = vector.broadcast %cst_34 : f32 to vector<256x128xf32>
    %70 = arith.select %68, %0, %69 : vector<256x128xi1>, vector<256x128xf32>
    %71 = arith.mulf %49, %70 : vector<256x128xf32>
    %cst_35 = arith.constant 1.000000e+00 : f32
    %72 = vector.broadcast %cst_35 : f32 to vector<256x128xf32>
    %73 = arith.subf %72, %70 : vector<256x128xf32>
    %74 = arith.mulf %71, %73 : vector<256x128xf32>
    %75 = arith.addf %74, %70 : vector<256x128xf32>
    %c0_36 = arith.constant 0 : index
    %c0_37 = arith.constant 0 : index
    %76 = vector.load %arg6[%c0_36, %c0_37] : memref<256x128xf32, #tpu.memory_space<vmem>>, vector<256x128xf32>
    tpu.vector_store %arg6[%c0_36, %c0_37], %75 {strides = array<i32>} : memref<256x128xf32, #tpu.memory_space<vmem>>, vector<256x128xf32>,
    return
  }
  func.func @transform_0(%arg0: i32) -> (i32, i32) {
    %c0_i32 = arith.constant 0 : i32
    %c0_i32_0 = arith.constant 0 : i32
    return %arg0, %c0_i32 : i32, i32
  }
  func.func @transform_1(%arg0: i32) -> (i32, i32, i32) {
    %c0_i32 = arith.constant 0 : i32
    %c0_i32_0 = arith.constant 0 : i32
    %c0_i32_1 = arith.constant 0 : i32
    %c0_i32_2 = arith.constant 0 : i32
    return %c0_i32, %c0_i32_0, %c0_i32_1 : i32, i32, i32
  }
  func.func @transform_2(%arg0: i32) -> (i32, i32, i32) {
    %c0_i32 = arith.constant 0 : i32
    %c0_i32_0 = arith.constant 0 : i32
    %c0_i32_1 = arith.constant 0 : i32
    %c0_i32_2 = arith.constant 0 : i32
    return %c0_i32, %c0_i32_0, %c0_i32_1 : i32, i32, i32
  }
  func.func @transform_3(%arg0: i32) -> (i32, i32) {
    %c0_i32 = arith.constant 0 : i32
    %c0_i32_0 = arith.constant 0 : i32
    %c0_i32_1 = arith.constant 0 : i32
    return %c0_i32, %c0_i32_0 : i32, i32
  }
  func.func @transform_4(%arg0: i32) -> (i32, i32) {
    %c0_i32 = arith.constant 0 : i32
    %c0_i32_0 = arith.constant 0 : i32
    %c0_i32_1 = arith.constant 0 : i32
    return %c0_i32, %c0_i32_0 : i32, i32
  }
  func.func @transform_5(%arg0: i32) -> (i32, i32) {
    %c0_i32 = arith.constant 0 : i32
    %c0_i32_0 = arith.constant 0 : i32
    return %arg0, %c0_i32 : i32, i32
  }
}

</mosaic_0001>

<bundles_post_ra>
// kernel: ritznet_forward.1
= control target key start
LH: loop header
LB: loop body
LE: loop exit
PB: predicated region body
PF: predicated region fallthrough
CT: control target
= control target key end

     0   :  { %s8122_s18 = smov 0   ;;  %s14342_s0 = inlined_call_operand.vmem [shape: f32[512,128], index: 0, kind: input, shape index: {}]   ;;  %s14343_s1 = inlined_call_operand.vmem [shape: f32[4,128,128], index: 1, kind: input, shape index: {}]   ;;  %s14344_s2 = inlined_call_operand.vmem [shape: f32[4,1,128], index: 2, kind: input, shape index: {}]   ;;  %s14345_s3 = inlined_call_operand.vmem [shape: f32[128,128], index: 3, kind: input, shape index: {}]   ;;  %s14346_s4 = inlined_call_operand.vmem [shape: f32[1,128], index: 4, kind: input, shape index: {}]   ;;  %s14347_s5 = inlined_call_operand.vmem [shape: f32[512,128], index: 5, kind: output, shape index: {}]  }
   0x1 LB: > { %s7651_s19 = sadd.s32 4294967295, %s8090_s18   ;;  %p7655_p0 = scmp.ge.s32.totalorder %s8090_s18, 1  ;;  %s8090_s18 = sphi %s8122_s18, %s15_s18  }
   0x2   : > { %p188_p1 = scmp.lt.s32.totalorder %s8090_s18, 3 }
   0x4   : > { %p189_p2 = pnand %p7655_p0, %p188_p1 }
   0x6   : > { %192 = sbr.rel (%p189_p2) target bundleno = 2317 (0x90d), region = 40 }
   0xb   : > { %v275_v0 = vld [vmem:[%s14343_s1 + $0x78] sm:$0xff]  ;;  %v274_v1 = vld [vmem:[%s14343_s1 + $0x70] sm:$0xff]  ;;  %v273_v2 = vld [vmem:[%s14343_s1 + $0x68] sm:$0xff]  ;;  %s7656_s26 = sshll.u32 %s7651_s19, 5 }
   0xc   : > { %v8139_v3 = vand.u32 4294901760, %v275_v0  ;;  %v8141_v4 = vand.u32 4294901760, %v274_v1  ;;  %v8143_v5 = vand.u32 4294901760, %v273_v2  ;;  %v272_v6 = vld [vmem:[%s14343_s1 + $0x60] sm:$0xff]  ;;  %v271_v7 = vld [vmem:[%s14343_s1 + $0x58] sm:$0xff]  ;;  %v270_v8 = vld [vmem:[%s14343_s1 + $0x50] sm:$0xff] }
   0xd   : > { %v8154_v9 = vand.u32 4294901760, %v272_v6  ;;  %v8156_v10 = vand.u32 4294901760, %v271_v7  ;;  %v8158_v11 = vand.u32 4294901760, %v270_v8  ;;  %v269_v12 = vld [vmem:[%s14343_s1 + $0x48] sm:$0xff]  ;;  %v268_v16 = vld [vmem:[%s14343_s1 + $0x40] sm:$0xff]  ;;  %p217_p3 = scmp.lt.s32.totalorder %s7656_s26, 63 }
   0xe   : > { %281 = vmatpush.msra.mxu0 %v8139_v3  ;;  %7713 = vmatpush.msra.mxu2 %v8139_v3  ;;  %v8166_v13 = vsub.f32 %v275_v0, %v8139_v3  ;;  %v8169_v14 = vsub.f32 %v274_v1, %v8141_v4  ;;  %v8172_v15 = vsub.f32 %v273_v2, %v8143_v5  ;;  %v8177_v17 = vand.u32 4294901760, %v269_v12  ;;  %v267_v23 = vld [vmem:[%s14343_s1 + $0x38] sm:$0xff]  ;;  %v266_v26 = vld [vmem:[%s14343_s1 + $0x30] sm:$0xff]  ;;  %v265_v36 = vld [vmem:[%s14343_s1 + $0x28] sm:$0xff] }
   0xf   : > { %v8180_v18 = vsub.f32 %v272_v6, %v8154_v9  ;;  %v8183_v19 = vsub.f32 %v271_v7, %v8156_v10  ;;  %s15864_s26 = smov (!%p217_p3, %s7656_s26), 63  ;;  %v8195_v24 = vand.u32 4294901760, %v268_v16  ;;  %v8202_v27 = vsub.f32 %v270_v8, %v8158_v11  ;;  %v264_v40 = vld [vmem:[%s14343_s1 + $0x20] sm:$0xff]  ;;  %v263_v51 = vld [vmem:[%s14343_s1 + $0x18] sm:$0xff]  ;;  %v262_v54 = vld [vmem:[%s14343_s1 + $0x10] sm:$0xff] }
  0x10   : > { %283 = vmatpush.msra.mxu0 %v8141_v4  ;;  %7714 = vmatpush.msra.mxu2 %v8141_v4  ;;  %v571_v20 = vand.u32 4294901760, %v8166_v13  ;;  %v577_v21 = vand.u32 4294901760, %v8169_v14  ;;  %v583_v22 = vand.u32 4294901760, %v8172_v15  ;;  %s7657_s16 = sshll.u32 %s15864_s26, 3  ;;  %v8217_v32 = vand.u32 4294901760, %v267_v23  ;;  %v261_v62 = vld [vmem:[%s14343_s1 + $0x8] sm:$0xff] }
  0x11   : > { %v589_v25 = vand.u32 4294901760, %v8180_v18  ;;  %v595_v30 = vand.u32 4294901760, %v8183_v19  ;;  %v8220_v33 = vsub.f32 %v269_v12, %v8177_v17  ;;  %s8227_s20 = scalar_lea.vmem %s14342_s0, %s7657_s16  ;;  %v8237_v38 = vand.u32 4294901760, %v266_v26  ;;  %v260_v8 = vld [vmem:[%s14343_s1] sm:$0xff]  ;;  %s14036_s12 = scalar_lea.vmem %s14347_s5, %s7657_s16 }
  0x12   : > { %285 = vmatpush.msra.mxu0 %v8143_v5  ;;  %7715 = vmatpush.msra.mxu2 %v8143_v5  ;;  %v572_v28 = vsub.f32 %v8166_v13, %v571_v20  ;;  %v578_v29 = vsub.f32 %v8169_v14, %v577_v21  ;;  %v584_v31 = vsub.f32 %v8172_v15, %v583_v22  ;;  %v14358_v39 = vand.u32 4294901760, %v8202_v27  ;;  %v228_v43 = vld [vmem:[%s8227_s20] sm:$0xff] }
  0x13   : > { %v590_v35 = vsub.f32 %v8180_v18, %v589_v25  ;;  %v8244_v41 = vsub.f32 %v268_v16, %v8195_v24  ;;  %v596_v42 = vsub.f32 %v8183_v19, %v595_v30  ;;  %v8252_v45 = vand.u32 4294901760, %v265_v36  ;;  %v244_v48 = vld [vmem:[%s8227_s20 + $0x80] sm:$0xff] }
  0x14   : > { %287 = vmatpush.msra.mxu0 %v8154_v9  ;;  %7716 = vmatpush.msra.mxu2 %v8154_v9  ;;  %v573_v34 = vand.u32 4294901760, %v572_v28  ;;  %v579_v37 = vand.u32 4294901760, %v578_v29  ;;  %v585_v44 = vand.u32 4294901760, %v584_v31  ;;  %v14356_v46 = vand.u32 4294901760, %v8220_v33 }
  0x15   : > { %v8256_v47 = vsub.f32 %v267_v23, %v8217_v32  ;;  %v591_v49 = vand.u32 4294901760, %v590_v35  ;;  %v8261_v50 = vand.u32 4294901760, %v264_v40  ;;  %v602_v52 = vsub.f32 %v8202_v27, %v14358_v39  ;;  %v245_v35 = vld [vmem:[%s8227_s20 + $0x88] sm:$0xff] }
  0x16   : > { %289 = vmatpush.msra.mxu0 %v8156_v10  ;;  %7717 = vmatpush.msra.mxu2 %v8156_v10  ;;  %v14355_v53 = vand.u32 4294901760, %v8244_v41  ;;  %v8274_v55 = vsub.f32 %v266_v26, %v8237_v38  ;;  %v8276_v56 = vand.u32 4294901760, %v228_v43  ;;  %v597_v57 = vand.u32 4294901760, %v596_v42 }
  0x17   : > { %574 = vmatpush.msra.mxu1 %v573_v34  ;;  %7729 = vmatpush.msra.mxu3 %v573_v34  ;;  %v8280_v58 = vand.u32 4294901760, %v244_v48  ;;  %v608_v59 = vsub.f32 %v8220_v33, %v14356_v46  ;;  %v8285_v60 = vand.u32 4294901760, %v263_v51  ;;  %v14352_v61 = vand.u32 4294901760, %v8256_v47  ;;  %v229_v34 = vld [vmem:[%s8227_s20 + $0x8] sm:$0xff] }
  0x18   : > { %291 = vmatpush.msra.mxu0 %v8158_v11  ;;  %7718 = vmatpush.msra.mxu2 %v8158_v11  ;;  %v8292_v63 = vsub.f32 %v265_v36, %v8252_v45  ;;  %v8296_v0 = vand.u32 4294901760, %v262_v54  ;;  %v8299_v1 = vsub.f32 %v264_v40, %v8261_v50  ;;  %v603_v2 = vand.u32 4294901760, %v602_v52 }
  0x19   : > { %580 = vmatpush.msra.mxu1 %v579_v37  ;;  %7730 = vmatpush.msra.mxu3 %v579_v37  ;;  %v614_v6 = vsub.f32 %v8244_v41, %v14355_v53  ;;  %v14351_v7 = vand.u32 4294901760, %v8274_v55  ;;  %v8309_v12 = vsub.f32 %v228_v43, %v8276_v56  ;;  %v8313_v16 = vand.u32 4294901760, %v261_v62 }
  0x1a   : > { %293 = vmatpush.msra.mxu0 %v8177_v17  ;;  %7719 = vmatpush.msra.mxu2 %v8177_v17  ;;  %v8316_v23 = vsub.f32 %v244_v48, %v8280_v58  ;;  %v609_v26 = vand.u32 4294901760, %v608_v59  ;;  %v620_v28 = vsub.f32 %v8256_v47, %v14352_v61  ;;  %v14350_v29 = vand.u32 4294901760, %v8292_v63  ;;  %v246_v61 = vld [vmem:[%s8227_s20 + $0x90] sm:$0xff] }
  0x1b   : > { %586 = vmatpush.msra.mxu1 %v585_v44  ;;  %7731 = vmatpush.msra.mxu3 %v585_v44  ;;  %v8323_v31 = vsub.f32 %v263_v51, %v8285_v60  ;;  %v8329_v36 = vand.u32 4294901760, %v260_v8  ;;  %v14348_v37 = vand.u32 4294901760, %v8299_v1  ;;  %v615_v40 = vand.u32 4294901760, %v614_v6 }
  0x1c   : > { %295 = vmatpush.msra.mxu0 %v8195_v24  ;;  %7720 = vmatpush.msra.mxu2 %v8195_v24  ;;  %v626_v42 = vsub.f32 %v8274_v55, %v14351_v7  ;;  %v14349_v43 = vand.u32 4294901760, %v8309_v12  ;;  %v8337_v44 = vsub.f32 %v262_v54, %v8296_v0  ;;  %v14353_v48 = vand.u32 4294901760, %v8316_v23 }
  0x1d   : > { %592 = vmatpush.msra.mxu1 %v591_v49  ;;  %7732 = vmatpush.msra.mxu3 %v591_v49  ;;  %v8342_v49 = vand.u32 4294901760, %v229_v34  ;;  %v8344_v51 = vand.u32 4294901760, %v245_v35  ;;  %v621_v52 = vand.u32 4294901760, %v620_v28  ;;  %v14354_v54 = vand.u32 4294901760, %v8323_v31 }
  0x1e   : > { %297 = vmatpush.msra.mxu0 %v8217_v32  ;;  %7721 = vmatpush.msra.mxu2 %v8217_v32  ;;  %v8351_v59 = vsub.f32 %v261_v62, %v8313_v16  ;;  %v627_v6 = vand.u32 4294901760, %v626_v42  ;;  %v14357_v28 = vand.u32 4294901760, %v8337_v44  ;;  %v8363_v62 = vsub.f32 %v260_v8, %v8329_v36 }
  0x1f   : > { %598 = vmatpush.msra.mxu1 %v597_v57  ;;  %7733 = vmatpush.msra.mxu3 %v597_v57  ;;  %v632_v57 = vsub.f32 %v8292_v63, %v14350_v29  ;;  %v8374_v42 = vsub.f32 %v245_v35, %v8344_v51  ;;  %v644_v8 = vsub.f32 %v8323_v31, %v14354_v54  ;;  %v8394_v46 = vand.u32 4294901760, %v246_v61 }
  0x20   : > { %299 = vmatpush.msra.mxu0 %v8237_v38  ;;  %7722 = vmatpush.msra.mxu2 %v8237_v38  ;;  %v14359_v7 = vand.u32 4294901760, %v8351_v59 }
  0x21   : > { %604 = vmatpush.msra.mxu1 %v603_v2  ;;  %7734 = vmatpush.msra.mxu3 %v603_v2  ;;  %v638_v2 = vsub.f32 %v8299_v1, %v14348_v37  ;;  %v443_v37 = vsub.f32 %v8316_v23, %v14353_v48  ;;  %v633_v29 = vand.u32 4294901760, %v632_v57  ;;  %v14360_v57 = vand.u32 4294901760, %v8363_v62 }
  0x22   : > { %301 = vmatpush.msra.mxu0 %v8252_v45  ;;  %7723 = vmatpush.msra.mxu2 %v8252_v45 }
  0x23   : > { %610 = vmatpush.msra.mxu1 %v609_v26  ;;  %7735 = vmatpush.msra.mxu3 %v609_v26  ;;  %v315_v26 = vsub.f32 %v8309_v12, %v14349_v43  ;;  %v230_v43 = vld [vmem:[%s8227_s20 + $0x10] sm:$0xff]  ;;  %v444_v54 = vand.u32 4294901760, %v443_v37 }
  0x24   : > { %303 = vmatpush.msra.mxu0 %v8261_v50  ;;  %7724 = vmatpush.msra.mxu2 %v8261_v50  ;;  %v8388_v48 = vand.u32 4294901760, %v230_v43 }
  0x25   : > { %616 = vmatpush.msra.mxu1 %v615_v40  ;;  %7736 = vmatpush.msra.mxu3 %v615_v40  ;;  %v8371_v40 = vsub.f32 %v229_v34, %v8342_v49  ;;  %v639_v34 = vand.u32 4294901760, %v638_v2  ;;  %v316_v35 = vand.u32 4294901760, %v315_v26  ;;  %v14361_v2 = vand.u32 4294901760, %v8374_v42 }
  0x26   : > { %305 = vmatpush.msra.mxu0 %v8285_v60  ;;  %7725 = vmatpush.msra.mxu2 %v8285_v60  ;;  %v656_v26 = vsub.f32 %v8351_v59, %v14359_v7  ;;  %v8405_v39 = vsub.f32 %v230_v43, %v8388_v48  ;;  %v247_v7 = vld [vmem:[%s8227_s20 + $0x98] sm:$0xff] }
  0x27   : > { %622 = vmatpush.msra.mxu1 %v621_v52  ;;  %7737 = vmatpush.msra.mxu3 %v621_v52  ;;  %v650_v52 = vsub.f32 %v8337_v44, %v14357_v28  ;;  %v14382_v53 = vand.u32 4294901760, %v8371_v40  ;;  %v662_v28 = vsub.f32 %v8363_v62, %v14360_v57 }
  0x28   : > { %307 = vmatpush.msra.mxu0 %v8296_v0  ;;  %7726 = vmatpush.msra.mxu2 %v8296_v0  ;;  %v657_v57 = vand.u32 4294901760, %v656_v26 }
  0x29   : > { %628 = vmatpush.msra.mxu1 %v627_v6  ;;  %7738 = vmatpush.msra.mxu3 %v627_v6  ;;  %v645_v6 = vand.u32 4294901760, %v644_v8  ;;  %v651_v37 = vand.u32 4294901760, %v650_v52  ;;  %v451_v8 = vsub.f32 %v8374_v42, %v14361_v2  ;;  %v231_v52 = vld [vmem:[%s8227_s20 + $0x18] sm:$0xff]  ;;  %v663_v43 = vand.u32 4294901760, %v662_v28 }
  0x2a   : > { %309 = vmatpush.msra.mxu0 %v8313_v16  ;;  %7727 = vmatpush.msra.mxu2 %v8313_v16 }
  0x2b   : > { %634 = vmatpush.msra.mxu1 %v633_v29  ;;  %7739 = vmatpush.msra.mxu3 %v633_v29  ;;  %v323_v29 = vsub.f32 %v8371_v40, %v14382_v53 }
  0x2c   : > { %311 = vmatpush.msra.mxu0 %v8329_v36  ;;  %7728 = vmatpush.msra.mxu2 %v8329_v36 }
  0x2d   : > { %640 = vmatpush.msra.mxu1 %v639_v34  ;;  %7740 = vmatpush.msra.mxu3 %v639_v34  ;;  %v8414_v34 = vsub.f32 %v246_v61, %v8394_v46  ;;  %v324_v2 = vand.u32 4294901760, %v323_v29  ;;  %v452_v61 = vand.u32 4294901760, %v451_v8 }
  0x2e   : > { %317 = vmatmul.f32.vlgmr.msra.gmra.mxu0 %v316_v35  ;;  %445 = vmatmul.f32.vlgmr.msra.gmra.mxu2 %v444_v54  ;;  %v8421_v54 = vand.u32 4294901760, %v231_v52  ;;  %v8423_v35 = vand.u32 4294901760, %v247_v7 }
  0x2f   : > { %646 = vmatpush.msra.mxu1 %v645_v6  ;;  %7741 = vmatpush.msra.mxu3 %v645_v6  ;;  %v14381_v6 = vand.u32 4294901760, %v8405_v39  ;;  %v14368_v26 = vand.u32 4294901760, %v8414_v34 }
  0x30   : > { %796 = vmatpush.msrb.mxu2 %v8166_v13  ;;  %1231 = vmatpush.msrb.mxu0 %v571_v20  ;;  %v8434_v13 = vsub.f32 %v231_v52, %v8421_v54  ;;  %v14897_v52 = vand.u32 4294901760, %v8220_v33 }
  0x31   : > { %652 = vmatpush.msra.mxu1 %v651_v37  ;;  %7742 = vmatpush.msra.mxu3 %v651_v37  ;;  %v331_v20 = vsub.f32 %v8405_v39, %v14381_v6 }
  0x32   : > { %799 = vmatpush.msrb.mxu2 %v8169_v14  ;;  %1235 = vmatpush.msrb.mxu0 %v577_v21  ;;  %v459_v14 = vsub.f32 %v8414_v34, %v14368_v26  ;;  %v8443_v21 = vsub.f32 %v247_v7, %v8423_v35  ;;  %v14378_v37 = vand.u32 4294901760, %v8434_v13 }
  0x33   : > { %658 = vmatpush.msra.mxu1 %v657_v57  ;;  %7743 = vmatpush.msra.mxu3 %v657_v57  ;;  %v332_v7 = vand.u32 4294901760, %v331_v20 }
  0x34   : > { %802 = vmatpush.msrb.mxu2 %v8172_v15  ;;  %1239 = vmatpush.msrb.mxu0 %v583_v22  ;;  %v232_v15 = vld [vmem:[%s8227_s20 + $0x20] sm:$0xff]  ;;  %v14367_v29 = vand.u32 4294901760, %v8443_v21 }
  0x35   : > { %664 = vmatpush.msra.mxu1 %v663_v43  ;;  %7744 = vmatpush.msra.mxu3 %v663_v43  ;;  %v248_v22 = vld [vmem:[%s8227_s20 + $0xa0] sm:$0xff]  ;;  %v8451_v28 = vand.u32 4294901760, %v232_v15 }
  0x36   : > { %325 = vmatmul.f32.gmra.mxu0 %v324_v2  ;;  %453 = vmatmul.f32.gmra.mxu2 %v452_v61  ;;  %v8453_v57 = vand.u32 4294901760, %v248_v22  ;;  %v460_v2 = vand.u32 4294901760, %v459_v14 }
  0x37   : > { %666 = vmatmul.f32.vlgmr.msra.gmra.mxu1 %v8276_v56  ;;  %730 = vmatmul.f32.vlgmr.msra.gmra.mxu3 %v8280_v58 }
  0x38   : > { %1004 = vmatpush.msrb.mxu3 %v8139_v3  ;;  %805 = vmatpush.msrb.mxu2 %v8180_v18  ;;  %v14896_v18 = vand.u32 4294901760, %v8202_v27 }
  0x39   : > { %1243 = vmatpush.msrb.mxu0 %v589_v25  ;;  %1422 = vmatpush.msrb.mxu1 %v8139_v3  ;;  %v8468_v3 = vsub.f32 %v232_v15, %v8451_v28  ;;  %v8480_v25 = vsub.f32 %v248_v22, %v8453_v57  ;;  %v14898_v15 = vand.u32 4294901760, %v8244_v41  ;;  %v14899_v22 = vand.u32 4294901760, %v8256_v47 }
  0x3a   : > { %1006 = vmatpush.msrb.mxu3 %v8141_v4  ;;  %808 = vmatpush.msrb.mxu2 %v8183_v19  ;;  %v339_v19 = vsub.f32 %v8434_v13, %v14378_v37  ;;  %v257_v37 = vld [vmem:[%s8227_s20 + $0xe8] sm:$0xff] }
  0x3b   : > { %1247 = vmatpush.msrb.mxu0 %v595_v30  ;;  %1424 = vmatpush.msrb.mxu1 %v8141_v4  ;;  %v467_v4 = vsub.f32 %v8443_v21, %v14367_v29  ;;  %v233_v30 = vld [vmem:[%s8227_s20 + $0x28] sm:$0xff]  ;;  %v14366_v20 = vand.u32 4294901760, %v8480_v25  ;;  %v8722_v6 = vand.u32 4294901760, %v257_v37 }
  0x3c   : > { %1008 = vmatpush.msrb.mxu3 %v8143_v5  ;;  %811 = vmatpush.msrb.mxu2 %v8202_v27  ;;  %v249_v27 = vld [vmem:[%s8227_s20 + $0xa8] sm:$0xff]  ;;  %v8489_v8 = vand.u32 4294901760, %v233_v30  ;;  %v340_v43 = vand.u32 4294901760, %v339_v19 }
  0x3d   : > { %1251 = vmatpush.msrb.mxu0 %v14896_v18  ;;  %1426 = vmatpush.msrb.mxu1 %v8143_v5  ;;  %v14377_v5 = vand.u32 4294901760, %v8468_v3  ;;  %v468_v61 = vand.u32 4294901760, %v467_v4  ;;  %v8495_v14 = vand.u32 4294901760, %v249_v27  ;;  %v14900_v18 = vand.u32 4294901760, %v8274_v55  ;;  %14917 = vst [vmem:[#allocation12_spill] sm:$0xff] %v8722_v6 }
  0x3e   : > { %333 = vmatmul.f32.gmra.mxu0 %v332_v7  ;;  %461 = vmatmul.f32.gmra.mxu2 %v460_v2  ;;  %v234_v7 = vld [vmem:[%s8227_s20 + $0x30] sm:$0xff] }
  0x3f   : > { %670 = vmatmul.f32.gmra.mxu1 %v8342_v49  ;;  %734 = vmatmul.f32.gmra.mxu3 %v8344_v51  ;;  %v250_v2 = vld [vmem:[%s8227_s20 + $0xb0] sm:$0xff] }
  0x40   : > { %1010 = vmatpush.msrb.mxu3 %v8154_v9  ;;  %814 = vmatpush.msrb.mxu2 %v8220_v33  ;;  %v8508_v33 = vsub.f32 %v233_v30, %v8489_v8  ;;  %v8530_v30 = vand.u32 4294901760, %v234_v7 }
  0x41   : > { %1255 = vmatpush.msrb.mxu0 %v14897_v52  ;;  %1428 = vmatpush.msrb.mxu1 %v8154_v9  ;;  %v347_v9 = vsub.f32 %v8468_v3, %v14377_v5  ;;  %v14901_v52 = vand.u32 4294901760, %v8292_v63  ;;  %v241_v5 = vld [vmem:[%s8227_s20 + $0x68] sm:$0xff] }
  0x42   : > { %1012 = vmatpush.msrb.mxu3 %v8156_v10  ;;  %817 = vmatpush.msrb.mxu2 %v8244_v41  ;;  %v8517_v41 = vsub.f32 %v249_v27, %v8495_v14  ;;  %v8532_v27 = vand.u32 4294901760, %v250_v2 }
  0x43   : > { %1259 = vmatpush.msrb.mxu0 %v14898_v15  ;;  %1430 = vmatpush.msrb.mxu1 %v8156_v10  ;;  %v475_v10 = vsub.f32 %v8480_v25, %v14366_v20 }
  0x44   : > { %1014 = vmatpush.msrb.mxu3 %v8158_v11  ;;  %820 = vmatpush.msrb.mxu2 %v8256_v47  ;;  %v14376_v47 = vand.u32 4294901760, %v8508_v33  ;;  %v14365_v4 = vand.u32 4294901760, %v8517_v41 }
  0x45   : > { %1263 = vmatpush.msrb.mxu0 %v14899_v22  ;;  %1432 = vmatpush.msrb.mxu1 %v8158_v11  ;;  %v348_v11 = vand.u32 4294901760, %v347_v9  ;;  %v476_v19 = vand.u32 4294901760, %v475_v10  ;;  %v14903_v9 = vand.u32 4294901760, %v8323_v31 }
  0x46   : > { %341 = vmatmul.f32.gmra.mxu0 %v340_v43  ;;  %469 = vmatmul.f32.gmra.mxu2 %v468_v61  ;;  %v8554_v43 = vsub.f32 %v250_v2, %v8532_v27  ;;  %v235_v61 = vld [vmem:[%s8227_s20 + $0x38] sm:$0xff] }
  0x47   : > { %674 = vmatmul.f32.gmra.mxu1 %v8388_v48  ;;  %738 = vmatmul.f32.gmra.mxu3 %v8394_v46  ;;  %v8562_v15 = vand.u32 4294901760, %v235_v61 }
  0x48   : > { %1016 = vmatpush.msrb.mxu3 %v8177_v17  ;;  %823 = vmatpush.msrb.mxu2 %v8274_v55  ;;  %v14902_v55 = vand.u32 4294901760, %v8299_v1 }
  0x49   : > { %1267 = vmatpush.msrb.mxu0 %v14900_v18  ;;  %1434 = vmatpush.msrb.mxu1 %v8177_v17  ;;  %v355_v17 = vsub.f32 %v8508_v33, %v14376_v47 }
  0x4a   : > { %1018 = vmatpush.msrb.mxu3 %v8195_v24  ;;  %826 = vmatpush.msrb.mxu2 %v8292_v63  ;;  %v483_v63 = vsub.f32 %v8517_v41, %v14365_v4  ;;  %v239_v4 = vld [vmem:[%s8227_s20 + $0x58] sm:$0xff] }
  0x4b   : > { %1271 = vmatpush.msrb.mxu0 %v14901_v52  ;;  %1436 = vmatpush.msrb.mxu1 %v8195_v24  ;;  %v8551_v24 = vsub.f32 %v234_v7, %v8530_v30  ;;  %v14364_v7 = vand.u32 4294901760, %v8554_v43 }
  0x4c   : > { %1020 = vmatpush.msrb.mxu3 %v8217_v32  ;;  %829 = vmatpush.msrb.mxu2 %v8299_v1  ;;  %v251_v1 = vld [vmem:[%s8227_s20 + $0xb8] sm:$0xff]  ;;  %v484_v22 = vand.u32 4294901760, %v483_v63 }
  0x4d   : > { %1275 = vmatpush.msrb.mxu0 %v14902_v55  ;;  %1438 = vmatpush.msrb.mxu1 %v8217_v32  ;;  %v356_v32 = vand.u32 4294901760, %v355_v17  ;;  %v14374_v10 = vand.u32 4294901760, %v8551_v24  ;;  %v8569_v2 = vand.u32 4294901760, %v251_v1  ;;  %v14906_v17 = vand.u32 4294901760, %v8363_v62 }
  0x4e   : > { %349 = vmatmul.f32.gmra.mxu0 %v348_v11  ;;  %477 = vmatmul.f32.gmra.mxu2 %v476_v19  ;;  %v14904_v11 = vand.u32 4294901760, %v8337_v44  ;;  %v236_v19 = vld [vmem:[%s8227_s20 + $0x40] sm:$0xff] }
  0x4f   : > { %678 = vmatmul.f32.gmra.mxu1 %v8421_v54  ;;  %742 = vmatmul.f32.gmra.mxu3 %v8423_v35  ;;  %v8591_v18 = vsub.f32 %v251_v1, %v8569_v2  ;;  %v8600_v52 = vand.u32 4294901760, %v236_v19 }
  0x50   : > { %1022 = vmatpush.msrb.mxu3 %v8237_v38  ;;  %832 = vmatpush.msrb.mxu2 %v8323_v31  ;;  %v14905_v31 = vand.u32 4294901760, %v8351_v59 }
  0x51   : > { %1279 = vmatpush.msrb.mxu0 %v14903_v9  ;;  %1440 = vmatpush.msrb.mxu1 %v8237_v38  ;;  %v8579_v38 = vsub.f32 %v235_v61, %v8562_v15  ;;  %v14363_v61 = vand.u32 4294901760, %v8591_v18 }
  0x52   : > { %1024 = vmatpush.msrb.mxu3 %v8252_v45  ;;  %835 = vmatpush.msrb.mxu2 %v8337_v44  ;;  %v363_v44 = vsub.f32 %v8551_v24, %v14374_v10 }
  0x53   : > { %1283 = vmatpush.msrb.mxu0 %v14904_v11  ;;  %1442 = vmatpush.msrb.mxu1 %v8252_v45  ;;  %v491_v45 = vsub.f32 %v8554_v43, %v14364_v7 }
  0x54   : > { %1026 = vmatpush.msrb.mxu3 %v8261_v50  ;;  %838 = vmatpush.msrb.mxu2 %v8351_v59  ;;  %v252_v59 = vld [vmem:[%s8227_s20 + $0xc0] sm:$0xff]  ;;  %v364_v55 = vand.u32 4294901760, %v363_v44 }
  0x55   : > { %1287 = vmatpush.msrb.mxu0 %v14905_v31  ;;  %1444 = vmatpush.msrb.mxu1 %v8261_v50  ;;  %v14372_v50 = vand.u32 4294901760, %v8579_v38  ;;  %v492_v63 = vand.u32 4294901760, %v491_v45  ;;  %v8606_v1 = vand.u32 4294901760, %v252_v59 }
  0x56   : > { %357 = vmatmul.f32.gmra.mxu0 %v356_v32  ;;  %485 = vmatmul.f32.gmra.mxu2 %v484_v22  ;;  %v499_v32 = vsub.f32 %v8591_v18, %v14363_v61  ;;  %v253_v22 = vld [vmem:[%s8227_s20 + $0xc8] sm:$0xff] }
  0x57   : > { %682 = vmatmul.f32.gmra.mxu1 %v8451_v28  ;;  %746 = vmatmul.f32.gmra.mxu3 %v8453_v57  ;;  %14907 = vst [vmem:[#allocation2_spill] sm:$0xff] %v8606_v1  ;;  %v8622_v9 = vsub.f32 %v252_v59, %v8606_v1 }
  0x58   : > { %1028 = vmatpush.msrb.mxu3 %v8285_v60  ;;  %841 = vmatpush.msrb.mxu2 %v8363_v62  ;;  %v371_v62 = vsub.f32 %v8579_v38, %v14372_v50  ;;  %v500_v31 = vand.u32 4294901760, %v499_v32  ;;  %v256_v50 = vld [vmem:[%s8227_s20 + $0xe0] sm:$0xff] }
  0x59   : > { %1291 = vmatpush.msrb.mxu0 %v14906_v17  ;;  %1446 = vmatpush.msrb.mxu1 %v8285_v60  ;;  %v8615_v60 = vsub.f32 %v236_v19, %v8600_v52  ;;  %14908 = vst [vmem:[#allocation3_spill] sm:$0xff] %v8622_v9  ;;  %v14362_v44 = vand.u32 4294901760, %v8622_v9  ;;  %v8634_v19 = vand.u32 4294901760, %v253_v22 }
  0x5a   : > { %1030 = vmatpush.msrb.mxu3 %v8296_v0 }
  0x5b   : > { %1448 = vmatpush.msrb.mxu1 %v8296_v0  ;;  %v237_v0 = vld [vmem:[%s8227_s20 + $0x48] sm:$0xff]  ;;  %v14371_v11 = vand.u32 4294901760, %v8615_v60  ;;  %14909 = vst [vmem:[#allocation4_spill] sm:$0xff] %v8634_v19 }
  0x5c   : > { %1032 = vmatpush.msrb.mxu3 %v8313_v16  ;;  %v8632_v45 = vand.u32 4294901760, %v237_v0 }
  0x5d   : > { %1450 = vmatpush.msrb.mxu1 %v8313_v16  ;;  %v372_v16 = vand.u32 4294901760, %v371_v62  ;;  %v379_v59 = vsub.f32 %v8615_v60, %v14371_v11  ;;  %v254_v62 = vld [vmem:[%s8227_s20 + $0xd0] sm:$0xff] }
  0x5e   : > { %365 = vmatmul.f32.gmra.mxu0 %v364_v55  ;;  %493 = vmatmul.f32.gmra.mxu2 %v492_v63  ;;  %v8643_v17 = vsub.f32 %v237_v0, %v8632_v45  ;;  %v8646_v55 = vsub.f32 %v253_v22, %v8634_v19  ;;  %v238_v63 = vld [vmem:[%s8227_s20 + $0x50] sm:$0xff]  ;;  %v8656_v61 = vand.u32 4294901760, %v254_v62 }
  0x5f   : > { %686 = vmatmul.f32.gmra.mxu1 %v8489_v8  ;;  %750 = vmatmul.f32.gmra.mxu3 %v8495_v14  ;;  %v380_v32 = vand.u32 4294901760, %v379_v59 }
  0x60   : > { %1034 = vmatpush.msrb.mxu3 %v8329_v36  ;;  %1452 = vmatpush.msrb.mxu1 %v8329_v36  ;;  %v507_v36 = vsub.f32 %v8622_v9, %v14362_v44  ;;  %14910 = vst [vmem:[#allocation5_spill] sm:$0xff] %v8646_v55  ;;  %v14370_v44 = vand.u32 4294901760, %v8643_v17  ;;  %v14369_v0 = vand.u32 4294901760, %v8646_v55 }
  0x61   : > { %14911 = vst [vmem:[#allocation6_spill] sm:$0xff] %v8656_v61 }
  0x62   : > { %v387_v7 = vsub.f32 %v8643_v17, %v14370_v44  ;;  %v515_v59 = vsub.f32 %v8646_v55, %v14369_v0  ;;  %v259_v55 = vld [vmem:[%s8227_s20 + $0xf8] sm:$0xff] }
  0x63   : > { %v8766_v9 = vand.u32 4294901760, %v259_v55 }
  0x64   : > { %v388_v20 = vand.u32 4294901760, %v387_v7  ;;  %v516_v29 = vand.u32 4294901760, %v515_v59  ;;  %v240_v59 = vld [vmem:[%s8227_s20 + $0x60] sm:$0xff] }
  0x65   : > { %v8698_v10 = vand.u32 4294901760, %v240_v59  ;;  %14921 = vst [vmem:[#allocation16_spill] sm:$0xff] %v8766_v9 }
  0x66   : > { %373 = vmatmul.f32.gmra.mxu0 %v372_v16  ;;  %501 = vmatmul.f32.gmra.mxu2 %v500_v31  ;;  %v8652_v16 = vand.u32 4294901760, %v238_v63  ;;  %v508_v31 = vand.u32 4294901760, %v507_v36  ;;  %v8668_v36 = vsub.f32 %v254_v62, %v8656_v61 }
  0x67   : > { %690 = vmatmul.f32.gmra.mxu1 %v8530_v30  ;;  %754 = vmatmul.f32.gmra.mxu3 %v8532_v27 }
  0x68   : > { %v8659_v22 = vsub.f32 %v238_v63, %v8652_v16  ;;  %14912 = vst [vmem:[#allocation7_spill] sm:$0xff] %v8668_v36  ;;  %v255_v63 = vld [vmem:[%s8227_s20 + $0xd8] sm:$0xff]  ;;  %v14375_v26 = vand.u32 4294901760, %v8668_v36 }
  0x69   : > { %v8678_v0 = vand.u32 4294901760, %v255_v63 }
  0x6a   : > { %v523_v11 = vsub.f32 %v8668_v36, %v14375_v26  ;;  %v8700_v26 = vand.u32 4294901760, %v256_v50 }
  0x6b   : > { %14913 = vst [vmem:[#allocation8_spill] sm:$0xff] %v8678_v0  ;;  %v8690_v7 = vsub.f32 %v255_v63, %v8678_v0 }
  0x6c   : > { %14915 = vst [vmem:[#allocation10_spill] sm:$0xff] %v8700_v26 }
  0x6d   : > { %14914 = vst [vmem:[#allocation9_spill] sm:$0xff] %v8690_v7 }
  0x6e   : > { %381 = vmatmul.f32.gmra.mxu0 %v380_v32  ;;  %509 = vmatmul.f32.gmra.mxu2 %v508_v31  ;;  %v14373_v32 = vand.u32 4294901760, %v8659_v22  ;;  %v8675_v31 = vand.u32 4294901760, %v239_v4 }
  0x6f   : > { %694 = vmatmul.f32.gmra.mxu1 %v8562_v15  ;;  %758 = vmatmul.f32.gmra.mxu3 %v8569_v2 }
  0x70   : > { %v395_v62 = vsub.f32 %v8659_v22, %v14373_v32  ;;  %v8684_v44 = vsub.f32 %v239_v4, %v8675_v31 }
  0x72   : > { %v396_v32 = vand.u32 4294901760, %v395_v62  ;;  %v14379_v4 = vand.u32 4294901760, %v8684_v44  ;;  %v8709_v62 = vsub.f32 %v240_v59, %v8698_v10 }
  0x74   : > { %v403_v63 = vsub.f32 %v8684_v44, %v14379_v4 }
  0x76   : > { %389 = vmatmul.f32.gmra.mxu0 %v388_v20  ;;  %517 = vmatmul.f32.gmra.mxu2 %v516_v29  ;;  %v524_v20 = vand.u32 4294901760, %v523_v11  ;;  %v14380_v29 = vand.u32 4294901760, %v8690_v7  ;;  %v8712_v11 = vsub.f32 %v256_v50, %v8700_v26 }
  0x77   : > { %698 = vmatmul.f32.gmra.mxu1 %v8600_v52  ;;  %762 = vmatmul.f32.gmra.mxu3 %v8606_v1 }
  0x78   : > { %v531_v47 = vsub.f32 %v8690_v7, %v14380_v29  ;;  %14916 = vst [vmem:[#allocation11_spill] sm:$0xff] %v8712_v11  ;;  %v14385_v29 = vand.u32 4294901760, %v8709_v62  ;;  %v14390_v59 = vand.u32 4294901760, %v8712_v11  ;;  %v242_v7 = vld [vmem:[%s8227_s20 + $0x70] sm:$0xff] }
  0x7a   : > { %v532_v4 = vand.u32 4294901760, %v531_v47  ;;  %v411_v53 = vsub.f32 %v8709_v62, %v14385_v29  ;;  %v8734_v47 = vsub.f32 %v257_v37, %v8722_v6 }
  0x7c   : > { %14918 = vst [vmem:[#allocation13_spill] sm:$0xff] %v8734_v47  ;;  %v412_v29 = vand.u32 4294901760, %v411_v53 }
  0x7e   : > { %397 = vmatmul.f32.gmra.mxu0 %v396_v32  ;;  %525 = vmatmul.f32.gmra.mxu2 %v524_v20  ;;  %v404_v32 = vand.u32 4294901760, %v403_v63  ;;  %v8718_v20 = vand.u32 4294901760, %v241_v5  ;;  %v539_v63 = vsub.f32 %v8712_v11, %v14390_v59 }
  0x7f   : > { %702 = vmatmul.f32.gmra.mxu1 %v8632_v45  ;;  %766 = vmatmul.f32.gmra.mxu3 %v8634_v19  ;;  %v14402_v19 = vand.u32 4294901760, %v8734_v47 }
  0x80   : > { %v8725_v50 = vsub.f32 %v241_v5, %v8718_v20  ;;  %v258_v5 = vld [vmem:[%s8227_s20 + $0xf0] sm:$0xff]  ;;  %v540_v36 = vand.u32 4294901760, %v539_v63  ;;  %v243_v63 = vld [vmem:[%s8227_s20 + $0x78] sm:$0xff] }
  0x81   : > { %v8744_v59 = vand.u32 4294901760, %v258_v5 }
  0x83   : > { %14919 = vst [vmem:[#allocation14_spill] sm:$0xff] %v8744_v59  ;;  %v8756_v53 = vsub.f32 %v258_v5, %v8744_v59 }
  0x85   : > { %14920 = vst [vmem:[#allocation15_spill] sm:$0xff] %v8756_v53 }
  0x86   : > { %405 = vmatmul.f32.gmra.mxu0 %v404_v32  ;;  %533 = vmatmul.f32.gmra.mxu2 %v532_v4  ;;  %v14399_v4 = vand.u32 4294901760, %v8725_v50  ;;  %v8741_v32 = vand.u32 4294901760, %v242_v7 }
  0x87   : > { %706 = vmatmul.f32.gmra.mxu1 %v8652_v16  ;;  %770 = vmatmul.f32.gmra.mxu3 %v8656_v61  ;;  %v547_v61 = vsub.f32 %v8734_v47, %v14402_v19  ;;  %v7675_v19 = vld [vmem:[%s14343_s1 + $0xf8] sm:$0xff]  ;;  %v8781_v47 = vsub.f32 %v259_v55, %v8766_v9 }
  0x88   : > { %v419_v37 = vsub.f32 %v8725_v50, %v14399_v4  ;;  %v8750_v11 = vsub.f32 %v242_v7, %v8741_v32 }
  0x89   : > { %v548_v7 = vand.u32 4294901760, %v547_v61  ;;  %14922 = vst [vmem:[#allocation17_spill] sm:$0xff] %v8781_v47  ;;  %v14414_v55 = vand.u32 4294901760, %v8781_v47 }
  0x8a   : > { %v420_v1 = vand.u32 4294901760, %v419_v37  ;;  %v14408_v4 = vand.u32 4294901760, %v8750_v11 }
  0x8c   : > { %v427_v5 = vsub.f32 %v8750_v11, %v14408_v4 }
  0x8e   : > { %413 = vmatmul.f32.gmra.mxu0 %v412_v29  ;;  %541 = vmatmul.f32.gmra.mxu2 %v540_v36  ;;  %v14407_v29 = vand.u32 4294901760, %v8756_v53  ;;  %v8764_v36 = vand.u32 4294901760, %v243_v63 }
  0x8f   : > { %710 = vmatmul.f32.gmra.mxu1 %v8675_v31  ;;  %774 = vmatmul.f32.gmra.mxu3 %v8678_v0  ;;  %v8783_v0 = vand.u32 4294901760, %v7675_v19 }
  0x90   : > { %v555_v61 = vsub.f32 %v8756_v53, %v14407_v29  ;;  %v8778_v37 = vsub.f32 %v243_v63, %v8764_v36 }
  0x91   : > { %14923 = vst [vmem:[#allocation18_spill] sm:$0xff] %v8783_v0  ;;  %1733 = vmatpush.msra.mxu2 %v8783_v0  ;;  %2456 = vmatpush.msra.mxu1 %v8783_v0 }
  0x92   : > { %v556_v29 = vand.u32 4294901760, %v555_v61  ;;  %v14417_v63 = vand.u32 4294901760, %v8778_v37 }
  0x96   : > { %421 = vmatmul.f32.gmra.mxu0 %v420_v1  ;;  %549 = vmatmul.f32.gmra.mxu2 %v548_v7  ;;  %v8789_v1 = vsub.f32 %v7675_v19, %v8783_v0  ;;  %v428_v7 = vand.u32 4294901760, %v427_v5  ;;  %v435_v19 = vsub.f32 %v8778_v37, %v14417_v63  ;;  %v563_v5 = vsub.f32 %v8781_v47, %v14414_v55 }
  0x97   : > { %714 = vmatmul.f32.gmra.mxu1 %v8698_v10  ;;  %778 = vmatmul.f32.gmra.mxu3 %v8700_v26  ;;  %v14927_v63 = vand.u32 4294901760, %v8309_v12 }
  0x98   : > { %v14415_v4 = vand.u32 4294901760, %v8789_v1  ;;  %2248 = vmatpush.msra.mxu0 %v8789_v1  ;;  %v436_v0 = vand.u32 4294901760, %v435_v19  ;;  %v564_v26 = vand.u32 4294901760, %v563_v5 }
  0x9a   : > { %v2024_v53 = vsub.f32 %v8789_v1, %v14415_v4 }
  0x9c   : > { %v2025_v61 = vand.u32 4294901760, %v2024_v53 }
  0x9e   : > { %429 = vmatmul.f32.gmra.mxu0 %v428_v7  ;;  %557 = vmatmul.f32.gmra.mxu2 %v556_v29  ;;  %v7674_v29 = vld [vmem:[%s14343_s1 + $0xf0] sm:$0xff] }
  0x9f   : > { %718 = vmatmul.f32.gmra.mxu1 %v8718_v20  ;;  %782 = vmatmul.f32.gmra.mxu3 %v8722_v6  ;;  %v8810_v7 = vand.u32 4294901760, %v7674_v29 }
  0xa0   : > { %2026 = vmatpush.msra.mxu3 %v2025_v61 }
  0xa1   : > { %14924 = vst [vmem:[#allocation19_spill] sm:$0xff] %v8810_v7  ;;  %1735 = vmatpush.msra.mxu2 %v8810_v7  ;;  %v8816_v53 = vsub.f32 %v7674_v29, %v8810_v7  ;;  %2458 = vmatpush.msra.mxu1 %v8810_v7  ;;  %v8833_v29 = vld [vmem:[%s14344_s2] ss:$0 sm:$0xff] }
  0xa3   : > { %14925 = vst [vmem:[#allocation20_spill] sm:$0xff] %v8816_v53  ;;  %v14416_v19 = vand.u32 4294901760, %v8816_v53  ;;  %2251 = vmatpush.msra.mxu0 %v8816_v53 }
  0xa6   : > { %437 = vmatmul.f32.gmra.mxu0 %v436_v0  ;;  %565 = vmatmul.f32.gmra.mxu2 %v564_v26  ;;  %v2030_v26 = vsub.f32 %v8816_v53, %v14416_v19  ;;  %v7673_v19 = vld [vmem:[%s14343_s1 + $0xe8] sm:$0xff] }
  0xa7   : > { %722 = vmatmul.f32.gmra.mxu1 %v8741_v32  ;;  %786 = vmatmul.f32.gmra.mxu3 %v8744_v59 }
  0xa8   : > { %v2031_v0 = vand.u32 4294901760, %v2030_v26  ;;  %v8844_v26 = vand.u32 4294901760, %v7673_v19 }
  0xaa   : > { %2032 = vmatpush.msra.mxu3 %v2031_v0  ;;  %14926 = vst [vmem:[#allocation21_spill] sm:$0xff] %v8844_v26  ;;  %1737 = vmatpush.msra.mxu2 %v8844_v26 }
  0xab   : > { %v8821_v5 = vpop.f32.mrf.mxu0  ;;  %2460 = vmatpush.msra.mxu1 %v8844_v26 }
  0xae   : > { %844 = vmatmul.f32.vlgmr.msrb.gmra.mxu2 %v8309_v12  ;;  %1293 = vmatmul.f32.vlgmr.msrb.gmra.mxu0 %v8276_v56 }
  0xaf   : > { %726 = vmatmul.f32.gmra.mxu1 %v8764_v36  ;;  %790 = vmatmul.f32.gmra.mxu3 %v8766_v9  ;;  %v8852_v9 = vsub.f32 %v7673_v19, %v8844_v26  ;;  %v14930_v26 = vand.u32 4294901760, %v8371_v40 }
  0xb1   : > { %v446_v61 = vpop.f32.mrf.mxu2  ;;  %14928 = vst [vmem:[#allocation22_spill] sm:$0xff] %v8852_v9  ;;  %v14429_v7 = vand.u32 4294901760, %v8852_v9  ;;  %2254 = vmatpush.msra.mxu0 %v8852_v9 }
  0xb2   : > { %v447_v0 = vadd.f32 %v8833_v29, %v446_v61 }
  0xb3   : > { %v8835_v55 = vpop.f32.mrf.mxu0 }
  0xb4   : > { %v8837_v4 = vpop.f32.mrf.mxu1 }
  0xb6   : > { %849 = vmatmul.f32.gmra.mxu2 %v8371_v40  ;;  %1297 = vmatmul.f32.gmra.mxu0 %v8342_v49 }
  0xb7   : > { %1038 = vmatmul.f32.vlgmr.msrb.gmra.mxu3 %v14927_v63  ;;  %1454 = vmatmul.f32.vlgmr.msrb.gmra.mxu1 %v8276_v56  ;;  %v2036_v56 = vsub.f32 %v8852_v9, %v14429_v7 }
  0xb9   : > { %v454_v47 = vpop.f32.mrf.mxu2  ;;  %v2037_v63 = vand.u32 4294901760, %v2036_v56  ;;  %v7672_v56 = vld [vmem:[%s14343_s1 + $0xe0] sm:$0xff] }
  0xba   : > { %v731_v59 = vpop.f32.mrf.mxu3  ;;  %v455_v19 = vadd.f32 %v8833_v29, %v454_v47  ;;  %v8883_v40 = vand.u32 4294901760, %v7672_v56  ;;  %v14933_v47 = vand.u32 4294901760, %v8405_v39 }
  0xbb   : > { %v8857_v6 = vadd.f32 %v731_v59, %v447_v0  ;;  %v8859_v61 = vpop.f32.mrf.mxu0  ;;  %2038 = vmatpush.msra.mxu3 %v2037_v63 }
  0xbc   : > { %v8861_v12 = vpop.f32.mrf.mxu1  ;;  %14932 = vst [vmem:[#allocation25_spill] sm:$0xff] %v8883_v40  ;;  %1739 = vmatpush.msra.mxu2 %v8883_v40  ;;  %2462 = vmatpush.msra.mxu1 %v8883_v40 }
  0xbd   : > { %14929 = vst [vmem:[#allocation23_spill] sm:$0xff] %v8857_v6 }
  0xbe   : > { %854 = vmatmul.f32.gmra.mxu2 %v8405_v39  ;;  %1301 = vmatmul.f32.gmra.mxu0 %v8388_v48 }
  0xbf   : > { %1044 = vmatmul.f32.gmra.mxu3 %v14930_v26  ;;  %1458 = vmatmul.f32.gmra.mxu1 %v8342_v49  ;;  %v8891_v26 = vsub.f32 %v7672_v56, %v8883_v40  ;;  %v14936_v40 = vand.u32 4294901760, %v8434_v13 }
  0xc1   : > { %v462_v59 = vpop.f32.mrf.mxu2  ;;  %14934 = vst [vmem:[#allocation26_spill] sm:$0xff] %v8891_v26  ;;  %2257 = vmatpush.msra.mxu0 %v8891_v26 }
  0xc2   : > { %v735_v0 = vpop.f32.mrf.mxu3  ;;  %v463_v49 = vadd.f32 %v8833_v29, %v462_v59 }
  0xc3   : > { %v8872_v6 = vadd.f32 %v735_v0, %v455_v19  ;;  %v8874_v53 = vpop.f32.mrf.mxu0  ;;  %v14432_v0 = vand.u32 4294901760, %v8891_v26 }
  0xc4   : > { %v8876_v7 = vpop.f32.mrf.mxu1 }
  0xc5   : > { %14931 = vst [vmem:[#allocation24_spill] sm:$0xff] %v8872_v6 }
  0xc6   : > { %859 = vmatmul.f32.gmra.mxu2 %v8434_v13  ;;  %1305 = vmatmul.f32.gmra.mxu0 %v8421_v54 }
  0xc7   : > { %1050 = vmatmul.f32.gmra.mxu3 %v14933_v47  ;;  %1462 = vmatmul.f32.gmra.mxu1 %v8388_v48  ;;  %v2042_v48 = vsub.f32 %v8891_v26, %v14432_v0 }
  0xc9   : > { %v470_v63 = vpop.f32.mrf.mxu2  ;;  %v2043_v56 = vand.u32 4294901760, %v2042_v48  ;;  %v7671_v48 = vld [vmem:[%s14343_s1 + $0xd8] sm:$0xff] }
  0xca   : > { %v739_v19 = vpop.f32.mrf.mxu3  ;;  %v471_v47 = vadd.f32 %v8833_v29, %v470_v63  ;;  %v8922_v13 = vand.u32 4294901760, %v7671_v48 }
  0xcb   : > { %v8896_v6 = vadd.f32 %v739_v19, %v463_v49  ;;  %v8898_v59 = vpop.f32.mrf.mxu0  ;;  %2044 = vmatpush.msra.mxu3 %v2043_v56 }
  0xcc   : > { %v8900_v39 = vpop.f32.mrf.mxu1  ;;  %14938 = vst [vmem:[#allocation29_spill] sm:$0xff] %v8922_v13  ;;  %1741 = vmatpush.msra.mxu2 %v8922_v13  ;;  %v8930_v63 = vsub.f32 %v7671_v48, %v8922_v13  ;;  %2464 = vmatpush.msra.mxu1 %v8922_v13  ;;  %v14942_v13 = vand.u32 4294901760, %v8508_v33 }
  0xcd   : > { %14935 = vst [vmem:[#allocation27_spill] sm:$0xff] %v8896_v6 }
  0xce   : > { %864 = vmatmul.f32.gmra.mxu2 %v8468_v3  ;;  %1309 = vmatmul.f32.gmra.mxu0 %v8451_v28  ;;  %14940 = vst [vmem:[#allocation30_spill] sm:$0xff] %v8930_v63 }
  0xcf   : > { %1056 = vmatmul.f32.gmra.mxu3 %v14936_v40  ;;  %1466 = vmatmul.f32.gmra.mxu1 %v8421_v54  ;;  %v14939_v40 = vand.u32 4294901760, %v8468_v3 }
  0xd0   : > { %2260 = vmatpush.msra.mxu0 %v8930_v63 }
  0xd1   : > { %v478_v49 = vpop.f32.mrf.mxu2 }
  0xd2   : > { %v743_v19 = vpop.f32.mrf.mxu3  ;;  %v479_v54 = vadd.f32 %v8833_v29, %v478_v49 }
  0xd3   : > { %v8911_v6 = vadd.f32 %v743_v19, %v471_v47  ;;  %v8913_v9 = vpop.f32.mrf.mxu0  ;;  %v14435_v19 = vand.u32 4294901760, %v8930_v63 }
  0xd4   : > { %v8915_v0 = vpop.f32.mrf.mxu1 }
  0xd5   : > { %14937 = vst [vmem:[#allocation28_spill] sm:$0xff] %v8911_v6 }
  0xd6   : > { %869 = vmatmul.f32.gmra.mxu2 %v8508_v33  ;;  %1313 = vmatmul.f32.gmra.mxu0 %v8489_v8 }
  0xd7   : > { %1062 = vmatmul.f32.gmra.mxu3 %v14939_v40  ;;  %1470 = vmatmul.f32.gmra.mxu1 %v8451_v28  ;;  %v2048_v28 = vsub.f32 %v8930_v63, %v14435_v19 }
  0xd9   : > { %v486_v56 = vpop.f32.mrf.mxu2  ;;  %v2049_v48 = vand.u32 4294901760, %v2048_v28  ;;  %v7670_v28 = vld [vmem:[%s14343_s1 + $0xd0] sm:$0xff] }
  0xda   : > { %v747_v47 = vpop.f32.mrf.mxu3  ;;  %v487_v40 = vadd.f32 %v8833_v29, %v486_v56  ;;  %v8961_v33 = vand.u32 4294901760, %v7670_v28 }
  0xdb   : > { %v8935_v6 = vadd.f32 %v747_v47, %v479_v54  ;;  %v8937_v49 = vpop.f32.mrf.mxu0  ;;  %2050 = vmatpush.msra.mxu3 %v2049_v48 }
  0xdc   : > { %v8939_v3 = vpop.f32.mrf.mxu1  ;;  %14944 = vst [vmem:[#allocation33_spill] sm:$0xff] %v8961_v33  ;;  %1743 = vmatpush.msra.mxu2 %v8961_v33  ;;  %v8969_v56 = vsub.f32 %v7670_v28, %v8961_v33  ;;  %2466 = vmatpush.msra.mxu1 %v8961_v33  ;;  %v14948_v33 = vand.u32 4294901760, %v8579_v38 }
  0xdd   : > { %14941 = vst [vmem:[#allocation31_spill] sm:$0xff] %v8935_v6 }
  0xde   : > { %874 = vmatmul.f32.gmra.mxu2 %v8551_v24  ;;  %1317 = vmatmul.f32.gmra.mxu0 %v8530_v30  ;;  %14946 = vst [vmem:[#allocation34_spill] sm:$0xff] %v8969_v56 }
  0xdf   : > { %1068 = vmatmul.f32.gmra.mxu3 %v14942_v13  ;;  %1474 = vmatmul.f32.gmra.mxu1 %v8489_v8  ;;  %v14945_v13 = vand.u32 4294901760, %v8551_v24 }
  0xe0   : > { %2263 = vmatpush.msra.mxu0 %v8969_v56 }
  0xe1   : > { %v494_v54 = vpop.f32.mrf.mxu2 }
  0xe2   : > { %v751_v47 = vpop.f32.mrf.mxu3  ;;  %v495_v8 = vadd.f32 %v8833_v29, %v494_v54 }
  0xe3   : > { %v8950_v6 = vadd.f32 %v751_v47, %v487_v40  ;;  %v8952_v26 = vpop.f32.mrf.mxu0  ;;  %v14438_v47 = vand.u32 4294901760, %v8969_v56 }
  0xe4   : > { %v8954_v19 = vpop.f32.mrf.mxu1 }
  0xe5   : > { %14943 = vst [vmem:[#allocation32_spill] sm:$0xff] %v8950_v6 }
  0xe6   : > { %879 = vmatmul.f32.gmra.mxu2 %v8579_v38  ;;  %1321 = vmatmul.f32.gmra.mxu0 %v8562_v15 }
  0xe7   : > { %1074 = vmatmul.f32.gmra.mxu3 %v14945_v13  ;;  %1478 = vmatmul.f32.gmra.mxu1 %v8530_v30  ;;  %v2054_v30 = vsub.f32 %v8969_v56, %v14438_v47 }
  0xe9   : > { %v502_v48 = vpop.f32.mrf.mxu2  ;;  %v2055_v28 = vand.u32 4294901760, %v2054_v30  ;;  %v7669_v30 = vld [vmem:[%s14343_s1 + $0xc8] sm:$0xff] }
  0xea   : > { %v755_v40 = vpop.f32.mrf.mxu3  ;;  %v503_v13 = vadd.f32 %v8833_v29, %v502_v48  ;;  %v9000_v38 = vand.u32 4294901760, %v7669_v30 }
  0xeb   : > { %v8974_v6 = vadd.f32 %v755_v40, %v495_v8  ;;  %v8976_v54 = vpop.f32.mrf.mxu0  ;;  %2056 = vmatpush.msra.mxu3 %v2055_v28 }
  0xec   : > { %v8978_v24 = vpop.f32.mrf.mxu1  ;;  %14950 = vst [vmem:[#allocation37_spill] sm:$0xff] %v9000_v38  ;;  %1745 = vmatpush.msra.mxu2 %v9000_v38  ;;  %v9008_v48 = vsub.f32 %v7669_v30, %v9000_v38  ;;  %2468 = vmatpush.msra.mxu1 %v9000_v38  ;;  %v14954_v38 = vand.u32 4294901760, %v8643_v17 }
  0xed   : > { %14947 = vst [vmem:[#allocation35_spill] sm:$0xff] %v8974_v6 }
  0xee   : > { %884 = vmatmul.f32.gmra.mxu2 %v8615_v60  ;;  %1325 = vmatmul.f32.gmra.mxu0 %v8600_v52  ;;  %14952 = vst [vmem:[#allocation38_spill] sm:$0xff] %v9008_v48 }
  0xef   : > { %1080 = vmatmul.f32.gmra.mxu3 %v14948_v33  ;;  %1482 = vmatmul.f32.gmra.mxu1 %v8562_v15  ;;  %v14951_v33 = vand.u32 4294901760, %v8615_v60 }
  0xf0   : > { %2266 = vmatpush.msra.mxu0 %v9008_v48 }
  0xf1   : > { %v510_v8 = vpop.f32.mrf.mxu2 }
  0xf2   : > { %v759_v40 = vpop.f32.mrf.mxu3  ;;  %v511_v15 = vadd.f32 %v8833_v29, %v510_v8 }
  0xf3   : > { %v8989_v6 = vadd.f32 %v759_v40, %v503_v13  ;;  %v8991_v63 = vpop.f32.mrf.mxu0  ;;  %v14441_v40 = vand.u32 4294901760, %v9008_v48 }
  0xf4   : > { %v8993_v47 = vpop.f32.mrf.mxu1 }
  0xf5   : > { %14949 = vst [vmem:[#allocation36_spill] sm:$0xff] %v8989_v6 }
  0xf6   : > { %889 = vmatmul.f32.gmra.mxu2 %v8643_v17  ;;  %1329 = vmatmul.f32.gmra.mxu0 %v8632_v45 }
  0xf7   : > { %1086 = vmatmul.f32.gmra.mxu3 %v14951_v33  ;;  %1486 = vmatmul.f32.gmra.mxu1 %v8600_v52  ;;  %v2060_v52 = vsub.f32 %v9008_v48, %v14441_v40 }
  0xf9   : > { %v518_v28 = vpop.f32.mrf.mxu2  ;;  %v2061_v30 = vand.u32 4294901760, %v2060_v52  ;;  %v7668_v52 = vld [vmem:[%s14343_s1 + $0xc0] sm:$0xff] }
  0xfa   : > { %v763_v13 = vpop.f32.mrf.mxu3  ;;  %v519_v33 = vadd.f32 %v8833_v29, %v518_v28  ;;  %v9039_v17 = vand.u32 4294901760, %v7668_v52 }
  0xfb   : > { %v9013_v6 = vadd.f32 %v763_v13, %v511_v15  ;;  %v9015_v8 = vpop.f32.mrf.mxu0  ;;  %2062 = vmatpush.msra.mxu3 %v2061_v30 }
  0xfc   : > { %v9017_v60 = vpop.f32.mrf.mxu1  ;;  %14956 = vst [vmem:[#allocation41_spill] sm:$0xff] %v9039_v17  ;;  %1747 = vmatpush.msra.mxu2 %v9039_v17  ;;  %v9047_v28 = vsub.f32 %v7668_v52, %v9039_v17  ;;  %2470 = vmatpush.msra.mxu1 %v9039_v17  ;;  %v14960_v17 = vand.u32 4294901760, %v8684_v44 }
  0xfd   : > { %14953 = vst [vmem:[#allocation39_spill] sm:$0xff] %v9013_v6 }
  0xfe   : > { %894 = vmatmul.f32.gmra.mxu2 %v8659_v22  ;;  %1333 = vmatmul.f32.gmra.mxu0 %v8652_v16  ;;  %14958 = vst [vmem:[#allocation42_spill] sm:$0xff] %v9047_v28 }
  0xff   : > { %1092 = vmatmul.f32.gmra.mxu3 %v14954_v38  ;;  %1490 = vmatmul.f32.gmra.mxu1 %v8632_v45  ;;  %v14957_v38 = vand.u32 4294901760, %v8659_v22 }
 0x100   : > { %2269 = vmatpush.msra.mxu0 %v9047_v28 }
 0x101   : > { %v526_v15 = vpop.f32.mrf.mxu2 }
 0x102   : > { %v767_v13 = vpop.f32.mrf.mxu3  ;;  %v527_v45 = vadd.f32 %v8833_v29, %v526_v15 }
 0x103   : > { %v9028_v6 = vadd.f32 %v767_v13, %v519_v33  ;;  %v9030_v56 = vpop.f32.mrf.mxu0  ;;  %v14444_v13 = vand.u32 4294901760, %v9047_v28 }
 0x104   : > { %v9032_v40 = vpop.f32.mrf.mxu1 }
 0x105   : > { %14955 = vst [vmem:[#allocation40_spill] sm:$0xff] %v9028_v6 }
 0x106   : > { %899 = vmatmul.f32.gmra.mxu2 %v8684_v44  ;;  %1337 = vmatmul.f32.gmra.mxu0 %v8675_v31 }
 0x107   : > { %1098 = vmatmul.f32.gmra.mxu3 %v14957_v38  ;;  %1494 = vmatmul.f32.gmra.mxu1 %v8652_v16  ;;  %v2066_v16 = vsub.f32 %v9047_v28, %v14444_v13 }
 0x109   : > { %v534_v30 = vpop.f32.mrf.mxu2  ;;  %v2067_v52 = vand.u32 4294901760, %v2066_v16  ;;  %v7667_v16 = vld [vmem:[%s14343_s1 + $0xb8] sm:$0xff] }
 0x10a   : > { %v771_v33 = vpop.f32.mrf.mxu3  ;;  %v535_v38 = vadd.f32 %v8833_v29, %v534_v30  ;;  %v9076_v28 = vand.u32 4294901760, %v7667_v16 }
 0x10b   : > { %v9052_v6 = vadd.f32 %v771_v33, %v527_v45  ;;  %v9054_v15 = vpop.f32.mrf.mxu0  ;;  %2068 = vmatpush.msra.mxu3 %v2067_v52 }
 0x10c   : > { %v9056_v22 = vpop.f32.mrf.mxu1  ;;  %14962 = vst [vmem:[#allocation45_spill] sm:$0xff] %v9076_v28  ;;  %1749 = vmatpush.msra.mxu2 %v9076_v28  ;;  %2472 = vmatpush.msra.mxu1 %v9076_v28 }
 0x10d   : > { %14959 = vst [vmem:[#allocation43_spill] sm:$0xff] %v9052_v6 }
 0x10e   : > { %904 = vmatmul.f32.gmra.mxu2 %v8709_v62  ;;  %1341 = vmatmul.f32.gmra.mxu0 %v8698_v10 }
 0x10f   : > { %1104 = vmatmul.f32.gmra.mxu3 %v14960_v17  ;;  %1498 = vmatmul.f32.gmra.mxu1 %v8675_v31  ;;  %v14963_v31 = vand.u32 4294901760, %v8709_v62  ;;  %v9085_v17 = vsub.f32 %v7667_v16, %v9076_v28 }
 0x111   : > { %v542_v45 = vpop.f32.mrf.mxu2  ;;  %v14446_v52 = vand.u32 4294901760, %v9085_v17  ;;  %2272 = vmatpush.msra.mxu0 %v9085_v17 }
 0x112   : > { %v775_v33 = vpop.f32.mrf.mxu3  ;;  %v543_v44 = vadd.f32 %v8833_v29, %v542_v45 }
 0x113   : > { %v9067_v6 = vadd.f32 %v775_v33, %v535_v38  ;;  %v9069_v48 = vpop.f32.mrf.mxu0 }
 0x114   : > { %v9071_v13 = vpop.f32.mrf.mxu1 }
 0x115   : > { %14961 = vst [vmem:[#allocation44_spill] sm:$0xff] %v9067_v6  ;;  %v14965_v6 = vand.u32 4294901760, %v8725_v50 }
 0x116   : > { %909 = vmatmul.f32.gmra.mxu2 %v8725_v50  ;;  %1345 = vmatmul.f32.gmra.mxu0 %v8718_v20  ;;  %v14967_v50 = vand.u32 4294901760, %v8750_v11 }
 0x117   : > { %1110 = vmatmul.f32.gmra.mxu3 %v14963_v31  ;;  %1502 = vmatmul.f32.gmra.mxu1 %v8698_v10  ;;  %v2072_v10 = vsub.f32 %v9085_v17, %v14446_v52 }
 0x119   : > { %v550_v30 = vpop.f32.mrf.mxu2  ;;  %v2073_v16 = vand.u32 4294901760, %v2072_v10 }
 0x11a   : > { %v779_v38 = vpop.f32.mrf.mxu3  ;;  %v551_v31 = vadd.f32 %v8833_v29, %v550_v30 }
 0x11b   : > { %v9091_v33 = vadd.f32 %v779_v38, %v543_v44  ;;  %v9093_v45 = vpop.f32.mrf.mxu0  ;;  %2074 = vmatpush.msra.mxu3 %v2073_v16 }
 0x11c   : > { %v9098_v62 = vpop.f32.mrf.mxu1 }
 0x11d   : > { %14964 = vst [vmem:[#allocation46_spill] sm:$0xff] %v9091_v33 }
 0x11e   : > { %914 = vmatmul.f32.gmra.mxu2 %v8750_v11  ;;  %1349 = vmatmul.f32.gmra.mxu0 %v8741_v32 }
 0x11f   : > { %1116 = vmatmul.f32.gmra.mxu3 %v14965_v6  ;;  %1506 = vmatmul.f32.gmra.mxu1 %v8718_v20 }
 0x121   : > { %v558_v44 = vpop.f32.mrf.mxu2 }
 0x122   : > { %v783_v38 = vpop.f32.mrf.mxu3  ;;  %v559_v30 = vadd.f32 %v8833_v29, %v558_v44  ;;  %v14969_v44 = vand.u32 4294901760, %v8778_v37 }
 0x123   : > { %v9106_v33 = vadd.f32 %v783_v38, %v551_v31  ;;  %v9108_v52 = vpop.f32.mrf.mxu0 }
 0x124   : > { %v9110_v28 = vpop.f32.mrf.mxu1 }
 0x125   : > { %14966 = vst [vmem:[#allocation47_spill] sm:$0xff] %v9106_v33 }
 0x126   : > { %919 = vmatmul.f32.gmra.mxu2 %v8778_v37  ;;  %1353 = vmatmul.f32.gmra.mxu0 %v8764_v36 }
 0x127   : > { %1122 = vmatmul.f32.gmra.mxu3 %v14967_v50  ;;  %1510 = vmatmul.f32.gmra.mxu1 %v8741_v32  ;;  %v319_v50 = vadd.f32 %v8833_v29, %v8821_v5  ;;  %v14972_v5 = vand.u32 4294901760, %v8316_v23 }
 0x129   : > { %v566_v6 = vpop.f32.mrf.mxu2  ;;  %v668_v37 = vadd.f32 %v8837_v4, %v319_v50 }
 0x12a   : > { %v787_v20 = vpop.f32.mrf.mxu3  ;;  %v567_v38 = vadd.f32 %v8833_v29, %v566_v6 }
 0x12b   : > { %v9118_v10 = vadd.f32 %v787_v20, %v559_v30  ;;  %v9120_v16 = vpop.f32.mrf.mxu0  ;;  %v7666_v30 = vld [vmem:[%s14343_s1 + $0xb0] sm:$0xff] }
 0x12c   : > { %v9122_v31 = vpop.f32.mrf.mxu1  ;;  %v9139_v33 = vand.u32 4294901760, %v7666_v30 }
 0x12d   : > { %14968 = vst [vmem:[#allocation48_spill] sm:$0xff] %v9118_v10 }
 0x12e   : > { %924 = vmatmul.f32.gmra.mxu2 %v8316_v23  ;;  %1357 = vmatmul.f32.gmra.mxu0 %v8280_v58  ;;  %14971 = vst [vmem:[#allocation50_spill] sm:$0xff] %v9139_v33 }
 0x12f   : > { %1128 = vmatmul.f32.gmra.mxu3 %v14969_v44  ;;  %1514 = vmatmul.f32.gmra.mxu1 %v8764_v36  ;;  %v9145_v36 = vsub.f32 %v7666_v30, %v9139_v33 }
 0x130   : > { %1751 = vmatpush.msra.mxu2 %v9139_v33  ;;  %2474 = vmatpush.msra.mxu1 %v9139_v33  ;;  %v327_v33 = vadd.f32 %v8833_v29, %v8835_v55 }
 0x131   : > { %v845_v11 = vpop.f32.mrf.mxu2  ;;  %2275 = vmatpush.msra.mxu0 %v9145_v36 }
 0x132   : > { %v791_v32 = vpop.f32.mrf.mxu3  ;;  %v846_v44 = vadd.f32 %v845_v11, %v668_v37  ;;  %v672_v11 = vadd.f32 %v8861_v12, %v327_v33  ;;  %v14973_v37 = vand.u32 4294901760, %v8374_v42  ;;  %v14974_v33 = vand.u32 4294901760, %v8414_v34 }
 0x133   : > { %v9135_v20 = vadd.f32 %v791_v32, %v567_v38  ;;  %v9137_v10 = vpop.f32.mrf.mxu0  ;;  %v14449_v38 = vand.u32 4294901760, %v9145_v36 }
 0x134   : > { %v9141_v6 = vpop.f32.mrf.mxu1 }
 0x135   : > { %14970 = vst [vmem:[#allocation49_spill] sm:$0xff] %v9135_v20  ;;  %v2078_v30 = vsub.f32 %v9145_v36, %v14449_v38 }
 0x136   : > { %929 = vmatmul.f32.gmra.mxu2 %v8374_v42  ;;  %1361 = vmatmul.f32.gmra.mxu0 %v8344_v51 }
 0x137   : > { %1134 = vmatmul.f32.gmra.mxu3 %v14972_v5  ;;  %1518 = vmatmul.f32.gmra.mxu1 %v8280_v58  ;;  %v2079_v50 = vand.u32 4294901760, %v2078_v30  ;;  %v335_v30 = vadd.f32 %v8833_v29, %v8859_v61 }
 0x139   : > { %v850_v32 = vpop.f32.mrf.mxu2  ;;  %2080 = vmatpush.msra.mxu3 %v2079_v50  ;;  %v676_v61 = vadd.f32 %v8876_v7, %v335_v30 }
 0x13a   : > { %v1039_v20 = vpop.f32.mrf.mxu3  ;;  %v851_v55 = vadd.f32 %v850_v32, %v672_v11 }
 0x13b   : > { %v9161_v4 = vadd.f32 %v1039_v20, %v846_v44  ;;  %v9163_v23 = vpop.f32.mrf.mxu0  ;;  %v7665_v44 = vld [vmem:[%s14343_s1 + $0xa8] sm:$0xff] }
 0x13c   : > { %v9165_v58 = vpop.f32.mrf.mxu1  ;;  %v9182_v12 = vand.u32 4294901760, %v7665_v44 }
 0x13e   : > { %934 = vmatmul.f32.gmra.mxu2 %v8414_v34  ;;  %1365 = vmatmul.f32.gmra.mxu0 %v8394_v46 }
 0x13f   : > { %1140 = vmatmul.f32.gmra.mxu3 %v14973_v37  ;;  %1522 = vmatmul.f32.gmra.mxu1 %v8344_v51  ;;  %v9188_v51 = vsub.f32 %v7665_v44, %v9182_v12  ;;  %v343_v44 = vadd.f32 %v8833_v29, %v8874_v53 }
 0x140   : > { %1753 = vmatpush.msra.mxu2 %v9182_v12  ;;  %2476 = vmatpush.msra.mxu1 %v9182_v12 }
 0x141   : > { %v855_v20 = vpop.f32.mrf.mxu2  ;;  %v14450_v32 = vand.u32 4294901760, %v9188_v51  ;;  %2278 = vmatpush.msra.mxu0 %v9188_v51 }
 0x142   : > { %v1045_v5 = vpop.f32.mrf.mxu3  ;;  %v856_v11 = vadd.f32 %v855_v20, %v676_v61  ;;  %v680_v20 = vadd.f32 %v8900_v39, %v343_v44  ;;  %v14975_v61 = vand.u32 4294901760, %v8443_v21 }
 0x143   : > { %v9178_v50 = vadd.f32 %v1045_v5, %v851_v55  ;;  %v9180_v38 = vpop.f32.mrf.mxu0  ;;  %v2084_v55 = vsub.f32 %v9188_v51, %v14450_v32 }
 0x144   : > { %v9184_v42 = vpop.f32.mrf.mxu1 }
 0x145   : > { %v2085_v30 = vand.u32 4294901760, %v2084_v55  ;;  %v7664_v55 = vld [vmem:[%s14343_s1 + $0xa0] sm:$0xff] }
 0x146   : > { %939 = vmatmul.f32.gmra.mxu2 %v8443_v21  ;;  %1369 = vmatmul.f32.gmra.mxu0 %v8423_v35  ;;  %v9225_v39 = vand.u32 4294901760, %v7664_v55 }
 0x147   : > { %1146 = vmatmul.f32.gmra.mxu3 %v14974_v33  ;;  %1526 = vmatmul.f32.gmra.mxu1 %v8394_v46 }
 0x148   : > { %2086 = vmatpush.msra.mxu3 %v2085_v30  ;;  %1755 = vmatpush.msra.mxu2 %v9225_v39 }
 0x149   : > { %v860_v37 = vpop.f32.mrf.mxu2  ;;  %2478 = vmatpush.msra.mxu1 %v9225_v39 }
 0x14a   : > { %v1051_v5 = vpop.f32.mrf.mxu3  ;;  %v861_v53 = vadd.f32 %v860_v37, %v680_v20  ;;  %v14976_v37 = vand.u32 4294901760, %v8480_v25 }
 0x14b   : > { %v9204_v7 = vadd.f32 %v1051_v5, %v856_v11  ;;  %v9206_v34 = vpop.f32.mrf.mxu0  ;;  %v351_v5 = vadd.f32 %v8833_v29, %v8898_v59 }
 0x14c   : > { %v9208_v46 = vpop.f32.mrf.mxu1 }
 0x14d   : > { %v684_v59 = vadd.f32 %v8915_v0, %v351_v5 }
 0x14e   : > { %944 = vmatmul.f32.gmra.mxu2 %v8480_v25  ;;  %1373 = vmatmul.f32.gmra.mxu0 %v8453_v57 }
 0x14f   : > { %1152 = vmatmul.f32.gmra.mxu3 %v14975_v61  ;;  %1530 = vmatmul.f32.gmra.mxu1 %v8423_v35  ;;  %v9231_v35 = vsub.f32 %v7664_v55, %v9225_v39  ;;  %v359_v55 = vadd.f32 %v8833_v29, %v8913_v9 }
 0x151   : > { %v865_v33 = vpop.f32.mrf.mxu2  ;;  %v14451_v44 = vand.u32 4294901760, %v9231_v35  ;;  %2281 = vmatpush.msra.mxu0 %v9231_v35 }
 0x152   : > { %v1057_v11 = vpop.f32.mrf.mxu3  ;;  %v866_v20 = vadd.f32 %v865_v33, %v684_v59  ;;  %v688_v33 = vadd.f32 %v8939_v3, %v359_v55  ;;  %v14977_v59 = vand.u32 4294901760, %v8517_v41 }
 0x153   : > { %v9221_v30 = vadd.f32 %v1057_v11, %v861_v53  ;;  %v9223_v32 = vpop.f32.mrf.mxu0  ;;  %v2090_v53 = vsub.f32 %v9231_v35, %v14451_v44 }
 0x154   : > { %v9227_v21 = vpop.f32.mrf.mxu1 }
 0x155   : > { %v2091_v5 = vand.u32 4294901760, %v2090_v53  ;;  %v7663_v53 = vld [vmem:[%s14343_s1 + $0x98] sm:$0xff] }
 0x156   : > { %949 = vmatmul.f32.gmra.mxu2 %v8517_v41  ;;  %1377 = vmatmul.f32.gmra.mxu0 %v8495_v14  ;;  %v9268_v3 = vand.u32 4294901760, %v7663_v53 }
 0x157   : > { %1158 = vmatmul.f32.gmra.mxu3 %v14976_v37  ;;  %1534 = vmatmul.f32.gmra.mxu1 %v8453_v57 }
 0x158   : > { %2092 = vmatpush.msra.mxu3 %v2091_v5  ;;  %1757 = vmatpush.msra.mxu2 %v9268_v3 }
 0x159   : > { %v870_v61 = vpop.f32.mrf.mxu2  ;;  %2480 = vmatpush.msra.mxu1 %v9268_v3 }
 0x15a   : > { %v1063_v11 = vpop.f32.mrf.mxu3  ;;  %v871_v9 = vadd.f32 %v870_v61, %v688_v33  ;;  %v14978_v61 = vand.u32 4294901760, %v8554_v43 }
 0x15b   : > { %v9247_v0 = vadd.f32 %v1063_v11, %v866_v20  ;;  %v9249_v25 = vpop.f32.mrf.mxu0  ;;  %v367_v11 = vadd.f32 %v8833_v29, %v8937_v49 }
 0x15c   : > { %v9251_v57 = vpop.f32.mrf.mxu1 }
 0x15d   : > { %v692_v49 = vadd.f32 %v8954_v19, %v367_v11 }
 0x15e   : > { %954 = vmatmul.f32.gmra.mxu2 %v8554_v43  ;;  %1381 = vmatmul.f32.gmra.mxu0 %v8532_v27 }
 0x15f   : > { %1164 = vmatmul.f32.gmra.mxu3 %v14977_v59  ;;  %1538 = vmatmul.f32.gmra.mxu1 %v8495_v14  ;;  %v9274_v14 = vsub.f32 %v7663_v53, %v9268_v3  ;;  %v375_v53 = vadd.f32 %v8833_v29, %v8952_v26 }
 0x161   : > { %v875_v37 = vpop.f32.mrf.mxu2  ;;  %v14452_v55 = vand.u32 4294901760, %v9274_v14  ;;  %2284 = vmatpush.msra.mxu0 %v9274_v14 }
 0x162   : > { %v1069_v20 = vpop.f32.mrf.mxu3  ;;  %v876_v33 = vadd.f32 %v875_v37, %v692_v49  ;;  %v14982_v37 = vld [vmem:[#allocation2_spill] sm:$0xff]  ;;  %v696_v49 = vadd.f32 %v8978_v24, %v375_v53 }
 0x163   : > { %v9264_v5 = vadd.f32 %v1069_v20, %v871_v9  ;;  %v9266_v44 = vpop.f32.mrf.mxu0  ;;  %v2096_v9 = vsub.f32 %v9274_v14, %v14452_v55  ;;  %v14983_v55 = vand.u32 4294901760, %v8591_v18 }
 0x164   : > { %v9270_v41 = vpop.f32.mrf.mxu1 }
 0x165   : > { %v2097_v11 = vand.u32 4294901760, %v2096_v9  ;;  %v7662_v9 = vld [vmem:[%s14343_s1 + $0x90] sm:$0xff] }
 0x166   : > { %959 = vmatmul.f32.gmra.mxu2 %v8591_v18  ;;  %1385 = vmatmul.f32.gmra.mxu0 %v8569_v2  ;;  %v9311_v24 = vand.u32 4294901760, %v7662_v9 }
 0x167   : > { %1170 = vmatmul.f32.gmra.mxu3 %v14978_v61  ;;  %1542 = vmatmul.f32.gmra.mxu1 %v8532_v27  ;;  %v14981_v61 = vld [vmem:[#allocation3_spill] sm:$0xff] }
 0x168   : > { %2098 = vmatpush.msra.mxu3 %v2097_v11  ;;  %v383_v11 = vadd.f32 %v8833_v29, %v8976_v54  ;;  %14985 = vst [vmem:[#allocation2_spill] sm:$0xff] %v9311_v24  ;;  %1759 = vmatpush.msra.mxu2 %v9311_v24  ;;  %v14989_v53 = vand.u32 4294901760, %v14981_v61 }
 0x169   : > { %v880_v59 = vpop.f32.mrf.mxu2  ;;  %2482 = vmatpush.msra.mxu1 %v9311_v24 }
 0x16a   : > { %v1075_v20 = vpop.f32.mrf.mxu3  ;;  %v881_v26 = vadd.f32 %v880_v59, %v696_v49  ;;  %v14988_v59 = vld [vmem:[#allocation4_spill] sm:$0xff]  ;;  %v700_v54 = vadd.f32 %v8993_v47, %v383_v11 }
 0x16b   : > { %v9290_v19 = vadd.f32 %v1075_v20, %v876_v33  ;;  %v9292_v43 = vpop.f32.mrf.mxu0 }
 0x16c   : > { %14979 = vst [vmem:[#allocation51_spill] sm:$0xff] %v9292_v43  ;;  %v9294_v27 = vpop.f32.mrf.mxu1 }
 0x16d   : > { %14980 = vst [vmem:[#allocation52_spill] sm:$0xff] %v9294_v27 }
 0x16e   : > { %964 = vmatmul.f32.gmra.mxu2 %v14981_v61  ;;  %1389 = vmatmul.f32.gmra.mxu0 %v14982_v37 }
 0x16f   : > { %1176 = vmatmul.f32.gmra.mxu3 %v14983_v55  ;;  %1546 = vmatmul.f32.gmra.mxu1 %v8569_v2  ;;  %v9317_v2 = vsub.f32 %v7662_v9, %v9311_v24  ;;  %v14987_v55 = vld [vmem:[#allocation5_spill] sm:$0xff] }
 0x170   : > { %v14992_v24 = vand.u32 4294901760, %v14987_v55 }
 0x171   : > { %v885_v33 = vpop.f32.mrf.mxu2  ;;  %v14453_v49 = vand.u32 4294901760, %v9317_v2  ;;  %2287 = vmatpush.msra.mxu0 %v9317_v2 }
 0x172   : > { %v1081_v20 = vpop.f32.mrf.mxu3 }
 0x173   : > { %v9307_v43 = vadd.f32 %v1081_v20, %v881_v26  ;;  %v9309_v27 = vpop.f32.mrf.mxu0  ;;  %v886_v26 = vadd.f32 %v885_v33, %v700_v54  ;;  %v2102_v9 = vsub.f32 %v9317_v2, %v14453_v49  ;;  %v14991_v33 = vld [vmem:[#allocation6_spill] sm:$0xff]  ;;  %v1295_v49 = vadd.f32 %v9120_v16, %v9161_v4 }
 0x174   : > { %14984 = vst [vmem:[#allocation3_spill] sm:$0xff] %v9309_v27  ;;  %v9313_v18 = vpop.f32.mrf.mxu1 }
 0x175   : > { %14986 = vst [vmem:[#allocation53_spill] sm:$0xff] %v9313_v18  ;;  %v391_v18 = vadd.f32 %v8833_v29, %v8991_v63  ;;  %v2103_v11 = vand.u32 4294901760, %v2102_v9  ;;  %v7661_v9 = vld [vmem:[%s14343_s1 + $0x88] sm:$0xff] }
 0x176   : > { %969 = vmatmul.f32.gmra.mxu2 %v14987_v55  ;;  %1393 = vmatmul.f32.gmra.mxu0 %v14988_v59  ;;  %v9357_v4 = vand.u32 4294901760, %v7661_v9 }
 0x177   : > { %1182 = vmatmul.f32.gmra.mxu3 %v14989_v53  ;;  %1550 = vmatmul.f32.gmra.mxu1 %v14982_v37  ;;  %v14990_v53 = vld [vmem:[#allocation7_spill] sm:$0xff]  ;;  %v704_v54 = vadd.f32 %v9017_v60, %v391_v18  ;;  %v1456_v60 = vadd.f32 %v9141_v6, %v1295_v49  ;;  %v14995_v6 = vld [vmem:[#allocation8_spill] sm:$0xff] }
 0x178   : > { %2104 = vmatpush.msra.mxu3 %v2103_v11  ;;  %v399_v11 = vadd.f32 %v8833_v29, %v9015_v8  ;;  %1761 = vmatpush.msra.mxu2 %v9357_v4  ;;  %v9363_v55 = vsub.f32 %v7661_v9, %v9357_v4  ;;  %v1299_v8 = vadd.f32 %v9137_v10, %v9178_v50 }
 0x179   : > { %v890_v20 = vpop.f32.mrf.mxu2  ;;  %2484 = vmatpush.msra.mxu1 %v9357_v4  ;;  %7758 = vtanh.f32 %v1456_v60 }
 0x17a   : > { %v1087_v27 = vpop.f32.mrf.mxu3  ;;  %v891_v63 = vadd.f32 %v890_v20, %v704_v54  ;;  %v708_v49 = vadd.f32 %v9032_v40, %v399_v11  ;;  %v14996_v20 = vand.u32 4294901760, %v14990_v53  ;;  %v14455_v54 = vand.u32 4294901760, %v9363_v55  ;;  %2290 = vmatpush.msra.mxu0 %v9363_v55  ;;  %v7660_v40 = vld [vmem:[%s14343_s1 + $0x80] sm:$0xff] }
 0x17b   : > { %v9333_v47 = vadd.f32 %v1087_v27, %v886_v26  ;;  %v9335_v61 = vpop.f32.mrf.mxu0  ;;  %v1460_v50 = vadd.f32 %v9165_v58, %v1299_v8  ;;  %v9383_v9 = vand.u32 4294901760, %v7660_v40  ;;  %v14999_v8 = vand.u32 4294901760, %v8789_v1  ;;  %v15003_v1 = vld [vmem:[#allocation20_spill] sm:$0xff] }
 0x17c   : > { %v9337_v37 = vpop.f32.mrf.mxu1  ;;  %v2108_v10 = vsub.f32 %v9363_v55, %v14455_v54 }
 0x17d   : > { %1763 = vmatpush.msra.mxu2 %v9383_v9  ;;  %2486 = vmatpush.msra.mxu1 %v9383_v9  ;;  %7760 = vtanh.f32 %v1460_v50  ;;  %v15004_v50 = vand.u32 4294901760, %v15003_v1 }
 0x17e   : > { %974 = vmatmul.f32.gmra.mxu2 %v14990_v53  ;;  %1397 = vmatmul.f32.gmra.mxu0 %v14991_v33  ;;  %v2109_v60 = vand.u32 4294901760, %v2108_v10 }
 0x17f   : > { %1188 = vmatmul.f32.gmra.mxu3 %v14992_v24  ;;  %1554 = vmatmul.f32.gmra.mxu1 %v14988_v59  ;;  %v14994_v59 = vld [vmem:[#allocation9_spill] sm:$0xff]  ;;  %v7759_v58 = vpop.eup %7758 }
 0x180   : > { %2110 = vmatpush.msra.mxu3 %v2109_v60  ;;  %2683 = vmatpush.msrb.mxu2 %v14999_v8  ;;  %v1614_v54 = vmul.f32 %v7759_v58, %v7759_v58 }
 0x181   : > { %v895_v27 = vpop.f32.mrf.mxu2 }
 0x182   : > { %v1093_v26 = vpop.f32.mrf.mxu3  ;;  %2687 = vmatpush.msrb.mxu2 %v15004_v50 }
 0x183   : > { %v9353_v18 = vadd.f32 %v1093_v26, %v891_v63  ;;  %v9355_v16 = vpop.f32.mrf.mxu0  ;;  %v896_v63 = vadd.f32 %v895_v27, %v708_v49 }
 0x184   : > { %14993 = vst [vmem:[#allocation5_spill] sm:$0xff] %v9355_v16  ;;  %v9359_v24 = vpop.f32.mrf.mxu1  ;;  %v15008_v16 = vld [vmem:[#allocation26_spill] sm:$0xff] }
 0x186   : > { %979 = vmatmul.f32.gmra.mxu2 %v14994_v59  ;;  %1401 = vmatmul.f32.gmra.mxu0 %v14995_v6 }
 0x187   : > { %1194 = vmatmul.f32.gmra.mxu3 %v14996_v20  ;;  %1558 = vmatmul.f32.gmra.mxu1 %v14991_v33  ;;  %v407_v33 = vadd.f32 %v8833_v29, %v9030_v56  ;;  %v9395_v20 = vsub.f32 %v7660_v40, %v9383_v9  ;;  %v15000_v56 = vld [vmem:[#allocation11_spill] sm:$0xff]  ;;  %v15002_v40 = vand.u32 4294901760, %v14994_v59  ;;  %v415_v59 = vadd.f32 %v8833_v29, %v9054_v15 }
 0x189   : > { %v900_v26 = vpop.f32.mrf.mxu2  ;;  %v712_v10 = vadd.f32 %v9056_v22, %v407_v33  ;;  %v14456_v60 = vand.u32 4294901760, %v9395_v20  ;;  %2293 = vmatpush.msra.mxu0 %v9395_v20  ;;  %v716_v15 = vadd.f32 %v9071_v13, %v415_v59  ;;  %v15016_v13 = vld [vmem:[#allocation18_spill] sm:$0xff] }
 0x18a   : > { %v1099_v53 = vpop.f32.mrf.mxu3 }
 0x18b   : > { %v9387_v11 = vadd.f32 %v1099_v53, %v896_v63  ;;  %v9389_v27 = vpop.f32.mrf.mxu0  ;;  %v15001_v63 = vld [vmem:[#allocation10_spill] sm:$0xff]  ;;  %v1303_v53 = vadd.f32 %v9163_v23, %v9204_v7  ;;  %v901_v8 = vadd.f32 %v900_v26, %v712_v10  ;;  %v2114_v22 = vsub.f32 %v9395_v20, %v14456_v60  ;;  %v7761_v26 = vpop.eup %7760 }
 0x18c   : > { %14997 = vst [vmem:[#allocation4_spill] sm:$0xff] %v9389_v27  ;;  %v9391_v49 = vpop.f32.mrf.mxu1  ;;  %v15005_v23 = vld [vmem:[#allocation22_spill] sm:$0xff]  ;;  %v1646_v10 = vmul.f32 %v7759_v58, %v1614_v54  ;;  %v15009_v60 = vand.u32 4294901760, %v15008_v16 }
 0x18d   : > { %14998 = vst [vmem:[#allocation7_spill] sm:$0xff] %v9391_v49  ;;  %v15006_v7 = vand.u32 4294901760, %v15005_v23  ;;  %v2115_v50 = vand.u32 4294901760, %v2114_v22  ;;  %v15010_v23 = vld [vmem:[#allocation13_spill] sm:$0xff]  ;;  %v8014_v54 = vld [vmem:[%s8227_s20] sm:$0xff] }
 0x18e   : > { %984 = vmatmul.f32.gmra.mxu2 %v15000_v56  ;;  %1405 = vmatmul.f32.gmra.mxu0 %v15001_v63  ;;  %v9437_v58 = vadd.f32 %v8014_v54, %v1646_v10  ;;  %v15014_v16 = vld [vmem:[#allocation30_spill] sm:$0xff] }
 0x18f   : > { %1200 = vmatmul.f32.gmra.mxu3 %v15002_v40  ;;  %1562 = vmatmul.f32.gmra.mxu1 %v14995_v6  ;;  %v1464_v6 = vadd.f32 %v9184_v42, %v1303_v53  ;;  %v1615_v42 = vmul.f32 %v7761_v26, %v7761_v26  ;;  %v15012_v53 = vand.u32 4294901760, %v15000_v56 }
 0x190   : > { %2691 = vmatpush.msrb.mxu2 %v15006_v7  ;;  %v15011_v7 = vld [vmem:[#allocation12_spill] sm:$0xff]  ;;  %15013 = vst [vmem:[#allocation9_spill] sm:$0xff] %v9437_v58  ;;  %2116 = vmatpush.msra.mxu3 %v2115_v50  ;;  %v15019_v50 = vld [vmem:[#allocation19_spill] sm:$0xff] }
 0x191   : > { %v905_v27 = vpop.f32.mrf.mxu2  ;;  %7762 = vtanh.f32 %v1464_v6  ;;  %v15017_v6 = vld [vmem:[#allocation34_spill] sm:$0xff] }
 0x192   : > { %v1105_v49 = vpop.f32.mrf.mxu3  ;;  %2695 = vmatpush.msrb.mxu2 %v15009_v60  ;;  %v15015_v60 = vand.u32 4294901760, %v15014_v16  ;;  %2874 = vmatpush.msrb.mxu3 %v15016_v13  ;;  %v15025_v16 = vand.u32 4294901760, %v15010_v23 }
 0x193   : > { %v9420_v33 = vadd.f32 %v1105_v49, %v901_v8  ;;  %v9422_v40 = vpop.f32.mrf.mxu0  ;;  %v1307_v49 = vadd.f32 %v9180_v38, %v9221_v30  ;;  %v906_v8 = vadd.f32 %v905_v27, %v716_v15  ;;  %v423_v38 = vadd.f32 %v8833_v29, %v9069_v48  ;;  %v15022_v48 = vld [vmem:[#allocation21_spill] sm:$0xff] }
 0x194   : > { %15007 = vst [vmem:[#allocation6_spill] sm:$0xff] %v9422_v40  ;;  %v9424_v1 = vpop.f32.mrf.mxu1  ;;  %2699 = vmatpush.msrb.mxu2 %v15015_v60  ;;  %v15018_v40 = vand.u32 4294901760, %v15017_v6  ;;  %v1647_v30 = vmul.f32 %v7761_v26, %v1615_v42  ;;  %2876 = vmatpush.msrb.mxu3 %v15019_v50  ;;  %v9453_v27 = vand.u32 4294901760, %v9437_v58  ;;  %v15023_v26 = vld [vmem:[#allocation15_spill] sm:$0xff]  ;;  %v15027_v6 = vld [vmem:[#allocation25_spill] sm:$0xff] }
 0x195   : > { %v1468_v56 = vadd.f32 %v9208_v46, %v1307_v49  ;;  %v15024_v46 = vld [vmem:[#allocation14_spill] sm:$0xff]  ;;  %v720_v42 = vadd.f32 %v9098_v62, %v423_v38  ;;  %v1311_v49 = vadd.f32 %v9206_v34, %v9247_v0  ;;  %v8015_v60 = vld [vmem:[%s8227_s20 + $0x8] sm:$0xff] }
 0x196   : > { %989 = vmatmul.f32.gmra.mxu2 %v15010_v23  ;;  %1409 = vmatmul.f32.gmra.mxu0 %v15011_v7  ;;  %v15028_v62 = vld [vmem:[#allocation42_spill] sm:$0xff]  ;;  %v15030_v23 = vld [vmem:[#allocation29_spill] sm:$0xff] }
 0x197   : > { %1206 = vmatmul.f32.gmra.mxu3 %v15012_v53  ;;  %1566 = vmatmul.f32.gmra.mxu1 %v15001_v63  ;;  %v15020_v53 = vld [vmem:[#allocation38_spill] sm:$0xff]  ;;  %v7763_v54 = vpop.eup %7762  ;;  %7764 = vtanh.f32 %v1468_v56  ;;  %v15029_v38 = vand.u32 4294901760, %v15028_v62  ;;  %v1472_v50 = vadd.f32 %v9227_v21, %v1311_v49  ;;  %v15035_v21 = vld [vmem:[#allocation16_spill] sm:$0xff] }
 0x198   : > { %2703 = vmatpush.msrb.mxu2 %v15018_v40  ;;  %v15021_v40 = vand.u32 4294901760, %v15020_v53  ;;  %2878 = vmatpush.msrb.mxu3 %v15022_v48  ;;  %v1616_v13 = vmul.f32 %v7763_v54, %v7763_v54 }
 0x199   : > { %v910_v22 = vpop.f32.mrf.mxu2  ;;  %7766 = vtanh.f32 %v1472_v50 }
 0x19a   : > { %v1111_v59 = vpop.f32.mrf.mxu3  ;;  %2707 = vmatpush.msrb.mxu2 %v15021_v40  ;;  %2880 = vmatpush.msrb.mxu3 %v15027_v6  ;;  %v911_v56 = vadd.f32 %v910_v22, %v720_v42  ;;  %v1648_v22 = vmul.f32 %v7763_v54, %v1616_v13  ;;  %v1315_v54 = vadd.f32 %v9223_v32, %v9264_v5  ;;  %v15036_v13 = vand.u32 4294901760, %v15023_v26 }
 0x19b   : > { %v9447_v63 = vadd.f32 %v1111_v59, %v906_v8  ;;  %v9449_v10 = vpop.f32.mrf.mxu0  ;;  %v9469_v8 = vadd.f32 %v8015_v60, %v1647_v30  ;;  %v9473_v59 = vsub.f32 %v9437_v58, %v9453_v27  ;;  %v431_v30 = vadd.f32 %v8833_v29, %v9093_v45  ;;  %v15034_v45 = vld [vmem:[#allocation17_spill] sm:$0xff] }
 0x19c   : > { %v9455_v15 = vpop.f32.mrf.mxu1  ;;  %2711 = vmatpush.msrb.mxu2 %v15029_v38  ;;  %2882 = vmatpush.msrb.mxu3 %v15030_v23  ;;  %v15033_v60 = vand.u32 4294901760, %v9145_v36  ;;  %v8016_v38 = vld [vmem:[%s8227_s20 + $0x10] sm:$0xff]  ;;  %v15039_v32 = vand.u32 4294901760, %v9188_v51  ;;  %v15041_v23 = vand.u32 4294901760, %v9231_v35  ;;  %v1476_v50 = vadd.f32 %v9251_v57, %v1315_v54 }
 0x19d   : > { %15026 = vst [vmem:[#allocation8_spill] sm:$0xff] %v9469_v8  ;;  %v9489_v48 = vand.u32 4294901760, %v9469_v8  ;;  %v7765_v29 = vpop.eup %7764  ;;  %v724_v49 = vadd.f32 %v9110_v28, %v431_v30  ;;  %v9513_v28 = vadd.f32 %v8016_v38, %v1648_v22 }
 0x19e   : > { %994 = vmatmul.f32.gmra.mxu2 %v15023_v26  ;;  %1413 = vmatmul.f32.gmra.mxu0 %v15024_v46  ;;  %v1617_v6 = vmul.f32 %v7765_v29, %v7765_v29  ;;  %7768 = vtanh.f32 %v1476_v50 }
 0x19f   : > { %1212 = vmatmul.f32.gmra.mxu3 %v15025_v16  ;;  %1570 = vmatmul.f32.gmra.mxu1 %v15011_v7  ;;  %v15031_v7 = vand.u32 4294901760, %v9085_v17  ;;  %v1766_v16 = vand.u32 4294901760, %v9473_v59  ;;  %v15032_v17 = vld [vmem:[#allocation33_spill] sm:$0xff]  ;;  %v9507_v36 = vsub.f32 %v9469_v8, %v9489_v48  ;;  %15037 = vst [vmem:[#allocation11_spill] sm:$0xff] %v9513_v28  ;;  %v7767_v57 = vpop.eup %7766 }
 0x1a0   : > { %2884 = vmatpush.msrb.mxu3 %v15032_v17  ;;  %v1649_v17 = vmul.f32 %v7765_v29, %v1617_v6  ;;  %v1319_v29 = vadd.f32 %v9249_v25, %v9290_v19  ;;  %v15044_v6 = vand.u32 4294901760, %v15034_v45  ;;  %v15047_v25 = vand.u32 4294901760, %v9317_v2 }
 0x1a1   : > { %v915_v34 = vpop.f32.mrf.mxu2  ;;  %2715 = vmatpush.msrb.mxu2 %v15031_v7  ;;  %v1767_v62 = vsub.f32 %v9473_v59, %v1766_v16  ;;  %v8017_v7 = vld [vmem:[%s14344_s2] ss:$0 sm:$0xff] }
 0x1a2   : > { %v1117_v0 = vpop.f32.mrf.mxu3  ;;  %v916_v5 = vadd.f32 %v915_v34, %v724_v49  ;;  %v439_v30 = vadd.f32 %v8017_v7, %v9108_v52  ;;  %v1774_v34 = vand.u32 4294901760, %v9507_v36  ;;  %v9534_v49 = vand.u32 4294901760, %v9513_v28 }
 0x1a3   : > { %v9484_v53 = vadd.f32 %v1117_v0, %v911_v56  ;;  %v9486_v40 = vpop.f32.mrf.mxu0  ;;  %2719 = vmatpush.msrb.mxu2 %v15033_v60  ;;  %v15038_v56 = vld [vmem:[#allocation37_spill] sm:$0xff]  ;;  %v1768_v35 = vand.u32 4294901760, %v1767_v62  ;;  %v15043_v52 = vand.u32 4294901760, %v9274_v14  ;;  %v1618_v62 = vmul.f32 %v7767_v57, %v7767_v57 }
 0x1a4   : > { %v9491_v42 = vpop.f32.mrf.mxu1  ;;  %2886 = vmatpush.msrb.mxu3 %v15038_v56  ;;  %v15040_v0 = vld [vmem:[#allocation41_spill] sm:$0xff]  ;;  %v728_v54 = vadd.f32 %v9122_v31, %v439_v30  ;;  %v1775_v14 = vsub.f32 %v9507_v36, %v1774_v34  ;;  %v9551_v38 = vsub.f32 %v9513_v28, %v9534_v49 }
 0x1a5   : > { %2723 = vmatpush.msrb.mxu2 %v15039_v32  ;;  %v8018_v56 = vld [vmem:[%s8227_s20 + $0x18] sm:$0xff]  ;;  %v15046_v32 = vld [vmem:[#allocation50_spill] sm:$0xff]  ;;  %v1650_v50 = vmul.f32 %v7767_v57, %v1618_v62 }
 0x1a6   : > { %999 = vmatmul.f32.gmra.mxu2 %v15034_v45  ;;  %1417 = vmatmul.f32.gmra.mxu0 %v15035_v21  ;;  %v9554_v31 = vadd.f32 %v8018_v56, %v1649_v17  ;;  %v1776_v2 = vand.u32 4294901760, %v1775_v14 }
 0x1a7   : > { %1218 = vmatmul.f32.gmra.mxu3 %v15036_v13  ;;  %1574 = vmatmul.f32.gmra.mxu1 %v15024_v46  ;;  %v15042_v13 = vld [vmem:[#allocation45_spill] sm:$0xff] }
 0x1a8   : > { %2888 = vmatpush.msrb.mxu3 %v15040_v0  ;;  %2727 = vmatpush.msrb.mxu2 %v15041_v23  ;;  %15045 = vst [vmem:[#allocation10_spill] sm:$0xff] %v9554_v31  ;;  %v15049_v0 = vand.u32 4294901760, %v9363_v55  ;;  %v1480_v23 = vadd.f32 %v9270_v41, %v1319_v29  ;;  %v7769_v41 = vpop.eup %7768  ;;  %v1323_v55 = vadd.f32 %v9266_v44, %v9307_v43  ;;  %v15052_v29 = vld [vmem:[#allocation24_spill] sm:$0xff] }
 0x1a9   : > { %v920_v26 = vpop.f32.mrf.mxu2 }
 0x1aa   : > { %v1123_v46 = vpop.f32.mrf.mxu3  ;;  %2890 = vmatpush.msrb.mxu3 %v15042_v13  ;;  %2731 = vmatpush.msrb.mxu2 %v15043_v52  ;;  %v921_v19 = vadd.f32 %v920_v26, %v728_v54  ;;  %v1782_v26 = vand.u32 4294901760, %v9551_v38  ;;  %7770 = vtanh.f32 %v1480_v23  ;;  %v1619_v13 = vmul.f32 %v7769_v41, %v7769_v41 }
 0x1ab   : > { %v9526_v22 = vadd.f32 %v1123_v46, %v916_v5  ;;  %v9528_v51 = vpop.f32.mrf.mxu0 }
 0x1ac   : > { %v9531_v60 = vpop.f32.mrf.mxu1  ;;  %2892 = vmatpush.msrb.mxu3 %v15046_v32  ;;  %2735 = vmatpush.msrb.mxu2 %v15047_v25  ;;  %v1783_v52 = vsub.f32 %v9551_v38, %v1782_v26  ;;  %v1651_v56 = vmul.f32 %v7769_v41, %v1619_v13  ;;  %v15058_v41 = vld [vmem:[#allocation53_spill] sm:$0xff] }
 0x1ae   : > { %1769 = vmatmul.f32.vlgmr.msra.gmra.mxu2 %v1768_v35  ;;  %2296 = vmatmul.f32.vlgmr.msra.gmra.mxu0 %v9473_v59  ;;  %v9572_v35 = vand.u32 4294901760, %v9554_v31  ;;  %v15054_v59 = vld [vmem:[#allocation52_spill] sm:$0xff]  ;;  %v1784_v25 = vand.u32 4294901760, %v1783_v52 }
 0x1af   : > { %1224 = vmatmul.f32.gmra.mxu3 %v15044_v6  ;;  %1578 = vmatmul.f32.gmra.mxu1 %v15035_v21  ;;  %v15048_v21 = vld [vmem:[#allocation23_spill] sm:$0xff]  ;;  %v15053_v6 = vld [vmem:[#allocation2_spill] sm:$0xff] }
 0x1b0   : > { %2894 = vmatpush.msrb.mxu3 %v9182_v12  ;;  %2739 = vmatpush.msrb.mxu2 %v15049_v0  ;;  %v15050_v12 = vand.u32 4294901760, %v9395_v20  ;;  %v8019_v20 = vld [vmem:[%s8227_s20 + $0x20] sm:$0xff] }
 0x1b1   : > { %v925_v45 = vpop.f32.mrf.mxu2  ;;  %v9589_v57 = vadd.f32 %v8019_v20, %v1650_v50 }
 0x1b2   : > { %v926_v5 = vadd.f32 %v925_v45, %v15048_v21  ;;  %v1129_v46 = vpop.f32.mrf.mxu3  ;;  %2896 = vmatpush.msrb.mxu3 %v9225_v39  ;;  %2743 = vmatpush.msrb.mxu2 %v15050_v12  ;;  %v9586_v39 = vsub.f32 %v9554_v31, %v9572_v35  ;;  %v7771_v45 = vpop.eup %7770  ;;  %v15055_v21 = vld [vmem:[#allocation51_spill] sm:$0xff] }
 0x1b3   : > { %v9564_v7 = vadd.f32 %v1129_v46, %v921_v19  ;;  %v9566_v30 = vpop.f32.mrf.mxu0  ;;  %15051 = vst [vmem:[#allocation20_spill] sm:$0xff] %v9589_v57  ;;  %v1620_v46 = vmul.f32 %v7771_v45, %v7771_v45 }
 0x1b4   : > { %v9568_v17 = vpop.f32.mrf.mxu1  ;;  %2898 = vmatpush.msrb.mxu3 %v9268_v3  ;;  %v1790_v19 = vand.u32 4294901760, %v9586_v39  ;;  %v9603_v3 = vand.u32 4294901760, %v9589_v57 }
 0x1b5   : > { %v1652_v13 = vmul.f32 %v7771_v45, %v1620_v46 }
 0x1b6   : > { %1777 = vmatmul.f32.gmra.mxu2 %v1776_v2  ;;  %2301 = vmatmul.f32.gmra.mxu0 %v9507_v36  ;;  %v1791_v0 = vsub.f32 %v9586_v39, %v1790_v19  ;;  %v9615_v23 = vsub.f32 %v9589_v57, %v9603_v3  ;;  %v15057_v2 = vld [vmem:[#allocation27_spill] sm:$0xff] }
 0x1b7   : > { %2118 = vmatmul.f32.vlgmr.msra.gmra.mxu3 %v9453_v27  ;;  %2490 = vmatmul.f32.vlgmr.msra.gmra.mxu1 %v1766_v16  ;;  %v1484_v16 = vadd.f32 %v15054_v59, %v1323_v55 }
 0x1b8   : > { %2900 = vmatpush.msrb.mxu3 %v15053_v6  ;;  %v1792_v20 = vand.u32 4294901760, %v1791_v0 }
 0x1b9   : > { %v930_v54 = vpop.f32.mrf.mxu2  ;;  %7772 = vtanh.f32 %v1484_v16 }
 0x1ba   : > { %v931_v44 = vadd.f32 %v930_v54, %v15052_v29  ;;  %v1135_v43 = vpop.f32.mrf.mxu3  ;;  %2902 = vmatpush.msrb.mxu3 %v9357_v4  ;;  %v8020_v4 = vld [vmem:[%s8227_s20 + $0x28] sm:$0xff]  ;;  %v1798_v54 = vand.u32 4294901760, %v9615_v23 }
 0x1bb   : > { %v9595_v14 = vadd.f32 %v1135_v43, %v926_v5  ;;  %v9597_v62 = vpop.f32.mrf.mxu0  ;;  %v1327_v5 = vadd.f32 %v15055_v21, %v9333_v47  ;;  %v9618_v50 = vadd.f32 %v8020_v4, %v1651_v56  ;;  %v8021_v56 = vld [vmem:[%s8227_s20 + $0x30] sm:$0xff] }
 0x1bc   : > { %v9599_v32 = vpop.f32.mrf.mxu1  ;;  %2904 = vmatpush.msrb.mxu3 %v9383_v9  ;;  %v1799_v59 = vsub.f32 %v9615_v23, %v1798_v54  ;;  %v15061_v21 = vld [vmem:[#allocation28_spill] sm:$0xff] }
 0x1bd   : > { %15056 = vst [vmem:[#allocation22_spill] sm:$0xff] %v9618_v50  ;;  %v1488_v55 = vadd.f32 %v15058_v41, %v1327_v5  ;;  %v9631_v29 = vand.u32 4294901760, %v9618_v50 }
 0x1be   : > { %1785 = vmatmul.f32.gmra.mxu2 %v1784_v25  ;;  %2306 = vmatmul.f32.gmra.mxu0 %v9551_v38  ;;  %v9643_v25 = vadd.f32 %v8021_v56, %v1652_v13 }
 0x1bf   : > { %2122 = vmatmul.f32.gmra.mxu3 %v9489_v48  ;;  %2496 = vmatmul.f32.gmra.mxu1 %v1774_v34  ;;  %v7773_v9 = vpop.eup %7772  ;;  %7774 = vtanh.f32 %v1488_v55  ;;  %v9640_v16 = vsub.f32 %v9618_v50, %v9631_v29 }
 0x1c0   : > { %v1621_v6 = vmul.f32 %v7773_v9, %v7773_v9  ;;  %15060 = vst [vmem:[#allocation26_spill] sm:$0xff] %v9643_v25 }
 0x1c1   : > { %v935_v38 = vpop.f32.mrf.mxu2 }
 0x1c2   : > { %v936_v47 = vadd.f32 %v935_v38, %v15057_v2  ;;  %v1141_v12 = vpop.f32.mrf.mxu3  ;;  %v1800_v38 = vand.u32 4294901760, %v1799_v59  ;;  %v1806_v2 = vand.u32 4294901760, %v9640_v16 }
 0x1c3   : > { %v9623_v36 = vadd.f32 %v1141_v12, %v931_v44  ;;  %v9625_v34 = vpop.f32.mrf.mxu0  ;;  %v15059_v44 = vld [vmem:[#allocation3_spill] sm:$0xff]  ;;  %v9655_v12 = vand.u32 4294901760, %v9643_v25 }
 0x1c4   : > { %v9627_v52 = vpop.f32.mrf.mxu1  ;;  %v1331_v43 = vadd.f32 %v15059_v44, %v9353_v18  ;;  %v1807_v55 = vsub.f32 %v9640_v16, %v1806_v2 }
 0x1c5   : > { %v7775_v41 = vpop.eup %7774  ;;  %v9664_v13 = vsub.f32 %v9643_v25, %v9655_v12 }
 0x1c6   : > { %1793 = vmatmul.f32.gmra.mxu2 %v1792_v20  ;;  %2311 = vmatmul.f32.gmra.mxu0 %v9586_v39  ;;  %v1492_v46 = vadd.f32 %v9337_v37, %v1331_v43  ;;  %v1335_v37 = vadd.f32 %v9335_v61, %v9387_v11  ;;  %v8022_v20 = vld [vmem:[%s8227_s20 + $0x38] sm:$0xff]  ;;  %v15063_v43 = vld [vmem:[#allocation31_spill] sm:$0xff] }
 0x1c7   : > { %2126 = vmatmul.f32.gmra.mxu3 %v9534_v49  ;;  %2502 = vmatmul.f32.gmra.mxu1 %v1782_v26  ;;  %v1653_v26 = vmul.f32 %v7773_v9, %v1621_v6 }
 0x1c8   : > { %7776 = vtanh.f32 %v1492_v46  ;;  %v1496_v59 = vadd.f32 %v9359_v24, %v1335_v37  ;;  %v15064_v24 = vld [vmem:[#allocation5_spill] sm:$0xff]  ;;  %v8023_v37 = vld [vmem:[%s8227_s20 + $0x40] sm:$0xff] }
 0x1c9   : > { %v940_v45 = vpop.f32.mrf.mxu2  ;;  %v9667_v9 = vadd.f32 %v8022_v20, %v1653_v26  ;;  %v15066_v20 = vld [vmem:[#allocation32_spill] sm:$0xff] }
 0x1ca   : > { %v941_v39 = vadd.f32 %v940_v45, %v15061_v21  ;;  %v1147_v5 = vpop.f32.mrf.mxu3  ;;  %v1808_v45 = vand.u32 4294901760, %v1807_v55  ;;  %v1814_v21 = vand.u32 4294901760, %v9664_v13  ;;  %7778 = vtanh.f32 %v1496_v59 }
 0x1cb   : > { %v9647_v18 = vadd.f32 %v1147_v5, %v936_v47  ;;  %v9649_v0 = vpop.f32.mrf.mxu0  ;;  %v1622_v47 = vmul.f32 %v7775_v41, %v7775_v41  ;;  %15062 = vst [vmem:[#allocation13_spill] sm:$0xff] %v9667_v9  ;;  %v9679_v5 = vand.u32 4294901760, %v9667_v9 }
 0x1cc   : > { %v9651_v4 = vpop.f32.mrf.mxu1 }
 0x1ce   : > { %1801 = vmatmul.f32.gmra.mxu2 %v1800_v38  ;;  %2316 = vmatmul.f32.gmra.mxu0 %v9615_v23  ;;  %v7777_v46 = vpop.eup %7776  ;;  %v1815_v38 = vsub.f32 %v9664_v13, %v1814_v21 }
 0x1cf   : > { %2130 = vmatmul.f32.gmra.mxu3 %v9572_v35  ;;  %2508 = vmatmul.f32.gmra.mxu1 %v1790_v19  ;;  %v1654_v19 = vmul.f32 %v7775_v41, %v1622_v47  ;;  %v1623_v26 = vmul.f32 %v7777_v46, %v7777_v46  ;;  %v9688_v41 = vsub.f32 %v9667_v9, %v9679_v5 }
 0x1d1   : > { %v945_v44 = vpop.f32.mrf.mxu2  ;;  %v9691_v47 = vadd.f32 %v8023_v37, %v1654_v19  ;;  %v1822_v9 = vand.u32 4294901760, %v9688_v41  ;;  %v7779_v37 = vpop.eup %7778 }
 0x1d2   : > { %v946_v23 = vadd.f32 %v945_v44, %v15063_v43  ;;  %v1153_v6 = vpop.f32.mrf.mxu3  ;;  %v15067_v43 = vld [vmem:[#allocation7_spill] sm:$0xff] }
 0x1d3   : > { %v9671_v61 = vadd.f32 %v1153_v6, %v941_v39  ;;  %v9673_v11 = vpop.f32.mrf.mxu0  ;;  %v1339_v39 = vadd.f32 %v15064_v24, %v9420_v33  ;;  %15065 = vst [vmem:[#allocation12_spill] sm:$0xff] %v9691_v47  ;;  %v1816_v24 = vand.u32 4294901760, %v1815_v38  ;;  %v9703_v19 = vand.u32 4294901760, %v9691_v47 }
 0x1d4   : > { %v9675_v56 = vpop.f32.mrf.mxu1 }
 0x1d5   : > { %v1500_v6 = vadd.f32 %v15067_v43, %v1339_v39  ;;  %v9712_v38 = vsub.f32 %v9691_v47, %v9703_v19  ;;  %v15070_v43 = vld [vmem:[#allocation35_spill] sm:$0xff] }
 0x1d6   : > { %1809 = vmatmul.f32.gmra.mxu2 %v1808_v45  ;;  %2321 = vmatmul.f32.gmra.mxu0 %v9640_v16 }
 0x1d7   : > { %2134 = vmatmul.f32.gmra.mxu3 %v9603_v3  ;;  %2514 = vmatmul.f32.gmra.mxu1 %v1798_v54  ;;  %v1655_v54 = vmul.f32 %v7777_v46, %v1623_v26  ;;  %7780 = vtanh.f32 %v1500_v6  ;;  %v1624_v46 = vmul.f32 %v7779_v37, %v7779_v37  ;;  %v1823_v26 = vsub.f32 %v9688_v41, %v1822_v9 }
 0x1d8   : > { %v1830_v47 = vand.u32 4294901760, %v9712_v38 }
 0x1d9   : > { %v950_v55 = vpop.f32.mrf.mxu2  ;;  %v1824_v50 = vand.u32 4294901760, %v1823_v26  ;;  %v8025_v26 = vld [vmem:[%s8227_s20 + $0x50] sm:$0xff] }
 0x1da   : > { %v951_v16 = vadd.f32 %v950_v55, %v15066_v20  ;;  %v1159_v44 = vpop.f32.mrf.mxu3  ;;  %v8024_v55 = vld [vmem:[%s8227_s20 + $0x48] sm:$0xff] }
 0x1db   : > { %v9695_v33 = vadd.f32 %v1159_v44, %v946_v23  ;;  %v9697_v59 = vpop.f32.mrf.mxu0  ;;  %v15068_v23 = vld [vmem:[#allocation4_spill] sm:$0xff]  ;;  %v9715_v20 = vadd.f32 %v8024_v55, %v1655_v54 }
 0x1dc   : > { %v9699_v45 = vpop.f32.mrf.mxu1  ;;  %v1343_v39 = vadd.f32 %v15068_v23, %v9447_v63 }
 0x1dd   : > { %15069 = vst [vmem:[#allocation30_spill] sm:$0xff] %v9715_v20  ;;  %v9727_v54 = vand.u32 4294901760, %v9715_v20  ;;  %v7781_v55 = vpop.eup %7780 }
 0x1de   : > { %1817 = vmatmul.f32.gmra.mxu2 %v1816_v24  ;;  %2326 = vmatmul.f32.gmra.mxu0 %v9664_v13  ;;  %v1504_v24 = vadd.f32 %v9424_v1, %v1343_v39  ;;  %v15072_v1 = vld [vmem:[#allocation6_spill] sm:$0xff]  ;;  %v1831_v39 = vsub.f32 %v9712_v38, %v1830_v47 }
 0x1df   : > { %2138 = vmatmul.f32.gmra.mxu3 %v9631_v29  ;;  %2520 = vmatmul.f32.gmra.mxu1 %v1806_v2  ;;  %v1656_v2 = vmul.f32 %v7779_v37, %v1624_v46  ;;  %15071 = vst [vmem:[#allocation18_spill] sm:$0xff] %v9727_v54  ;;  %v1625_v37 = vmul.f32 %v7781_v55, %v7781_v55 }
 0x1e0   : > { %7782 = vtanh.f32 %v1504_v24  ;;  %v9736_v46 = vsub.f32 %v9715_v20, %v9727_v54  ;;  %v1832_v31 = vand.u32 4294901760, %v1831_v39 }
 0x1e1   : > { %v955_v44 = vpop.f32.mrf.mxu2 }
 0x1e2   : > { %v956_v13 = vadd.f32 %v955_v44, %v15070_v43  ;;  %v1165_v6 = vpop.f32.mrf.mxu3  ;;  %v9739_v44 = vadd.f32 %v8025_v26, %v1656_v2  ;;  %v15074_v43 = vld [vmem:[#allocation36_spill] sm:$0xff]  ;;  %v1838_v20 = vand.u32 4294901760, %v9736_v46 }
 0x1e3   : > { %v9719_v63 = vadd.f32 %v1165_v6, %v951_v16  ;;  %v9721_v23 = vpop.f32.mrf.mxu0  ;;  %v1347_v16 = vadd.f32 %v15072_v1, %v9484_v53 }
 0x1e4   : > { %v9723_v25 = vpop.f32.mrf.mxu1  ;;  %15073 = vst [vmem:[#allocation34_spill] sm:$0xff] %v9739_v44  ;;  %v9751_v2 = vand.u32 4294901760, %v9739_v44 }
 0x1e5   : > { %v1508_v24 = vadd.f32 %v9455_v15, %v1347_v16  ;;  %v1351_v15 = vadd.f32 %v9449_v10, %v9526_v22 }
 0x1e6   : > { %1825 = vmatmul.f32.gmra.mxu2 %v1824_v50  ;;  %2331 = vmatmul.f32.gmra.mxu0 %v9688_v41  ;;  %15075 = vst [vmem:[#allocation19_spill] sm:$0xff] %v9751_v2  ;;  %v7783_v26 = vpop.eup %7782  ;;  %v9760_v16 = vsub.f32 %v9739_v44, %v9751_v2 }
 0x1e7   : > { %2142 = vmatmul.f32.gmra.mxu3 %v9655_v12  ;;  %2526 = vmatmul.f32.gmra.mxu1 %v1814_v21  ;;  %v1657_v21 = vmul.f32 %v7781_v55, %v1625_v37  ;;  %7784 = vtanh.f32 %v1508_v24  ;;  %v1839_v55 = vsub.f32 %v9736_v46, %v1838_v20  ;;  %v8026_v37 = vld [vmem:[%s8227_s20 + $0x58] sm:$0xff] }
 0x1e8   : > { %v1846_v44 = vand.u32 4294901760, %v9760_v16 }
 0x1e9   : > { %v960_v50 = vpop.f32.mrf.mxu2  ;;  %v9763_v39 = vadd.f32 %v8026_v37, %v1657_v21  ;;  %v1840_v28 = vand.u32 4294901760, %v1839_v55 }
 0x1ea   : > { %v961_v41 = vadd.f32 %v960_v50, %v15074_v43  ;;  %v1171_v6 = vpop.f32.mrf.mxu3  ;;  %v15077_v50 = vld [vmem:[#allocation39_spill] sm:$0xff] }
 0x1eb   : > { %v9743_v53 = vadd.f32 %v1171_v6, %v956_v13  ;;  %v9745_v1 = vpop.f32.mrf.mxu0  ;;  %v1626_v13 = vmul.f32 %v7783_v26, %v7783_v26  ;;  %15076 = vst [vmem:[#allocation38_spill] sm:$0xff] %v9763_v39  ;;  %v1512_v6 = vadd.f32 %v9491_v42, %v1351_v15  ;;  %v9775_v21 = vand.u32 4294901760, %v9763_v39 }
 0x1ec   : > { %v9747_v57 = vpop.f32.mrf.mxu1  ;;  %v1355_v42 = vadd.f32 %v9486_v40, %v9564_v7 }
 0x1ed   : > { %15078 = vst [vmem:[#allocation21_spill] sm:$0xff] %v9775_v21  ;;  %v7785_v37 = vpop.eup %7784  ;;  %7786 = vtanh.f32 %v1512_v6  ;;  %v9784_v15 = vsub.f32 %v9763_v39, %v9775_v21 }
 0x1ee   : > { %1833 = vmatmul.f32.gmra.mxu2 %v1832_v31  ;;  %2336 = vmatmul.f32.gmra.mxu0 %v9712_v38 }
 0x1ef   : > { %2146 = vmatmul.f32.gmra.mxu3 %v9679_v5  ;;  %2532 = vmatmul.f32.gmra.mxu1 %v1822_v9  ;;  %v1658_v9 = vmul.f32 %v7783_v26, %v1626_v13  ;;  %v1847_v26 = vsub.f32 %v9760_v16, %v1846_v44  ;;  %v8027_v13 = vld [vmem:[%s8227_s20 + $0x60] sm:$0xff]  ;;  %v1854_v39 = vand.u32 4294901760, %v9784_v15 }
 0x1f1   : > { %v965_v31 = vpop.f32.mrf.mxu2  ;;  %v9787_v55 = vadd.f32 %v8027_v13, %v1658_v9  ;;  %v1848_v8 = vand.u32 4294901760, %v1847_v26 }
 0x1f2   : > { %v966_v38 = vadd.f32 %v965_v31, %v15077_v50  ;;  %v1177_v43 = vpop.f32.mrf.mxu3  ;;  %v15080_v31 = vld [vmem:[#allocation40_spill] sm:$0xff] }
 0x1f3   : > { %v9767_v10 = vadd.f32 %v1177_v43, %v961_v41  ;;  %v9769_v22 = vpop.f32.mrf.mxu0  ;;  %v1627_v41 = vmul.f32 %v7785_v37, %v7785_v37  ;;  %15079 = vst [vmem:[#allocation15_spill] sm:$0xff] %v9787_v55  ;;  %v1516_v43 = vadd.f32 %v9531_v60, %v1355_v42  ;;  %v9799_v9 = vand.u32 4294901760, %v9787_v55  ;;  %v7787_v13 = vpop.eup %7786 }
 0x1f4   : > { %v9771_v24 = vpop.f32.mrf.mxu1  ;;  %v1359_v60 = vadd.f32 %v9528_v51, %v9595_v14 }
 0x1f5   : > { %15081 = vst [vmem:[#allocation14_spill] sm:$0xff] %v9799_v9  ;;  %7788 = vtanh.f32 %v1516_v43  ;;  %v9808_v42 = vsub.f32 %v9787_v55, %v9799_v9 }
 0x1f6   : > { %1841 = vmatmul.f32.gmra.mxu2 %v1840_v28  ;;  %2341 = vmatmul.f32.gmra.mxu0 %v9736_v46 }
 0x1f7   : > { %2150 = vmatmul.f32.gmra.mxu3 %v9703_v19  ;;  %2538 = vmatmul.f32.gmra.mxu1 %v1830_v47  ;;  %v1659_v47 = vmul.f32 %v7785_v37, %v1627_v41  ;;  %v1855_v37 = vsub.f32 %v9784_v15, %v1854_v39  ;;  %v8028_v41 = vld [vmem:[%s8227_s20 + $0x68] sm:$0xff]  ;;  %v1862_v55 = vand.u32 4294901760, %v9808_v42 }
 0x1f9   : > { %v970_v28 = vpop.f32.mrf.mxu2  ;;  %v9811_v26 = vadd.f32 %v8028_v41, %v1659_v47  ;;  %v1856_v58 = vand.u32 4294901760, %v1855_v37 }
 0x1fa   : > { %v971_v46 = vadd.f32 %v970_v28, %v15080_v31  ;;  %v1183_v50 = vpop.f32.mrf.mxu3  ;;  %v15083_v28 = vld [vmem:[#allocation43_spill] sm:$0xff] }
 0x1fb   : > { %v9791_v40 = vadd.f32 %v1183_v50, %v966_v38  ;;  %v9793_v7 = vpop.f32.mrf.mxu0  ;;  %v1628_v38 = vmul.f32 %v7787_v13, %v7787_v13  ;;  %15082 = vst [vmem:[#allocation25_spill] sm:$0xff] %v9811_v26  ;;  %v1520_v50 = vadd.f32 %v9568_v17, %v1359_v60  ;;  %v9823_v47 = vand.u32 4294901760, %v9811_v26  ;;  %v7789_v41 = vpop.eup %7788 }
 0x1fc   : > { %v9795_v6 = vpop.f32.mrf.mxu1  ;;  %v1363_v17 = vadd.f32 %v9566_v30, %v9623_v36 }
 0x1fd   : > { %15084 = vst [vmem:[#allocation42_spill] sm:$0xff] %v9823_v47  ;;  %7790 = vtanh.f32 %v1520_v50  ;;  %v9832_v60 = vsub.f32 %v9811_v26, %v9823_v47 }
 0x1fe   : > { %1849 = vmatmul.f32.gmra.mxu2 %v1848_v8  ;;  %2346 = vmatmul.f32.gmra.mxu0 %v9760_v16 }
 0x1ff   : > { %2154 = vmatmul.f32.gmra.mxu3 %v9727_v54  ;;  %2544 = vmatmul.f32.gmra.mxu1 %v1838_v20  ;;  %v1660_v20 = vmul.f32 %v7787_v13, %v1628_v38  ;;  %v1863_v13 = vsub.f32 %v9808_v42, %v1862_v55  ;;  %v8029_v38 = vld [vmem:[%s8227_s20 + $0x70] sm:$0xff]  ;;  %v1870_v26 = vand.u32 4294901760, %v9832_v60 }
 0x201   : > { %v975_v8 = vpop.f32.mrf.mxu2  ;;  %v9835_v37 = vadd.f32 %v8029_v38, %v1660_v20 }
 0x202   : > { %v976_v16 = vadd.f32 %v975_v8, %v15083_v28  ;;  %v1189_v31 = vpop.f32.mrf.mxu3  ;;  %v15086_v8 = vld [vmem:[#allocation44_spill] sm:$0xff] }
 0x203   : > { %v9815_v51 = vadd.f32 %v1189_v31, %v971_v46  ;;  %v9817_v14 = vpop.f32.mrf.mxu0  ;;  %v1629_v46 = vmul.f32 %v7789_v41, %v7789_v41  ;;  %15085 = vst [vmem:[#allocation29_spill] sm:$0xff] %v9835_v37  ;;  %v1524_v31 = vadd.f32 %v9599_v32, %v1363_v17  ;;  %v9847_v20 = vand.u32 4294901760, %v9835_v37  ;;  %v7791_v38 = vpop.eup %7790 }
 0x204   : > { %v9819_v43 = vpop.f32.mrf.mxu1  ;;  %v1367_v32 = vadd.f32 %v9597_v62, %v9647_v18 }
 0x205   : > { %15087 = vst [vmem:[#allocation33_spill] sm:$0xff] %v9847_v20  ;;  %7792 = vtanh.f32 %v1524_v31  ;;  %v9856_v17 = vsub.f32 %v9835_v37, %v9847_v20 }
 0x206   : > { %1857 = vmatmul.f32.gmra.mxu2 %v1856_v58  ;;  %2351 = vmatmul.f32.gmra.mxu0 %v9784_v15 }
 0x207   : > { %2158 = vmatmul.f32.gmra.mxu3 %v9751_v2  ;;  %2550 = vmatmul.f32.gmra.mxu1 %v1846_v44  ;;  %v1661_v44 = vmul.f32 %v7789_v41, %v1629_v46  ;;  %v1864_v2 = vand.u32 4294901760, %v1863_v13  ;;  %v1871_v41 = vsub.f32 %v9832_v60, %v1870_v26  ;;  %v8030_v46 = vld [vmem:[%s8227_s20 + $0x78] sm:$0xff]  ;;  %v1878_v37 = vand.u32 4294901760, %v9856_v17 }
 0x209   : > { %v980_v58 = vpop.f32.mrf.mxu2  ;;  %v9859_v13 = vadd.f32 %v8030_v46, %v1661_v44 }
 0x20a   : > { %v981_v15 = vadd.f32 %v980_v58, %v15086_v8  ;;  %v1195_v28 = vpop.f32.mrf.mxu3  ;;  %v15089_v58 = vld [vmem:[#allocation46_spill] sm:$0xff] }
 0x20b   : > { %v9839_v30 = vadd.f32 %v1195_v28, %v976_v16  ;;  %v9841_v36 = vpop.f32.mrf.mxu0  ;;  %v1630_v16 = vmul.f32 %v7791_v38, %v7791_v38  ;;  %15088 = vst [vmem:[#allocation17_spill] sm:$0xff] %v9859_v13  ;;  %v1528_v28 = vadd.f32 %v9627_v52, %v1367_v32  ;;  %v9871_v44 = vand.u32 4294901760, %v9859_v13  ;;  %v7793_v46 = vpop.eup %7792 }
 0x20c   : > { %v9843_v50 = vpop.f32.mrf.mxu1  ;;  %v1371_v52 = vadd.f32 %v9625_v34, %v9671_v61 }
 0x20d   : > { %15090 = vst [vmem:[#allocation16_spill] sm:$0xff] %v9871_v44  ;;  %7794 = vtanh.f32 %v1528_v28  ;;  %v9880_v32 = vsub.f32 %v9859_v13, %v9871_v44 }
 0x20e   : > { %1865 = vmatmul.f32.gmra.mxu2 %v1864_v2  ;;  %2356 = vmatmul.f32.gmra.mxu0 %v9808_v42 }
 0x20f   : > { %2162 = vmatmul.f32.gmra.mxu3 %v9775_v21  ;;  %2556 = vmatmul.f32.gmra.mxu1 %v1854_v39  ;;  %v1662_v39 = vmul.f32 %v7791_v38, %v1630_v16  ;;  %v1872_v21 = vand.u32 4294901760, %v1871_v41  ;;  %v1879_v38 = vsub.f32 %v9856_v17, %v1878_v37  ;;  %v8031_v16 = vld [vmem:[%s8227_s20 + $0x80] sm:$0xff]  ;;  %v1886_v13 = vand.u32 4294901760, %v9880_v32 }
 0x211   : > { %v985_v2 = vpop.f32.mrf.mxu2  ;;  %v9883_v41 = vadd.f32 %v8031_v16, %v1662_v39 }
 0x212   : > { %v986_v42 = vadd.f32 %v985_v2, %v15089_v58  ;;  %v1201_v8 = vpop.f32.mrf.mxu3  ;;  %v15092_v2 = vld [vmem:[#allocation47_spill] sm:$0xff] }
 0x213   : > { %v9863_v62 = vadd.f32 %v1201_v8, %v981_v15  ;;  %v9865_v18 = vpop.f32.mrf.mxu0  ;;  %v1631_v15 = vmul.f32 %v7793_v46, %v7793_v46  ;;  %15091 = vst [vmem:[#allocation37_spill] sm:$0xff] %v9883_v41  ;;  %v1532_v8 = vadd.f32 %v9651_v4, %v1371_v52  ;;  %v9895_v39 = vand.u32 4294901760, %v9883_v41  ;;  %v7795_v16 = vpop.eup %7794  ;;  %v8032_v52 = vld [vmem:[%s8227_s20 + $0x88] sm:$0xff] }
 0x214   : > { %v9867_v31 = vpop.f32.mrf.mxu1  ;;  %v1632_v4 = vmul.f32 %v7795_v16, %v7795_v16 }
 0x215   : > { %15093 = vst [vmem:[#allocation41_spill] sm:$0xff] %v9895_v39  ;;  %7796 = vtanh.f32 %v1532_v8 }
 0x216   : > { %1873 = vmatmul.f32.gmra.mxu2 %v1872_v21  ;;  %2361 = vmatmul.f32.gmra.mxu0 %v9832_v60 }
 0x217   : > { %2166 = vmatmul.f32.gmra.mxu3 %v9799_v9  ;;  %2562 = vmatmul.f32.gmra.mxu1 %v1862_v55  ;;  %v1663_v55 = vmul.f32 %v7793_v46, %v1631_v15  ;;  %v1880_v9 = vand.u32 4294901760, %v1879_v38  ;;  %v9904_v46 = vsub.f32 %v9883_v41, %v9895_v39 }
 0x219   : > { %v990_v21 = vpop.f32.mrf.mxu2  ;;  %v9907_v15 = vadd.f32 %v8032_v52, %v1663_v55  ;;  %v1894_v41 = vand.u32 4294901760, %v9904_v46 }
 0x21a   : > { %v991_v60 = vadd.f32 %v990_v21, %v15092_v2  ;;  %v1207_v58 = vpop.f32.mrf.mxu3  ;;  %v1375_v21 = vadd.f32 %v9649_v0, %v9695_v33  ;;  %v15095_v33 = vld [vmem:[#allocation48_spill] sm:$0xff] }
 0x21b   : > { %v9887_v34 = vadd.f32 %v1207_v58, %v986_v42  ;;  %v9889_v61 = vpop.f32.mrf.mxu0  ;;  %v1887_v42 = vsub.f32 %v9880_v32, %v1886_v13  ;;  %15094 = vst [vmem:[#allocation45_spill] sm:$0xff] %v9907_v15  ;;  %v1664_v58 = vmul.f32 %v7795_v16, %v1632_v4  ;;  %v9919_v55 = vand.u32 4294901760, %v9907_v15  ;;  %v7797_v52 = vpop.eup %7796  ;;  %v8033_v4 = vld [vmem:[%s8227_s20 + $0x90] sm:$0xff] }
 0x21c   : > { %v9891_v28 = vpop.f32.mrf.mxu1  ;;  %v1536_v0 = vadd.f32 %v9675_v56, %v1375_v21  ;;  %v1379_v56 = vadd.f32 %v9673_v11, %v9719_v63  ;;  %v1895_v16 = vsub.f32 %v9904_v46, %v1894_v41  ;;  %v15097_v11 = vld [vmem:[#allocation49_spill] sm:$0xff] }
 0x21d   : > { %v9928_v21 = vsub.f32 %v9907_v15, %v9919_v55 }
 0x21e   : > { %1881 = vmatmul.f32.gmra.mxu2 %v1880_v9  ;;  %2366 = vmatmul.f32.gmra.mxu0 %v9856_v17  ;;  %7798 = vtanh.f32 %v1536_v0  ;;  %v1540_v0 = vadd.f32 %v9699_v45, %v1379_v56 }
 0x21f   : > { %2170 = vmatmul.f32.gmra.mxu3 %v9823_v47  ;;  %2568 = vmatmul.f32.gmra.mxu1 %v1870_v26  ;;  %v1888_v47 = vand.u32 4294901760, %v1887_v42  ;;  %v9931_v42 = vadd.f32 %v8033_v4, %v1664_v58  ;;  %v1902_v15 = vand.u32 4294901760, %v9928_v21 }
 0x220   : > { %7800 = vtanh.f32 %v1540_v0 }
 0x221   : > { %v995_v38 = vpop.f32.mrf.mxu2  ;;  %15096 = vst [vmem:[#allocation50_spill] sm:$0xff] %v9931_v42  ;;  %v9941_v54 = vand.u32 4294901760, %v9931_v42 }
 0x222   : > { %v996_v9 = vadd.f32 %v995_v38, %v15095_v33  ;;  %v1213_v17 = vpop.f32.mrf.mxu3 }
 0x223   : > { %v9911_v2 = vadd.f32 %v1213_v17, %v991_v60  ;;  %v9913_v26 = vpop.f32.mrf.mxu0  ;;  %v1633_v60 = vmul.f32 %v7797_v52, %v7797_v52  ;;  %v9950_v56 = vsub.f32 %v9931_v42, %v9941_v54 }
 0x224   : > { %v9915_v8 = vpop.f32.mrf.mxu1  ;;  %v7799_v33 = vpop.eup %7798 }
 0x225   : > { %v1634_v45 = vmul.f32 %v7799_v33, %v7799_v33 }
 0x226   : > { %1889 = vmatmul.f32.gmra.mxu2 %v1888_v47  ;;  %2371 = vmatmul.f32.gmra.mxu0 %v9880_v32 }
 0x227   : > { %2174 = vmatmul.f32.gmra.mxu3 %v9847_v20  ;;  %2574 = vmatmul.f32.gmra.mxu1 %v1878_v37  ;;  %v1665_v37 = vmul.f32 %v7797_v52, %v1633_v60  ;;  %v1896_v20 = vand.u32 4294901760, %v1895_v16  ;;  %v1903_v52 = vsub.f32 %v9928_v21, %v1902_v15  ;;  %v8034_v60 = vld [vmem:[%s8227_s20 + $0x98] sm:$0xff] }
 0x229   : > { %v1000_v38 = vpop.f32.mrf.mxu2  ;;  %v9953_v16 = vadd.f32 %v8034_v60, %v1665_v37  ;;  %v9965_v37 = vld [vmem:[%s14344_s2 + $0x1] ss:$0 sm:$0xff] }
 0x22a   : > { %v1001_v63 = vadd.f32 %v1000_v38, %v15097_v11  ;;  %v1219_v47 = vpop.f32.mrf.mxu3  ;;  %v1666_v38 = vmul.f32 %v7799_v33, %v1634_v45  ;;  %v14487_v11 = vand.u32 4294901760, %v9950_v56  ;;  %v1387_v45 = vadd.f32 %v9721_v23, %v9767_v10 }
 0x22b   : > { %v9935_v32 = vadd.f32 %v1219_v47, %v996_v9  ;;  %v2297_v58 = vpop.f32.mrf.mxu0  ;;  %v1383_v9 = vadd.f32 %v9697_v59, %v9743_v53  ;;  %15098 = vst [vmem:[#allocation23_spill] sm:$0xff] %v9953_v16  ;;  %v7801_v59 = vpop.eup %7800  ;;  %v9960_v47 = vand.u32 4294901760, %v9953_v16 }
 0x22c   : > { %v9937_v17 = vpop.f32.mrf.mxu1  ;;  %v1635_v33 = vmul.f32 %v7801_v59, %v7801_v59 }
 0x22e   : > { %1897 = vmatmul.f32.gmra.mxu2 %v1896_v20  ;;  %2376 = vmatmul.f32.gmra.mxu0 %v9904_v46  ;;  %v1544_v46 = vadd.f32 %v9723_v25, %v1383_v9  ;;  %v7692_v25 = vld [vmem:[%s14343_s1 + $0x178] sm:$0xff]  ;;  %v8035_v9 = vld [vmem:[%s8227_s20 + $0xa0] sm:$0xff] }
 0x22f   : > { %2178 = vmatmul.f32.gmra.mxu3 %v9871_v44  ;;  %2580 = vmatmul.f32.gmra.mxu1 %v1886_v13  ;;  %v1904_v13 = vand.u32 4294901760, %v1903_v52  ;;  %v9977_v52 = vadd.f32 %v8035_v9, %v1666_v38  ;;  %v1548_v9 = vadd.f32 %v9747_v57, %v1387_v45  ;;  %v1391_v44 = vadd.f32 %v9745_v1, %v9791_v40  ;;  %v8036_v45 = vld [vmem:[%s8227_s20 + $0xa8] sm:$0xff] }
 0x230   : > { %7802 = vtanh.f32 %v1544_v46 }
 0x231   : > { %v1770_v4 = vpop.f32.mrf.mxu2  ;;  %15100 = vst [vmem:[#allocation2_spill] sm:$0xff] %v9977_v52  ;;  %7804 = vtanh.f32 %v1548_v9  ;;  %v1552_v40 = vadd.f32 %v9771_v24, %v1391_v44  ;;  %v7691_v24 = vld [vmem:[%s14343_s1 + $0x170] sm:$0xff]  ;;  %v1395_v44 = vadd.f32 %v9769_v22, %v9815_v51 }
 0x232   : > { %v1225_v20 = vpop.f32.mrf.mxu3  ;;  %v1771_v23 = vadd.f32 %v9965_v37, %v1770_v4  ;;  %v8037_v51 = vld [vmem:[%s8227_s20 + $0xb0] sm:$0xff] }
 0x233   : > { %v9956_v0 = vadd.f32 %v1225_v20, %v1001_v63  ;;  %v9971_v63 = vand.u32 4294901760, %v7692_v25  ;;  %v2302_v60 = vpop.f32.mrf.mxu0  ;;  %v1911_v20 = vsub.f32 %v9950_v56, %v14487_v11  ;;  %7806 = vtanh.f32 %v1552_v40 }
 0x234   : > { %v2491_v53 = vpop.f32.mrf.mxu1 }
 0x235   : > { %15099 = vst [vmem:[#allocation24_spill] sm:$0xff] %v9971_v63  ;;  %3185 = vmatpush.msrb.mxu0 %v9971_v63  ;;  %v9988_v46 = vsub.f32 %v7692_v25, %v9971_v63  ;;  %3908 = vmatpush.msra.mxu3 %v9971_v63  ;;  %v1912_v42 = vand.u32 4294901760, %v1911_v20 }
 0x236   : > { %1905 = vmatmul.f32.gmra.mxu2 %v1904_v13  ;;  %2381 = vmatmul.f32.gmra.mxu0 %v9928_v21  ;;  %v9984_v21 = vsub.f32 %v9953_v16, %v9960_v47  ;;  %v1667_v13 = vmul.f32 %v7801_v59, %v1635_v33  ;;  %v9996_v16 = vand.u32 4294901760, %v9977_v52  ;;  %v7803_v63 = vpop.eup %7802 }
 0x237   : > { %2182 = vmatmul.f32.gmra.mxu3 %v9895_v39  ;;  %2586 = vmatmul.f32.gmra.mxu1 %v1894_v41  ;;  %v14495_v38 = vand.u32 4294901760, %v9988_v46 }
 0x238   : > { %3700 = vmatpush.msra.mxu2 %v9988_v46  ;;  %v14497_v39 = vand.u32 4294901760, %v9984_v21  ;;  %v10008_v33 = vsub.f32 %v9977_v52, %v9996_v16  ;;  %v10011_v20 = vadd.f32 %v8036_v45, %v1667_v13 }
 0x239   : > { %v1778_v10 = vpop.f32.mrf.mxu2  ;;  %v3476_v4 = vsub.f32 %v9988_v46, %v14495_v38  ;;  %v7805_v38 = vpop.eup %7804 }
 0x23a   : > { %v2119_v41 = vpop.f32.mrf.mxu3  ;;  %15101 = vst [vmem:[#allocation52_spill] sm:$0xff] %v10011_v20  ;;  %v1919_v1 = vsub.f32 %v9984_v21, %v14497_v39  ;;  %v10022_v13 = vand.u32 4294901760, %v10011_v20  ;;  %v1637_v22 = vmul.f32 %v7805_v38, %v7805_v38 }
 0x23b   : > { %v2120_v11 = vadd.f32 %v2119_v41, %v1771_v23  ;;  %v3477_v57 = vand.u32 4294901760, %v3476_v4  ;;  %v1636_v41 = vmul.f32 %v7803_v63, %v7803_v63  ;;  %v14496_v4 = vand.u32 4294901760, %v10008_v33 }
 0x23c   : > { %v2497_v25 = vpop.f32.mrf.mxu1  ;;  %v1920_v45 = vand.u32 4294901760, %v1919_v1 }
 0x23d   : > { %v2298_v59 = vadd.f32 %v2297_v58, %v2120_v11  ;;  %3478 = vmatpush.msrb.mxu1 %v3477_v57  ;;  %v2307_v58 = vpop.f32.mrf.mxu0 }
 0x23e   : > { %1913 = vmatmul.f32.gmra.mxu2 %v1912_v42  ;;  %2386 = vmatmul.f32.gmra.mxu0 %v9950_v56  ;;  %v1779_v42 = vadd.f32 %v9965_v37, %v1778_v10  ;;  %v10030_v10 = vand.u32 4294901760, %v7691_v24 }
 0x23f   : > { %2186 = vmatmul.f32.gmra.mxu3 %v9919_v55  ;;  %2592 = vmatmul.f32.gmra.mxu1 %v1902_v15  ;;  %v10013_v23 = vadd.f32 %v2491_v53, %v2298_v59  ;;  %v1668_v53 = vmul.f32 %v7803_v63, %v1636_v41  ;;  %v15102_v63 = vand.u32 4294901760, %v9950_v56  ;;  %v10040_v41 = vsub.f32 %v10011_v20, %v10022_v13 }
 0x240   : > { %3187 = vmatpush.msrb.mxu0 %v10030_v10  ;;  %3910 = vmatpush.msra.mxu3 %v10030_v10 }
 0x241   : > { %v1786_v15 = vpop.f32.mrf.mxu2  ;;  %v10045_v40 = vadd.f32 %v8037_v51, %v1668_v53  ;;  %v1669_v51 = vmul.f32 %v7805_v38, %v1637_v22  ;;  %v1399_v38 = vadd.f32 %v9793_v7, %v9839_v30  ;;  %v15104_v22 = vand.u32 4294901760, %v9984_v21 }
 0x242   : > { %v2123_v11 = vpop.f32.mrf.mxu3  ;;  %v1787_v56 = vadd.f32 %v9965_v37, %v1786_v15 }
 0x243   : > { %v2124_v9 = vadd.f32 %v2123_v11, %v1779_v42  ;;  %15103 = vst [vmem:[#allocation51_spill] sm:$0xff] %v10045_v40  ;;  %v10049_v42 = vsub.f32 %v7691_v24, %v10030_v10  ;;  %v14500_v24 = vand.u32 4294901760, %v10040_v41  ;;  %v10058_v39 = vand.u32 4294901760, %v10045_v40 }
 0x244   : > { %v2503_v59 = vpop.f32.mrf.mxu1 }
 0x245   : > { %v2303_v57 = vadd.f32 %v2302_v60, %v2124_v9  ;;  %v1927_v60 = vsub.f32 %v10008_v33, %v14496_v4  ;;  %v1556_v9 = vadd.f32 %v9795_v6, %v1395_v44  ;;  %3703 = vmatpush.msra.mxu2 %v10049_v42  ;;  %v2312_v4 = vpop.f32.mrf.mxu0 }
 0x246   : > { %1921 = vmatmul.f32.gmra.mxu2 %v1920_v45  ;;  %2391 = vmatmul.f32.gmra.mxu0 %v9984_v21 }
 0x247   : > { %2190 = vmatmul.f32.gmra.mxu3 %v9941_v54  ;;  %2598 = vmatmul.f32.gmra.mxu1 %v15102_v63  ;;  %v10042_v1 = vadd.f32 %v2497_v25, %v2303_v57  ;;  %v14499_v25 = vand.u32 4294901760, %v10049_v42  ;;  %v7807_v57 = vpop.eup %7806  ;;  %v1928_v63 = vand.u32 4294901760, %v1927_v60  ;;  %7808 = vtanh.f32 %v1556_v9 }
 0x248   : > { %v1638_v44 = vmul.f32 %v7807_v57, %v7807_v57  ;;  %v10076_v9 = vsub.f32 %v10045_v40, %v10058_v39 }
 0x249   : > { %v1794_v11 = vpop.f32.mrf.mxu2  ;;  %v3482_v6 = vsub.f32 %v10049_v42, %v14499_v25 }
 0x24a   : > { %v2127_v45 = vpop.f32.mrf.mxu3  ;;  %v1795_v7 = vadd.f32 %v9965_v37, %v1794_v11  ;;  %v1670_v21 = vmul.f32 %v7807_v57, %v1638_v44  ;;  %v14501_v25 = vand.u32 4294901760, %v10076_v9  ;;  %v8039_v11 = vld [vmem:[%s8227_s20 + $0xc0] sm:$0xff] }
 0x24b   : > { %v2128_v53 = vadd.f32 %v2127_v45, %v1787_v56  ;;  %v3483_v60 = vand.u32 4294901760, %v3482_v6  ;;  %v8038_v45 = vld [vmem:[%s8227_s20 + $0xb8] sm:$0xff] }
 0x24c   : > { %v2509_v20 = vpop.f32.mrf.mxu1  ;;  %v10092_v57 = vadd.f32 %v8039_v11, %v1670_v21  ;;  %v1943_v21 = vsub.f32 %v10076_v9, %v14501_v25 }
 0x24d   : > { %v2308_v15 = vadd.f32 %v2307_v58, %v2128_v53  ;;  %v1935_v58 = vsub.f32 %v10040_v41, %v14500_v24  ;;  %3484 = vmatpush.msrb.mxu1 %v3483_v60  ;;  %v10079_v53 = vadd.f32 %v8038_v45, %v1669_v51  ;;  %v7690_v51 = vld [vmem:[%s14343_s1 + $0x168] sm:$0xff]  ;;  %v2317_v45 = vpop.f32.mrf.mxu0 }
 0x24e   : > { %1929 = vmatmul.f32.gmra.mxu2 %v1928_v63  ;;  %2396 = vmatmul.f32.gmra.mxu0 %v10008_v33  ;;  %15106 = vst [vmem:[#allocation53_spill] sm:$0xff] %v10092_v57  ;;  %v10120_v11 = vand.u32 4294901760, %v10092_v57 }
 0x24f   : > { %2194 = vmatmul.f32.gmra.mxu3 %v9960_v47  ;;  %2604 = vmatmul.f32.gmra.mxu1 %v15104_v22  ;;  %v10069_v56 = vadd.f32 %v2503_v59, %v2308_v15  ;;  %15105 = vst [vmem:[#allocation27_spill] sm:$0xff] %v10079_v53  ;;  %v1560_v59 = vadd.f32 %v9819_v43, %v1399_v38  ;;  %v7809_v15 = vpop.eup %7808  ;;  %v1936_v22 = vand.u32 4294901760, %v1935_v58  ;;  %v10085_v24 = vand.u32 4294901760, %v10079_v53 }
 0x250   : > { %v10094_v43 = vand.u32 4294901760, %v7690_v51  ;;  %v1639_v44 = vmul.f32 %v7809_v15, %v7809_v15  ;;  %v1403_v38 = vadd.f32 %v9817_v14, %v9863_v62 }
 0x251   : > { %v1802_v30 = vpop.f32.mrf.mxu2  ;;  %7810 = vtanh.f32 %v1560_v59 }
 0x252   : > { %v2131_v63 = vpop.f32.mrf.mxu3  ;;  %3189 = vmatpush.msrb.mxu0 %v10094_v43  ;;  %v10112_v14 = vsub.f32 %v7690_v51, %v10094_v43  ;;  %3912 = vmatpush.msra.mxu3 %v10094_v43  ;;  %v1803_v62 = vadd.f32 %v9965_v37, %v1802_v30  ;;  %v1944_v51 = vand.u32 4294901760, %v1943_v21 }
 0x253   : > { %v2132_v6 = vadd.f32 %v2131_v63, %v1795_v7  ;;  %v10108_v63 = vsub.f32 %v10079_v53, %v10085_v24  ;;  %v1407_v53 = vadd.f32 %v9841_v36, %v9887_v34 }
 0x254   : > { %v2515_v7 = vpop.f32.mrf.mxu1  ;;  %v14504_v59 = vand.u32 4294901760, %v10112_v14  ;;  %3706 = vmatpush.msra.mxu2 %v10112_v14 }
 0x255   : > { %v2313_v60 = vadd.f32 %v2312_v4, %v2132_v6  ;;  %v15107_v4 = vand.u32 4294901760, %v10008_v33  ;;  %v1671_v6 = vmul.f32 %v7809_v15, %v1639_v44  ;;  %v15108_v15 = vand.u32 4294901760, %v10040_v41  ;;  %v2322_v34 = vpop.f32.mrf.mxu0 }
 0x256   : > { %1937 = vmatmul.f32.gmra.mxu2 %v1936_v22  ;;  %2401 = vmatmul.f32.gmra.mxu0 %v10040_v41  ;;  %v1564_v22 = vadd.f32 %v9843_v50, %v1403_v38  ;;  %v3488_v30 = vsub.f32 %v10112_v14, %v14504_v59  ;;  %v10134_v44 = vsub.f32 %v10092_v57, %v10120_v11  ;;  %v8040_v38 = vld [vmem:[%s8227_s20 + $0xc8] sm:$0xff] }
 0x257   : > { %2198 = vmatmul.f32.gmra.mxu3 %v9996_v16  ;;  %2610 = vmatmul.f32.gmra.mxu1 %v15107_v4  ;;  %v10101_v58 = vadd.f32 %v2509_v20, %v2313_v60  ;;  %v14506_v4 = vand.u32 4294901760, %v10108_v63  ;;  %v7811_v25 = vpop.eup %7810  ;;  %v10137_v21 = vadd.f32 %v8040_v38, %v1671_v6 }
 0x258   : > { %v3489_v50 = vand.u32 4294901760, %v3488_v30  ;;  %7812 = vtanh.f32 %v1564_v22  ;;  %v1640_v36 = vmul.f32 %v7811_v25, %v7811_v25  ;;  %v14505_v6 = vand.u32 4294901760, %v10134_v44 }
 0x259   : > { %v1810_v33 = vpop.f32.mrf.mxu2  ;;  %15109 = vst [vmem:[#allocation3_spill] sm:$0xff] %v10137_v21 }
 0x25a   : > { %v2135_v20 = vpop.f32.mrf.mxu3  ;;  %3490 = vmatpush.msrb.mxu1 %v3489_v50  ;;  %v1811_v41 = vadd.f32 %v9965_v37, %v1810_v33  ;;  %v1959_v50 = vsub.f32 %v10134_v44, %v14505_v6 }
 0x25b   : > { %v2136_v60 = vadd.f32 %v2135_v20, %v1803_v62  ;;  %v1568_v20 = vadd.f32 %v9867_v31, %v1407_v53  ;;  %v7689_v31 = vld [vmem:[%s14343_s1 + $0x160] sm:$0xff]  ;;  %v1411_v53 = vadd.f32 %v9865_v18, %v9911_v2  ;;  %v8041_v2 = vld [vmem:[%s8227_s20 + $0xd0] sm:$0xff] }
 0x25c   : > { %v10156_v33 = vand.u32 4294901760, %v7689_v31 }
 0x25d   : > { %v2318_v40 = vadd.f32 %v2317_v45, %v2136_v60  ;;  %v1951_v45 = vsub.f32 %v10108_v63, %v14506_v4  ;;  %v2521_v60 = vpop.f32.mrf.mxu1  ;;  %7814 = vtanh.f32 %v1568_v20 }
 0x25e   : > { %1945 = vmatmul.f32.gmra.mxu2 %v1944_v51  ;;  %2406 = vmatmul.f32.gmra.mxu0 %v10076_v9  ;;  %v7813_v38 = vpop.eup %7812  ;;  %v10175_v20 = vsub.f32 %v7689_v31, %v10156_v33 }
 0x25f   : > { %2202 = vmatmul.f32.gmra.mxu3 %v10022_v13  ;;  %2616 = vmatmul.f32.gmra.mxu1 %v15108_v15  ;;  %v10139_v62 = vadd.f32 %v2515_v7, %v2318_v40  ;;  %v10148_v40 = vand.u32 4294901760, %v10137_v21  ;;  %v1672_v7 = vmul.f32 %v7811_v25, %v1640_v36  ;;  %v1952_v15 = vand.u32 4294901760, %v1951_v45 }
 0x260   : > { %v15110_v25 = vand.u32 4294901760, %v10076_v9  ;;  %v1641_v18 = vmul.f32 %v7813_v38, %v7813_v38  ;;  %3191 = vmatpush.msrb.mxu0 %v10156_v33  ;;  %3914 = vmatpush.msra.mxu3 %v10156_v33 }
 0x261   : > { %v1818_v22 = vpop.f32.mrf.mxu2  ;;  %v10166_v36 = vsub.f32 %v10137_v21, %v10148_v40  ;;  %v10171_v45 = vadd.f32 %v8041_v2, %v1672_v7  ;;  %3709 = vmatpush.msra.mxu2 %v10175_v20 }
 0x262   : > { %v2139_v51 = vpop.f32.mrf.mxu3  ;;  %v1819_v9 = vadd.f32 %v9965_v37, %v1818_v22  ;;  %v1673_v2 = vmul.f32 %v7813_v38, %v1641_v18  ;;  %v1415_v38 = vadd.f32 %v9889_v61, %v9935_v32 }
 0x263   : > { %v2140_v30 = vadd.f32 %v2139_v51, %v1811_v41  ;;  %15111 = vst [vmem:[#allocation28_spill] sm:$0xff] %v10171_v45  ;;  %v1572_v51 = vadd.f32 %v9891_v28, %v1411_v53  ;;  %v14508_v31 = vand.u32 4294901760, %v10166_v36  ;;  %v10184_v4 = vand.u32 4294901760, %v10171_v45 }
 0x265   : > { %v2323_v59 = vadd.f32 %v2322_v34, %v2140_v30  ;;  %v2327_v30 = vpop.f32.mrf.mxu0  ;;  %v2527_v6 = vpop.f32.mrf.mxu1  ;;  %15112 = vst [vmem:[#allocation31_spill] sm:$0xff] %v10184_v4  ;;  %7816 = vtanh.f32 %v1572_v51  ;;  %v10202_v51 = vsub.f32 %v10171_v45, %v10184_v4 }
 0x266   : > { %1953 = vmatmul.f32.gmra.mxu2 %v1952_v15  ;;  %2411 = vmatmul.f32.gmra.mxu0 %v10108_v63 }
 0x267   : > { %2206 = vmatmul.f32.gmra.mxu3 %v10058_v39  ;;  %2622 = vmatmul.f32.gmra.mxu1 %v15110_v25  ;;  %v10168_v34 = vadd.f32 %v2521_v60, %v2323_v59  ;;  %v14507_v59 = vand.u32 4294901760, %v10175_v20  ;;  %v7815_v60 = vpop.eup %7814  ;;  %v1960_v25 = vand.u32 4294901760, %v1959_v50  ;;  %v15113_v50 = vand.u32 4294901760, %v10108_v63 }
 0x268   : > { %v1642_v53 = vmul.f32 %v7815_v60, %v7815_v60 }
 0x269   : > { %v1826_v41 = vpop.f32.mrf.mxu2  ;;  %v3494_v28 = vsub.f32 %v10175_v20, %v14507_v59 }
 0x26a   : > { %v2143_v15 = vpop.f32.mrf.mxu3  ;;  %v1827_v61 = vadd.f32 %v9965_v37, %v1826_v41  ;;  %v1674_v63 = vmul.f32 %v7815_v60, %v1642_v53  ;;  %v7688_v41 = vld [vmem:[%s14343_s1 + $0x158] sm:$0xff]  ;;  %v8043_v60 = vld [vmem:[%s8227_s20 + $0xe0] sm:$0xff] }
 0x26b   : > { %v2144_v7 = vadd.f32 %v2143_v15, %v1819_v9  ;;  %v3495_v9 = vand.u32 4294901760, %v3494_v28  ;;  %v8042_v15 = vld [vmem:[%s8227_s20 + $0xd8] sm:$0xff]  ;;  %v10220_v53 = vand.u32 4294901760, %v7688_v41 }
 0x26d   : > { %v2328_v22 = vadd.f32 %v2327_v30, %v2144_v7  ;;  %v1967_v30 = vsub.f32 %v10166_v36, %v14508_v31  ;;  %3496 = vmatpush.msrb.mxu1 %v3495_v9  ;;  %v10205_v7 = vadd.f32 %v8042_v15, %v1673_v2  ;;  %v1974_v31 = vand.u32 4294901760, %v10202_v51  ;;  %v2533_v2 = vpop.f32.mrf.mxu1  ;;  %3193 = vmatpush.msrb.mxu0 %v10220_v53 }
 0x26e   : > { %1961 = vmatmul.f32.gmra.mxu2 %v1960_v25  ;;  %2416 = vmatmul.f32.gmra.mxu0 %v10134_v44  ;;  %v15117_v15 = vand.u32 4294901760, %v10134_v44 }
 0x26f   : > { %2210 = vmatmul.f32.gmra.mxu3 %v10085_v24  ;;  %2628 = vmatmul.f32.gmra.mxu1 %v15113_v50  ;;  %v10195_v18 = vadd.f32 %v2527_v6, %v2328_v22  ;;  %15114 = vst [vmem:[#allocation5_spill] sm:$0xff] %v10205_v7  ;;  %v1576_v6 = vadd.f32 %v9915_v8, %v1415_v38  ;;  %v7817_v22 = vpop.eup %7816  ;;  %v2332_v50 = vpop.f32.mrf.mxu0  ;;  %v1968_v59 = vand.u32 4294901760, %v1967_v30  ;;  %v10211_v45 = vand.u32 4294901760, %v10205_v7 }
 0x270   : > { %v10218_v8 = vadd.f32 %v8043_v60, %v1674_v63  ;;  %v1643_v38 = vmul.f32 %v7817_v22, %v7817_v22  ;;  %v1419_v30 = vadd.f32 %v9913_v26, %v9956_v0  ;;  %3916 = vmatpush.msra.mxu3 %v10220_v53 }
 0x271   : > { %v1834_v32 = vpop.f32.mrf.mxu2  ;;  %15115 = vst [vmem:[#allocation32_spill] sm:$0xff] %v10211_v45  ;;  %7818 = vtanh.f32 %v1576_v6  ;;  %v10232_v63 = vsub.f32 %v10205_v7, %v10211_v45 }
 0x272   : > { %v2147_v25 = vpop.f32.mrf.mxu3  ;;  %15116 = vst [vmem:[#allocation7_spill] sm:$0xff] %v10218_v8  ;;  %v1835_v26 = vadd.f32 %v9965_v37, %v1834_v32 }
 0x273   : > { %v2148_v28 = vadd.f32 %v2147_v25, %v1827_v61  ;;  %v10236_v25 = vsub.f32 %v7688_v41, %v10220_v53  ;;  %v1982_v60 = vand.u32 4294901760, %v10232_v63 }
 0x275   : > { %v2333_v9 = vadd.f32 %v2332_v50, %v2148_v28  ;;  %v14511_v6 = vand.u32 4294901760, %v10236_v25  ;;  %3712 = vmatpush.msra.mxu2 %v10236_v25  ;;  %v1675_v28 = vmul.f32 %v7817_v22, %v1643_v38  ;;  %v1580_v50 = vadd.f32 %v9937_v17, %v1419_v30  ;;  %v8044_v38 = vld [vmem:[%s8227_s20 + $0xe8] sm:$0xff] }
 0x276   : > { %1969 = vmatmul.f32.gmra.mxu2 %v1968_v59  ;;  %2421 = vmatmul.f32.gmra.mxu0 %v10166_v36  ;;  %v1975_v59 = vsub.f32 %v10202_v51, %v1974_v31  ;;  %v15119_v17 = vand.u32 4294901760, %v10166_v36 }
 0x277   : > { %2214 = vmatmul.f32.gmra.mxu3 %v10120_v11  ;;  %2634 = vmatmul.f32.gmra.mxu1 %v15117_v15  ;;  %v10227_v61 = vadd.f32 %v2533_v2, %v2333_v9  ;;  %v10246_v2 = vand.u32 4294901760, %v10218_v8  ;;  %v3500_v32 = vsub.f32 %v10236_v25, %v14511_v6  ;;  %v7819_v15 = vpop.eup %7818  ;;  %7820 = vtanh.f32 %v1580_v50 }
 0x278   : > { %v1976_v41 = vand.u32 4294901760, %v1975_v59  ;;  %v10259_v30 = vadd.f32 %v8044_v38, %v1675_v28  ;;  %v1644_v59 = vmul.f32 %v7819_v15, %v7819_v15  ;;  %v7687_v28 = vld [vmem:[%s14343_s1 + $0x150] sm:$0xff] }
 0x279   : > { %v1842_v0 = vpop.f32.mrf.mxu2  ;;  %15118 = vst [vmem:[#allocation4_spill] sm:$0xff] %v10246_v2  ;;  %v3501_v7 = vand.u32 4294901760, %v3500_v32  ;;  %v1989_v22 = vsub.f32 %v10218_v8, %v10246_v2 }
 0x27a   : > { %v2151_v44 = vpop.f32.mrf.mxu3  ;;  %15120 = vst [vmem:[#allocation35_spill] sm:$0xff] %v10259_v30  ;;  %v10266_v36 = vand.u32 4294901760, %v10259_v30 }
 0x27b   : > { %v10243_v9 = vadd.f32 %v2151_v44, %v1835_v26  ;;  %v1983_v26 = vsub.f32 %v10232_v63, %v1982_v60  ;;  %3502 = vmatpush.msrb.mxu1 %v3501_v7  ;;  %v1843_v44 = vadd.f32 %v9965_v37, %v1842_v0  ;;  %v1990_v32 = vand.u32 4294901760, %v1989_v22 }
 0x27c   : > { %15122 = vst [vmem:[#allocation36_spill] sm:$0xff] %v10266_v36  ;;  %v10272_v7 = vand.u32 4294901760, %v7687_v28  ;;  %v1997_v38 = vsub.f32 %v10259_v30, %v10266_v36 }
 0x27d   : > { %v1984_v6 = vand.u32 4294901760, %v1983_v26  ;;  %v7821_v8 = vpop.eup %7820  ;;  %v1991_v0 = vsub.f32 %v1989_v22, %v1990_v32 }
 0x27e   : > { %1977 = vmatmul.f32.gmra.mxu2 %v1976_v41  ;;  %2426 = vmatmul.f32.gmra.mxu0 %v10202_v51  ;;  %v10282_v26 = vsub.f32 %v7687_v28, %v10272_v7  ;;  %v1998_v21 = vand.u32 4294901760, %v1997_v38 }
 0x27f   : > { %2218 = vmatmul.f32.gmra.mxu3 %v10148_v40  ;;  %2640 = vmatmul.f32.gmra.mxu1 %v15119_v17  ;;  %v1676_v17 = vmul.f32 %v7819_v15, %v1644_v59  ;;  %v8045_v15 = vld [vmem:[%s8227_s20 + $0xf0] sm:$0xff] }
 0x280   : > { %3195 = vmatpush.msrb.mxu0 %v10272_v7  ;;  %3918 = vmatpush.msra.mxu3 %v10272_v7  ;;  %v1999_v52 = vsub.f32 %v1997_v38, %v1998_v21 }
 0x281   : > { %v1850_v51 = vpop.f32.mrf.mxu2  ;;  %v10278_v59 = vadd.f32 %v8045_v15, %v1676_v17  ;;  %3715 = vmatpush.msra.mxu2 %v10282_v26  ;;  %v1992_v17 = vand.u32 4294901760, %v1991_v0 }
 0x282   : > { %v2155_v41 = vpop.f32.mrf.mxu3 }
 0x283   : > { %v10263_v50 = vadd.f32 %v2155_v41, %v1843_v44  ;;  %v1645_v44 = vmul.f32 %v7821_v8, %v7821_v8  ;;  %15123 = vst [vmem:[#allocation39_spill] sm:$0xff] %v10278_v59  ;;  %v10291_v57 = vand.u32 4294901760, %v10278_v59 }
 0x285   : > { %15121 = vst [vmem:[#allocation6_spill] sm:$0xff] %v10263_v50  ;;  %v1677_v15 = vmul.f32 %v7821_v8, %v1645_v44  ;;  %v8046_v8 = vld [vmem:[%s8227_s20 + $0xf8] sm:$0xff]  ;;  %v15171_v50 = vand.u32 4294901760, %v10175_v20 }
 0x286   : > { %1985 = vmatmul.f32.gmra.mxu2 %v1984_v6  ;;  %2431 = vmatmul.f32.gmra.mxu0 %v10232_v63  ;;  %v1851_v63 = vadd.f32 %v9965_v37, %v1850_v51  ;;  %15125 = vst [vmem:[#allocation43_spill] sm:$0xff] %v10291_v57 }
 0x287   : > { %2222 = vmatmul.f32.gmra.mxu3 %v10184_v4  ;;  %2646 = vmatmul.f32.gmra.mxu1 %v1974_v31  ;;  %v14519_v31 = vand.u32 4294901760, %v10282_v26  ;;  %v10300_v0 = vadd.f32 %v8046_v8, %v1677_v15 }
 0x289   : > { %v1858_v6 = vpop.f32.mrf.mxu2  ;;  %v3506_v28 = vsub.f32 %v10282_v26, %v14519_v31  ;;  %15126 = vst [vmem:[#allocation44_spill] sm:$0xff] %v10300_v0 }
 0x28a   : > { %v2159_v41 = vpop.f32.mrf.mxu3  ;;  %v1859_v44 = vadd.f32 %v9965_v37, %v1858_v6 }
 0x28b   : > { %v10288_v30 = vadd.f32 %v2159_v41, %v1851_v63  ;;  %v3507_v51 = vand.u32 4294901760, %v3506_v28  ;;  %v2005_v63 = vsub.f32 %v10278_v59, %v10291_v57  ;;  %v10306_v28 = vand.u32 4294901760, %v10300_v0 }
 0x28d   : > { %15124 = vst [vmem:[#allocation40_spill] sm:$0xff] %v10288_v30  ;;  %3508 = vmatpush.msrb.mxu1 %v3507_v51 }
 0x28e   : > { %1993 = vmatmul.f32.gmra.mxu2 %v1992_v17  ;;  %2436 = vmatmul.f32.gmra.mxu0 %v1989_v22  ;;  %v2000_v17 = vand.u32 4294901760, %v1999_v52  ;;  %v2006_v22 = vand.u32 4294901760, %v2005_v63  ;;  %15128 = vst [vmem:[#allocation47_spill] sm:$0xff] %v10306_v28 }
 0x28f   : > { %2226 = vmatmul.f32.gmra.mxu3 %v10211_v45  ;;  %2652 = vmatmul.f32.gmra.mxu1 %v1982_v60  ;;  %v7686_v60 = vld [vmem:[%s14343_s1 + $0x148] sm:$0xff] }
 0x290   : > { %v10311_v51 = vand.u32 4294901760, %v7686_v60  ;;  %v2007_v6 = vsub.f32 %v2005_v63, %v2006_v22 }
 0x291   : > { %v1866_v41 = vpop.f32.mrf.mxu2 }
 0x292   : > { %v2163_v30 = vpop.f32.mrf.mxu3  ;;  %3197 = vmatpush.msrb.mxu0 %v10311_v51  ;;  %v10318_v52 = vsub.f32 %v7686_v60, %v10311_v51  ;;  %3920 = vmatpush.msra.mxu3 %v10311_v51  ;;  %v1867_v15 = vadd.f32 %v9965_v37, %v1866_v41 }
 0x293   : > { %v10303_v4 = vadd.f32 %v2163_v30, %v1859_v44  ;;  %v2013_v30 = vsub.f32 %v10300_v0, %v10306_v28 }
 0x294   : > { %v14525_v44 = vand.u32 4294901760, %v10318_v52  ;;  %3718 = vmatpush.msra.mxu2 %v10318_v52 }
 0x295   : > { %15127 = vst [vmem:[#allocation46_spill] sm:$0xff] %v10303_v4  ;;  %v2014_v31 = vand.u32 4294901760, %v2013_v30 }
 0x296   : > { %2001 = vmatmul.f32.gmra.mxu2 %v2000_v17  ;;  %2441 = vmatmul.f32.gmra.mxu0 %v1997_v38  ;;  %v2008_v17 = vand.u32 4294901760, %v2007_v6  ;;  %v3512_v0 = vsub.f32 %v10318_v52, %v14525_v44 }
 0x297   : > { %2230 = vmatmul.f32.gmra.mxu3 %v10246_v2  ;;  %2658 = vmatmul.f32.gmra.mxu1 %v1990_v32  ;;  %v2015_v41 = vsub.f32 %v2013_v30, %v2014_v31 }
 0x298   : > { %v3513_v60 = vand.u32 4294901760, %v3512_v0 }
 0x299   : > { %v1874_v8 = vpop.f32.mrf.mxu2  ;;  %v2016_v6 = vand.u32 4294901760, %v2015_v41 }
 0x29a   : > { %v2167_v38 = vpop.f32.mrf.mxu3  ;;  %3514 = vmatpush.msrb.mxu1 %v3513_v60  ;;  %v1875_v59 = vadd.f32 %v9965_v37, %v1874_v8 }
 0x29b   : > { %v10324_v32 = vadd.f32 %v2167_v38, %v1867_v15  ;;  %v7685_v38 = vld [vmem:[%s14343_s1 + $0x140] sm:$0xff] }
 0x29d   : > { %15129 = vst [vmem:[#allocation48_spill] sm:$0xff] %v10324_v32 }
 0x29e   : > { %2009 = vmatmul.f32.gmra.mxu2 %v2008_v17  ;;  %2446 = vmatmul.f32.gmra.mxu0 %v2005_v63  ;;  %v10336_v63 = vand.u32 4294901760, %v7685_v38 }
 0x29f   : > { %2234 = vmatmul.f32.gmra.mxu3 %v10266_v36  ;;  %2664 = vmatmul.f32.gmra.mxu1 %v1998_v21 }
 0x2a0   : > { %3199 = vmatpush.msrb.mxu0 %v10336_v63  ;;  %v10341_v21 = vsub.f32 %v7685_v38, %v10336_v63  ;;  %3922 = vmatpush.msra.mxu3 %v10336_v63  ;;  %v7684_v38 = vld [vmem:[%s14343_s1 + $0x138] sm:$0xff] }
 0x2a1   : > { %v1882_v2 = vpop.f32.mrf.mxu2 }
 0x2a2   : > { %v2171_v4 = vpop.f32.mrf.mxu3  ;;  %v14524_v8 = vand.u32 4294901760, %v10341_v21  ;;  %3721 = vmatpush.msra.mxu2 %v10341_v21 }
 0x2a3   : > { %v10331_v15 = vadd.f32 %v2171_v4, %v1875_v59  ;;  %v1883_v4 = vadd.f32 %v9965_v37, %v1882_v2 }
 0x2a5   : > { %15130 = vst [vmem:[#allocation49_spill] sm:$0xff] %v10331_v15 }
 0x2a6   : > { %2017 = vmatmul.f32.gmra.mxu2 %v2016_v6  ;;  %2451 = vmatmul.f32.gmra.mxu0 %v2013_v30 }
 0x2a7   : > { %2238 = vmatmul.f32.gmra.mxu3 %v10291_v57  ;;  %2670 = vmatmul.f32.gmra.mxu1 %v2006_v22  ;;  %v3518_v22 = vsub.f32 %v10341_v21, %v14524_v8 }
 0x2a9   : > { %v1890_v59 = vpop.f32.mrf.mxu2  ;;  %v3519_v17 = vand.u32 4294901760, %v3518_v22 }
 0x2aa   : > { %v2175_v0 = vpop.f32.mrf.mxu3  ;;  %v1891_v2 = vadd.f32 %v9965_v37, %v1890_v59 }
 0x2ab   : > { %v10347_v30 = vadd.f32 %v2175_v0, %v1883_v4  ;;  %3520 = vmatpush.msrb.mxu1 %v3519_v17  ;;  %v10361_v4 = vand.u32 4294901760, %v7684_v38 }
 0x2ad   : > { %15131 = vst [vmem:[#allocation54_spill] sm:$0xff] %v10347_v30  ;;  %3201 = vmatpush.msrb.mxu0 %v10361_v4  ;;  %3924 = vmatpush.msra.mxu3 %v10361_v4 }
 0x2ae   : > { %2745 = vmatmul.f32.vlgmr.msrb.gmra.mxu2 %v9453_v27 }
 0x2af   : > { %2242 = vmatmul.f32.gmra.mxu3 %v10306_v28  ;;  %2676 = vmatmul.f32.gmra.mxu1 %v2014_v31  ;;  %v10366_v31 = vsub.f32 %v7684_v38, %v10361_v4 }
 0x2b1   : > { %v1898_v60 = vpop.f32.mrf.mxu2  ;;  %v14526_v17 = vand.u32 4294901760, %v10366_v31  ;;  %3724 = vmatpush.msra.mxu2 %v10366_v31 }
 0x2b2   : > { %v2179_v41 = vpop.f32.mrf.mxu3  ;;  %v1899_v59 = vadd.f32 %v9965_v37, %v1898_v60 }
 0x2b3   : > { %v10355_v6 = vadd.f32 %v2179_v41, %v1891_v2 }
 0x2b5   : > { %15132 = vst [vmem:[#allocation55_spill] sm:$0xff] %v10355_v6 }
 0x2b6   : > { %2749 = vmatmul.f32.gmra.mxu2 %v9489_v48 }
 0x2b7   : > { %2906 = vmatmul.f32.vlgmr.msrb.gmra.mxu3 %v9453_v27  ;;  %v3524_v27 = vsub.f32 %v10366_v31, %v14526_v17 }
 0x2b9   : > { %v1906_v0 = vpop.f32.mrf.mxu2  ;;  %v3525_v41 = vand.u32 4294901760, %v3524_v27 }
 0x2ba   : > { %v2183_v22 = vpop.f32.mrf.mxu3  ;;  %v1907_v60 = vadd.f32 %v9965_v37, %v1906_v0 }
 0x2bb   : > { %v10372_v2 = vadd.f32 %v2183_v22, %v1899_v59  ;;  %3526 = vmatpush.msrb.mxu1 %v3525_v41  ;;  %v7683_v59 = vld [vmem:[%s14343_s1 + $0x130] sm:$0xff] }
 0x2bc   : > { %v10386_v22 = vand.u32 4294901760, %v7683_v59 }
 0x2bd   : > { %15133 = vst [vmem:[#allocation56_spill] sm:$0xff] %v10372_v2 }
 0x2be   : > { %2753 = vmatmul.f32.gmra.mxu2 %v9534_v49  ;;  %3203 = vmatpush.msrb.mxu0 %v10386_v22 }
 0x2bf   : > { %2910 = vmatmul.f32.gmra.mxu3 %v9489_v48  ;;  %v10391_v48 = vsub.f32 %v7683_v59, %v10386_v22 }
 0x2c0   : > { %3926 = vmatpush.msra.mxu3 %v10386_v22 }
 0x2c1   : > { %v1914_v38 = vpop.f32.mrf.mxu2  ;;  %v14527_v41 = vand.u32 4294901760, %v10391_v48  ;;  %3727 = vmatpush.msra.mxu2 %v10391_v48 }
 0x2c2   : > { %v2187_v8 = vpop.f32.mrf.mxu3 }
 0x2c3   : > { %v10380_v44 = vadd.f32 %v2187_v8, %v1907_v60  ;;  %v1915_v8 = vadd.f32 %v9965_v37, %v1914_v38 }
 0x2c5   : > { %15134 = vst [vmem:[#allocation57_spill] sm:$0xff] %v10380_v44 }
 0x2c6   : > { %2757 = vmatmul.f32.gmra.mxu2 %v9572_v35 }
 0x2c7   : > { %2914 = vmatmul.f32.gmra.mxu3 %v9534_v49  ;;  %v3530_v49 = vsub.f32 %v10391_v48, %v14527_v41 }
 0x2c9   : > { %v1922_v0 = vpop.f32.mrf.mxu2  ;;  %v3531_v59 = vand.u32 4294901760, %v3530_v49 }
 0x2ca   : > { %v2191_v27 = vpop.f32.mrf.mxu3  ;;  %v1923_v38 = vadd.f32 %v9965_v37, %v1922_v0 }
 0x2cb   : > { %v10397_v60 = vadd.f32 %v2191_v27, %v1915_v8  ;;  %3532 = vmatpush.msrb.mxu1 %v3531_v59  ;;  %v7682_v8 = vld [vmem:[%s14343_s1 + $0x128] sm:$0xff] }
 0x2cc   : > { %v10411_v27 = vand.u32 4294901760, %v7682_v8 }
 0x2cd   : > { %15135 = vst [vmem:[#allocation58_spill] sm:$0xff] %v10397_v60  ;;  %v10432_v60 = vpop.f32.mrf.mxu0 }
 0x2ce   : > { %2761 = vmatmul.f32.gmra.mxu2 %v9603_v3  ;;  %3205 = vmatpush.msrb.mxu0 %v10411_v27 }
 0x2cf   : > { %2918 = vmatmul.f32.gmra.mxu3 %v9572_v35  ;;  %v10416_v35 = vsub.f32 %v7682_v8, %v10411_v27 }
 0x2d0   : > { %3928 = vmatpush.msra.mxu3 %v10411_v27 }
 0x2d1   : > { %v1930_v17 = vpop.f32.mrf.mxu2  ;;  %v14530_v59 = vand.u32 4294901760, %v10416_v35  ;;  %3730 = vmatpush.msra.mxu2 %v10416_v35 }
 0x2d2   : > { %v2195_v44 = vpop.f32.mrf.mxu3 }
 0x2d3   : > { %v10405_v2 = vadd.f32 %v2195_v44, %v1923_v38  ;;  %v1931_v44 = vadd.f32 %v9965_v37, %v1930_v17  ;;  %v10422_v38 = vpop.f32.mrf.mxu1 }
 0x2d5   : > { %15136 = vst [vmem:[#allocation59_spill] sm:$0xff] %v10405_v2 }
 0x2d6   : > { %2765 = vmatmul.f32.gmra.mxu2 %v9631_v29 }
 0x2d7   : > { %2922 = vmatmul.f32.gmra.mxu3 %v9603_v3  ;;  %v3536_v3 = vsub.f32 %v10416_v35, %v14530_v59 }
 0x2d9   : > { %v1938_v0 = vpop.f32.mrf.mxu2  ;;  %v3537_v8 = vand.u32 4294901760, %v3536_v3 }
 0x2da   : > { %v2199_v49 = vpop.f32.mrf.mxu3  ;;  %v1939_v17 = vadd.f32 %v9965_v37, %v1938_v0 }
 0x2db   : > { %v10424_v41 = vadd.f32 %v2199_v49, %v1931_v44  ;;  %3538 = vmatpush.msrb.mxu1 %v3537_v8  ;;  %v10436_v44 = vpop.f32.mrf.mxu1  ;;  %v7681_v49 = vld [vmem:[%s14343_s1 + $0x120] sm:$0xff] }
 0x2dc   : > { %15139 = vst [vmem:[#allocation62_spill] sm:$0xff] %v10436_v44  ;;  %v10442_v3 = vand.u32 4294901760, %v7681_v49 }
 0x2dd   : > { %15137 = vst [vmem:[#allocation60_spill] sm:$0xff] %v10424_v41 }
 0x2de   : > { %2769 = vmatmul.f32.gmra.mxu2 %v9655_v12  ;;  %3207 = vmatpush.msrb.mxu0 %v10442_v3 }
 0x2df   : > { %2926 = vmatmul.f32.gmra.mxu3 %v9631_v29  ;;  %v10447_v29 = vsub.f32 %v7681_v49, %v10442_v3 }
 0x2e0   : > { %3930 = vmatpush.msra.mxu3 %v10442_v3 }
 0x2e1   : > { %v1946_v2 = vpop.f32.mrf.mxu2  ;;  %3733 = vmatpush.msra.mxu2 %v10447_v29 }
 0x2e2   : > { %v2203_v6 = vpop.f32.mrf.mxu3 }
 0x2e3   : > { %v10434_v28 = vadd.f32 %v2203_v6, %v1939_v17  ;;  %v1947_v6 = vadd.f32 %v9965_v37, %v1946_v2  ;;  %v14533_v17 = vand.u32 4294901760, %v10447_v29  ;;  %v10461_v41 = vpop.f32.mrf.mxu1 }
 0x2e4   : > { %15142 = vst [vmem:[#allocation65_spill] sm:$0xff] %v10461_v41 }
 0x2e5   : > { %15138 = vst [vmem:[#allocation61_spill] sm:$0xff] %v10434_v28  ;;  %v10455_v28 = vpop.f32.mrf.mxu0 }
 0x2e6   : > { %2773 = vmatmul.f32.gmra.mxu2 %v9679_v5  ;;  %15141 = vst [vmem:[#allocation64_spill] sm:$0xff] %v10455_v28 }
 0x2e7   : > { %2930 = vmatmul.f32.gmra.mxu3 %v9655_v12  ;;  %v3542_v12 = vsub.f32 %v10447_v29, %v14533_v17  ;;  %v15145_v17 = vld [vmem:[#allocation18_spill] sm:$0xff] }
 0x2e9   : > { %v1954_v0 = vpop.f32.mrf.mxu2  ;;  %v3543_v49 = vand.u32 4294901760, %v3542_v12 }
 0x2ea   : > { %v2207_v8 = vpop.f32.mrf.mxu3  ;;  %v1955_v2 = vadd.f32 %v9965_v37, %v1954_v0 }
 0x2eb   : > { %v10453_v59 = vadd.f32 %v2207_v8, %v1947_v6  ;;  %3544 = vmatpush.msrb.mxu1 %v3543_v49  ;;  %v7680_v8 = vld [vmem:[%s14343_s1 + $0x118] sm:$0xff] }
 0x2ec   : > { %v10473_v12 = vand.u32 4294901760, %v7680_v8 }
 0x2ed   : > { %15140 = vst [vmem:[#allocation63_spill] sm:$0xff] %v10453_v59  ;;  %v10470_v59 = vpop.f32.mrf.mxu0 }
 0x2ee   : > { %2777 = vmatmul.f32.gmra.mxu2 %v9703_v19  ;;  %15144 = vst [vmem:[#allocation67_spill] sm:$0xff] %v10470_v59  ;;  %3209 = vmatpush.msrb.mxu0 %v10473_v12  ;;  %v15163_v59 = vld [vmem:[#allocation33_spill] sm:$0xff] }
 0x2ef   : > { %2934 = vmatmul.f32.gmra.mxu3 %v9679_v5  ;;  %v10478_v5 = vsub.f32 %v7680_v8, %v10473_v12  ;;  %v15148_v8 = vld [vmem:[#allocation19_spill] sm:$0xff] }
 0x2f0   : > { %3932 = vmatpush.msra.mxu3 %v10473_v12 }
 0x2f1   : > { %v1962_v30 = vpop.f32.mrf.mxu2  ;;  %3736 = vmatpush.msra.mxu2 %v10478_v5 }
 0x2f2   : > { %v2211_v57 = vpop.f32.mrf.mxu3  ;;  %v1963_v0 = vadd.f32 %v9965_v37, %v1962_v30 }
 0x2f3   : > { %v10465_v6 = vadd.f32 %v2211_v57, %v1955_v2  ;;  %v10481_v57 = vpop.f32.mrf.mxu1 }
 0x2f4   : > { %15146 = vst [vmem:[#allocation18_spill] sm:$0xff] %v10481_v57 }
 0x2f5   : > { %15143 = vst [vmem:[#allocation66_spill] sm:$0xff] %v10465_v6  ;;  %v14538_v6 = vand.u32 4294901760, %v10478_v5  ;;  %v10493_v32 = vpop.f32.mrf.mxu0 }
 0x2f6   : > { %2781 = vmatmul.f32.gmra.mxu2 %v15145_v17  ;;  %15149 = vst [vmem:[#allocation19_spill] sm:$0xff] %v10493_v32 }
 0x2f7   : > { %2938 = vmatmul.f32.gmra.mxu3 %v9703_v19  ;;  %v3548_v19 = vsub.f32 %v10478_v5, %v14538_v6  ;;  %v15152_v6 = vld [vmem:[#allocation21_spill] sm:$0xff] }
 0x2f9   : > { %v1970_v49 = vpop.f32.mrf.mxu2  ;;  %v3549_v36 = vand.u32 4294901760, %v3548_v19 }
 0x2fa   : > { %v2215_v2 = vpop.f32.mrf.mxu3  ;;  %v1971_v30 = vadd.f32 %v9965_v37, %v1970_v49 }
 0x2fb   : > { %v10486_v15 = vadd.f32 %v2215_v2, %v1963_v0  ;;  %3550 = vmatpush.msrb.mxu1 %v3549_v36  ;;  %v10496_v45 = vpop.f32.mrf.mxu1  ;;  %v7679_v2 = vld [vmem:[%s14343_s1 + $0x110] sm:$0xff] }
 0x2fc   : > { %15150 = vst [vmem:[#allocation69_spill] sm:$0xff] %v10496_v45  ;;  %v10504_v19 = vand.u32 4294901760, %v7679_v2  ;;  %v15156_v45 = vld [vmem:[#allocation14_spill] sm:$0xff] }
 0x2fd   : > { %15147 = vst [vmem:[#allocation68_spill] sm:$0xff] %v10486_v15  ;;  %v10513_v49 = vpop.f32.mrf.mxu0 }
 0x2fe   : > { %2785 = vmatmul.f32.gmra.mxu2 %v15148_v8  ;;  %3211 = vmatpush.msrb.mxu0 %v10504_v19  ;;  %v10509_v36 = vsub.f32 %v7679_v2, %v10504_v19  ;;  %15153 = vst [vmem:[#allocation21_spill] sm:$0xff] %v10513_v49 }
 0x2ff   : > { %2942 = vmatmul.f32.gmra.mxu3 %v15145_v17 }
 0x300   : > { %3934 = vmatpush.msra.mxu3 %v10504_v19  ;;  %3739 = vmatpush.msra.mxu2 %v10509_v36 }
 0x301   : > { %v1978_v57 = vpop.f32.mrf.mxu2 }
 0x302   : > { %v2219_v41 = vpop.f32.mrf.mxu3 }
 0x303   : > { %v10498_v0 = vadd.f32 %v2219_v41, %v1971_v30  ;;  %v1979_v41 = vadd.f32 %v9965_v37, %v1978_v57  ;;  %v10522_v2 = vpop.f32.mrf.mxu1  ;;  %v8047_v37 = vld [vmem:[%s14344_s2 + $0x1] ss:$0 sm:$0xff] }
 0x304   : > { %15155 = vst [vmem:[#allocation72_spill] sm:$0xff] %v10522_v2  ;;  %v15159_v2 = vld [vmem:[#allocation42_spill] sm:$0xff] }
 0x305   : > { %15151 = vst [vmem:[#allocation70_spill] sm:$0xff] %v10498_v0  ;;  %v14539_v0 = vand.u32 4294901760, %v10509_v36 }
 0x306   : > { %2789 = vmatmul.f32.gmra.mxu2 %v15152_v6 }
 0x307   : > { %2946 = vmatmul.f32.gmra.mxu3 %v15148_v8  ;;  %v3554_v8 = vsub.f32 %v10509_v36, %v14539_v0  ;;  %v7678_v0 = vld [vmem:[%s14343_s1 + $0x108] sm:$0xff] }
 0x309   : > { %v1986_v17 = vpop.f32.mrf.mxu2  ;;  %v3555_v32 = vand.u32 4294901760, %v3554_v8  ;;  %v10537_v8 = vand.u32 4294901760, %v7678_v0 }
 0x30a   : > { %v2223_v30 = vpop.f32.mrf.mxu3  ;;  %v1987_v57 = vadd.f32 %v8047_v37, %v1986_v17 }
 0x30b   : > { %v10517_v15 = vadd.f32 %v2223_v30, %v1979_v41  ;;  %3556 = vmatpush.msrb.mxu1 %v3555_v32  ;;  %v10539_v32 = vpop.f32.mrf.mxu1  ;;  %3213 = vmatpush.msrb.mxu0 %v10537_v8 }
 0x30c   : > { %15160 = vst [vmem:[#allocation42_spill] sm:$0xff] %v10539_v32  ;;  %3936 = vmatpush.msra.mxu3 %v10537_v8 }
 0x30d   : > { %15154 = vst [vmem:[#allocation71_spill] sm:$0xff] %v10517_v15  ;;  %v10531_v15 = vpop.f32.mrf.mxu0 }
 0x30e   : > { %2793 = vmatmul.f32.gmra.mxu2 %v15156_v45  ;;  %15158 = vst [vmem:[#allocation73_spill] sm:$0xff] %v10531_v15 }
 0x30f   : > { %2950 = vmatmul.f32.gmra.mxu3 %v15152_v6  ;;  %v10544_v6 = vsub.f32 %v7678_v0, %v10537_v8 }
 0x311   : > { %v1994_v49 = vpop.f32.mrf.mxu2  ;;  %3742 = vmatpush.msra.mxu2 %v10544_v6 }
 0x312   : > { %v2227_v41 = vpop.f32.mrf.mxu3  ;;  %v1995_v17 = vadd.f32 %v8047_v37, %v1994_v49  ;;  %v7677_v49 = vld [vmem:[%s14343_s1 + $0x100] sm:$0xff] }
 0x313   : > { %v10529_v30 = vadd.f32 %v2227_v41, %v1987_v57  ;;  %v10561_v44 = vpop.f32.mrf.mxu1 }
 0x314   : > { %15164 = vst [vmem:[#allocation33_spill] sm:$0xff] %v10561_v44  ;;  %v15168_v44 = vand.u32 4294901760, %v10049_v42 }
 0x315   : > { %15157 = vst [vmem:[#allocation14_spill] sm:$0xff] %v10529_v30  ;;  %v14540_v30 = vand.u32 4294901760, %v10544_v6  ;;  %v10554_v32 = vpop.f32.mrf.mxu0 }
 0x316   : > { %2797 = vmatmul.f32.gmra.mxu2 %v15159_v2  ;;  %15162 = vst [vmem:[#allocation75_spill] sm:$0xff] %v10554_v32 }
 0x317   : > { %2954 = vmatmul.f32.gmra.mxu3 %v15156_v45  ;;  %v3560_v45 = vsub.f32 %v10544_v6, %v14540_v30 }
 0x319   : > { %v2002_v57 = vpop.f32.mrf.mxu2  ;;  %v3561_v0 = vand.u32 4294901760, %v3560_v45 }
 0x31a   : > { %v2231_v41 = vpop.f32.mrf.mxu3 }
 0x31b   : > { %v10549_v15 = vadd.f32 %v2231_v41, %v1995_v17  ;;  %3562 = vmatpush.msrb.mxu1 %v3561_v0  ;;  %v2003_v17 = vadd.f32 %v8047_v37, %v2002_v57  ;;  %v15167_v57 = vld [vmem:[#allocation16_spill] sm:$0xff]  ;;  %v10589_v42 = vpop.f32.mrf.mxu1 }
 0x31d   : > { %15161 = vst [vmem:[#allocation74_spill] sm:$0xff] %v10549_v15  ;;  %v10563_v15 = vand.u32 4294901760, %v7677_v49 }
 0x31e   : > { %2801 = vmatmul.f32.gmra.mxu2 %v15163_v59 }
 0x31f   : > { %2958 = vmatmul.f32.gmra.mxu3 %v15159_v2  ;;  %3215 = vmatpush.msrb.mxu0 %v10563_v15  ;;  %v10569_v45 = vsub.f32 %v7677_v49, %v10563_v15  ;;  %v15166_v2 = vand.u32 4294901760, %v9988_v46  ;;  %v10583_v49 = vpop.f32.mrf.mxu0  ;;  %v15170_v46 = vand.u32 4294901760, %v10112_v14  ;;  %v15175_v14 = vand.u32 4294901760, %v10282_v26 }
 0x320   : > { %3938 = vmatpush.msra.mxu3 %v10563_v15  ;;  %15169 = vst [vmem:[#allocation16_spill] sm:$0xff] %v10583_v49  ;;  %v15174_v49 = vld [vmem:[#allocation41_spill] sm:$0xff] }
 0x321   : > { %v2010_v41 = vpop.f32.mrf.mxu2  ;;  %4135 = vmatpush.msra.mxu0 %v15166_v2  ;;  %v14541_v0 = vand.u32 4294901760, %v10569_v45  ;;  %3745 = vmatpush.msra.mxu2 %v10569_v45 }
 0x322   : > { %v2235_v28 = vpop.f32.mrf.mxu3 }
 0x323   : > { %v10565_v30 = vadd.f32 %v2235_v28, %v2003_v17  ;;  %4139 = vmatpush.msra.mxu0 %v15168_v44  ;;  %v3566_v28 = vsub.f32 %v10569_v45, %v14541_v0  ;;  %v2011_v17 = vadd.f32 %v8047_v37, %v2010_v41  ;;  %v15173_v0 = vand.u32 4294901760, %v10236_v25  ;;  %v10612_v26 = vpop.f32.mrf.mxu1 }
 0x325   : > { %15165 = vst [vmem:[#allocation76_spill] sm:$0xff] %v10565_v30  ;;  %4143 = vmatpush.msra.mxu0 %v15170_v46  ;;  %v3567_v30 = vand.u32 4294901760, %v3566_v28 }
 0x326   : > { %2805 = vmatmul.f32.gmra.mxu2 %v15167_v57 }
 0x327   : > { %2962 = vmatmul.f32.gmra.mxu3 %v15163_v59  ;;  %4147 = vmatpush.msra.mxu0 %v15171_v50  ;;  %v15172_v59 = vld [vmem:[#allocation24_spill] sm:$0xff] }
 0x328   : > { %3568 = vmatpush.msrb.mxu1 %v3567_v30  ;;  %v15176_v30 = vand.u32 4294901760, %v10318_v52 }
 0x329   : > { %v2018_v2 = vpop.f32.mrf.mxu2  ;;  %4151 = vmatpush.msra.mxu0 %v15173_v0  ;;  %v15181_v0 = vand.u32 4294901760, %v10447_v29 }
 0x32a   : > { %v2239_v32 = vpop.f32.mrf.mxu3  ;;  %4326 = vmatpush.msra.mxu1 %v15172_v59  ;;  %v2019_v20 = vadd.f32 %v8047_v37, %v2018_v2 }
 0x32b   : > { %v10591_v44 = vadd.f32 %v2239_v32, %v2011_v17  ;;  %4155 = vmatpush.msra.mxu0 %v15175_v14  ;;  %v10604_v32 = vpop.f32.mrf.mxu0 }
 0x32c   : > { %4328 = vmatpush.msra.mxu1 %v10030_v10  ;;  %v15177_v10 = vand.u32 4294901760, %v10341_v21 }
 0x32d   : > { %4159 = vmatpush.msra.mxu0 %v15176_v30 }
 0x32e   : > { %2809 = vmatmul.f32.gmra.mxu2 %v15174_v49  ;;  %4330 = vmatpush.msra.mxu1 %v10094_v43  ;;  %v15178_v43 = vand.u32 4294901760, %v10366_v31 }
 0x32f   : > { %2966 = vmatmul.f32.gmra.mxu3 %v15167_v57  ;;  %4163 = vmatpush.msra.mxu0 %v15177_v10  ;;  %v15185_v57 = vand.u32 4294901760, %v10569_v45 }
 0x330   : > { %4332 = vmatpush.msra.mxu1 %v10156_v33  ;;  %v15179_v33 = vand.u32 4294901760, %v10391_v48 }
 0x331   : > { %v2746_v50 = vpop.f32.mrf.mxu2  ;;  %4167 = vmatpush.msra.mxu0 %v15178_v43 }
 0x332   : > { %v2243_v25 = vpop.f32.mrf.mxu3  ;;  %4334 = vmatpush.msra.mxu1 %v10220_v53  ;;  %v2747_v52 = vadd.f32 %v2746_v50, %v10013_v23  ;;  %v15180_v53 = vand.u32 4294901760, %v10416_v35  ;;  %v10635_v23 = vpop.f32.mrf.mxu1  ;;  %v15184_v35 = vand.u32 4294901760, %v10544_v6 }
 0x333   : > { %v10607_v41 = vadd.f32 %v2243_v25, %v2019_v20  ;;  %4171 = vmatpush.msra.mxu0 %v15179_v33 }
 0x334   : > { %4336 = vmatpush.msra.mxu1 %v10272_v7  ;;  %v10628_v7 = vpop.f32.mrf.mxu0 }
 0x335   : > { %4175 = vmatpush.msra.mxu0 %v15180_v53 }
 0x336   : > { %2813 = vmatmul.f32.gmra.mxu2 %v9919_v55  ;;  %4338 = vmatpush.msra.mxu1 %v10311_v51  ;;  %v15182_v51 = vand.u32 4294901760, %v10478_v5 }
 0x337   : > { %2970 = vmatmul.f32.gmra.mxu3 %v15174_v49  ;;  %4179 = vmatpush.msra.mxu0 %v15181_v0 }
 0x338   : > { %4340 = vmatpush.msra.mxu1 %v10336_v63  ;;  %v15183_v63 = vand.u32 4294901760, %v10509_v36 }
 0x339   : > { %v2750_v21 = vpop.f32.mrf.mxu2  ;;  %4183 = vmatpush.msra.mxu0 %v15182_v51 }
 0x33a   : > { %v2907_v37 = vpop.f32.mrf.mxu3  ;;  %4342 = vmatpush.msra.mxu1 %v10361_v4  ;;  %v2751_v48 = vadd.f32 %v2750_v21, %v10042_v1  ;;  %v15186_v1 = vld [vmem:[#allocation9_spill] sm:$0xff]  ;;  %v10657_v6 = vpop.f32.mrf.mxu1 }
 0x33b   : > { %v2908_v31 = vadd.f32 %v2907_v37, %v2747_v52  ;;  %4187 = vmatpush.msra.mxu0 %v15183_v63  ;;  %v15190_v37 = vld [vmem:[#allocation11_spill] sm:$0xff] }
 0x33c   : > { %4344 = vmatpush.msra.mxu1 %v10386_v22  ;;  %v10648_v36 = vpop.f32.mrf.mxu0 }
 0x33d   : > { %7822 = vtanh.f32 %v2908_v31  ;;  %4191 = vmatpush.msra.mxu0 %v15184_v35 }
 0x33e   : > { %2817 = vmatmul.f32.gmra.mxu2 %v9941_v54  ;;  %4346 = vmatpush.msra.mxu1 %v10411_v27 }
 0x33f   : > { %2974 = vmatmul.f32.gmra.mxu3 %v9919_v55  ;;  %4195 = vmatpush.msra.mxu0 %v15185_v57 }
 0x340   : > { %4348 = vmatpush.msra.mxu1 %v10442_v3 }
 0x341   : > { %v2754_v4 = vpop.f32.mrf.mxu2 }
 0x342   : > { %v2911_v29 = vpop.f32.mrf.mxu3  ;;  %4350 = vmatpush.msra.mxu1 %v10473_v12  ;;  %v2755_v45 = vadd.f32 %v2754_v4, %v10069_v56  ;;  %v10684_v33 = vpop.f32.mrf.mxu1 }
 0x343   : > { %v7823_v5 = vpop.eup %7822  ;;  %v2912_v22 = vadd.f32 %v2911_v29, %v2751_v48 }
 0x344   : > { %v3066_v55 = vmul.f32 %v7823_v5, %v7823_v5  ;;  %4352 = vmatpush.msra.mxu1 %v10504_v19  ;;  %v10672_v2 = vpop.f32.mrf.mxu0 }
 0x345   : > { %7824 = vtanh.f32 %v2912_v22 }
 0x346   : > { %v3098_v27 = vmul.f32 %v7823_v5, %v3066_v55  ;;  %2821 = vmatmul.f32.gmra.mxu2 %v9960_v47  ;;  %4354 = vmatpush.msra.mxu1 %v10537_v8 }
 0x347   : > { %2978 = vmatmul.f32.gmra.mxu3 %v9941_v54 }
 0x348   : > { %v10654_v3 = vadd.f32 %v3098_v27, %v15186_v1  ;;  %4356 = vmatpush.msra.mxu1 %v10563_v15  ;;  %v15188_v15 = vld [vmem:[#allocation8_spill] sm:$0xff]  ;;  %v15192_v1 = vld [vmem:[#allocation10_spill] sm:$0xff] }
 0x349   : > { %v2758_v12 = vpop.f32.mrf.mxu2 }
 0x34a   : > { %15187 = vst [vmem:[#allocation24_spill] sm:$0xff] %v10654_v3  ;;  %v2915_v28 = vpop.f32.mrf.mxu3  ;;  %v10661_v49 = vand.u32 4294901760, %v10654_v3  ;;  %v2759_v20 = vadd.f32 %v2758_v12, %v10101_v58  ;;  %v10711_v55 = vpop.f32.mrf.mxu1 }
 0x34b   : > { %v7825_v46 = vpop.eup %7824  ;;  %v2916_v19 = vadd.f32 %v2915_v28, %v2755_v45 }
 0x34c   : > { %v3067_v17 = vmul.f32 %v7825_v46, %v7825_v46  ;;  %3570 = vmatmul.f32.vlgmr.msrb.gmra.mxu1 %v10661_v49  ;;  %v10667_v54 = vsub.f32 %v10654_v3, %v10661_v49  ;;  %v10701_v48 = vpop.f32.mrf.mxu0 }
 0x34d   : > { %7826 = vtanh.f32 %v2916_v19 }
 0x34e   : > { %v3099_v8 = vmul.f32 %v7825_v46, %v3067_v17  ;;  %2825 = vmatmul.f32.gmra.mxu2 %v9996_v16  ;;  %v14548_v56 = vand.u32 4294901760, %v10667_v54 }
 0x34f   : > { %2982 = vmatmul.f32.gmra.mxu3 %v9960_v47 }
 0x350   : > { %v10675_v59 = vadd.f32 %v3099_v8, %v15188_v15  ;;  %v3219_v14 = vsub.f32 %v10667_v54, %v14548_v56  ;;  %v15218_v56 = vld [vmem:[#allocation19_spill] sm:$0xff] }
 0x351   : > { %v2762_v50 = vpop.f32.mrf.mxu2 }
 0x352   : > { %15189 = vst [vmem:[#allocation41_spill] sm:$0xff] %v10675_v59  ;;  %v2919_v30 = vpop.f32.mrf.mxu3  ;;  %v3220_v25 = vand.u32 4294901760, %v3219_v14  ;;  %v10682_v10 = vand.u32 4294901760, %v10675_v59  ;;  %v2763_v51 = vadd.f32 %v2762_v50, %v10139_v62 }
 0x353   : > { %v7827_v43 = vpop.eup %7826  ;;  %v2920_v47 = vadd.f32 %v2919_v30, %v2759_v20 }
 0x354   : > { %v3068_v52 = vmul.f32 %v7827_v43, %v7827_v43  ;;  %3221 = vmatmul.f32.vlgmr.msrb.gmra.mxu0 %v3220_v25  ;;  %3574 = vmatmul.f32.gmra.mxu1 %v10682_v10  ;;  %v10689_v21 = vsub.f32 %v10675_v59, %v10682_v10  ;;  %v10726_v20 = vpop.f32.mrf.mxu0  ;;  %v10735_v25 = vpop.f32.mrf.mxu1 }
 0x355   : > { %7828 = vtanh.f32 %v2920_v47 }
 0x356   : > { %v3100_v58 = vmul.f32 %v7827_v43, %v3068_v52  ;;  %2829 = vmatmul.f32.gmra.mxu2 %v10022_v13  ;;  %v14547_v53 = vand.u32 4294901760, %v10689_v21  ;;  %v15194_v43 = vld [vmem:[#allocation20_spill] sm:$0xff] }
 0x357   : > { %2986 = vmatmul.f32.gmra.mxu3 %v9996_v16 }
 0x358   : > { %v10695_v31 = vadd.f32 %v3100_v58, %v15190_v37  ;;  %v3227_v0 = vsub.f32 %v10689_v21, %v14547_v53  ;;  %v15217_v53 = vld [vmem:[#allocation46_spill] sm:$0xff] }
 0x359   : > { %v2766_v63 = vpop.f32.mrf.mxu2 }
 0x35a   : > { %15191 = vst [vmem:[#allocation9_spill] sm:$0xff] %v10695_v31  ;;  %v2923_v4 = vpop.f32.mrf.mxu3  ;;  %v3228_v35 = vand.u32 4294901760, %v3227_v0  ;;  %v10704_v29 = vand.u32 4294901760, %v10695_v31  ;;  %v2767_v28 = vadd.f32 %v2766_v63, %v10168_v34 }
 0x35b   : > { %v7829_v5 = vpop.eup %7828  ;;  %v2924_v22 = vadd.f32 %v2923_v4, %v2763_v51 }
 0x35c   : > { %v3069_v16 = vmul.f32 %v7829_v5, %v7829_v5  ;;  %3229 = vmatmul.f32.gmra.mxu0 %v3228_v35  ;;  %3578 = vmatmul.f32.gmra.mxu1 %v10704_v29  ;;  %v10709_v57 = vsub.f32 %v10695_v31, %v10704_v29 }
 0x35d   : > { %7830 = vtanh.f32 %v2924_v22  ;;  %v10753_v22 = vpop.f32.mrf.mxu0 }
 0x35e   : > { %v3101_v62 = vmul.f32 %v7829_v5, %v3069_v16  ;;  %2833 = vmatmul.f32.gmra.mxu2 %v10058_v39  ;;  %v14546_v27 = vand.u32 4294901760, %v10709_v57 }
 0x35f   : > { %2990 = vmatmul.f32.gmra.mxu3 %v10022_v13 }
 0x360   : > { %v10717_v45 = vadd.f32 %v3101_v62, %v15192_v1  ;;  %v3235_v12 = vsub.f32 %v10709_v57, %v14546_v27  ;;  %v15197_v62 = vld [vmem:[#allocation22_spill] sm:$0xff] }
 0x361   : > { %v2770_v46 = vpop.f32.mrf.mxu2 }
 0x362   : > { %15193 = vst [vmem:[#allocation8_spill] sm:$0xff] %v10717_v45  ;;  %v2927_v19 = vpop.f32.mrf.mxu3  ;;  %v3236_v17 = vand.u32 4294901760, %v3235_v12  ;;  %v10724_v8 = vand.u32 4294901760, %v10717_v45  ;;  %v2771_v58 = vadd.f32 %v2770_v46, %v10195_v18 }
 0x363   : > { %v7831_v15 = vpop.eup %7830  ;;  %v2928_v14 = vadd.f32 %v2927_v19, %v2767_v28  ;;  %v10764_v28 = vpop.f32.mrf.mxu1 }
 0x364   : > { %v3070_v13 = vmul.f32 %v7831_v15, %v7831_v15  ;;  %3237 = vmatmul.f32.gmra.mxu0 %v3236_v17  ;;  %3582 = vmatmul.f32.gmra.mxu1 %v10724_v8  ;;  %v10731_v50 = vsub.f32 %v10717_v45, %v10724_v8 }
 0x365   : > { %7832 = vtanh.f32 %v2928_v14 }
 0x366   : > { %v3102_v34 = vmul.f32 %v7831_v15, %v3070_v13  ;;  %2837 = vmatmul.f32.gmra.mxu2 %v10085_v24  ;;  %v14545_v30 = vand.u32 4294901760, %v10731_v50 }
 0x367   : > { %2994 = vmatmul.f32.gmra.mxu3 %v10058_v39 }
 0x368   : > { %v10739_v47 = vadd.f32 %v3102_v34, %v15194_v43  ;;  %v3243_v52 = vsub.f32 %v10731_v50, %v14545_v30 }
 0x369   : > { %v2774_v37 = vpop.f32.mrf.mxu2 }
 0x36a   : > { %15195 = vst [vmem:[#allocation11_spill] sm:$0xff] %v10739_v47  ;;  %v2931_v0 = vpop.f32.mrf.mxu3  ;;  %v3244_v51 = vand.u32 4294901760, %v3243_v52  ;;  %v10746_v63 = vand.u32 4294901760, %v10739_v47  ;;  %v2775_v46 = vadd.f32 %v2774_v37, %v10227_v61 }
 0x36b   : > { %v7833_v4 = vpop.eup %7832  ;;  %v2932_v35 = vadd.f32 %v2931_v0, %v2771_v58 }
 0x36c   : > { %15196 = vst [vmem:[#allocation10_spill] sm:$0xff] %v10746_v63  ;;  %v3071_v5 = vmul.f32 %v7833_v4, %v7833_v4  ;;  %3245 = vmatmul.f32.gmra.mxu0 %v3244_v51  ;;  %3586 = vmatmul.f32.gmra.mxu1 %v10746_v63  ;;  %v10751_v39 = vsub.f32 %v10739_v47, %v10746_v63  ;;  %v15225_v47 = vld [vmem:[#allocation21_spill] sm:$0xff] }
 0x36d   : > { %7834 = vtanh.f32 %v2932_v35  ;;  %v15255_v63 = vld [vmem:[#allocation57_spill] sm:$0xff] }
 0x36e   : > { %v3103_v18 = vmul.f32 %v7833_v4, %v3071_v5  ;;  %2841 = vmatmul.f32.gmra.mxu2 %v10120_v11  ;;  %v14544_v16 = vand.u32 4294901760, %v10751_v39 }
 0x36f   : > { %2998 = vmatmul.f32.gmra.mxu3 %v10085_v24  ;;  %v2338_v24 = vadd.f32 %v10432_v60, %v10243_v9  ;;  %v10781_v9 = vpop.f32.mrf.mxu0  ;;  %v15200_v60 = vld [vmem:[#allocation26_spill] sm:$0xff] }
 0x370   : > { %v10759_v1 = vadd.f32 %v3103_v18, %v15197_v62  ;;  %v3251_v12 = vsub.f32 %v10751_v39, %v14544_v16  ;;  %v15213_v16 = vld [vmem:[#allocation65_spill] sm:$0xff] }
 0x371   : > { %v2778_v19 = vpop.f32.mrf.mxu2  ;;  %v2540_v37 = vadd.f32 %v10422_v38, %v2338_v24  ;;  %v15203_v38 = vld [vmem:[#allocation6_spill] sm:$0xff] }
 0x372   : > { %15198 = vst [vmem:[#allocation20_spill] sm:$0xff] %v10759_v1  ;;  %v2935_v17 = vpop.f32.mrf.mxu3  ;;  %v3252_v15 = vand.u32 4294901760, %v3251_v12  ;;  %v10768_v14 = vand.u32 4294901760, %v10759_v1 }
 0x373   : > { %v7835_v13 = vpop.eup %7834  ;;  %v2936_v34 = vadd.f32 %v2935_v17, %v2775_v46  ;;  %v2779_v4 = vadd.f32 %v2778_v19, %v2540_v37  ;;  %v15204_v46 = vld [vmem:[#allocation64_spill] sm:$0xff]  ;;  %v10794_v17 = vpop.f32.mrf.mxu1 }
 0x374   : > { %15199 = vst [vmem:[#allocation22_spill] sm:$0xff] %v10768_v14  ;;  %v3072_v43 = vmul.f32 %v7835_v13, %v7835_v13  ;;  %3253 = vmatmul.f32.gmra.mxu0 %v3252_v15  ;;  %3590 = vmatmul.f32.gmra.mxu1 %v10768_v14  ;;  %v10775_v52 = vsub.f32 %v10759_v1, %v10768_v14  ;;  %v15224_v1 = vld [vmem:[#allocation48_spill] sm:$0xff] }
 0x375   : > { %7836 = vtanh.f32 %v2936_v34  ;;  %v15205_v34 = vld [vmem:[#allocation31_spill] sm:$0xff] }
 0x376   : > { %v3104_v61 = vmul.f32 %v7835_v13, %v3072_v43  ;;  %2845 = vmatmul.f32.gmra.mxu2 %v10148_v40  ;;  %v14542_v58 = vand.u32 4294901760, %v10775_v52 }
 0x377   : > { %3002 = vmatmul.f32.gmra.mxu3 %v10120_v11  ;;  %v2343_v11 = vadd.f32 %v15204_v46, %v15203_v38  ;;  %v10811_v38 = vpop.f32.mrf.mxu0 }
 0x378   : > { %v10784_v0 = vadd.f32 %v3104_v61, %v15200_v60  ;;  %v3259_v51 = vsub.f32 %v10775_v52, %v14542_v58  ;;  %v15206_v61 = vld [vmem:[#allocation62_spill] sm:$0xff]  ;;  %v15207_v60 = vld [vmem:[#allocation13_spill] sm:$0xff] }
 0x379   : > { %v2782_v35 = vpop.f32.mrf.mxu2  ;;  %v2546_v37 = vadd.f32 %v15206_v61, %v2343_v11  ;;  %v15210_v11 = vld [vmem:[#allocation40_spill] sm:$0xff]  ;;  %v15211_v61 = vld [vmem:[#allocation67_spill] sm:$0xff] }
 0x37a   : > { %15201 = vst [vmem:[#allocation26_spill] sm:$0xff] %v10784_v0  ;;  %v2939_v5 = vpop.f32.mrf.mxu3  ;;  %v3260_v18 = vand.u32 4294901760, %v3259_v51  ;;  %v10790_v62 = vand.u32 4294901760, %v10784_v0 }
 0x37b   : > { %v7837_v12 = vpop.eup %7836  ;;  %v2940_v15 = vadd.f32 %v2939_v5, %v2779_v4  ;;  %v2783_v5 = vadd.f32 %v2782_v35, %v2546_v37  ;;  %v10823_v37 = vpop.f32.mrf.mxu1 }
 0x37c   : > { %15202 = vst [vmem:[#allocation77_spill] sm:$0xff] %v10790_v62  ;;  %v3073_v13 = vmul.f32 %v7837_v12, %v7837_v12  ;;  %3261 = vmatmul.f32.gmra.mxu0 %v3260_v18  ;;  %3594 = vmatmul.f32.gmra.mxu1 %v10790_v62  ;;  %v10799_v19 = vsub.f32 %v10784_v0, %v10790_v62 }
 0x37d   : > { %7838 = vtanh.f32 %v2940_v15 }
 0x37e   : > { %v3105_v24 = vmul.f32 %v7837_v12, %v3073_v13  ;;  %2849 = vmatmul.f32.gmra.mxu2 %v15205_v34  ;;  %v14543_v43 = vand.u32 4294901760, %v10799_v19 }
 0x37f   : > { %3006 = vmatmul.f32.gmra.mxu3 %v10148_v40  ;;  %v2348_v40 = vadd.f32 %v15211_v61, %v15210_v11 }
 0x380   : > { %v10806_v51 = vadd.f32 %v3105_v24, %v15207_v60  ;;  %v3267_v4 = vsub.f32 %v10799_v19, %v14543_v43 }
 0x381   : > { %v2786_v18 = vpop.f32.mrf.mxu2  ;;  %v2552_v30 = vadd.f32 %v15213_v16, %v2348_v40  ;;  %v2353_v16 = vadd.f32 %v15218_v56, %v15217_v53  ;;  %v15220_v56 = vld [vmem:[#allocation18_spill] sm:$0xff] }
 0x382   : > { %15208 = vst [vmem:[#allocation6_spill] sm:$0xff] %v10806_v51  ;;  %v2943_v12 = vpop.f32.mrf.mxu3  ;;  %v3268_v46 = vand.u32 4294901760, %v3267_v4  ;;  %v10814_v15 = vand.u32 4294901760, %v10806_v51  ;;  %v15212_v4 = vld [vmem:[#allocation32_spill] sm:$0xff] }
 0x383   : > { %v7839_v13 = vpop.eup %7838  ;;  %v2944_v58 = vadd.f32 %v2943_v12, %v2783_v5  ;;  %v15214_v5 = vld [vmem:[#allocation12_spill] sm:$0xff]  ;;  %v2787_v11 = vadd.f32 %v2786_v18, %v2552_v30  ;;  %v2558_v53 = vadd.f32 %v15220_v56, %v2353_v16  ;;  %v2358_v16 = vadd.f32 %v15225_v47, %v15224_v1  ;;  %v15228_v47 = vld [vmem:[#allocation34_spill] sm:$0xff] }
 0x384   : > { %15209 = vst [vmem:[#allocation64_spill] sm:$0xff] %v10814_v15  ;;  %v3074_v24 = vmul.f32 %v7839_v13, %v7839_v13  ;;  %3269 = vmatmul.f32.gmra.mxu0 %v3268_v46  ;;  %3598 = vmatmul.f32.gmra.mxu1 %v10814_v15  ;;  %v10821_v35 = vsub.f32 %v10806_v51, %v10814_v15 }
 0x385   : > { %7840 = vtanh.f32 %v2944_v58 }
 0x386   : > { %v3106_v60 = vmul.f32 %v7839_v13, %v3074_v24  ;;  %2853 = vmatmul.f32.gmra.mxu2 %v15212_v4  ;;  %v14549_v43 = vand.u32 4294901760, %v10821_v35 }
 0x387   : > { %3010 = vmatmul.f32.gmra.mxu3 %v15205_v34  ;;  %v10840_v34 = vpop.f32.mrf.mxu0 }
 0x388   : > { %v10830_v12 = vadd.f32 %v3106_v60, %v15214_v5  ;;  %v3275_v46 = vsub.f32 %v10821_v35, %v14549_v43  ;;  %v15219_v5 = vld [vmem:[#allocation4_spill] sm:$0xff]  ;;  %v10849_v43 = vpop.f32.mrf.mxu1 }
 0x389   : > { %v2790_v61 = vpop.f32.mrf.mxu2 }
 0x38a   : > { %15215 = vst [vmem:[#allocation31_spill] sm:$0xff] %v10830_v12  ;;  %v2947_v27 = vpop.f32.mrf.mxu3  ;;  %v3276_v58 = vand.u32 4294901760, %v3275_v46  ;;  %v10836_v13 = vand.u32 4294901760, %v10830_v12 }
 0x38b   : > { %v7841_v24 = vpop.eup %7840  ;;  %v2948_v40 = vadd.f32 %v2947_v27, %v2787_v11  ;;  %v15221_v27 = vld [vmem:[#allocation30_spill] sm:$0xff] }
 0x38c   : > { %15216 = vst [vmem:[#allocation62_spill] sm:$0xff] %v10836_v13  ;;  %v3075_v60 = vmul.f32 %v7841_v24, %v7841_v24  ;;  %3277 = vmatmul.f32.gmra.mxu0 %v3276_v58  ;;  %3602 = vmatmul.f32.gmra.mxu1 %v10836_v13  ;;  %v10845_v30 = vsub.f32 %v10830_v12, %v10836_v13 }
 0x38d   : > { %7842 = vtanh.f32 %v2948_v40  ;;  %v2791_v12 = vadd.f32 %v2790_v61, %v2558_v53 }
 0x38e   : > { %v3107_v18 = vmul.f32 %v7841_v24, %v3075_v60  ;;  %2857 = vmatmul.f32.gmra.mxu2 %v15219_v5  ;;  %v14555_v46 = vand.u32 4294901760, %v10845_v30 }
 0x38f   : > { %3014 = vmatmul.f32.gmra.mxu3 %v15212_v4  ;;  %v10869_v61 = vpop.f32.mrf.mxu0 }
 0x390   : > { %v10854_v11 = vadd.f32 %v3107_v18, %v15221_v27  ;;  %v3283_v58 = vsub.f32 %v10845_v30, %v14555_v46  ;;  %v15226_v27 = vld [vmem:[#allocation36_spill] sm:$0xff]  ;;  %v15227_v46 = vld [vmem:[#allocation69_spill] sm:$0xff] }
 0x391   : > { %v2794_v40 = vpop.f32.mrf.mxu2  ;;  %v2564_v45 = vadd.f32 %v15227_v46, %v2358_v16  ;;  %v15231_v46 = vld [vmem:[#allocation49_spill] sm:$0xff] }
 0x392   : > { %15222 = vst [vmem:[#allocation13_spill] sm:$0xff] %v10854_v11  ;;  %v2951_v24 = vpop.f32.mrf.mxu3  ;;  %v3284_v60 = vand.u32 4294901760, %v3283_v58  ;;  %v10860_v51 = vand.u32 4294901760, %v10854_v11  ;;  %v15232_v16 = vld [vmem:[#allocation73_spill] sm:$0xff] }
 0x393   : > { %v7843_v0 = vpop.eup %7842  ;;  %v2952_v56 = vadd.f32 %v2951_v24, %v2791_v12  ;;  %v10881_v24 = vpop.f32.mrf.mxu1 }
 0x394   : > { %15223 = vst [vmem:[#allocation40_spill] sm:$0xff] %v10860_v51  ;;  %v3076_v4 = vmul.f32 %v7843_v0, %v7843_v0  ;;  %3285 = vmatmul.f32.gmra.mxu0 %v3284_v60  ;;  %3606 = vmatmul.f32.gmra.mxu1 %v10860_v51  ;;  %v10867_v18 = vsub.f32 %v10854_v11, %v10860_v51 }
 0x395   : > { %7844 = vtanh.f32 %v2952_v56  ;;  %v2795_v60 = vadd.f32 %v2794_v40, %v2564_v45  ;;  %v15233_v40 = vld [vmem:[#allocation43_spill] sm:$0xff] }
 0x396   : > { %v3108_v53 = vmul.f32 %v7843_v0, %v3076_v4  ;;  %2861 = vmatmul.f32.gmra.mxu2 %v15226_v27  ;;  %v14560_v58 = vand.u32 4294901760, %v10867_v18 }
 0x397   : > { %3018 = vmatmul.f32.gmra.mxu3 %v15219_v5  ;;  %v2363_v5 = vadd.f32 %v15232_v16, %v15231_v46  ;;  %v10897_v46 = vpop.f32.mrf.mxu0 }
 0x398   : > { %v10876_v1 = vadd.f32 %v3108_v53, %v15228_v47  ;;  %v3291_v12 = vsub.f32 %v10867_v18, %v14560_v58  ;;  %v15234_v58 = vld [vmem:[#allocation72_spill] sm:$0xff] }
 0x399   : > { %v2798_v56 = vpop.f32.mrf.mxu2  ;;  %v2570_v3 = vadd.f32 %v15234_v58, %v2363_v5  ;;  %v15238_v58 = vld [vmem:[#allocation54_spill] sm:$0xff]  ;;  %v15239_v5 = vld [vmem:[#allocation75_spill] sm:$0xff] }
 0x39a   : > { %15229 = vst [vmem:[#allocation67_spill] sm:$0xff] %v10876_v1  ;;  %v2955_v0 = vpop.f32.mrf.mxu3  ;;  %v3292_v4 = vand.u32 4294901760, %v3291_v12  ;;  %v10884_v11 = vand.u32 4294901760, %v10876_v1 }
 0x39b   : > { %v7845_v31 = vpop.eup %7844  ;;  %v2956_v59 = vadd.f32 %v2955_v0, %v2795_v60  ;;  %v15235_v60 = vld [vmem:[#allocation38_spill] sm:$0xff]  ;;  %v2799_v16 = vadd.f32 %v2798_v56, %v2570_v3  ;;  %v10910_v51 = vpop.f32.mrf.mxu1 }
 0x39c   : > { %15230 = vst [vmem:[#allocation32_spill] sm:$0xff] %v10884_v11  ;;  %v3077_v53 = vmul.f32 %v7845_v31, %v7845_v31  ;;  %3293 = vmatmul.f32.gmra.mxu0 %v3292_v4  ;;  %3610 = vmatmul.f32.gmra.mxu1 %v10884_v11  ;;  %v10891_v47 = vsub.f32 %v10876_v1, %v10884_v11 }
 0x39d   : > { %7846 = vtanh.f32 %v2956_v59 }
 0x39e   : > { %v3109_v45 = vmul.f32 %v7845_v31, %v3077_v53  ;;  %2865 = vmatmul.f32.gmra.mxu2 %v15233_v40  ;;  %v14569_v12 = vand.u32 4294901760, %v10891_v47 }
 0x39f   : > { %3022 = vmatmul.f32.gmra.mxu3 %v15226_v27  ;;  %v2368_v27 = vadd.f32 %v15239_v5, %v15238_v58  ;;  %v15242_v58 = vld [vmem:[#allocation15_spill] sm:$0xff] }
 0x3a0   : > { %v10900_v0 = vadd.f32 %v3109_v45, %v15235_v60  ;;  %v3299_v4 = vsub.f32 %v10891_v47, %v14569_v12  ;;  %v15240_v60 = vld [vmem:[#allocation47_spill] sm:$0xff]  ;;  %v15241_v12 = vld [vmem:[#allocation42_spill] sm:$0xff] }
 0x3a1   : > { %v2802_v59 = vpop.f32.mrf.mxu2  ;;  %v2576_v15 = vadd.f32 %v15241_v12, %v2368_v27  ;;  %v15245_v12 = vld [vmem:[#allocation55_spill] sm:$0xff]  ;;  %v15246_v27 = vld [vmem:[#allocation16_spill] sm:$0xff] }
 0x3a2   : > { %15236 = vst [vmem:[#allocation65_spill] sm:$0xff] %v10900_v0  ;;  %v2959_v31 = vpop.f32.mrf.mxu3  ;;  %v3300_v53 = vand.u32 4294901760, %v3299_v4  ;;  %v10906_v1 = vand.u32 4294901760, %v10900_v0 }
 0x3a3   : > { %v7847_v11 = vpop.eup %7846  ;;  %v2960_v13 = vadd.f32 %v2959_v31, %v2799_v16 }
 0x3a4   : > { %15237 = vst [vmem:[#allocation12_spill] sm:$0xff] %v10906_v1  ;;  %v3078_v45 = vmul.f32 %v7847_v11, %v7847_v11  ;;  %3301 = vmatmul.f32.gmra.mxu0 %v3300_v53  ;;  %3614 = vmatmul.f32.gmra.mxu1 %v10906_v1  ;;  %v10915_v3 = vsub.f32 %v10900_v0, %v10906_v1  ;;  %v10927_v0 = vpop.f32.mrf.mxu0 }
 0x3a5   : > { %7848 = vtanh.f32 %v2960_v13  ;;  %v2803_v53 = vadd.f32 %v2802_v59, %v2576_v15  ;;  %v10939_v59 = vpop.f32.mrf.mxu1 }
 0x3a6   : > { %v3110_v56 = vmul.f32 %v7847_v11, %v3078_v45  ;;  %2869 = vmatmul.f32.gmra.mxu2 %v15240_v60  ;;  %v14577_v4 = vand.u32 4294901760, %v10915_v3 }
 0x3a7   : > { %3026 = vmatmul.f32.gmra.mxu3 %v15233_v40  ;;  %v2373_v40 = vadd.f32 %v15246_v27, %v15245_v12 }
 0x3a8   : > { %v10922_v16 = vadd.f32 %v3110_v56, %v15242_v58  ;;  %v3307_v31 = vsub.f32 %v10915_v3, %v14577_v4  ;;  %v15247_v4 = vld [vmem:[#allocation33_spill] sm:$0xff] }
 0x3a9   : > { %v2806_v5 = vpop.f32.mrf.mxu2  ;;  %v2582_v14 = vadd.f32 %v15247_v4, %v2373_v40 }
 0x3aa   : > { %15243 = vst [vmem:[#allocation46_spill] sm:$0xff] %v10922_v16  ;;  %v2963_v13 = vpop.f32.mrf.mxu3  ;;  %v3308_v11 = vand.u32 4294901760, %v3307_v31  ;;  %v10930_v45 = vand.u32 4294901760, %v10922_v16 }
 0x3ab   : > { %v7849_v1 = vpop.eup %7848  ;;  %v2964_v62 = vadd.f32 %v2963_v13, %v2803_v53  ;;  %v15248_v53 = vld [vmem:[#allocation25_spill] sm:$0xff]  ;;  %v2807_v12 = vadd.f32 %v2806_v5, %v2582_v14 }
 0x3ac   : > { %15244 = vst [vmem:[#allocation19_spill] sm:$0xff] %v10930_v45  ;;  %v3079_v56 = vmul.f32 %v7849_v1, %v7849_v1  ;;  %3309 = vmatmul.f32.gmra.mxu0 %v3308_v11  ;;  %3618 = vmatmul.f32.gmra.mxu1 %v10930_v45  ;;  %v10937_v15 = vsub.f32 %v10922_v16, %v10930_v45  ;;  %v15251_v45 = vld [vmem:[#allocation56_spill] sm:$0xff] }
 0x3ad   : > { %7850 = vtanh.f32 %v2964_v62  ;;  %v2378_v4 = vadd.f32 %v10604_v32, %v15251_v45  ;;  %v15253_v45 = vld [vmem:[#allocation29_spill] sm:$0xff] }
 0x3ae   : > { %v3111_v58 = vmul.f32 %v7849_v1, %v3079_v56  ;;  %3748 = vmatmul.f32.vlgmr.msra.gmra.mxu2 %v10667_v54  ;;  %v14583_v31 = vand.u32 4294901760, %v10937_v15 }
 0x3af   : > { %3030 = vmatmul.f32.gmra.mxu3 %v15240_v60  ;;  %v10956_v60 = vpop.f32.mrf.mxu0  ;;  %v2588_v32 = vadd.f32 %v10589_v42, %v2378_v4  ;;  %v2383_v42 = vadd.f32 %v10628_v7, %v15255_v63  ;;  %v15256_v7 = vand.u32 4294901760, %v10689_v21  ;;  %v15257_v63 = vld [vmem:[#allocation17_spill] sm:$0xff] }
 0x3b0   : > { %v10946_v13 = vadd.f32 %v3111_v58, %v15248_v53  ;;  %v3315_v11 = vsub.f32 %v10937_v15, %v14583_v31 }
 0x3b1   : > { %v2810_v27 = vpop.f32.mrf.mxu2 }
 0x3b2   : > { %15249 = vst [vmem:[#allocation4_spill] sm:$0xff] %v10946_v13  ;;  %v2967_v16 = vpop.f32.mrf.mxu3  ;;  %v3316_v62 = vand.u32 4294901760, %v3315_v11  ;;  %v10952_v1 = vand.u32 4294901760, %v10946_v13  ;;  %v10965_v11 = vpop.f32.mrf.mxu1 }
 0x3b3   : > { %v7851_v56 = vpop.eup %7850  ;;  %v2968_v40 = vadd.f32 %v2967_v16, %v2807_v12  ;;  %v15252_v16 = vand.u32 4294901760, %v10667_v54 }
 0x3b4   : > { %15250 = vst [vmem:[#allocation18_spill] sm:$0xff] %v10952_v1  ;;  %v3080_v58 = vmul.f32 %v7851_v56, %v7851_v56  ;;  %3317 = vmatmul.f32.gmra.mxu0 %v3316_v62  ;;  %3622 = vmatmul.f32.gmra.mxu1 %v10952_v1  ;;  %v10961_v14 = vsub.f32 %v10946_v13, %v10952_v1 }
 0x3b5   : > { %7852 = vtanh.f32 %v2968_v40  ;;  %v2811_v40 = vadd.f32 %v2810_v27, %v2588_v32 }
 0x3b6   : > { %v3112_v5 = vmul.f32 %v7851_v56, %v3080_v58  ;;  %3753 = vmatmul.f32.gmra.mxu2 %v10689_v21  ;;  %v14589_v53 = vand.u32 4294901760, %v10961_v14 }
 0x3b7   : > { %3942 = vmatmul.f32.vlgmr.msra.gmra.mxu3 %v15252_v16  ;;  %v10986_v27 = vpop.f32.mrf.mxu0 }
 0x3b8   : > { %v10971_v12 = vadd.f32 %v3112_v5, %v15253_v45  ;;  %v3323_v62 = vsub.f32 %v10961_v14, %v14589_v53  ;;  %v2594_v45 = vadd.f32 %v10612_v26, %v2383_v42  ;;  %v15260_v42 = vld [vmem:[#allocation58_spill] sm:$0xff] }
 0x3b9   : > { %v2814_v56 = vpop.f32.mrf.mxu2  ;;  %v2388_v21 = vadd.f32 %v10648_v36, %v15260_v42 }
 0x3ba   : > { %15254 = vst [vmem:[#allocation30_spill] sm:$0xff] %v10971_v12  ;;  %v2971_v58 = vpop.f32.mrf.mxu3  ;;  %v3324_v31 = vand.u32 4294901760, %v3323_v62  ;;  %v10977_v13 = vand.u32 4294901760, %v10971_v12 }
 0x3bb   : > { %v7853_v1 = vpop.eup %7852  ;;  %v2972_v54 = vadd.f32 %v2971_v58, %v2811_v40  ;;  %v10999_v40 = vpop.f32.mrf.mxu1  ;;  %v2815_v58 = vadd.f32 %v2814_v56, %v2594_v45 }
 0x3bc   : > { %v3081_v4 = vmul.f32 %v7853_v1, %v7853_v1  ;;  %3325 = vmatmul.f32.gmra.mxu0 %v3324_v31  ;;  %3626 = vmatmul.f32.gmra.mxu1 %v10977_v13  ;;  %v10984_v5 = vsub.f32 %v10971_v12, %v10977_v13 }
 0x3bd   : > { %7854 = vtanh.f32 %v2972_v54 }
 0x3be   : > { %v3113_v32 = vmul.f32 %v7853_v1, %v3081_v4  ;;  %3758 = vmatmul.f32.gmra.mxu2 %v10709_v57  ;;  %v14590_v16 = vand.u32 4294901760, %v10984_v5 }
 0x3bf   : > { %3948 = vmatmul.f32.gmra.mxu3 %v15256_v7  ;;  %v11016_v36 = vpop.f32.mrf.mxu0 }
 0x3c0   : > { %v10994_v31 = vadd.f32 %v3113_v32, %v15257_v63  ;;  %v3331_v62 = vsub.f32 %v10984_v5, %v14590_v16  ;;  %v15261_v16 = vand.u32 4294901760, %v10709_v57 }
 0x3c1   : > { %v2818_v1 = vpop.f32.mrf.mxu2 }
 0x3c2   : > { %15258 = vst [vmem:[#allocation48_spill] sm:$0xff] %v10994_v31  ;;  %v2975_v54 = vpop.f32.mrf.mxu3  ;;  %v3332_v4 = vand.u32 4294901760, %v3331_v62  ;;  %v11002_v53 = vand.u32 4294901760, %v10994_v31  ;;  %v2600_v62 = vadd.f32 %v10635_v23, %v2388_v21 }
 0x3c3   : > { %v7855_v26 = vpop.eup %7854  ;;  %v2976_v7 = vadd.f32 %v2975_v54, %v2815_v58  ;;  %v15262_v58 = vld [vmem:[#allocation37_spill] sm:$0xff] }
 0x3c4   : > { %15259 = vst [vmem:[#allocation21_spill] sm:$0xff] %v11002_v53  ;;  %v3082_v32 = vmul.f32 %v7855_v26, %v7855_v26  ;;  %3333 = vmatmul.f32.gmra.mxu0 %v3332_v4  ;;  %3630 = vmatmul.f32.gmra.mxu1 %v11002_v53  ;;  %v11009_v63 = vsub.f32 %v10994_v31, %v11002_v53  ;;  %v15282_v53 = vld [vmem:[#allocation63_spill] sm:$0xff] }
 0x3c5   : > { %7856 = vtanh.f32 %v2976_v7  ;;  %v2819_v42 = vadd.f32 %v2818_v1, %v2600_v62 }
 0x3c6   : > { %v3114_v56 = vmul.f32 %v7855_v26, %v3082_v32  ;;  %3763 = vmatmul.f32.gmra.mxu2 %v10731_v50  ;;  %v14593_v45 = vand.u32 4294901760, %v11009_v63 }
 0x3c7   : > { %3954 = vmatmul.f32.gmra.mxu3 %v15261_v16  ;;  %v15265_v16 = vld [vmem:[#allocation59_spill] sm:$0xff] }
 0x3c8   : > { %v11019_v54 = vadd.f32 %v3114_v56, %v15262_v58  ;;  %v3339_v4 = vsub.f32 %v11009_v63, %v14593_v45  ;;  %v2393_v21 = vadd.f32 %v10672_v2, %v15265_v16  ;;  %v15266_v45 = vand.u32 4294901760, %v10731_v50  ;;  %v15267_v2 = vld [vmem:[#allocation45_spill] sm:$0xff] }
 0x3c9   : > { %v11024_v26 = vpop.f32.mrf.mxu1  ;;  %v2822_v7 = vpop.f32.mrf.mxu2 }
 0x3ca   : > { %15263 = vst [vmem:[#allocation36_spill] sm:$0xff] %v11019_v54  ;;  %v2979_v32 = vpop.f32.mrf.mxu3  ;;  %v3340_v31 = vand.u32 4294901760, %v3339_v4  ;;  %v11027_v23 = vand.u32 4294901760, %v11019_v54  ;;  %v2606_v4 = vadd.f32 %v10657_v6, %v2393_v21 }
 0x3cb   : > { %v7857_v57 = vpop.eup %7856  ;;  %v2980_v12 = vadd.f32 %v2979_v32, %v2819_v42 }
 0x3cc   : > { %15264 = vst [vmem:[#allocation69_spill] sm:$0xff] %v11027_v23  ;;  %v3083_v56 = vmul.f32 %v7857_v57, %v7857_v57  ;;  %3341 = vmatmul.f32.gmra.mxu0 %v3340_v31  ;;  %3634 = vmatmul.f32.gmra.mxu1 %v11027_v23  ;;  %v11034_v1 = vsub.f32 %v11019_v54, %v11027_v23  ;;  %v15271_v23 = vand.u32 4294901760, %v10751_v39 }
 0x3cd   : > { %7858 = vtanh.f32 %v2980_v12  ;;  %v2823_v32 = vadd.f32 %v2822_v7, %v2606_v4 }
 0x3ce   : > { %v3115_v62 = vmul.f32 %v7857_v57, %v3083_v56  ;;  %3768 = vmatmul.f32.gmra.mxu2 %v10751_v39  ;;  %v14595_v58 = vand.u32 4294901760, %v11034_v1 }
 0x3cf   : > { %3960 = vmatmul.f32.gmra.mxu3 %v15266_v45  ;;  %v15270_v45 = vld [vmem:[#allocation60_spill] sm:$0xff] }
 0x3d0   : > { %v11042_v42 = vadd.f32 %v3115_v62, %v15267_v2  ;;  %v3347_v31 = vsub.f32 %v11034_v1, %v14595_v58  ;;  %v2398_v21 = vadd.f32 %v10701_v48, %v15270_v45  ;;  %v15272_v48 = vld [vmem:[#allocation50_spill] sm:$0xff] }
 0x3d1   : > { %v11047_v16 = vpop.f32.mrf.mxu0  ;;  %v11049_v12 = vpop.f32.mrf.mxu1 }
 0x3d2   : > { %15268 = vst [vmem:[#allocation34_spill] sm:$0xff] %v11042_v42  ;;  %v2826_v57 = vpop.f32.mrf.mxu2  ;;  %v2983_v56 = vpop.f32.mrf.mxu3  ;;  %v3348_v54 = vand.u32 4294901760, %v3347_v31  ;;  %v11052_v6 = vand.u32 4294901760, %v11042_v42  ;;  %v2612_v58 = vadd.f32 %v10684_v33, %v2398_v21 }
 0x3d3   : > { %v7859_v50 = vpop.eup %7858  ;;  %v2984_v62 = vadd.f32 %v2983_v56, %v2823_v32  ;;  %v7709_v56 = vld [vmem:[%s14343_s1 + $0x1f8] sm:$0xff] }
 0x3d4   : > { %15269 = vst [vmem:[#allocation49_spill] sm:$0xff] %v11052_v6  ;;  %v3084_v2 = vmul.f32 %v7859_v50, %v7859_v50  ;;  %3349 = vmatmul.f32.gmra.mxu0 %v3348_v54  ;;  %3638 = vmatmul.f32.gmra.mxu1 %v11052_v6  ;;  %v11059_v7 = vsub.f32 %v11042_v42, %v11052_v6  ;;  %v11079_v33 = vand.u32 4294901760, %v7709_v56 }
 0x3d5   : > { %7860 = vtanh.f32 %v2984_v62 }
 0x3d6   : > { %v3116_v4 = vmul.f32 %v7859_v50, %v3084_v2  ;;  %3773 = vmatmul.f32.gmra.mxu2 %v10775_v52  ;;  %v14598_v31 = vand.u32 4294901760, %v11059_v7  ;;  %v2827_v50 = vadd.f32 %v2826_v57, %v2612_v58  ;;  %15274 = vst [vmem:[#allocation43_spill] sm:$0xff] %v11079_v33  ;;  %v11088_v58 = vsub.f32 %v7709_v56, %v11079_v33 }
 0x3d7   : > { %3966 = vmatmul.f32.gmra.mxu3 %v15271_v23  ;;  %4637 = vmatpush.msrb.mxu2 %v11079_v33 }
 0x3d8   : > { %v11067_v32 = vadd.f32 %v3116_v4, %v15272_v48  ;;  %v3355_v54 = vsub.f32 %v11059_v7, %v14598_v31  ;;  %v15276_v48 = vld [vmem:[#allocation61_spill] sm:$0xff]  ;;  %15277 = vst [vmem:[#allocation38_spill] sm:$0xff] %v11088_v58  ;;  %5360 = vmatpush.msrb.mxu1 %v11079_v33  ;;  %v14606_v6 = vand.u32 4294901760, %v11088_v58  ;;  %5152 = vmatpush.msrb.mxu0 %v11088_v58 }
 0x3d9   : > { %v11075_v45 = vpop.f32.mrf.mxu0  ;;  %v11077_v62 = vpop.f32.mrf.mxu1  ;;  %v2403_v31 = vadd.f32 %v10726_v20, %v15276_v48  ;;  %v15279_v48 = vld [vmem:[#allocation23_spill] sm:$0xff] }
 0x3da   : > { %15273 = vst [vmem:[#allocation73_spill] sm:$0xff] %v11067_v32  ;;  %v2830_v39 = vpop.f32.mrf.mxu2  ;;  %v2987_v23 = vpop.f32.mrf.mxu3  ;;  %v3356_v21 = vand.u32 4294901760, %v3355_v54  ;;  %v11082_v2 = vand.u32 4294901760, %v11067_v32 }
 0x3db   : > { %v7861_v4 = vpop.eup %7860  ;;  %v2988_v42 = vadd.f32 %v2987_v23, %v2827_v50  ;;  %v2618_v50 = vadd.f32 %v10711_v55, %v2403_v31  ;;  %v15278_v23 = vand.u32 4294901760, %v10775_v52 }
 0x3dc   : > { %15275 = vst [vmem:[#allocation72_spill] sm:$0xff] %v11082_v2  ;;  %v3085_v57 = vmul.f32 %v7861_v4, %v7861_v4  ;;  %3357 = vmatmul.f32.gmra.mxu0 %v3356_v21  ;;  %3642 = vmatmul.f32.gmra.mxu1 %v11082_v2  ;;  %v11094_v54 = vsub.f32 %v11067_v32, %v11082_v2 }
 0x3dd   : > { %7862 = vtanh.f32 %v2988_v42  ;;  %v4928_v21 = vsub.f32 %v11088_v58, %v14606_v6 }
 0x3de   : > { %v3117_v20 = vmul.f32 %v7861_v4, %v3085_v57  ;;  %3778 = vmatmul.f32.gmra.mxu2 %v10799_v19  ;;  %v14611_v56 = vand.u32 4294901760, %v11094_v54  ;;  %v2831_v57 = vadd.f32 %v2830_v39, %v2618_v50 }
 0x3df   : > { %3972 = vmatmul.f32.gmra.mxu3 %v15278_v23  ;;  %v4929_v55 = vand.u32 4294901760, %v4928_v21 }
 0x3e0   : > { %v11107_v42 = vadd.f32 %v3117_v20, %v15279_v48  ;;  %v3363_v4 = vsub.f32 %v11094_v54, %v14611_v56  ;;  %v2408_v20 = vadd.f32 %v10753_v22, %v15282_v53  ;;  %v15283_v22 = vand.u32 4294901760, %v10799_v19  ;;  %v15284_v53 = vld [vmem:[#allocation2_spill] sm:$0xff] }
 0x3e1   : > { %v11112_v32 = vpop.f32.mrf.mxu0  ;;  %v11114_v2 = vpop.f32.mrf.mxu1  ;;  %4930 = vmatpush.msrb.mxu3 %v4929_v55 }
 0x3e2   : > { %15280 = vst [vmem:[#allocation54_spill] sm:$0xff] %v11107_v42  ;;  %v2834_v31 = vpop.f32.mrf.mxu2  ;;  %v2991_v52 = vpop.f32.mrf.mxu3  ;;  %v3364_v23 = vand.u32 4294901760, %v3363_v4  ;;  %v11117_v33 = vand.u32 4294901760, %v11107_v42  ;;  %v2624_v4 = vadd.f32 %v10735_v25, %v2408_v20 }
 0x3e3   : > { %v7863_v6 = vpop.eup %7862  ;;  %v2992_v48 = vadd.f32 %v2991_v52, %v2831_v57 }
 0x3e4   : > { %15281 = vst [vmem:[#allocation75_spill] sm:$0xff] %v11117_v33  ;;  %v3086_v58 = vmul.f32 %v7863_v6, %v7863_v6  ;;  %3365 = vmatmul.f32.gmra.mxu0 %v3364_v23  ;;  %3646 = vmatmul.f32.gmra.mxu1 %v11117_v33  ;;  %v11124_v39 = vsub.f32 %v11107_v42, %v11117_v33 }
 0x3e5   : > { %7864 = vtanh.f32 %v2992_v48 }
 0x3e6   : > { %v3118_v50 = vmul.f32 %v7863_v6, %v3086_v58  ;;  %3783 = vmatmul.f32.gmra.mxu2 %v10821_v35  ;;  %v14610_v21 = vand.u32 4294901760, %v11124_v39  ;;  %v7708_v6 = vld [vmem:[%s14343_s1 + $0x1f0] sm:$0xff]  ;;  %v2835_v58 = vadd.f32 %v2834_v31, %v2624_v4 }
 0x3e7   : > { %3978 = vmatmul.f32.gmra.mxu3 %v15283_v22  ;;  %v11144_v25 = vand.u32 4294901760, %v7708_v6 }
 0x3e8   : > { %v11132_v57 = vadd.f32 %v3118_v50, %v15284_v53  ;;  %v3371_v55 = vsub.f32 %v11124_v39, %v14610_v21  ;;  %v15288_v53 = vld [vmem:[#allocation66_spill] sm:$0xff] }
 0x3e9   : > { %v11140_v52 = vpop.f32.mrf.mxu0  ;;  %v11142_v23 = vpop.f32.mrf.mxu1  ;;  %15286 = vst [vmem:[#allocation42_spill] sm:$0xff] %v11144_v25  ;;  %v2413_v21 = vadd.f32 %v10781_v9, %v15288_v53  ;;  %4639 = vmatpush.msrb.mxu2 %v11144_v25  ;;  %v11153_v31 = vsub.f32 %v7708_v6, %v11144_v25  ;;  %5362 = vmatpush.msrb.mxu1 %v11144_v25  ;;  %v15291_v53 = vld [vmem:[#allocation52_spill] sm:$0xff] }
 0x3ea   : > { %15285 = vst [vmem:[#allocation47_spill] sm:$0xff] %v11132_v57  ;;  %v2838_v19 = vpop.f32.mrf.mxu2  ;;  %v2995_v20 = vpop.f32.mrf.mxu3  ;;  %v3372_v48 = vand.u32 4294901760, %v3371_v55  ;;  %v11147_v50 = vand.u32 4294901760, %v11132_v57  ;;  %v15294_v25 = vld [vmem:[#allocation68_spill] sm:$0xff] }
 0x3eb   : > { %v7865_v22 = vpop.eup %7864  ;;  %v2996_v56 = vadd.f32 %v2995_v20, %v2835_v58  ;;  %15289 = vst [vmem:[#allocation55_spill] sm:$0xff] %v11153_v31  ;;  %v14618_v42 = vand.u32 4294901760, %v11153_v31  ;;  %5155 = vmatpush.msrb.mxu0 %v11153_v31  ;;  %v2630_v58 = vadd.f32 %v10764_v28, %v2413_v21  ;;  %v15290_v20 = vand.u32 4294901760, %v10821_v35 }
 0x3ec   : > { %15287 = vst [vmem:[#allocation15_spill] sm:$0xff] %v11147_v50  ;;  %v3087_v4 = vmul.f32 %v7865_v22, %v7865_v22  ;;  %3373 = vmatmul.f32.gmra.mxu0 %v3372_v48  ;;  %3650 = vmatmul.f32.gmra.mxu1 %v11147_v50  ;;  %v11159_v55 = vsub.f32 %v11132_v57, %v11147_v50 }
 0x3ed   : > { %7866 = vtanh.f32 %v2996_v56  ;;  %v4934_v48 = vsub.f32 %v11153_v31, %v14618_v42 }
 0x3ee   : > { %v3119_v9 = vmul.f32 %v7865_v22, %v3087_v4  ;;  %3788 = vmatmul.f32.gmra.mxu2 %v10845_v30  ;;  %v14622_v6 = vand.u32 4294901760, %v11159_v55  ;;  %v2839_v4 = vadd.f32 %v2838_v19, %v2630_v58 }
 0x3ef   : > { %3984 = vmatmul.f32.gmra.mxu3 %v15290_v20  ;;  %v4935_v28 = vand.u32 4294901760, %v4934_v48 }
 0x3f0   : > { %v11172_v56 = vadd.f32 %v3119_v9, %v15291_v53  ;;  %v3379_v22 = vsub.f32 %v11159_v55, %v14622_v6  ;;  %v2418_v9 = vadd.f32 %v10811_v38, %v15294_v25  ;;  %v15295_v38 = vand.u32 4294901760, %v10845_v30  ;;  %v15296_v25 = vld [vmem:[#allocation51_spill] sm:$0xff] }
 0x3f1   : > { %v11177_v57 = vpop.f32.mrf.mxu0  ;;  %v11179_v50 = vpop.f32.mrf.mxu1  ;;  %4936 = vmatpush.msrb.mxu3 %v4935_v28 }
 0x3f2   : > { %15292 = vst [vmem:[#allocation16_spill] sm:$0xff] %v11172_v56  ;;  %v2842_v21 = vpop.f32.mrf.mxu2  ;;  %v2999_v35 = vpop.f32.mrf.mxu3  ;;  %v3380_v20 = vand.u32 4294901760, %v3379_v22  ;;  %v11182_v33 = vand.u32 4294901760, %v11172_v56  ;;  %v2636_v22 = vadd.f32 %v10794_v17, %v2418_v9 }
 0x3f3   : > { %v7867_v42 = vpop.eup %7866  ;;  %v3000_v53 = vadd.f32 %v2999_v35, %v2839_v4 }
 0x3f4   : > { %15293 = vst [vmem:[#allocation33_spill] sm:$0xff] %v11182_v33  ;;  %v3088_v31 = vmul.f32 %v7867_v42, %v7867_v42  ;;  %3381 = vmatmul.f32.gmra.mxu0 %v3380_v20  ;;  %3654 = vmatmul.f32.gmra.mxu1 %v11182_v33  ;;  %v11189_v19 = vsub.f32 %v11172_v56, %v11182_v33 }
 0x3f5   : > { %7868 = vtanh.f32 %v3000_v53 }
 0x3f6   : > { %v3120_v58 = vmul.f32 %v7867_v42, %v3088_v31  ;;  %3793 = vmatmul.f32.gmra.mxu2 %v10867_v18  ;;  %v14621_v48 = vand.u32 4294901760, %v11189_v19  ;;  %v7707_v42 = vld [vmem:[%s14343_s1 + $0x1e8] sm:$0xff]  ;;  %v2843_v31 = vadd.f32 %v2842_v21, %v2636_v22 }
 0x3f7   : > { %3990 = vmatmul.f32.gmra.mxu3 %v15295_v38  ;;  %v11209_v17 = vand.u32 4294901760, %v7707_v42 }
 0x3f8   : > { %v11197_v4 = vadd.f32 %v3120_v58, %v15296_v25  ;;  %v3387_v28 = vsub.f32 %v11189_v19, %v14621_v48  ;;  %v15300_v25 = vld [vmem:[#allocation70_spill] sm:$0xff] }
 0x3f9   : > { %v11205_v35 = vpop.f32.mrf.mxu0  ;;  %v11207_v20 = vpop.f32.mrf.mxu1  ;;  %15298 = vst [vmem:[#allocation56_spill] sm:$0xff] %v11209_v17  ;;  %v2423_v48 = vadd.f32 %v10840_v34, %v15300_v25  ;;  %4641 = vmatpush.msrb.mxu2 %v11209_v17  ;;  %v11218_v21 = vsub.f32 %v7707_v42, %v11209_v17  ;;  %5364 = vmatpush.msrb.mxu1 %v11209_v17  ;;  %v15303_v25 = vld [vmem:[#allocation27_spill] sm:$0xff] }
 0x3fa   : > { %15297 = vst [vmem:[#allocation25_spill] sm:$0xff] %v11197_v4  ;;  %v2846_v30 = vpop.f32.mrf.mxu2  ;;  %v3003_v9 = vpop.f32.mrf.mxu3  ;;  %v3388_v53 = vand.u32 4294901760, %v3387_v28  ;;  %v11212_v58 = vand.u32 4294901760, %v11197_v4  ;;  %v15306_v17 = vld [vmem:[#allocation71_spill] sm:$0xff] }
 0x3fb   : > { %v7869_v38 = vpop.eup %7868  ;;  %v3004_v6 = vadd.f32 %v3003_v9, %v2843_v31  ;;  %15301 = vst [vmem:[#allocation57_spill] sm:$0xff] %v11218_v21  ;;  %v14629_v56 = vand.u32 4294901760, %v11218_v21  ;;  %5158 = vmatpush.msrb.mxu0 %v11218_v21  ;;  %v2642_v31 = vadd.f32 %v10823_v37, %v2423_v48  ;;  %v15302_v9 = vand.u32 4294901760, %v10867_v18 }
 0x3fc   : > { %15299 = vst [vmem:[#allocation29_spill] sm:$0xff] %v11212_v58  ;;  %v3089_v22 = vmul.f32 %v7869_v38, %v7869_v38  ;;  %3389 = vmatmul.f32.gmra.mxu0 %v3388_v53  ;;  %3658 = vmatmul.f32.gmra.mxu1 %v11212_v58  ;;  %v11224_v28 = vsub.f32 %v11197_v4, %v11212_v58 }
 0x3fd   : > { %7870 = vtanh.f32 %v3004_v6  ;;  %v4940_v53 = vsub.f32 %v11218_v21, %v14629_v56 }
 0x3fe   : > { %v3121_v34 = vmul.f32 %v7869_v38, %v3089_v22  ;;  %3798 = vmatmul.f32.gmra.mxu2 %v10891_v47  ;;  %v14633_v42 = vand.u32 4294901760, %v11224_v28  ;;  %v2847_v22 = vadd.f32 %v2846_v30, %v2642_v31 }
 0x3ff   : > { %3996 = vmatmul.f32.gmra.mxu3 %v15302_v9  ;;  %v4941_v37 = vand.u32 4294901760, %v4940_v53 }
 0x400   : > { %v11237_v6 = vadd.f32 %v3121_v34, %v15303_v25  ;;  %v3395_v38 = vsub.f32 %v11224_v28, %v14633_v42  ;;  %v2428_v34 = vadd.f32 %v10869_v61, %v15306_v17  ;;  %v15307_v61 = vand.u32 4294901760, %v10891_v47  ;;  %v15308_v17 = vld [vmem:[#allocation53_spill] sm:$0xff] }
 0x401   : > { %v11242_v4 = vpop.f32.mrf.mxu0  ;;  %v11244_v58 = vpop.f32.mrf.mxu1  ;;  %4942 = vmatpush.msrb.mxu3 %v4941_v37 }
 0x402   : > { %15304 = vst [vmem:[#allocation17_spill] sm:$0xff] %v11237_v6  ;;  %v2850_v48 = vpop.f32.mrf.mxu2  ;;  %v3007_v18 = vpop.f32.mrf.mxu3  ;;  %v3396_v9 = vand.u32 4294901760, %v3395_v38  ;;  %v11247_v33 = vand.u32 4294901760, %v11237_v6  ;;  %v2648_v38 = vadd.f32 %v10849_v43, %v2428_v34 }
 0x403   : > { %v7871_v56 = vpop.eup %7870  ;;  %v3008_v25 = vadd.f32 %v3007_v18, %v2847_v22 }
 0x404   : > { %15305 = vst [vmem:[#allocation58_spill] sm:$0xff] %v11247_v33  ;;  %v3090_v21 = vmul.f32 %v7871_v56, %v7871_v56  ;;  %3397 = vmatmul.f32.gmra.mxu0 %v3396_v9  ;;  %3662 = vmatmul.f32.gmra.mxu1 %v11247_v33  ;;  %v11254_v30 = vsub.f32 %v11237_v6, %v11247_v33  ;;  %v15318_v33 = vld [vmem:[#allocation74_spill] sm:$0xff] }
 0x405   : > { %7872 = vtanh.f32 %v3008_v25 }
 0x406   : > { %v3122_v31 = vmul.f32 %v7871_v56, %v3090_v21  ;;  %3803 = vmatmul.f32.gmra.mxu2 %v10915_v3  ;;  %v14632_v53 = vand.u32 4294901760, %v11254_v30  ;;  %v7706_v56 = vld [vmem:[%s14343_s1 + $0x1e0] sm:$0xff]  ;;  %v2851_v21 = vadd.f32 %v2850_v48, %v2648_v38 }
 0x407   : > { %4002 = vmatmul.f32.gmra.mxu3 %v15307_v61  ;;  %v11274_v43 = vand.u32 4294901760, %v7706_v56 }
 0x408   : > { %v11262_v22 = vadd.f32 %v3122_v31, %v15308_v17  ;;  %v3403_v37 = vsub.f32 %v11254_v30, %v14632_v53  ;;  %v15313_v17 = vld [vmem:[#allocation14_spill] sm:$0xff] }
 0x409   : > { %v11270_v18 = vpop.f32.mrf.mxu0  ;;  %v11272_v9 = vpop.f32.mrf.mxu1  ;;  %15311 = vst [vmem:[#allocation45_spill] sm:$0xff] %v11274_v43  ;;  %v2433_v53 = vadd.f32 %v10897_v46, %v15313_v17  ;;  %4643 = vmatpush.msrb.mxu2 %v11274_v43  ;;  %v11283_v48 = vsub.f32 %v7706_v56, %v11274_v43  ;;  %5366 = vmatpush.msrb.mxu1 %v11274_v43  ;;  %v15315_v17 = vld [vmem:[#allocation3_spill] sm:$0xff] }
 0x40a   : > { %15309 = vst [vmem:[#allocation37_spill] sm:$0xff] %v11262_v22  ;;  %v2854_v47 = vpop.f32.mrf.mxu2  ;;  %v3011_v34 = vpop.f32.mrf.mxu3  ;;  %v3404_v25 = vand.u32 4294901760, %v3403_v37  ;;  %v11277_v31 = vand.u32 4294901760, %v11262_v22 }
 0x40b   : > { %15310 = vst [vmem:[#allocation59_spill] sm:$0xff] %v11272_v9  ;;  %v7873_v61 = vpop.eup %7872  ;;  %v3012_v42 = vadd.f32 %v3011_v34, %v2851_v21  ;;  %v14638_v6 = vand.u32 4294901760, %v11283_v48  ;;  %5161 = vmatpush.msrb.mxu0 %v11283_v48  ;;  %v2654_v21 = vadd.f32 %v10881_v24, %v2433_v53  ;;  %v15314_v34 = vand.u32 4294901760, %v10915_v3 }
 0x40c   : > { %15312 = vst [vmem:[#allocation60_spill] sm:$0xff] %v11277_v31  ;;  %v3091_v38 = vmul.f32 %v7873_v61, %v7873_v61  ;;  %3405 = vmatmul.f32.gmra.mxu0 %v3404_v25  ;;  %3666 = vmatmul.f32.gmra.mxu1 %v11277_v31  ;;  %v11289_v37 = vsub.f32 %v11262_v22, %v11277_v31 }
 0x40d   : > { %7874 = vtanh.f32 %v3012_v42  ;;  %v4946_v25 = vsub.f32 %v11283_v48, %v14638_v6 }
 0x40e   : > { %v3123_v46 = vmul.f32 %v7873_v61, %v3091_v38  ;;  %3808 = vmatmul.f32.gmra.mxu2 %v10937_v15  ;;  %v14643_v56 = vand.u32 4294901760, %v11289_v37  ;;  %v2855_v38 = vadd.f32 %v2854_v47, %v2654_v21 }
 0x40f   : > { %4008 = vmatmul.f32.gmra.mxu3 %v15314_v34  ;;  %v4947_v24 = vand.u32 4294901760, %v4946_v25 }
 0x410   : > { %v11302_v42 = vadd.f32 %v3123_v46, %v15315_v17  ;;  %v3411_v61 = vsub.f32 %v11289_v37, %v14643_v56  ;;  %v2438_v46 = vadd.f32 %v10927_v0, %v15318_v33  ;;  %v15319_v0 = vand.u32 4294901760, %v10937_v15  ;;  %v15320_v33 = vld [vmem:[#allocation28_spill] sm:$0xff] }
 0x411   : > { %v11307_v22 = vpop.f32.mrf.mxu0  ;;  %v11309_v31 = vpop.f32.mrf.mxu1  ;;  %4948 = vmatpush.msrb.mxu3 %v4947_v24 }
 0x412   : > { %15316 = vst [vmem:[#allocation50_spill] sm:$0xff] %v11302_v42  ;;  %v2858_v53 = vpop.f32.mrf.mxu2  ;;  %v3015_v3 = vpop.f32.mrf.mxu3  ;;  %v3412_v34 = vand.u32 4294901760, %v3411_v61  ;;  %v11312_v9 = vand.u32 4294901760, %v11302_v42  ;;  %v2660_v61 = vadd.f32 %v10910_v51, %v2438_v46 }
 0x413   : > { %v7875_v6 = vpop.eup %7874  ;;  %v3016_v17 = vadd.f32 %v3015_v3, %v2855_v38 }
 0x414   : > { %15317 = vst [vmem:[#allocation61_spill] sm:$0xff] %v11312_v9  ;;  %v3092_v43 = vmul.f32 %v7875_v6, %v7875_v6  ;;  %3413 = vmatmul.f32.gmra.mxu0 %v3412_v34  ;;  %3670 = vmatmul.f32.gmra.mxu1 %v11312_v9  ;;  %v11319_v47 = vsub.f32 %v11302_v42, %v11312_v9 }
 0x415   : > { %7876 = vtanh.f32 %v3016_v17 }
 0x416   : > { %v3124_v21 = vmul.f32 %v7875_v6, %v3092_v43  ;;  %3813 = vmatmul.f32.gmra.mxu2 %v10961_v14  ;;  %v14642_v25 = vand.u32 4294901760, %v11319_v47  ;;  %v7705_v6 = vld [vmem:[%s14343_s1 + $0x1d8] sm:$0xff]  ;;  %v2859_v43 = vadd.f32 %v2858_v53, %v2660_v61 }
 0x417   : > { %4014 = vmatmul.f32.gmra.mxu3 %v15319_v0  ;;  %v11339_v51 = vand.u32 4294901760, %v7705_v6 }
 0x418   : > { %v11327_v38 = vadd.f32 %v3124_v21, %v15320_v33  ;;  %v3419_v24 = vsub.f32 %v11319_v47, %v14642_v25  ;;  %v15324_v33 = vld [vmem:[#allocation76_spill] sm:$0xff] }
 0x419   : > { %v11335_v3 = vpop.f32.mrf.mxu0  ;;  %v11337_v34 = vpop.f32.mrf.mxu1  ;;  %v2443_v25 = vadd.f32 %v10956_v60, %v15324_v33  ;;  %4645 = vmatpush.msrb.mxu2 %v11339_v51  ;;  %v11348_v53 = vsub.f32 %v7705_v6, %v11339_v51  ;;  %5368 = vmatpush.msrb.mxu1 %v11339_v51  ;;  %v15326_v33 = vld [vmem:[#allocation5_spill] sm:$0xff] }
 0x41a   : > { %15321 = vst [vmem:[#allocation23_spill] sm:$0xff] %v11327_v38  ;;  %v2862_v15 = vpop.f32.mrf.mxu2  ;;  %v3019_v46 = vpop.f32.mrf.mxu3  ;;  %v3420_v17 = vand.u32 4294901760, %v3419_v24  ;;  %v11342_v21 = vand.u32 4294901760, %v11327_v38 }
 0x41b   : > { %15322 = vst [vmem:[#allocation63_spill] sm:$0xff] %v11337_v34  ;;  %v7877_v0 = vpop.eup %7876  ;;  %v3020_v56 = vadd.f32 %v3019_v46, %v2859_v43  ;;  %v14646_v42 = vand.u32 4294901760, %v11348_v53  ;;  %5164 = vmatpush.msrb.mxu0 %v11348_v53  ;;  %v2666_v43 = vadd.f32 %v10939_v59, %v2443_v25  ;;  %v15325_v46 = vand.u32 4294901760, %v10961_v14 }
 0x41c   : > { %15323 = vst [vmem:[#allocation2_spill] sm:$0xff] %v11342_v21  ;;  %v3093_v61 = vmul.f32 %v7877_v0, %v7877_v0  ;;  %3421 = vmatmul.f32.gmra.mxu0 %v3420_v17  ;;  %3674 = vmatmul.f32.gmra.mxu1 %v11342_v21  ;;  %v11354_v24 = vsub.f32 %v11327_v38, %v11342_v21 }
 0x41d   : > { %7878 = vtanh.f32 %v3020_v56  ;;  %v4952_v17 = vsub.f32 %v11348_v53, %v14646_v42  ;;  %v2863_v38 = vadd.f32 %v2862_v15, %v2666_v43 }
 0x41e   : > { %v3125_v60 = vmul.f32 %v7877_v0, %v3093_v61  ;;  %3818 = vmatmul.f32.gmra.mxu2 %v10984_v5  ;;  %v14649_v6 = vand.u32 4294901760, %v11354_v24  ;;  %v7704_v61 = vld [vmem:[%s14343_s1 + $0x1d0] sm:$0xff] }
 0x41f   : > { %4020 = vmatmul.f32.gmra.mxu3 %v15325_v46  ;;  %v4953_v25 = vand.u32 4294901760, %v4952_v17  ;;  %v11379_v46 = vand.u32 4294901760, %v7704_v61 }
 0x420   : > { %v11367_v56 = vadd.f32 %v3125_v60, %v15326_v33  ;;  %v3427_v0 = vsub.f32 %v11354_v24, %v14649_v6  ;;  %v2448_v6 = vadd.f32 %v10986_v27, %v10591_v44 }
 0x421   : > { %v11375_v59 = vpop.f32.mrf.mxu0  ;;  %v11377_v14 = vpop.f32.mrf.mxu1  ;;  %4954 = vmatpush.msrb.mxu3 %v4953_v25  ;;  %4647 = vmatpush.msrb.mxu2 %v11379_v46  ;;  %v11388_v15 = vsub.f32 %v7704_v61, %v11379_v46  ;;  %v15331_v61 = vld [vmem:[#allocation7_spill] sm:$0xff] }
 0x422   : > { %15327 = vst [vmem:[#allocation66_spill] sm:$0xff] %v11367_v56  ;;  %v2866_v42 = vpop.f32.mrf.mxu2  ;;  %v3023_v21 = vpop.f32.mrf.mxu3  ;;  %v3428_v60 = vand.u32 4294901760, %v3427_v0  ;;  %v11382_v33 = vand.u32 4294901760, %v11367_v56  ;;  %5370 = vmatpush.msrb.mxu1 %v11379_v46 }
 0x423   : > { %15328 = vst [vmem:[#allocation52_spill] sm:$0xff] %v11377_v14  ;;  %v7879_v34 = vpop.eup %7878  ;;  %v3024_v9 = vadd.f32 %v3023_v21, %v2863_v38  ;;  %v14652_v0 = vand.u32 4294901760, %v11388_v15  ;;  %5167 = vmatpush.msrb.mxu0 %v11388_v15  ;;  %v2672_v38 = vadd.f32 %v10965_v11, %v2448_v6  ;;  %v15330_v21 = vand.u32 4294901760, %v10984_v5 }
 0x424   : > { %15329 = vst [vmem:[#allocation68_spill] sm:$0xff] %v11382_v33  ;;  %v3094_v43 = vmul.f32 %v7879_v34, %v7879_v34  ;;  %3429 = vmatmul.f32.gmra.mxu0 %v3428_v60  ;;  %3678 = vmatmul.f32.gmra.mxu1 %v11382_v33  ;;  %v11393_v17 = vsub.f32 %v11367_v56, %v11382_v33  ;;  %v11415_v60 = vld [vmem:[%s14344_s2 + $0x2] ss:$0 sm:$0xff] }
 0x425   : > { %7880 = vtanh.f32 %v3024_v9  ;;  %v4958_v9 = vsub.f32 %v11388_v15, %v14652_v0  ;;  %v2867_v11 = vadd.f32 %v2866_v42, %v2672_v38  ;;  %v7703_v38 = vld [vmem:[%s14343_s1 + $0x1c8] sm:$0xff] }
 0x426   : > { %v3126_v44 = vmul.f32 %v7879_v34, %v3094_v43  ;;  %3823 = vmatmul.f32.gmra.mxu2 %v11009_v63  ;;  %v14654_v27 = vand.u32 4294901760, %v11393_v17 }
 0x427   : > { %4026 = vmatmul.f32.gmra.mxu3 %v15330_v21  ;;  %v4959_v43 = vand.u32 4294901760, %v4958_v9  ;;  %v3223_v9 = vadd.f32 %v11415_v60, %v11047_v16 }
 0x428   : > { %v11407_v25 = vadd.f32 %v3126_v44, %v15331_v61  ;;  %v3435_v34 = vsub.f32 %v11393_v17, %v14654_v27  ;;  %v2453_v27 = vadd.f32 %v11016_v36, %v10607_v41 }
 0x429   : > { %v11417_v6 = vpop.f32.mrf.mxu0  ;;  %v11419_v5 = vpop.f32.mrf.mxu1  ;;  %4960 = vmatpush.msrb.mxu3 %v4959_v43  ;;  %v15335_v43 = vld [vmem:[#allocation35_spill] sm:$0xff] }
 0x42a   : > { %15332 = vst [vmem:[#allocation51_spill] sm:$0xff] %v11407_v25  ;;  %v2870_v21 = vpop.f32.mrf.mxu2  ;;  %v3027_v0 = vpop.f32.mrf.mxu3  ;;  %v3436_v56 = vand.u32 4294901760, %v3435_v34  ;;  %v11422_v44 = vand.u32 4294901760, %v11407_v25  ;;  %v11436_v34 = vand.u32 4294901760, %v7703_v38 }
 0x42b   : > { %v7881_v61 = vpop.eup %7880  ;;  %v3028_v33 = vadd.f32 %v3027_v0, %v2867_v11  ;;  %v15334_v0 = vand.u32 4294901760, %v11009_v63  ;;  %v3572_v63 = vadd.f32 %v11024_v26, %v3223_v9  ;;  %v3231_v9 = vadd.f32 %v11415_v60, %v11075_v45 }
 0x42c   : > { %15333 = vst [vmem:[#allocation70_spill] sm:$0xff] %v11422_v44  ;;  %v3095_v14 = vmul.f32 %v7881_v61, %v7881_v61  ;;  %3437 = vmatmul.f32.gmra.mxu0 %v3436_v56  ;;  %3682 = vmatmul.f32.gmra.mxu1 %v11422_v44  ;;  %v11429_v42 = vsub.f32 %v11407_v25, %v11422_v44 }
 0x42d   : > { %7882 = vtanh.f32 %v3028_v33  ;;  %v2678_v56 = vadd.f32 %v10999_v40, %v2453_v27  ;;  %4649 = vmatpush.msrb.mxu2 %v11436_v34  ;;  %v11445_v11 = vsub.f32 %v7703_v38, %v11436_v34  ;;  %5372 = vmatpush.msrb.mxu1 %v11436_v34 }
 0x42e   : > { %v3127_v41 = vmul.f32 %v7881_v61, %v3095_v14  ;;  %3828 = vmatmul.f32.gmra.mxu2 %v11034_v1  ;;  %v14657_v36 = vand.u32 4294901760, %v11429_v42 }
 0x42f   : > { %4032 = vmatmul.f32.gmra.mxu3 %v15334_v0  ;;  %v2871_v33 = vadd.f32 %v2870_v21, %v2678_v56  ;;  %v14661_v27 = vand.u32 4294901760, %v11445_v11  ;;  %5170 = vmatpush.msrb.mxu0 %v11445_v11 }
 0x430   : > { %v11448_v16 = vadd.f32 %v3127_v41, %v15335_v43  ;;  %v3443_v14 = vsub.f32 %v11429_v42, %v14657_v36 }
 0x431   : > { %v11454_v61 = vpop.f32.mrf.mxu0  ;;  %v11456_v40 = vpop.f32.mrf.mxu1  ;;  %v4964_v21 = vsub.f32 %v11445_v11, %v14661_v27 }
 0x432   : > { %15336 = vst [vmem:[#allocation27_spill] sm:$0xff] %v11448_v16  ;;  %v3031_v38 = vpop.f32.mrf.mxu3  ;;  %v3749_v41 = vpop.f32.mrf.mxu2  ;;  %v3444_v0 = vand.u32 4294901760, %v3443_v14  ;;  %v11462_v43 = vand.u32 4294901760, %v11448_v16 }
 0x433   : > { %15337 = vst [vmem:[#allocation71_spill] sm:$0xff] %v11456_v40  ;;  %v7883_v36 = vpop.eup %7882  ;;  %v3032_v25 = vadd.f32 %v3031_v38, %v2871_v33  ;;  %v3750_v44 = vadd.f32 %v3749_v41, %v3572_v63  ;;  %v4965_v14 = vand.u32 4294901760, %v4964_v21  ;;  %v15339_v63 = vand.u32 4294901760, %v11034_v1  ;;  %v15340_v38 = vld [vmem:[#allocation39_spill] sm:$0xff] }
 0x434   : > { %15338 = vst [vmem:[#allocation53_spill] sm:$0xff] %v11462_v43  ;;  %v3096_v56 = vmul.f32 %v7883_v36, %v7883_v36  ;;  %3445 = vmatmul.f32.gmra.mxu0 %v3444_v0  ;;  %3686 = vmatmul.f32.gmra.mxu1 %v11462_v43  ;;  %v11470_v26 = vsub.f32 %v11448_v16, %v11462_v43 }
 0x435   : > { %7884 = vtanh.f32 %v3032_v25  ;;  %4966 = vmatpush.msrb.mxu3 %v4965_v14  ;;  %v3576_v25 = vadd.f32 %v11049_v12, %v3231_v9  ;;  %v7702_v12 = vld [vmem:[%s14343_s1 + $0x1c0] sm:$0xff]  ;;  %v3239_v9 = vadd.f32 %v11415_v60, %v11112_v32 }
 0x436   : > { %v3128_v40 = vmul.f32 %v7883_v36, %v3096_v56  ;;  %3833 = vmatmul.f32.gmra.mxu2 %v11059_v7  ;;  %v14663_v33 = vand.u32 4294901760, %v11470_v26 }
 0x437   : > { %4038 = vmatmul.f32.gmra.mxu3 %v15339_v63 }
 0x438   : > { %v11479_v41 = vadd.f32 %v3128_v40, %v15340_v38  ;;  %v3451_v0 = vsub.f32 %v11470_v26, %v14663_v33 }
 0x439   : > { %v11484_v27 = vpop.f32.mrf.mxu0  ;;  %v11486_v45 = vpop.f32.mrf.mxu1 }
 0x43a   : > { %15341 = vst [vmem:[#allocation14_spill] sm:$0xff] %v11479_v41  ;;  %v3754_v36 = vpop.f32.mrf.mxu2  ;;  %v3943_v21 = vpop.f32.mrf.mxu3  ;;  %v3452_v56 = vand.u32 4294901760, %v3451_v0  ;;  %v11490_v1 = vand.u32 4294901760, %v11479_v41  ;;  %v11504_v0 = vand.u32 4294901760, %v7702_v12 }
 0x43b   : > { %15342 = vst [vmem:[#allocation3_spill] sm:$0xff] %v11486_v45  ;;  %v7885_v63 = vpop.eup %7884  ;;  %v3755_v40 = vadd.f32 %v3754_v36, %v3576_v25  ;;  %v11492_v38 = vadd.f32 %v3943_v21, %v3750_v44  ;;  %v15344_v36 = vand.u32 4294901760, %v11059_v7  ;;  %v3580_v7 = vadd.f32 %v11077_v62, %v3239_v9 }
 0x43c   : > { %15343 = vst [vmem:[#allocation74_spill] sm:$0xff] %v11490_v1  ;;  %v3097_v16 = vmul.f32 %v7885_v63, %v7885_v63  ;;  %3453 = vmatmul.f32.gmra.mxu0 %v3452_v56  ;;  %3690 = vmatmul.f32.gmra.mxu1 %v11490_v1  ;;  %v11497_v14 = vsub.f32 %v11479_v41, %v11490_v1  ;;  %v15345_v56 = vld [vmem:[#allocation44_spill] sm:$0xff] }
 0x43d   : > { %4651 = vmatpush.msrb.mxu2 %v11504_v0  ;;  %v11512_v21 = vsub.f32 %v7702_v12, %v11504_v0  ;;  %5374 = vmatpush.msrb.mxu1 %v11504_v0  ;;  %v3247_v9 = vadd.f32 %v11415_v60, %v11140_v52 }
 0x43e   : > { %v3129_v25 = vmul.f32 %v7885_v63, %v3097_v16  ;;  %3838 = vmatmul.f32.gmra.mxu2 %v11094_v54  ;;  %v14667_v44 = vand.u32 4294901760, %v11497_v14 }
 0x43f   : > { %4044 = vmatmul.f32.gmra.mxu3 %v15344_v36  ;;  %v14668_v36 = vand.u32 4294901760, %v11512_v21  ;;  %5173 = vmatpush.msrb.mxu0 %v11512_v21 }
 0x440   : > { %v11515_v33 = vadd.f32 %v3129_v25, %v15345_v56  ;;  %v3459_v32 = vsub.f32 %v11497_v14, %v14667_v44 }
 0x441   : > { %v11521_v16 = vpop.f32.mrf.mxu0  ;;  %v11523_v63 = vpop.f32.mrf.mxu1  ;;  %v4970_v45 = vsub.f32 %v11512_v21, %v14668_v36  ;;  %v3584_v36 = vadd.f32 %v11114_v2, %v3247_v9  ;;  %v15353_v2 = vand.u32 4294901760, %v11124_v39 }
 0x442   : > { %15346 = vst [vmem:[#allocation28_spill] sm:$0xff] %v11515_v33  ;;  %v3759_v12 = vpop.f32.mrf.mxu2  ;;  %v3949_v41 = vpop.f32.mrf.mxu3  ;;  %v3460_v25 = vand.u32 4294901760, %v3459_v32  ;;  %v11529_v56 = vand.u32 4294901760, %v11515_v33 }
 0x443   : > { %15347 = vst [vmem:[#allocation76_spill] sm:$0xff] %v11521_v16  ;;  %v3760_v1 = vadd.f32 %v3759_v12, %v3580_v7  ;;  %v11531_v44 = vadd.f32 %v3949_v41, %v3755_v40  ;;  %v4971_v32 = vand.u32 4294901760, %v4970_v45  ;;  %v15350_v40 = vand.u32 4294901760, %v11094_v54  ;;  %v7701_v54 = vld [vmem:[%s14343_s1 + $0x1b8] sm:$0xff] }
 0x444   : > { %15348 = vst [vmem:[#allocation5_spill] sm:$0xff] %v11523_v63  ;;  %3461 = vmatmul.f32.gmra.mxu0 %v3460_v25  ;;  %3694 = vmatmul.f32.gmra.mxu1 %v11529_v56  ;;  %v11539_v62 = vsub.f32 %v11515_v33, %v11529_v56 }
 0x445   : > { %15349 = vst [vmem:[#allocation7_spill] sm:$0xff] %v11529_v56  ;;  %4972 = vmatpush.msrb.mxu3 %v4971_v32  ;;  %v3255_v32 = vadd.f32 %v11415_v60, %v11177_v57 }
 0x446   : > { %3843 = vmatmul.f32.gmra.mxu2 %v11124_v39  ;;  %v14673_v41 = vand.u32 4294901760, %v11539_v62 }
 0x447   : > { %4050 = vmatmul.f32.gmra.mxu3 %v15350_v40  ;;  %v11563_v40 = vand.u32 4294901760, %v7701_v54  ;;  %v3588_v57 = vadd.f32 %v11142_v23, %v3255_v32  ;;  %v3263_v23 = vadd.f32 %v11415_v60, %v11205_v35  ;;  %v3271_v35 = vadd.f32 %v11415_v60, %v11242_v4 }
 0x448   : > { %v3467_v7 = vsub.f32 %v11539_v62, %v14673_v41 }
 0x449   : > { %v11550_v12 = vpop.f32.mrf.mxu0  ;;  %v11552_v25 = vpop.f32.mrf.mxu1  ;;  %4653 = vmatpush.msrb.mxu2 %v11563_v40  ;;  %5376 = vmatpush.msrb.mxu1 %v11563_v40  ;;  %v3596_v4 = vadd.f32 %v11207_v20, %v3271_v35  ;;  %v3279_v20 = vadd.f32 %v11415_v60, %v11270_v18  ;;  %v15362_v35 = vand.u32 4294901760, %v11224_v28  ;;  %v15365_v18 = vld [vmem:[#allocation10_spill] sm:$0xff] }
 0x44a   : > { %15351 = vst [vmem:[#allocation35_spill] sm:$0xff] %v11550_v12  ;;  %v3764_v52 = vpop.f32.mrf.mxu2  ;;  %v3955_v45 = vpop.f32.mrf.mxu3  ;;  %v3468_v33 = vand.u32 4294901760, %v3467_v7  ;;  %v7694_v12 = vld [vmem:[%s14343_s1 + $0x180] sm:$0xff] }
 0x44b   : > { %15352 = vst [vmem:[#allocation39_spill] sm:$0xff] %v11552_v25  ;;  %v3765_v56 = vadd.f32 %v3764_v52, %v3584_v36  ;;  %v11555_v63 = vadd.f32 %v3955_v45, %v3760_v1 }
 0x44c   : > { %3469 = vmatmul.f32.gmra.mxu0 %v3468_v33  ;;  %4358 = vmatmul.f32.vlgmr.msra.gmra.mxu1 %v10661_v49  ;;  %v11570_v33 = vsub.f32 %v7701_v54, %v11563_v40 }
 0x44e   : > { %3848 = vmatmul.f32.gmra.mxu2 %v11159_v55  ;;  %v14672_v9 = vand.u32 4294901760, %v11570_v33  ;;  %5176 = vmatpush.msrb.mxu0 %v11570_v33 }
 0x44f   : > { %4056 = vmatmul.f32.gmra.mxu3 %v15353_v2  ;;  %v15356_v2 = vand.u32 4294901760, %v11159_v55  ;;  %v7700_v55 = vld [vmem:[%s14343_s1 + $0x1b0] sm:$0xff] }
 0x450   : > { %v4976_v54 = vsub.f32 %v11570_v33, %v14672_v9 }
 0x451   : > { %v11573_v1 = vpop.f32.mrf.mxu0  ;;  %v11575_v36 = vpop.f32.mrf.mxu1 }
 0x452   : > { %15354 = vst [vmem:[#allocation44_spill] sm:$0xff] %v11573_v1  ;;  %v3769_v7 = vpop.f32.mrf.mxu2  ;;  %v3961_v39 = vpop.f32.mrf.mxu3  ;;  %v4977_v32 = vand.u32 4294901760, %v4976_v54  ;;  %v11606_v54 = vand.u32 4294901760, %v7700_v55 }
 0x453   : > { %15355 = vst [vmem:[#allocation78_spill] sm:$0xff] %v11575_v36  ;;  %v3770_v52 = vadd.f32 %v3769_v7, %v3588_v57  ;;  %v11580_v45 = vadd.f32 %v3961_v39, %v3765_v56  ;;  %v3592_v7 = vadd.f32 %v11179_v50, %v3263_v23  ;;  %v15359_v50 = vand.u32 4294901760, %v11189_v19 }
 0x454   : > { %4197 = vmatmul.f32.vlgmr.msra.gmra.mxu0 %v10661_v49  ;;  %4362 = vmatmul.f32.gmra.mxu1 %v10682_v10 }
 0x455   : > { %4978 = vmatpush.msrb.mxu3 %v4977_v32  ;;  %4655 = vmatpush.msrb.mxu2 %v11606_v54 }
 0x456   : > { %3853 = vmatmul.f32.gmra.mxu2 %v11189_v19  ;;  %5378 = vmatpush.msrb.mxu1 %v11606_v54 }
 0x457   : > { %4062 = vmatmul.f32.gmra.mxu3 %v15356_v2 }
 0x459   : > { %v11592_v56 = vpop.f32.mrf.mxu0  ;;  %v11594_v57 = vpop.f32.mrf.mxu1 }
 0x45a   : > { %15357 = vst [vmem:[#allocation79_spill] sm:$0xff] %v11592_v56  ;;  %v3774_v39 = vpop.f32.mrf.mxu2  ;;  %v3967_v49 = vpop.f32.mrf.mxu3 }
 0x45b   : > { %15358 = vst [vmem:[#allocation80_spill] sm:$0xff] %v11594_v57  ;;  %v3775_v9 = vadd.f32 %v3774_v39, %v3592_v7  ;;  %v11597_v41 = vadd.f32 %v3967_v49, %v3770_v52 }
 0x45c   : > { %4201 = vmatmul.f32.gmra.mxu0 %v10682_v10  ;;  %4366 = vmatmul.f32.gmra.mxu1 %v10704_v29  ;;  %v11613_v10 = vsub.f32 %v7700_v55, %v11606_v54 }
 0x45e   : > { %3858 = vmatmul.f32.gmra.mxu2 %v11224_v28  ;;  %v14674_v32 = vand.u32 4294901760, %v11613_v10  ;;  %5179 = vmatpush.msrb.mxu0 %v11613_v10  ;;  %v7699_v28 = vld [vmem:[%s14343_s1 + $0x1a8] sm:$0xff] }
 0x45f   : > { %4068 = vmatmul.f32.gmra.mxu3 %v15359_v50 }
 0x460   : > { %v4982_v49 = vsub.f32 %v11613_v10, %v14674_v32 }
 0x461   : > { %v11616_v52 = vpop.f32.mrf.mxu0  ;;  %v11618_v23 = vpop.f32.mrf.mxu1 }
 0x462   : > { %15360 = vst [vmem:[#allocation81_spill] sm:$0xff] %v11616_v52  ;;  %v3779_v2 = vpop.f32.mrf.mxu2  ;;  %v3973_v19 = vpop.f32.mrf.mxu3  ;;  %v4983_v55 = vand.u32 4294901760, %v4982_v49  ;;  %v11647_v49 = vand.u32 4294901760, %v7699_v28 }
 0x463   : > { %15361 = vst [vmem:[#allocation82_spill] sm:$0xff] %v11618_v23  ;;  %v3780_v7 = vadd.f32 %v3779_v2, %v3596_v4  ;;  %v11623_v39 = vadd.f32 %v3973_v19, %v3775_v9  ;;  %v3600_v4 = vadd.f32 %v11244_v58, %v3279_v20 }
 0x464   : > { %4205 = vmatmul.f32.gmra.mxu0 %v10704_v29  ;;  %4370 = vmatmul.f32.gmra.mxu1 %v10724_v8  ;;  %v11654_v58 = vsub.f32 %v7699_v28, %v11647_v49  ;;  %v15370_v28 = vand.u32 4294901760, %v11289_v37 }
 0x465   : > { %4984 = vmatpush.msrb.mxu3 %v4983_v55  ;;  %v15366_v55 = vand.u32 4294901760, %v11254_v30  ;;  %4657 = vmatpush.msrb.mxu2 %v11647_v49 }
 0x466   : > { %3863 = vmatmul.f32.gmra.mxu2 %v11254_v30  ;;  %5380 = vmatpush.msrb.mxu1 %v11647_v49  ;;  %v14675_v20 = vand.u32 4294901760, %v11654_v58 }
 0x467   : > { %4074 = vmatmul.f32.gmra.mxu3 %v15362_v35  ;;  %5182 = vmatpush.msrb.mxu0 %v11654_v58 }
 0x468   : > { %v4988_v30 = vsub.f32 %v11654_v58, %v14675_v20 }
 0x469   : > { %v11635_v9 = vpop.f32.mrf.mxu0  ;;  %v11637_v50 = vpop.f32.mrf.mxu1 }
 0x46a   : > { %15363 = vst [vmem:[#allocation83_spill] sm:$0xff] %v11635_v9  ;;  %v3784_v2 = vpop.f32.mrf.mxu2  ;;  %v3979_v29 = vpop.f32.mrf.mxu3 }
 0x46b   : > { %15364 = vst [vmem:[#allocation84_spill] sm:$0xff] %v11637_v50  ;;  %v3785_v19 = vadd.f32 %v3784_v2, %v3600_v4  ;;  %v11640_v32 = vadd.f32 %v3979_v29, %v3780_v7  ;;  %v15369_v2 = vld [vmem:[#allocation22_spill] sm:$0xff]  ;;  %v4989_v29 = vand.u32 4294901760, %v4988_v30 }
 0x46c   : > { %4209 = vmatmul.f32.gmra.mxu0 %v10724_v8  ;;  %4374 = vmatmul.f32.gmra.mxu1 %v15365_v18 }
 0x46d   : > { %4990 = vmatpush.msrb.mxu3 %v4989_v29 }
 0x46e   : > { %3868 = vmatmul.f32.gmra.mxu2 %v11289_v37  ;;  %v15374_v37 = vand.u32 4294901760, %v11319_v47 }
 0x46f   : > { %4080 = vmatmul.f32.gmra.mxu3 %v15366_v55 }
 0x471   : > { %v11657_v8 = vpop.f32.mrf.mxu0  ;;  %v11659_v7 = vpop.f32.mrf.mxu1 }
 0x472   : > { %15367 = vst [vmem:[#allocation10_spill] sm:$0xff] %v11657_v8  ;;  %v3985_v35 = vpop.f32.mrf.mxu3 }
 0x473   : > { %15368 = vst [vmem:[#allocation85_spill] sm:$0xff] %v11659_v7  ;;  %v11663_v4 = vadd.f32 %v3985_v35, %v3785_v19  ;;  %v15373_v35 = vld [vmem:[#allocation77_spill] sm:$0xff] }
 0x474   : > { %4213 = vmatmul.f32.gmra.mxu0 %v15365_v18  ;;  %4378 = vmatmul.f32.gmra.mxu1 %v15369_v2  ;;  %v7698_v18 = vld [vmem:[%s14343_s1 + $0x1a0] sm:$0xff] }
 0x475   : > { %v11684_v30 = vand.u32 4294901760, %v7698_v18 }
 0x476   : > { %3873 = vmatmul.f32.gmra.mxu2 %v11319_v47 }
 0x477   : > { %4086 = vmatmul.f32.gmra.mxu3 %v15370_v28  ;;  %4659 = vmatpush.msrb.mxu2 %v11684_v30  ;;  %v11691_v29 = vsub.f32 %v7698_v18, %v11684_v30  ;;  %v15377_v18 = vld [vmem:[#allocation64_spill] sm:$0xff] }
 0x478   : > { %5382 = vmatpush.msrb.mxu1 %v11684_v30 }
 0x479   : > { %v11673_v55 = vpop.f32.mrf.mxu0  ;;  %v11675_v7 = vpop.f32.mrf.mxu1  ;;  %v14676_v20 = vand.u32 4294901760, %v11691_v29  ;;  %5185 = vmatpush.msrb.mxu0 %v11691_v29 }
 0x47a   : > { %15371 = vst [vmem:[#allocation22_spill] sm:$0xff] %v11673_v55  ;;  %v11677_v19 = vpop.f32.mrf.mxu3 }
 0x47b   : > { %15372 = vst [vmem:[#allocation86_spill] sm:$0xff] %v11675_v7  ;;  %v11700_v7 = vpop.f32.mrf.mxu2  ;;  %v4994_v47 = vsub.f32 %v11691_v29, %v14676_v20  ;;  %v15381_v20 = vld [vmem:[#allocation62_spill] sm:$0xff] }
 0x47c   : > { %4217 = vmatmul.f32.gmra.mxu0 %v15369_v2  ;;  %4382 = vmatmul.f32.gmra.mxu1 %v15373_v35 }
 0x47d   : > { %v4995_v55 = vand.u32 4294901760, %v4994_v47 }
 0x47e   : > { %3878 = vmatmul.f32.gmra.mxu2 %v11354_v24 }
 0x47f   : > { %4092 = vmatmul.f32.gmra.mxu3 %v15374_v37 }
 0x480   : > { %4996 = vmatpush.msrb.mxu3 %v4995_v55 }
 0x481   : > { %v11694_v2 = vpop.f32.mrf.mxu0  ;;  %v11696_v28 = vpop.f32.mrf.mxu1 }
 0x482   : > { %15375 = vst [vmem:[#allocation77_spill] sm:$0xff] %v11694_v2  ;;  %v11705_v37 = vpop.f32.mrf.mxu3 }
 0x483   : > { %15376 = vst [vmem:[#allocation87_spill] sm:$0xff] %v11696_v28  ;;  %v15378_v28 = vand.u32 4294901760, %v11354_v24  ;;  %v11716_v8 = vpop.f32.mrf.mxu2  ;;  %v15382_v24 = vand.u32 4294901760, %v11393_v17 }
 0x484   : > { %4221 = vmatmul.f32.gmra.mxu0 %v15373_v35  ;;  %4386 = vmatmul.f32.gmra.mxu1 %v15377_v18  ;;  %v7697_v35 = vld [vmem:[%s14343_s1 + $0x198] sm:$0xff] }
 0x485   : > { %v11723_v47 = vand.u32 4294901760, %v7697_v35 }
 0x486   : > { %3883 = vmatmul.f32.gmra.mxu2 %v11393_v17 }
 0x487   : > { %4098 = vmatmul.f32.gmra.mxu3 %v15378_v28  ;;  %4661 = vmatpush.msrb.mxu2 %v11723_v47  ;;  %v11732_v55 = vsub.f32 %v7697_v35, %v11723_v47 }
 0x488   : > { %5384 = vmatpush.msrb.mxu1 %v11723_v47 }
 0x489   : > { %v11712_v2 = vpop.f32.mrf.mxu0  ;;  %v11714_v50 = vpop.f32.mrf.mxu1  ;;  %5188 = vmatpush.msrb.mxu0 %v11732_v55 }
 0x48a   : > { %15379 = vst [vmem:[#allocation64_spill] sm:$0xff] %v11712_v2  ;;  %v11725_v23 = vpop.f32.mrf.mxu3 }
 0x48b   : > { %15380 = vst [vmem:[#allocation88_spill] sm:$0xff] %v11714_v50  ;;  %v14677_v50 = vand.u32 4294901760, %v11732_v55  ;;  %v11746_v2 = vpop.f32.mrf.mxu2 }
 0x48c   : > { %4225 = vmatmul.f32.gmra.mxu0 %v15377_v18  ;;  %4390 = vmatmul.f32.gmra.mxu1 %v15381_v20 }
 0x48d   : > { %v5000_v17 = vsub.f32 %v11732_v55, %v14677_v50 }
 0x48e   : > { %3888 = vmatmul.f32.gmra.mxu2 %v11429_v42 }
 0x48f   : > { %4104 = vmatmul.f32.gmra.mxu3 %v15382_v24  ;;  %v15385_v24 = vld [vmem:[#allocation40_spill] sm:$0xff]  ;;  %v5001_v35 = vand.u32 4294901760, %v5000_v17 }
 0x490   : > { %v7696_v17 = vld [vmem:[%s14343_s1 + $0x190] sm:$0xff] }
 0x491   : > { %v11735_v28 = vpop.f32.mrf.mxu0  ;;  %v11737_v18 = vpop.f32.mrf.mxu1  ;;  %5002 = vmatpush.msrb.mxu3 %v5001_v35  ;;  %v11762_v50 = vand.u32 4294901760, %v7696_v17 }
 0x492   : > { %15383 = vst [vmem:[#allocation62_spill] sm:$0xff] %v11735_v28  ;;  %v15386_v28 = vand.u32 4294901760, %v11429_v42  ;;  %v15390_v42 = vand.u32 4294901760, %v11470_v26 }
 0x493   : > { %15384 = vst [vmem:[#allocation89_spill] sm:$0xff] %v11737_v18  ;;  %v11751_v18 = vpop.f32.mrf.mxu3  ;;  %4663 = vmatpush.msrb.mxu2 %v11762_v50  ;;  %v11771_v35 = vpop.f32.mrf.mxu2  ;;  %5386 = vmatpush.msrb.mxu1 %v11762_v50 }
 0x494   : > { %4229 = vmatmul.f32.gmra.mxu0 %v15381_v20  ;;  %4394 = vmatmul.f32.gmra.mxu1 %v15385_v24  ;;  %v15389_v20 = vld [vmem:[#allocation32_spill] sm:$0xff] }
 0x496   : > { %3893 = vmatmul.f32.gmra.mxu2 %v11470_v26 }
 0x497   : > { %4110 = vmatmul.f32.gmra.mxu3 %v15386_v28  ;;  %v11769_v28 = vsub.f32 %v7696_v17, %v11762_v50  ;;  %v15394_v17 = vld [vmem:[#allocation12_spill] sm:$0xff] }
 0x499   : > { %v11753_v9 = vpop.f32.mrf.mxu0  ;;  %v11755_v57 = vpop.f32.mrf.mxu1  ;;  %5191 = vmatpush.msrb.mxu0 %v11769_v28 }
 0x49a   : > { %15387 = vst [vmem:[#allocation40_spill] sm:$0xff] %v11753_v9  ;;  %v14678_v9 = vand.u32 4294901760, %v11769_v28 }
 0x49b   : > { %15388 = vst [vmem:[#allocation90_spill] sm:$0xff] %v11755_v57  ;;  %v11780_v52 = vpop.f32.mrf.mxu3  ;;  %v11794_v56 = vpop.f32.mrf.mxu2 }
 0x49c   : > { %4233 = vmatmul.f32.gmra.mxu0 %v15385_v24  ;;  %4398 = vmatmul.f32.gmra.mxu1 %v15389_v20  ;;  %15393 = vst [vmem:[#allocation92_spill] sm:$0xff] %v11780_v52  ;;  %v5006_v26 = vsub.f32 %v11769_v28, %v14678_v9 }
 0x49e   : > { %3898 = vmatmul.f32.gmra.mxu2 %v11497_v14 }
 0x49f   : > { %4116 = vmatmul.f32.gmra.mxu3 %v15390_v42  ;;  %v5007_v42 = vand.u32 4294901760, %v5006_v26  ;;  %v7695_v26 = vld [vmem:[%s14343_s1 + $0x188] sm:$0xff] }
 0x4a0   : > { %v11803_v9 = vand.u32 4294901760, %v7695_v26 }
 0x4a1   : > { %v11774_v24 = vpop.f32.mrf.mxu0  ;;  %v11776_v57 = vpop.f32.mrf.mxu1  ;;  %5008 = vmatpush.msrb.mxu3 %v5007_v42 }
 0x4a2   : > { %15391 = vst [vmem:[#allocation32_spill] sm:$0xff] %v11774_v24  ;;  %v15395_v24 = vand.u32 4294901760, %v11497_v14  ;;  %v15400_v14 = vand.u32 4294901760, %v11539_v62  ;;  %4665 = vmatpush.msrb.mxu2 %v11803_v9  ;;  %5388 = vmatpush.msrb.mxu1 %v11803_v9 }
 0x4a3   : > { %15392 = vst [vmem:[#allocation91_spill] sm:$0xff] %v11776_v57  ;;  %v11796_v25 = vpop.f32.mrf.mxu3 }
 0x4a4   : > { %4237 = vmatmul.f32.gmra.mxu0 %v15389_v20  ;;  %4402 = vmatmul.f32.gmra.mxu1 %v15394_v17  ;;  %15398 = vst [vmem:[#allocation94_spill] sm:$0xff] %v11796_v25  ;;  %v15399_v20 = vld [vmem:[#allocation19_spill] sm:$0xff]  ;;  %v11834_v25 = vand.u32 4294901760, %v7694_v12 }
 0x4a6   : > { %3903 = vmatmul.f32.gmra.mxu2 %v11539_v62  ;;  %5390 = vmatpush.msrb.mxu1 %v11834_v25 }
 0x4a7   : > { %4122 = vmatmul.f32.gmra.mxu3 %v15395_v24  ;;  %v11809_v24 = vsub.f32 %v7695_v26, %v11803_v9  ;;  %v15404_v26 = vld [vmem:[#allocation18_spill] sm:$0xff]  ;;  %4667 = vmatpush.msrb.mxu2 %v11834_v25 }
 0x4a9   : > { %v11790_v57 = vpop.f32.mrf.mxu0  ;;  %v11792_v36 = vpop.f32.mrf.mxu1  ;;  %5194 = vmatpush.msrb.mxu0 %v11809_v24 }
 0x4aa   : > { %15396 = vst [vmem:[#allocation12_spill] sm:$0xff] %v11790_v57 }
 0x4ab   : > { %15397 = vst [vmem:[#allocation93_spill] sm:$0xff] %v11792_v36  ;;  %v14679_v36 = vand.u32 4294901760, %v11809_v24  ;;  %v11825_v1 = vpop.f32.mrf.mxu3 }
 0x4ac   : > { %4241 = vmatmul.f32.gmra.mxu0 %v15394_v17  ;;  %4406 = vmatmul.f32.gmra.mxu1 %v15399_v20  ;;  %15405 = vst [vmem:[#allocation18_spill] sm:$0xff] %v11825_v1  ;;  %v15411_v1 = vld [vmem:[#allocation55_spill] sm:$0xff] }
 0x4ad   : > { %v5012_v62 = vsub.f32 %v11809_v24, %v14679_v36  ;;  %v15409_v36 = vld [vmem:[#allocation38_spill] sm:$0xff] }
 0x4af   : > { %4128 = vmatmul.f32.gmra.mxu3 %v15400_v14  ;;  %v11821_v14 = vpop.f32.mrf.mxu2  ;;  %v5013_v57 = vand.u32 4294901760, %v5012_v62 }
 0x4b0   : > { %15403 = vst [vmem:[#allocation96_spill] sm:$0xff] %v11821_v14 }
 0x4b1   : > { %v11812_v42 = vpop.f32.mrf.mxu0  ;;  %v11814_v17 = vpop.f32.mrf.mxu1  ;;  %5014 = vmatpush.msrb.mxu3 %v5013_v57 }
 0x4b2   : > { %15401 = vst [vmem:[#allocation19_spill] sm:$0xff] %v11812_v42 }
 0x4b3   : > { %15402 = vst [vmem:[#allocation95_spill] sm:$0xff] %v11814_v17 }
 0x4b4   : > { %4245 = vmatmul.f32.gmra.mxu0 %v15399_v20  ;;  %4410 = vmatmul.f32.gmra.mxu1 %v15404_v26  ;;  %v11839_v20 = vsub.f32 %v7694_v12, %v11834_v25  ;;  %v15412_v12 = vand.u32 4294901760, %v15411_v1  ;;  %v15419_v1 = vand.u32 4294901760, %v11348_v53  ;;  %v15424_v53 = vld [vmem:[#allocation69_spill] sm:$0xff] }
 0x4b6   : > { %v5017_v62 = vand.u32 4294901760, %v11839_v20  ;;  %5197 = vmatpush.msrb.mxu0 %v11839_v20 }
 0x4b7   : > { %v11843_v57 = vpop.f32.mrf.mxu2 }
 0x4b8   : > { %15408 = vst [vmem:[#allocation99_spill] sm:$0xff] %v11843_v57  ;;  %v15414_v57 = vld [vmem:[#allocation57_spill] sm:$0xff] }
 0x4b9   : > { %v11827_v42 = vpop.f32.mrf.mxu0  ;;  %v11829_v17 = vpop.f32.mrf.mxu1  ;;  %v15415_v52 = vand.u32 4294901760, %v15414_v57 }
 0x4ba   : > { %15406 = vst [vmem:[#allocation97_spill] sm:$0xff] %v11827_v42  ;;  %v11849_v42 = vpop.f32.mrf.mxu3 }
 0x4bb   : > { %15407 = vst [vmem:[#allocation98_spill] sm:$0xff] %v11829_v17  ;;  %v15410_v17 = vand.u32 4294901760, %v15409_v36  ;;  %v15416_v36 = vld [vmem:[#allocation21_spill] sm:$0xff] }
 0x4bc   : > { %4249 = vmatmul.f32.gmra.mxu0 %v15404_v26  ;;  %4414 = vmatmul.f32.gmra.mxu1 %v10977_v13  ;;  %v5018_v26 = vsub.f32 %v11839_v20, %v5017_v62  ;;  %v15418_v20 = vld [vmem:[#allocation43_spill] sm:$0xff] }
 0x4bd   : > { %5587 = vmatpush.msra.mxu2 %v15410_v17  ;;  %v15417_v17 = vand.u32 4294901760, %v11283_v48  ;;  %v15423_v48 = vand.u32 4294901760, %v11445_v11  ;;  %v15428_v11 = vand.u32 4294901760, %v11613_v10 }
 0x4be   : > { %v5019_v43 = vand.u32 4294901760, %v5018_v26 }
 0x4bf   : > { %5591 = vmatpush.msra.mxu2 %v15412_v12  ;;  %v11867_v12 = vpop.f32.mrf.mxu2 }
 0x4c0   : > { %5020 = vmatpush.msrb.mxu3 %v5019_v43  ;;  %v15422_v43 = vld [vmem:[#allocation56_spill] sm:$0xff] }
 0x4c1   : > { %v11854_v16 = vpop.f32.mrf.mxu0  ;;  %v11856_v14 = vpop.f32.mrf.mxu1  ;;  %5595 = vmatpush.msra.mxu2 %v15415_v52 }
 0x4c2   : > { %15413 = vst [vmem:[#allocation38_spill] sm:$0xff] %v11856_v14  ;;  %5778 = vmatpush.msra.mxu3 %v15418_v20  ;;  %v15420_v14 = vld [vmem:[#allocation42_spill] sm:$0xff]  ;;  %v11874_v57 = vpop.f32.mrf.mxu3 }
 0x4c3   : > { %5599 = vmatpush.msra.mxu2 %v15417_v17  ;;  %v15425_v17 = vld [vmem:[#allocation45_spill] sm:$0xff] }
 0x4c4   : > { %4253 = vmatmul.f32.gmra.mxu0 %v10977_v13  ;;  %4418 = vmatmul.f32.gmra.mxu1 %v15416_v36  ;;  %v15421_v13 = vand.u32 4294901760, %v11388_v15  ;;  %v15427_v15 = vand.u32 4294901760, %v11570_v33 }
 0x4c5   : > { %5603 = vmatpush.msra.mxu2 %v15419_v1  ;;  %5780 = vmatpush.msra.mxu3 %v15420_v14  ;;  %v15426_v14 = vand.u32 4294901760, %v11512_v21  ;;  %v15429_v21 = vand.u32 4294901760, %v11654_v58  ;;  %v15433_v58 = vand.u32 4294901760, %v11769_v28 }
 0x4c7   : > { %5607 = vmatpush.msra.mxu2 %v15421_v13  ;;  %5782 = vmatpush.msra.mxu3 %v15422_v43  ;;  %v15430_v43 = vld [vmem:[#allocation49_spill] sm:$0xff] }
 0x4c9   : > { %v11870_v26 = vpop.f32.mrf.mxu0  ;;  %v4359_v52 = vpop.f32.mrf.mxu1  ;;  %5611 = vmatpush.msra.mxu2 %v15423_v48  ;;  %5784 = vmatpush.msra.mxu3 %v15425_v17 }
 0x4cb   : > { %5615 = vmatpush.msra.mxu2 %v15426_v14  ;;  %5786 = vmatpush.msra.mxu3 %v11339_v51  ;;  %v11896_v51 = vpop.f32.mrf.mxu3 }
 0x4cc   : > { %4257 = vmatmul.f32.gmra.mxu0 %v15416_v36  ;;  %4422 = vmatmul.f32.gmra.mxu1 %v15424_v53  ;;  %v11890_v36 = vpop.f32.mrf.mxu2 }
 0x4cd   : > { %5619 = vmatpush.msra.mxu2 %v15427_v15  ;;  %5788 = vmatpush.msra.mxu3 %v11379_v46  ;;  %v15431_v46 = vand.u32 4294901760, %v11691_v29 }
 0x4cf   : > { %5623 = vmatpush.msra.mxu2 %v15428_v11  ;;  %5790 = vmatpush.msra.mxu3 %v11436_v34  ;;  %v15432_v34 = vand.u32 4294901760, %v11732_v55  ;;  %v15435_v55 = vld [vmem:[#allocation72_spill] sm:$0xff] }
 0x4d1   : > { %v4198_v20 = vpop.f32.mrf.mxu0  ;;  %v4363_v1 = vpop.f32.mrf.mxu1  ;;  %5627 = vmatpush.msra.mxu2 %v15429_v21  ;;  %5792 = vmatpush.msra.mxu3 %v11504_v0  ;;  %v15434_v0 = vand.u32 4294901760, %v11809_v24 }
 0x4d2   : > { %v4199_v13 = vadd.f32 %v4198_v20, %v11492_v38  ;;  %v15438_v20 = vld [vmem:[#allocation75_spill] sm:$0xff] }
 0x4d3   : > { %5631 = vmatpush.msra.mxu2 %v15431_v46  ;;  %5794 = vmatpush.msra.mxu3 %v11563_v40 }
 0x4d4   : > { %v4360_v33 = vadd.f32 %v4359_v52, %v4199_v13  ;;  %4261 = vmatmul.f32.gmra.mxu0 %v15424_v53  ;;  %4426 = vmatmul.f32.gmra.mxu1 %v15430_v43  ;;  %v11913_v48 = vpop.f32.mrf.mxu2 }
 0x4d5   : > { %5635 = vmatpush.msra.mxu2 %v15432_v34  ;;  %5796 = vmatpush.msra.mxu3 %v11606_v54  ;;  %v11918_v54 = vpop.f32.mrf.mxu3 }
 0x4d6   : > { %7886 = vtanh.f32 %v4360_v33 }
 0x4d7   : > { %5639 = vmatpush.msra.mxu2 %v15433_v58  ;;  %5798 = vmatpush.msra.mxu3 %v11647_v49  ;;  %v15436_v49 = vld [vmem:[#allocation24_spill] sm:$0xff] }
 0x4d9   : > { %v4202_v38 = vpop.f32.mrf.mxu0  ;;  %v4367_v10 = vpop.f32.mrf.mxu1  ;;  %5643 = vmatpush.msra.mxu2 %v15434_v0  ;;  %5800 = vmatpush.msra.mxu3 %v11684_v30 }
 0x4da   : > { %v4203_v52 = vadd.f32 %v4202_v38, %v11531_v44 }
 0x4db   : > { %5647 = vmatpush.msra.mxu2 %v5017_v62  ;;  %5802 = vmatpush.msra.mxu3 %v11723_v47 }
 0x4dc   : > { %v7887_v29 = vpop.eup %7886  ;;  %v4364_v40 = vadd.f32 %v4363_v1, %v4203_v52  ;;  %4265 = vmatmul.f32.gmra.mxu0 %v15430_v43  ;;  %4430 = vmatmul.f32.gmra.mxu1 %v15435_v55  ;;  %v15439_v43 = vld [vmem:[#allocation41_spill] sm:$0xff]  ;;  %v15441_v52 = vld [vmem:[#allocation15_spill] sm:$0xff] }
 0x4dd   : > { %v4518_v53 = vmul.f32 %v7887_v29, %v7887_v29  ;;  %5804 = vmatpush.msra.mxu3 %v11762_v50  ;;  %v11937_v50 = vpop.f32.mrf.mxu2  ;;  %v11941_v11 = vpop.f32.mrf.mxu3 }
 0x4de   : > { %7888 = vtanh.f32 %v4364_v40 }
 0x4df   : > { %v4550_v44 = vmul.f32 %v7887_v29, %v4518_v53  ;;  %5806 = vmatpush.msra.mxu3 %v11803_v9 }
 0x4e1   : > { %v11922_v28 = vadd.f32 %v4550_v44, %v15436_v49  ;;  %v4206_v24 = vpop.f32.mrf.mxu0  ;;  %v4371_v17 = vpop.f32.mrf.mxu1  ;;  %5808 = vmatpush.msra.mxu3 %v11834_v25 }
 0x4e2   : > { %v4207_v14 = vadd.f32 %v4206_v24, %v11555_v63  ;;  %v15442_v24 = vld [vmem:[#allocation9_spill] sm:$0xff] }
 0x4e3   : > { %15437 = vst [vmem:[#allocation55_spill] sm:$0xff] %v11922_v28  ;;  %v11927_v15 = vand.u32 4294901760, %v11922_v28 }
 0x4e4   : > { %v7889_v30 = vpop.eup %7888  ;;  %v4368_v62 = vadd.f32 %v4367_v10, %v4207_v14  ;;  %4269 = vmatmul.f32.gmra.mxu0 %v15435_v55  ;;  %4434 = vmatmul.f32.gmra.mxu1 %v15438_v20 }
 0x4e5   : > { %v4519_v47 = vmul.f32 %v7889_v30, %v7889_v30  ;;  %5022 = vmatmul.f32.vlgmr.msrb.gmra.mxu3 %v11927_v15  ;;  %v11935_v1 = vsub.f32 %v11922_v28, %v11927_v15  ;;  %v11961_v55 = vpop.f32.mrf.mxu2  ;;  %v11969_v14 = vpop.f32.mrf.mxu3 }
 0x4e6   : > { %7890 = vtanh.f32 %v4368_v62 }
 0x4e7   : > { %v4551_v63 = vmul.f32 %v7889_v30, %v4519_v47  ;;  %v14684_v9 = vand.u32 4294901760, %v11935_v1 }
 0x4e9   : > { %v4210_v13 = vpop.f32.mrf.mxu0  ;;  %v4375_v21 = vpop.f32.mrf.mxu1  ;;  %v4671_v33 = vsub.f32 %v11935_v1, %v14684_v9  ;;  %v11947_v46 = vadd.f32 %v4551_v63, %v15439_v43 }
 0x4ea   : > { %v4211_v34 = vadd.f32 %v4210_v13, %v11580_v45  ;;  %v15445_v13 = vld [vmem:[#allocation33_spill] sm:$0xff] }
 0x4eb   : > { %15440 = vst [vmem:[#allocation57_spill] sm:$0xff] %v11947_v46  ;;  %v4672_v38 = vand.u32 4294901760, %v4671_v33  ;;  %v11951_v10 = vand.u32 4294901760, %v11947_v46 }
 0x4ec   : > { %v7891_v25 = vpop.eup %7890  ;;  %v4372_v58 = vadd.f32 %v4371_v17, %v4211_v34  ;;  %4273 = vmatmul.f32.gmra.mxu0 %v15438_v20  ;;  %4438 = vmatmul.f32.gmra.mxu1 %v15441_v52 }
 0x4ed   : > { %v4520_v0 = vmul.f32 %v7891_v25, %v7891_v25  ;;  %4673 = vmatmul.f32.vlgmr.msrb.gmra.mxu2 %v4672_v38  ;;  %5026 = vmatmul.f32.gmra.mxu3 %v11951_v10  ;;  %v11958_v29 = vsub.f32 %v11947_v46, %v11951_v10 }
 0x4ee   : > { %7892 = vtanh.f32 %v4372_v58  ;;  %v15446_v58 = vld [vmem:[#allocation8_spill] sm:$0xff] }
 0x4ef   : > { %v4552_v45 = vmul.f32 %v7891_v25, %v4520_v0  ;;  %v14683_v40 = vand.u32 4294901760, %v11958_v29  ;;  %v11989_v0 = vpop.f32.mrf.mxu2 }
 0x4f1   : > { %v4214_v53 = vpop.f32.mrf.mxu0  ;;  %v4379_v44 = vpop.f32.mrf.mxu1  ;;  %v4679_v49 = vsub.f32 %v11958_v29, %v14683_v40  ;;  %v11967_v17 = vadd.f32 %v4552_v45, %v15442_v24 }
 0x4f2   : > { %v4215_v30 = vadd.f32 %v4214_v53, %v11597_v41 }
 0x4f3   : > { %15443 = vst [vmem:[#allocation21_spill] sm:$0xff] %v11967_v17  ;;  %v4680_v62 = vand.u32 4294901760, %v4679_v49  ;;  %v11973_v20 = vand.u32 4294901760, %v11967_v17 }
 0x4f4   : > { %v7893_v47 = vpop.eup %7892  ;;  %v4376_v63 = vadd.f32 %v4375_v21, %v4215_v30  ;;  %4277 = vmatmul.f32.gmra.mxu0 %v15441_v52  ;;  %4442 = vmatmul.f32.gmra.mxu1 %v15445_v13  ;;  %v11995_v30 = vpop.f32.mrf.mxu3 }
 0x4f5   : > { %15444 = vst [vmem:[#allocation43_spill] sm:$0xff] %v11973_v20  ;;  %v4521_v33 = vmul.f32 %v7893_v47, %v7893_v47  ;;  %4681 = vmatmul.f32.gmra.mxu2 %v4680_v62  ;;  %5030 = vmatmul.f32.gmra.mxu3 %v11973_v20  ;;  %v11980_v43 = vsub.f32 %v11967_v17, %v11973_v20 }
 0x4f6   : > { %7894 = vtanh.f32 %v4376_v63 }
 0x4f7   : > { %v4553_v41 = vmul.f32 %v7893_v47, %v4521_v33  ;;  %v14682_v34 = vand.u32 4294901760, %v11980_v43  ;;  %v15449_v47 = vld [vmem:[#allocation29_spill] sm:$0xff] }
 0x4f9   : > { %v4218_v38 = vpop.f32.mrf.mxu0  ;;  %v4383_v25 = vpop.f32.mrf.mxu1  ;;  %v4687_v21 = vsub.f32 %v11980_v43, %v14682_v34  ;;  %v11987_v52 = vadd.f32 %v4553_v41, %v15446_v58 }
 0x4fa   : > { %v4219_v45 = vadd.f32 %v4218_v38, %v11623_v39 }
 0x4fb   : > { %15447 = vst [vmem:[#allocation42_spill] sm:$0xff] %v11987_v52  ;;  %v4688_v53 = vand.u32 4294901760, %v4687_v21  ;;  %v11993_v49 = vand.u32 4294901760, %v11987_v52 }
 0x4fc   : > { %v7895_v24 = vpop.eup %7894  ;;  %v4380_v62 = vadd.f32 %v4379_v44, %v4219_v45  ;;  %4281 = vmatmul.f32.gmra.mxu0 %v15445_v13  ;;  %4446 = vmatmul.f32.gmra.mxu1 %v15449_v47  ;;  %v15450_v13 = vld [vmem:[#allocation11_spill] sm:$0xff] }
 0x4fd   : > { %15448 = vst [vmem:[#allocation56_spill] sm:$0xff] %v11993_v49  ;;  %v4522_v63 = vmul.f32 %v7895_v24, %v7895_v24  ;;  %4689 = vmatmul.f32.gmra.mxu2 %v4688_v53  ;;  %5034 = vmatmul.f32.gmra.mxu3 %v11993_v49  ;;  %v12002_v33 = vsub.f32 %v11987_v52, %v11993_v49  ;;  %v15498_v49 = vld [vmem:[#allocation7_spill] sm:$0xff] }
 0x4fe   : > { %7896 = vtanh.f32 %v4380_v62  ;;  %v12015_v62 = vpop.f32.mrf.mxu2 }
 0x4ff   : > { %v4554_v39 = vmul.f32 %v7895_v24, %v4522_v63  ;;  %v14685_v41 = vand.u32 4294901760, %v12002_v33  ;;  %v15453_v63 = vld [vmem:[#allocation58_spill] sm:$0xff] }
 0x501   : > { %v4222_v38 = vpop.f32.mrf.mxu0  ;;  %v4387_v21 = vpop.f32.mrf.mxu1  ;;  %v4695_v44 = vsub.f32 %v12002_v33, %v14685_v41  ;;  %v12009_v58 = vadd.f32 %v4554_v39, %v15450_v13 }
 0x502   : > { %v4223_v45 = vadd.f32 %v4222_v38, %v11640_v32  ;;  %v12024_v32 = vpop.f32.mrf.mxu3 }
 0x503   : > { %15451 = vst [vmem:[#allocation69_spill] sm:$0xff] %v12009_v58  ;;  %v4696_v53 = vand.u32 4294901760, %v4695_v44  ;;  %v12013_v34 = vand.u32 4294901760, %v12009_v58 }
 0x504   : > { %v7897_v40 = vpop.eup %7896  ;;  %v4384_v24 = vadd.f32 %v4383_v25, %v4223_v45  ;;  %4285 = vmatmul.f32.gmra.mxu0 %v15449_v47  ;;  %4450 = vmatmul.f32.gmra.mxu1 %v15453_v63  ;;  %v3287_v25 = vadd.f32 %v11415_v60, %v11307_v22  ;;  %v15458_v22 = vld [vmem:[#allocation60_spill] sm:$0xff] }
 0x505   : > { %15452 = vst [vmem:[#allocation45_spill] sm:$0xff] %v12013_v34  ;;  %v4523_v9 = vmul.f32 %v7897_v40, %v7897_v40  ;;  %4697 = vmatmul.f32.gmra.mxu2 %v4696_v53  ;;  %5038 = vmatmul.f32.gmra.mxu3 %v12013_v34  ;;  %v12022_v39 = vsub.f32 %v12009_v58, %v12013_v34  ;;  %v15454_v53 = vld [vmem:[#allocation20_spill] sm:$0xff] }
 0x506   : > { %7898 = vtanh.f32 %v4384_v24 }
 0x507   : > { %v4555_v38 = vmul.f32 %v7897_v40, %v4523_v9  ;;  %v14691_v44 = vand.u32 4294901760, %v12022_v39  ;;  %v15457_v40 = vld [vmem:[#allocation59_spill] sm:$0xff] }
 0x508   : > { %v3604_v17 = vadd.f32 %v15457_v40, %v3287_v25 }
 0x509   : > { %v4226_v47 = vpop.f32.mrf.mxu0  ;;  %v4391_v13 = vpop.f32.mrf.mxu1  ;;  %v4703_v45 = vsub.f32 %v12022_v39, %v14691_v44  ;;  %v12033_v41 = vadd.f32 %v4555_v38, %v15454_v53 }
 0x50a   : > { %v4227_v58 = vadd.f32 %v4226_v47, %v11663_v4  ;;  %v3790_v4 = vadd.f32 %v11700_v7, %v3604_v17  ;;  %v12048_v47 = vpop.f32.mrf.mxu2  ;;  %v15459_v7 = vld [vmem:[#allocation26_spill] sm:$0xff] }
 0x50b   : > { %15455 = vst [vmem:[#allocation49_spill] sm:$0xff] %v12033_v41  ;;  %v4704_v52 = vand.u32 4294901760, %v4703_v45  ;;  %v12037_v24 = vand.u32 4294901760, %v12033_v41 }
 0x50c   : > { %v7899_v9 = vpop.eup %7898  ;;  %v4388_v46 = vadd.f32 %v4387_v21, %v4227_v58  ;;  %4289 = vmatmul.f32.gmra.mxu0 %v15453_v63  ;;  %4454 = vmatmul.f32.gmra.mxu1 %v15458_v22  ;;  %v3295_v58 = vadd.f32 %v11415_v60, %v11335_v3  ;;  %v3992_v63 = vadd.f32 %v11677_v19, %v3790_v4  ;;  %v15462_v19 = vld [vmem:[#allocation61_spill] sm:$0xff] }
 0x50d   : > { %15456 = vst [vmem:[#allocation72_spill] sm:$0xff] %v12037_v24  ;;  %v4524_v28 = vmul.f32 %v7899_v9, %v7899_v9  ;;  %4705 = vmatmul.f32.gmra.mxu2 %v4704_v52  ;;  %5042 = vmatmul.f32.gmra.mxu3 %v12037_v24  ;;  %v12045_v38 = vsub.f32 %v12033_v41, %v12037_v24  ;;  %v12054_v52 = vpop.f32.mrf.mxu3  ;;  %v15467_v41 = vld [vmem:[#allocation2_spill] sm:$0xff] }
 0x50e   : > { %7900 = vtanh.f32 %v4388_v46  ;;  %v3608_v3 = vadd.f32 %v11309_v31, %v3295_v58  ;;  %v12078_v31 = vld [vmem:[%s14344_s2 + $0x2] ss:$0 sm:$0xff] }
 0x50f   : > { %v4556_v45 = vmul.f32 %v7899_v9, %v4524_v28  ;;  %v14692_v21 = vand.u32 4294901760, %v12045_v38 }
 0x511   : > { %v4230_v25 = vpop.f32.mrf.mxu0  ;;  %v4395_v53 = vpop.f32.mrf.mxu1  ;;  %v4711_v40 = vsub.f32 %v12045_v38, %v14692_v21  ;;  %v12060_v17 = vadd.f32 %v4556_v45, %v15459_v7 }
 0x512   : > { %v4231_v46 = vadd.f32 %v4230_v25, %v3992_v63  ;;  %v3795_v63 = vadd.f32 %v11716_v8, %v3608_v3  ;;  %v12083_v58 = vpop.f32.mrf.mxu2 }
 0x513   : > { %15460 = vst [vmem:[#allocation24_spill] sm:$0xff] %v12060_v17  ;;  %v4712_v28 = vand.u32 4294901760, %v4711_v40  ;;  %v12063_v9 = vand.u32 4294901760, %v12060_v17 }
 0x514   : > { %v7901_v44 = vpop.eup %7900  ;;  %v4392_v60 = vadd.f32 %v4391_v13, %v4231_v46  ;;  %4293 = vmatmul.f32.gmra.mxu0 %v15458_v22  ;;  %4458 = vmatmul.f32.gmra.mxu1 %v15462_v19  ;;  %v3303_v13 = vadd.f32 %v12078_v31, %v11375_v59  ;;  %v3998_v22 = vadd.f32 %v11705_v37, %v3795_v63  ;;  %v15466_v37 = vld [vmem:[#allocation63_spill] sm:$0xff] }
 0x515   : > { %15461 = vst [vmem:[#allocation75_spill] sm:$0xff] %v12063_v9  ;;  %v4525_v4 = vmul.f32 %v7901_v44, %v7901_v44  ;;  %4713 = vmatmul.f32.gmra.mxu2 %v4712_v28  ;;  %5046 = vmatmul.f32.gmra.mxu3 %v12063_v9  ;;  %v12071_v45 = vsub.f32 %v12060_v17, %v12063_v9  ;;  %v12091_v3 = vpop.f32.mrf.mxu3 }
 0x516   : > { %7902 = vtanh.f32 %v4392_v60  ;;  %v3612_v63 = vadd.f32 %v15466_v37, %v3303_v13 }
 0x517   : > { %v4557_v25 = vmul.f32 %v7901_v44, %v4525_v4  ;;  %v14697_v40 = vand.u32 4294901760, %v12071_v45  ;;  %v15463_v44 = vld [vmem:[#allocation6_spill] sm:$0xff] }
 0x519   : > { %v4234_v7 = vpop.f32.mrf.mxu0  ;;  %v4399_v46 = vpop.f32.mrf.mxu1  ;;  %v4719_v8 = vsub.f32 %v12071_v45, %v14697_v40  ;;  %v12089_v28 = vadd.f32 %v4557_v25, %v15463_v44 }
 0x51a   : > { %v4235_v60 = vadd.f32 %v4234_v7, %v3998_v22  ;;  %v3800_v22 = vadd.f32 %v11746_v2, %v3612_v63  ;;  %v12115_v40 = vpop.f32.mrf.mxu2 }
 0x51b   : > { %15464 = vst [vmem:[#allocation41_spill] sm:$0xff] %v12089_v28  ;;  %v4720_v4 = vand.u32 4294901760, %v4719_v8  ;;  %v12094_v21 = vand.u32 4294901760, %v12089_v28 }
 0x51c   : > { %v7903_v59 = vpop.eup %7902  ;;  %v4396_v17 = vadd.f32 %v4395_v53, %v4235_v60  ;;  %4297 = vmatmul.f32.gmra.mxu0 %v15462_v19  ;;  %4462 = vmatmul.f32.gmra.mxu1 %v15467_v41  ;;  %v3311_v53 = vadd.f32 %v12078_v31, %v11417_v6  ;;  %v4004_v19 = vadd.f32 %v11725_v23, %v3800_v22  ;;  %v15471_v6 = vld [vmem:[#allocation52_spill] sm:$0xff] }
 0x51d   : > { %15465 = vst [vmem:[#allocation15_spill] sm:$0xff] %v12094_v21  ;;  %v4526_v9 = vmul.f32 %v7903_v59, %v7903_v59  ;;  %4721 = vmatmul.f32.gmra.mxu2 %v4720_v4  ;;  %5050 = vmatmul.f32.gmra.mxu3 %v12094_v21  ;;  %v12102_v25 = vsub.f32 %v12089_v28, %v12094_v21  ;;  %v15468_v4 = vld [vmem:[#allocation31_spill] sm:$0xff]  ;;  %v12121_v23 = vpop.f32.mrf.mxu3  ;;  %v15472_v28 = vld [vmem:[#allocation68_spill] sm:$0xff] }
 0x51e   : > { %7904 = vtanh.f32 %v4396_v17  ;;  %v3616_v63 = vadd.f32 %v15471_v6, %v3311_v53 }
 0x51f   : > { %v4558_v7 = vmul.f32 %v7903_v59, %v4526_v9  ;;  %v14699_v8 = vand.u32 4294901760, %v12102_v25 }
 0x521   : > { %v4238_v13 = vpop.f32.mrf.mxu0  ;;  %v4403_v44 = vpop.f32.mrf.mxu1  ;;  %v4727_v60 = vsub.f32 %v12102_v25, %v14699_v8  ;;  %v12113_v37 = vadd.f32 %v4558_v7, %v15468_v4 }
 0x522   : > { %v4239_v2 = vadd.f32 %v4238_v13, %v4004_v19  ;;  %v3805_v19 = vadd.f32 %v11771_v35, %v3616_v63 }
 0x523   : > { %15469 = vst [vmem:[#allocation9_spill] sm:$0xff] %v12113_v37  ;;  %v4728_v17 = vand.u32 4294901760, %v4727_v60  ;;  %v12118_v9 = vand.u32 4294901760, %v12113_v37 }
 0x524   : > { %v7905_v59 = vpop.eup %7904  ;;  %v4400_v22 = vadd.f32 %v4399_v46, %v4239_v2  ;;  %4301 = vmatmul.f32.gmra.mxu0 %v15467_v41  ;;  %4466 = vmatmul.f32.gmra.mxu1 %v15472_v28  ;;  %v3319_v46 = vadd.f32 %v12078_v31, %v11454_v61  ;;  %v4010_v41 = vadd.f32 %v11751_v18, %v3805_v19  ;;  %v12145_v61 = vpop.f32.mrf.mxu2 }
 0x525   : > { %15470 = vst [vmem:[#allocation33_spill] sm:$0xff] %v12118_v9  ;;  %v4527_v8 = vmul.f32 %v7905_v59, %v7905_v59  ;;  %4729 = vmatmul.f32.gmra.mxu2 %v4728_v17  ;;  %5054 = vmatmul.f32.gmra.mxu3 %v12118_v9  ;;  %v12128_v7 = vsub.f32 %v12113_v37, %v12118_v9  ;;  %v15473_v17 = vld [vmem:[#allocation13_spill] sm:$0xff] }
 0x526   : > { %7906 = vtanh.f32 %v4400_v22  ;;  %v3620_v63 = vadd.f32 %v11419_v5, %v3319_v46  ;;  %v15476_v22 = vld [vmem:[#allocation70_spill] sm:$0xff] }
 0x527   : > { %v4559_v13 = vmul.f32 %v7905_v59, %v4527_v8  ;;  %v14701_v53 = vand.u32 4294901760, %v12128_v7 }
 0x529   : > { %v4242_v60 = vpop.f32.mrf.mxu0  ;;  %v4407_v4 = vpop.f32.mrf.mxu1  ;;  %v4735_v2 = vsub.f32 %v12128_v7, %v14701_v53  ;;  %v12139_v6 = vadd.f32 %v4559_v13, %v15473_v17  ;;  %v15478_v53 = vld [vmem:[#allocation67_spill] sm:$0xff] }
 0x52a   : > { %v4243_v37 = vadd.f32 %v4242_v60, %v4010_v41  ;;  %v3810_v41 = vadd.f32 %v11794_v56, %v3620_v63  ;;  %v12155_v60 = vpop.f32.mrf.mxu3 }
 0x52b   : > { %15474 = vst [vmem:[#allocation8_spill] sm:$0xff] %v12139_v6  ;;  %v4736_v35 = vand.u32 4294901760, %v4735_v2  ;;  %v12142_v8 = vand.u32 4294901760, %v12139_v6 }
 0x52c   : > { %v7907_v59 = vpop.eup %7906  ;;  %v4404_v18 = vadd.f32 %v4403_v44, %v4243_v37  ;;  %4305 = vmatmul.f32.gmra.mxu0 %v15472_v28  ;;  %4470 = vmatmul.f32.gmra.mxu1 %v15476_v22  ;;  %v3327_v28 = vadd.f32 %v12078_v31, %v11484_v27  ;;  %v15477_v37 = vld [vmem:[#allocation92_spill] sm:$0xff] }
 0x52d   : > { %15475 = vst [vmem:[#allocation29_spill] sm:$0xff] %v12142_v8  ;;  %v4528_v19 = vmul.f32 %v7907_v59, %v7907_v59  ;;  %4737 = vmatmul.f32.gmra.mxu2 %v4736_v35  ;;  %5058 = vmatmul.f32.gmra.mxu3 %v12142_v8  ;;  %v12152_v13 = vsub.f32 %v12139_v6, %v12142_v8 }
 0x52e   : > { %7908 = vtanh.f32 %v4404_v18  ;;  %v4016_v46 = vadd.f32 %v15477_v37, %v3810_v41  ;;  %v15482_v41 = vld [vmem:[#allocation53_spill] sm:$0xff] }
 0x52f   : > { %v4560_v5 = vmul.f32 %v7907_v59, %v4528_v19  ;;  %v14705_v44 = vand.u32 4294901760, %v12152_v13  ;;  %v15481_v19 = vld [vmem:[#allocation71_spill] sm:$0xff] }
 0x530   : > { %v3624_v8 = vadd.f32 %v15481_v19, %v3327_v28  ;;  %v15484_v28 = vld [vmem:[#allocation76_spill] sm:$0xff] }
 0x531   : > { %v4246_v2 = vpop.f32.mrf.mxu0  ;;  %v4411_v17 = vpop.f32.mrf.mxu1  ;;  %v4743_v35 = vsub.f32 %v12152_v13, %v14705_v44  ;;  %v12165_v6 = vadd.f32 %v4560_v5, %v15478_v53  ;;  %v15483_v5 = vld [vmem:[#allocation96_spill] sm:$0xff] }
 0x532   : > { %v4247_v56 = vadd.f32 %v4246_v2, %v4016_v46  ;;  %v3815_v46 = vadd.f32 %v15483_v5, %v3624_v8  ;;  %v12179_v2 = vpop.f32.mrf.mxu2  ;;  %v15486_v8 = vld [vmem:[#allocation65_spill] sm:$0xff] }
 0x533   : > { %15479 = vst [vmem:[#allocation11_spill] sm:$0xff] %v12165_v6  ;;  %v4744_v63 = vand.u32 4294901760, %v4743_v35  ;;  %v12168_v59 = vand.u32 4294901760, %v12165_v6 }
 0x534   : > { %v7909_v18 = vpop.eup %7908  ;;  %v4408_v27 = vadd.f32 %v4407_v4, %v4247_v56  ;;  %4309 = vmatmul.f32.gmra.mxu0 %v15476_v22  ;;  %4474 = vmatmul.f32.gmra.mxu1 %v15482_v41  ;;  %v3335_v22 = vadd.f32 %v12078_v31, %v15484_v28  ;;  %v15485_v56 = vld [vmem:[#allocation94_spill] sm:$0xff]  ;;  %v15489_v28 = vld [vmem:[#allocation3_spill] sm:$0xff] }
 0x535   : > { %15480 = vst [vmem:[#allocation58_spill] sm:$0xff] %v12168_v59  ;;  %v4529_v37 = vmul.f32 %v7909_v18, %v7909_v18  ;;  %4745 = vmatmul.f32.gmra.mxu2 %v4744_v63  ;;  %5062 = vmatmul.f32.gmra.mxu3 %v12168_v59  ;;  %v12176_v53 = vsub.f32 %v12165_v6, %v12168_v59  ;;  %v12185_v63 = vpop.f32.mrf.mxu3 }
 0x536   : > { %7910 = vtanh.f32 %v4408_v27  ;;  %v4022_v19 = vadd.f32 %v15485_v56, %v3815_v46  ;;  %v3628_v21 = vadd.f32 %v15489_v28, %v3335_v22  ;;  %v15490_v56 = vld [vmem:[#allocation74_spill] sm:$0xff]  ;;  %v15492_v22 = vld [vmem:[#allocation35_spill] sm:$0xff] }
 0x537   : > { %v4561_v35 = vmul.f32 %v7909_v18, %v4529_v37  ;;  %v14715_v4 = vand.u32 4294901760, %v12176_v53 }
 0x539   : > { %v4250_v44 = vpop.f32.mrf.mxu0  ;;  %v4415_v9 = vpop.f32.mrf.mxu1  ;;  %v4751_v6 = vsub.f32 %v12176_v53, %v14715_v4  ;;  %v12191_v5 = vadd.f32 %v4561_v35, %v15486_v8 }
 0x53a   : > { %v4251_v27 = vadd.f32 %v4250_v44, %v4022_v19  ;;  %v12209_v28 = vpop.f32.mrf.mxu2 }
 0x53b   : > { %15487 = vst [vmem:[#allocation20_spill] sm:$0xff] %v12191_v5  ;;  %v4752_v18 = vand.u32 4294901760, %v4751_v6  ;;  %v12194_v37 = vand.u32 4294901760, %v12191_v5  ;;  %v15491_v6 = vld [vmem:[#allocation99_spill] sm:$0xff] }
 0x53c   : > { %v7911_v59 = vpop.eup %7910  ;;  %v4412_v46 = vadd.f32 %v4411_v17, %v4251_v27  ;;  %4313 = vmatmul.f32.gmra.mxu0 %v15482_v41  ;;  %4478 = vmatmul.f32.gmra.mxu1 %v15490_v56  ;;  %v3820_v44 = vadd.f32 %v15491_v6, %v3628_v21  ;;  %v3343_v17 = vadd.f32 %v12078_v31, %v15492_v22  ;;  %v15493_v41 = vld [vmem:[#allocation18_spill] sm:$0xff] }
 0x53d   : > { %15488 = vst [vmem:[#allocation59_spill] sm:$0xff] %v12194_v37  ;;  %v4530_v24 = vmul.f32 %v7911_v59, %v7911_v59  ;;  %4753 = vmatmul.f32.gmra.mxu2 %v4752_v18  ;;  %5066 = vmatmul.f32.gmra.mxu3 %v12194_v37  ;;  %v12202_v35 = vsub.f32 %v12191_v5, %v12194_v37  ;;  %v15494_v37 = vld [vmem:[#allocation46_spill] sm:$0xff]  ;;  %v12217_v21 = vpop.f32.mrf.mxu3 }
 0x53e   : > { %7912 = vtanh.f32 %v4412_v46  ;;  %v4028_v27 = vadd.f32 %v15493_v41, %v3820_v44  ;;  %v15497_v44 = vld [vmem:[#allocation5_spill] sm:$0xff] }
 0x53f   : > { %v4562_v19 = vmul.f32 %v7911_v59, %v4530_v24  ;;  %v14725_v8 = vand.u32 4294901760, %v12202_v35  ;;  %v3632_v22 = vadd.f32 %v15497_v44, %v3343_v17  ;;  %v15499_v17 = vld [vmem:[#allocation44_spill] sm:$0xff] }
 0x540   : > { %v15500_v44 = vld [vmem:[#allocation4_spill] sm:$0xff] }
 0x541   : > { %v4254_v18 = vpop.f32.mrf.mxu0  ;;  %v4419_v4 = vpop.f32.mrf.mxu1  ;;  %v4759_v5 = vsub.f32 %v12202_v35, %v14725_v8  ;;  %v12215_v34 = vadd.f32 %v4562_v19, %v15494_v37 }
 0x542   : > { %v4255_v24 = vadd.f32 %v4254_v18, %v4028_v27 }
 0x543   : > { %15495 = vst [vmem:[#allocation60_spill] sm:$0xff] %v12215_v34  ;;  %v4760_v59 = vand.u32 4294901760, %v4759_v5  ;;  %v12220_v46 = vand.u32 4294901760, %v12215_v34  ;;  %v3825_v5 = vadd.f32 %v11867_v12, %v3632_v22 }
 0x544   : > { %v7913_v6 = vpop.eup %7912  ;;  %v4416_v41 = vadd.f32 %v4415_v9, %v4255_v24  ;;  %4317 = vmatmul.f32.gmra.mxu0 %v15490_v56  ;;  %4482 = vmatmul.f32.gmra.mxu1 %v15498_v49  ;;  %v3351_v9 = vadd.f32 %v12078_v31, %v15499_v17 }
 0x545   : > { %15496 = vst [vmem:[#allocation26_spill] sm:$0xff] %v12220_v46  ;;  %v4531_v20 = vmul.f32 %v7913_v6, %v7913_v6  ;;  %4761 = vmatmul.f32.gmra.mxu2 %v4760_v59  ;;  %5070 = vmatmul.f32.gmra.mxu3 %v12220_v46  ;;  %v12228_v37 = vsub.f32 %v12215_v34, %v12220_v46  ;;  %v12241_v34 = vpop.f32.mrf.mxu2  ;;  %v15534_v46 = vand.u32 4294901760, %v12045_v38 }
 0x546   : > { %7914 = vtanh.f32 %v4416_v41  ;;  %v4034_v56 = vadd.f32 %v11849_v42, %v3825_v5  ;;  %v15503_v41 = vld [vmem:[#allocation39_spill] sm:$0xff]  ;;  %v12247_v42 = vpop.f32.mrf.mxu3 }
 0x547   : > { %v4563_v19 = vmul.f32 %v7913_v6, %v4531_v20  ;;  %v14727_v27 = vand.u32 4294901760, %v12228_v37  ;;  %v3636_v17 = vadd.f32 %v15503_v41, %v3351_v9  ;;  %v15506_v41 = vld [vmem:[#allocation30_spill] sm:$0xff] }
 0x549   : > { %v4258_v18 = vpop.f32.mrf.mxu0  ;;  %v4423_v24 = vpop.f32.mrf.mxu1  ;;  %v4767_v59 = vsub.f32 %v12228_v37, %v14727_v27  ;;  %v12239_v8 = vadd.f32 %v4563_v19, %v15500_v44  ;;  %v15504_v27 = vand.u32 4294901760, %v11935_v1 }
 0x54a   : > { %v4259_v12 = vadd.f32 %v4258_v18, %v4034_v56  ;;  %v3830_v18 = vadd.f32 %v11890_v36, %v3636_v17 }
 0x54b   : > { %15501 = vst [vmem:[#allocation61_spill] sm:$0xff] %v12239_v8  ;;  %v4768_v20 = vand.u32 4294901760, %v4767_v59  ;;  %v12244_v6 = vand.u32 4294901760, %v12239_v8 }
 0x54c   : > { %v7915_v22 = vpop.eup %7914  ;;  %v4420_v5 = vadd.f32 %v4419_v4, %v4259_v12  ;;  %4321 = vmatmul.f32.gmra.mxu0 %v15498_v49  ;;  %5394 = vmatmul.f32.vlgmr.msrb.gmra.mxu1 %v15504_v27  ;;  %v15505_v4 = vld [vmem:[#allocation79_spill] sm:$0xff]  ;;  %v4040_v44 = vadd.f32 %v11874_v57, %v3830_v18  ;;  %v15510_v18 = vand.u32 4294901760, %v11958_v29 }
 0x54d   : > { %15502 = vst [vmem:[#allocation6_spill] sm:$0xff] %v12244_v6  ;;  %v4532_v19 = vmul.f32 %v7915_v22, %v7915_v22  ;;  %4769 = vmatmul.f32.gmra.mxu2 %v4768_v20  ;;  %5074 = vmatmul.f32.gmra.mxu3 %v12244_v6  ;;  %v12255_v56 = vsub.f32 %v12239_v8, %v12244_v6 }
 0x54e   : > { %7916 = vtanh.f32 %v4420_v5  ;;  %v3359_v49 = vadd.f32 %v12078_v31, %v15505_v4  ;;  %v15509_v5 = vld [vmem:[#allocation78_spill] sm:$0xff]  ;;  %v12272_v4 = vpop.f32.mrf.mxu2 }
 0x54f   : > { %v4564_v9 = vmul.f32 %v7915_v22, %v4532_v19  ;;  %v14731_v59 = vand.u32 4294901760, %v12255_v56 }
 0x550   : > { %v3640_v19 = vadd.f32 %v15509_v5, %v3359_v49 }
 0x551   : > { %v4262_v27 = vpop.f32.mrf.mxu0  ;;  %v4427_v12 = vpop.f32.mrf.mxu1  ;;  %v4775_v20 = vsub.f32 %v12255_v56, %v14731_v59  ;;  %v12266_v8 = vadd.f32 %v4564_v9, %v15506_v41 }
 0x552   : > { %v4263_v6 = vadd.f32 %v4262_v27, %v4040_v44  ;;  %v3835_v44 = vadd.f32 %v11913_v48, %v3640_v19  ;;  %v12283_v27 = vpop.f32.mrf.mxu3 }
 0x553   : > { %15507 = vst [vmem:[#allocation63_spill] sm:$0xff] %v12266_v8  ;;  %v4776_v36 = vand.u32 4294901760, %v4775_v20  ;;  %v12269_v22 = vand.u32 4294901760, %v12266_v8 }
 0x554   : > { %v7917_v17 = vpop.eup %7916  ;;  %v4424_v57 = vadd.f32 %v4423_v24, %v4263_v6  ;;  %5200 = vmatmul.f32.vlgmr.msrb.gmra.mxu0 %v11935_v1  ;;  %5400 = vmatmul.f32.gmra.mxu1 %v15510_v18  ;;  %v15511_v1 = vld [vmem:[#allocation81_spill] sm:$0xff]  ;;  %v4046_v20 = vadd.f32 %v11896_v51, %v3835_v44  ;;  %v15512_v18 = vld [vmem:[#allocation48_spill] sm:$0xff]  ;;  %v15516_v51 = vand.u32 4294901760, %v11980_v43 }
 0x555   : > { %15508 = vst [vmem:[#allocation2_spill] sm:$0xff] %v12269_v22  ;;  %v4533_v59 = vmul.f32 %v7917_v17, %v7917_v17  ;;  %4777 = vmatmul.f32.gmra.mxu2 %v4776_v36  ;;  %5078 = vmatmul.f32.gmra.mxu3 %v12269_v22  ;;  %v12280_v9 = vsub.f32 %v12266_v8, %v12269_v22 }
 0x556   : > { %7918 = vtanh.f32 %v4424_v57  ;;  %v3367_v6 = vadd.f32 %v12078_v31, %v15511_v1  ;;  %v15515_v57 = vld [vmem:[#allocation80_spill] sm:$0xff] }
 0x557   : > { %v4565_v49 = vmul.f32 %v7917_v17, %v4533_v59  ;;  %v14735_v24 = vand.u32 4294901760, %v12280_v9 }
 0x558   : > { %v3644_v22 = vadd.f32 %v15515_v57, %v3367_v6 }
 0x559   : > { %v4266_v41 = vpop.f32.mrf.mxu0  ;;  %v4431_v36 = vpop.f32.mrf.mxu1  ;;  %v4783_v5 = vsub.f32 %v12280_v9, %v14735_v24  ;;  %v12293_v8 = vadd.f32 %v4565_v49, %v15512_v18 }
 0x55a   : > { %v4267_v48 = vadd.f32 %v4266_v41, %v4046_v20  ;;  %v3840_v20 = vadd.f32 %v11937_v50, %v3644_v22  ;;  %v12308_v41 = vpop.f32.mrf.mxu2  ;;  %v15518_v50 = vld [vmem:[#allocation36_spill] sm:$0xff] }
 0x55b   : > { %15513 = vst [vmem:[#allocation31_spill] sm:$0xff] %v12293_v8  ;;  %v4784_v19 = vand.u32 4294901760, %v4783_v5  ;;  %v12296_v59 = vand.u32 4294901760, %v12293_v8 }
 0x55c   : > { %v7919_v17 = vpop.eup %7918  ;;  %v4428_v1 = vadd.f32 %v4427_v12, %v4267_v48  ;;  %5205 = vmatmul.f32.gmra.mxu0 %v11958_v29  ;;  %5406 = vmatmul.f32.gmra.mxu1 %v15516_v51  ;;  %v15517_v29 = vld [vmem:[#allocation83_spill] sm:$0xff]  ;;  %v4052_v18 = vadd.f32 %v11918_v54, %v3840_v20  ;;  %v12314_v48 = vpop.f32.mrf.mxu3  ;;  %v15522_v20 = vand.u32 4294901760, %v12002_v33 }
 0x55d   : > { %15514 = vst [vmem:[#allocation52_spill] sm:$0xff] %v12296_v59  ;;  %v4534_v44 = vmul.f32 %v7919_v17, %v7919_v17  ;;  %4785 = vmatmul.f32.gmra.mxu2 %v4784_v19  ;;  %5082 = vmatmul.f32.gmra.mxu3 %v12296_v59  ;;  %v12305_v49 = vsub.f32 %v12293_v8, %v12296_v59 }
 0x55e   : > { %7920 = vtanh.f32 %v4428_v1  ;;  %v3375_v5 = vadd.f32 %v12078_v31, %v15517_v29  ;;  %v15521_v29 = vld [vmem:[#allocation82_spill] sm:$0xff] }
 0x55f   : > { %v4566_v6 = vmul.f32 %v7919_v17, %v4534_v44  ;;  %v14739_v12 = vand.u32 4294901760, %v12305_v49 }
 0x560   : > { %v3648_v8 = vadd.f32 %v15521_v29, %v3375_v5 }
 0x561   : > { %v4270_v19 = vpop.f32.mrf.mxu0  ;;  %v4435_v57 = vpop.f32.mrf.mxu1  ;;  %v4791_v51 = vsub.f32 %v12305_v49, %v14739_v12  ;;  %v12320_v22 = vadd.f32 %v4566_v6, %v15518_v50  ;;  %v15524_v12 = vld [vmem:[#allocation34_spill] sm:$0xff] }
 0x562   : > { %v4271_v1 = vadd.f32 %v4270_v19, %v4052_v18  ;;  %v3845_v18 = vadd.f32 %v11961_v55, %v3648_v8  ;;  %v12339_v50 = vpop.f32.mrf.mxu2 }
 0x563   : > { %15519 = vst [vmem:[#allocation68_spill] sm:$0xff] %v12320_v22  ;;  %v4792_v17 = vand.u32 4294901760, %v4791_v51  ;;  %v12323_v44 = vand.u32 4294901760, %v12320_v22 }
 0x564   : > { %v7921_v24 = vpop.eup %7920  ;;  %v4432_v54 = vadd.f32 %v4431_v36, %v4271_v1  ;;  %5210 = vmatmul.f32.gmra.mxu0 %v11980_v43  ;;  %5412 = vmatmul.f32.gmra.mxu1 %v15522_v20  ;;  %v15523_v36 = vld [vmem:[#allocation10_spill] sm:$0xff]  ;;  %v4058_v51 = vadd.f32 %v11941_v11, %v3845_v18 }
 0x565   : > { %15520 = vst [vmem:[#allocation13_spill] sm:$0xff] %v12323_v44  ;;  %v4535_v59 = vmul.f32 %v7921_v24, %v7921_v24  ;;  %4793 = vmatmul.f32.gmra.mxu2 %v4792_v17  ;;  %5086 = vmatmul.f32.gmra.mxu3 %v12323_v44  ;;  %v12332_v6 = vsub.f32 %v12320_v22, %v12323_v44  ;;  %v15528_v22 = vand.u32 4294901760, %v12022_v39 }
 0x566   : > { %7922 = vtanh.f32 %v4432_v54  ;;  %v3383_v43 = vadd.f32 %v12078_v31, %v15523_v36  ;;  %v15527_v36 = vld [vmem:[#allocation84_spill] sm:$0xff] }
 0x567   : > { %v4567_v19 = vmul.f32 %v7921_v24, %v4535_v59  ;;  %v14743_v5 = vand.u32 4294901760, %v12332_v6 }
 0x568   : > { %v5023_v1 = vpop.f32.mrf.mxu3  ;;  %v3652_v11 = vadd.f32 %v15527_v36, %v3383_v43 }
 0x569   : > { %v4274_v17 = vpop.f32.mrf.mxu0  ;;  %v4439_v29 = vpop.f32.mrf.mxu1  ;;  %v4799_v20 = vsub.f32 %v12332_v6, %v14743_v5  ;;  %v12345_v55 = vadd.f32 %v4567_v19, %v15524_v12  ;;  %v12358_v12 = vld [vmem:[%s14344_s2 + $0x3] ss:$0 sm:$0xff] }
 0x56a   : > { %v4275_v8 = vadd.f32 %v4274_v17, %v4058_v51 }
 0x56b   : > { %15525 = vst [vmem:[#allocation70_spill] sm:$0xff] %v12345_v55  ;;  %v4800_v24 = vand.u32 4294901760, %v4799_v20  ;;  %v12348_v59 = vand.u32 4294901760, %v12345_v55 }
 0x56c   : > { %v7923_v54 = vpop.eup %7922  ;;  %v4436_v18 = vadd.f32 %v4435_v57, %v4275_v8  ;;  %5215 = vmatmul.f32.gmra.mxu0 %v12002_v33  ;;  %5418 = vmatmul.f32.gmra.mxu1 %v15528_v22  ;;  %v3850_v57 = vadd.f32 %v11989_v0, %v3652_v11  ;;  %v15529_v22 = vld [vmem:[#allocation22_spill] sm:$0xff]  ;;  %v15530_v0 = vld [vmem:[#allocation73_spill] sm:$0xff] }
 0x56d   : > { %15526 = vst [vmem:[#allocation92_spill] sm:$0xff] %v12348_v59  ;;  %v4536_v44 = vmul.f32 %v7923_v54, %v7923_v54  ;;  %4801 = vmatmul.f32.gmra.mxu2 %v4800_v24  ;;  %5090 = vmatmul.f32.gmra.mxu3 %v12348_v59  ;;  %v12362_v19 = vsub.f32 %v12345_v55, %v12348_v59 }
 0x56e   : > { %7924 = vtanh.f32 %v4436_v18  ;;  %v3391_v51 = vadd.f32 %v12078_v31, %v15529_v22  ;;  %v4064_v17 = vadd.f32 %v11969_v14, %v3850_v57  ;;  %v15533_v57 = vld [vmem:[#allocation85_spill] sm:$0xff] }
 0x56f   : > { %v4568_v33 = vmul.f32 %v7923_v54, %v4536_v44  ;;  %v14749_v43 = vand.u32 4294901760, %v12362_v19 }
 0x570   : > { %v4674_v20 = vpop.f32.mrf.mxu2  ;;  %v5027_v8 = vpop.f32.mrf.mxu3  ;;  %v3656_v59 = vadd.f32 %v15533_v57, %v3391_v51 }
 0x571   : > { %v4675_v24 = vadd.f32 %v12358_v12, %v4674_v20  ;;  %v4278_v36 = vpop.f32.mrf.mxu0  ;;  %v4443_v5 = vpop.f32.mrf.mxu1  ;;  %v4807_v55 = vsub.f32 %v12362_v19, %v14749_v43  ;;  %v12374_v11 = vadd.f32 %v4568_v33, %v15530_v0 }
 0x572   : > { %v4279_v44 = vadd.f32 %v4278_v36, %v4064_v17 }
 0x573   : > { %15531 = vst [vmem:[#allocation67_spill] sm:$0xff] %v12374_v11  ;;  %v4808_v54 = vand.u32 4294901760, %v4807_v55  ;;  %v12377_v18 = vand.u32 4294901760, %v12374_v11  ;;  %v12379_v22 = vadd.f32 %v5023_v1, %v4675_v24  ;;  %v3855_v1 = vadd.f32 %v12015_v62, %v3656_v59 }
 0x574   : > { %v7925_v14 = vpop.eup %7924  ;;  %v4440_v20 = vadd.f32 %v4439_v29, %v4279_v44  ;;  %5220 = vmatmul.f32.gmra.mxu0 %v12022_v39  ;;  %5424 = vmatmul.f32.gmra.mxu1 %v15534_v46  ;;  %v6081_v39 = vld [vmem:[%s14345_s3 + $0x78] sm:$0xff] }
 0x575   : > { %15532 = vst [vmem:[#allocation71_spill] sm:$0xff] %v12377_v18  ;;  %v4537_v43 = vmul.f32 %v7925_v14, %v7925_v14  ;;  %4809 = vmatmul.f32.gmra.mxu2 %v4808_v54  ;;  %5094 = vmatmul.f32.gmra.mxu3 %v12377_v18  ;;  %v12388_v55 = vsub.f32 %v12374_v11, %v12377_v18  ;;  %v15535_v29 = vld [vmem:[#allocation77_spill] sm:$0xff]  ;;  %v12398_v0 = vand.u32 4294901760, %v6081_v39  ;;  %v15537_v54 = vld [vmem:[#allocation54_spill] sm:$0xff] }
 0x576   : > { %7926 = vtanh.f32 %v4440_v20  ;;  %v3399_v46 = vadd.f32 %v12078_v31, %v15535_v29  ;;  %v4070_v17 = vadd.f32 %v11995_v30, %v3855_v1  ;;  %v15540_v11 = vld [vmem:[#allocation86_spill] sm:$0xff] }
 0x577   : > { %v4569_v33 = vmul.f32 %v7925_v14, %v4537_v43  ;;  %v14751_v51 = vand.u32 4294901760, %v12388_v55  ;;  %15536 = vst [vmem:[#allocation53_spill] sm:$0xff] %v12398_v0  ;;  %6087 = vmatpush.msra.mxu0 %v12398_v0  ;;  %v12409_v30 = vsub.f32 %v6081_v39, %v12398_v0  ;;  %6810 = vmatpush.msrb.mxu3 %v12398_v0  ;;  %v15547_v0 = vand.u32 4294901760, %v12102_v25 }
 0x578   : > { %v4682_v24 = vpop.f32.mrf.mxu2  ;;  %v5031_v36 = vpop.f32.mrf.mxu3 }
 0x579   : > { %v4683_v44 = vadd.f32 %v12358_v12, %v4682_v24  ;;  %v4282_v62 = vpop.f32.mrf.mxu0  ;;  %v4447_v59 = vpop.f32.mrf.mxu1  ;;  %v4815_v43 = vsub.f32 %v12388_v55, %v14751_v51  ;;  %v12405_v14 = vadd.f32 %v4569_v33, %v15537_v54  ;;  %v3660_v51 = vadd.f32 %v15540_v11, %v3399_v46  ;;  %6602 = vmatpush.msrb.mxu2 %v12409_v30  ;;  %v15542_v46 = vld [vmem:[#allocation64_spill] sm:$0xff] }
 0x57a   : > { %v4283_v57 = vadd.f32 %v4282_v62, %v4070_v17  ;;  %v15541_v33 = vand.u32 4294901760, %v12071_v45  ;;  %v14754_v39 = vand.u32 4294901760, %v12409_v30 }
 0x57b   : > { %15538 = vst [vmem:[#allocation96_spill] sm:$0xff] %v12405_v14  ;;  %v4816_v20 = vand.u32 4294901760, %v4815_v43  ;;  %v12413_v1 = vand.u32 4294901760, %v12405_v14  ;;  %v12415_v29 = vadd.f32 %v5027_v8, %v4683_v44  ;;  %v3860_v8 = vadd.f32 %v12048_v47, %v3660_v51 }
 0x57c   : > { %v7927_v24 = vpop.eup %7926  ;;  %v4444_v18 = vadd.f32 %v4443_v5, %v4283_v57  ;;  %5225 = vmatmul.f32.gmra.mxu0 %v12045_v38  ;;  %5430 = vmatmul.f32.gmra.mxu1 %v15541_v33  ;;  %v6378_v38 = vsub.f32 %v12409_v30, %v14754_v39  ;;  %v3407_v44 = vadd.f32 %v12078_v31, %v15542_v46  ;;  %v15543_v39 = vld [vmem:[#allocation47_spill] sm:$0xff] }
 0x57d   : > { %15539 = vst [vmem:[#allocation76_spill] sm:$0xff] %v12413_v1  ;;  %v4538_v17 = vmul.f32 %v7927_v24, %v7927_v24  ;;  %4817 = vmatmul.f32.gmra.mxu2 %v4816_v20  ;;  %5098 = vmatmul.f32.gmra.mxu3 %v12413_v1  ;;  %v12425_v62 = vsub.f32 %v12405_v14, %v12413_v1 }
 0x57e   : > { %7928 = vtanh.f32 %v4444_v18  ;;  %v4076_v43 = vadd.f32 %v12024_v32, %v3860_v8  ;;  %v6379_v20 = vand.u32 4294901760, %v6378_v38  ;;  %v15546_v38 = vld [vmem:[#allocation87_spill] sm:$0xff] }
 0x57f   : > { %v4570_v5 = vmul.f32 %v7927_v24, %v4538_v17  ;;  %v14759_v11 = vand.u32 4294901760, %v12425_v62 }
 0x580   : > { %v4690_v54 = vpop.f32.mrf.mxu2  ;;  %v5035_v57 = vpop.f32.mrf.mxu3  ;;  %6380 = vmatpush.msra.mxu1 %v6379_v20 }
 0x581   : > { %v4691_v47 = vadd.f32 %v12358_v12, %v4690_v54  ;;  %v4286_v18 = vpop.f32.mrf.mxu0  ;;  %v4451_v51 = vpop.f32.mrf.mxu1  ;;  %v4823_v33 = vsub.f32 %v12425_v62, %v14759_v11  ;;  %v12441_v24 = vadd.f32 %v4570_v5, %v15543_v39  ;;  %v3664_v54 = vadd.f32 %v15546_v38, %v3407_v44 }
 0x582   : > { %v4287_v17 = vadd.f32 %v4286_v18, %v4076_v43 }
 0x583   : > { %15544 = vst [vmem:[#allocation94_spill] sm:$0xff] %v12441_v24  ;;  %v4824_v14 = vand.u32 4294901760, %v4823_v33  ;;  %v12444_v46 = vand.u32 4294901760, %v12441_v24  ;;  %v12446_v32 = vadd.f32 %v5031_v36, %v4691_v47  ;;  %v3865_v36 = vadd.f32 %v12083_v58, %v3664_v54  ;;  %v15549_v33 = vld [vmem:[#allocation16_spill] sm:$0xff] }
 0x584   : > { %v7929_v8 = vpop.eup %7928  ;;  %v4448_v1 = vadd.f32 %v4447_v59, %v4287_v17  ;;  %5230 = vmatmul.f32.gmra.mxu0 %v12071_v45  ;;  %5436 = vmatmul.f32.gmra.mxu1 %v15547_v0  ;;  %v6080_v45 = vld [vmem:[%s14345_s3 + $0x70] sm:$0xff]  ;;  %v15548_v59 = vld [vmem:[#allocation62_spill] sm:$0xff] }
 0x585   : > { %15545 = vst [vmem:[#allocation65_spill] sm:$0xff] %v12444_v46  ;;  %v4539_v11 = vmul.f32 %v7929_v8, %v7929_v8  ;;  %4825 = vmatmul.f32.gmra.mxu2 %v4824_v14  ;;  %5102 = vmatmul.f32.gmra.mxu3 %v12444_v46  ;;  %v12455_v39 = vsub.f32 %v12441_v24, %v12444_v46  ;;  %v12465_v47 = vand.u32 4294901760, %v6080_v45  ;;  %v15559_v46 = vand.u32 4294901760, %v12152_v13 }
 0x586   : > { %7930 = vtanh.f32 %v4448_v1  ;;  %v3415_v0 = vadd.f32 %v12078_v31, %v15548_v59  ;;  %v4082_v14 = vadd.f32 %v12054_v52, %v3865_v36 }
 0x587   : > { %v4571_v5 = vmul.f32 %v7929_v8, %v4539_v11  ;;  %v14760_v44 = vand.u32 4294901760, %v12455_v39  ;;  %6089 = vmatpush.msra.mxu0 %v12465_v47  ;;  %v12476_v52 = vsub.f32 %v6080_v45, %v12465_v47  ;;  %6812 = vmatpush.msrb.mxu3 %v12465_v47 }
 0x588   : > { %v4698_v43 = vpop.f32.mrf.mxu2  ;;  %v5039_v20 = vpop.f32.mrf.mxu3 }
 0x589   : > { %v4699_v18 = vadd.f32 %v12358_v12, %v4698_v43  ;;  %v4290_v58 = vpop.f32.mrf.mxu0  ;;  %v4455_v1 = vpop.f32.mrf.mxu1  ;;  %v4831_v11 = vsub.f32 %v12455_v39, %v14760_v44  ;;  %v12472_v17 = vadd.f32 %v4571_v5, %v15549_v33  ;;  %v15552_v43 = vld [vmem:[#allocation88_spill] sm:$0xff]  ;;  %v15553_v5 = vand.u32 4294901760, %v12128_v7  ;;  %6605 = vmatpush.msrb.mxu2 %v12476_v52 }
 0x58a   : > { %v4291_v8 = vadd.f32 %v4290_v58, %v4082_v14  ;;  %v3668_v44 = vadd.f32 %v15552_v43, %v3415_v0  ;;  %v14762_v45 = vand.u32 4294901760, %v12476_v52 }
 0x58b   : > { %15550 = vst [vmem:[#allocation3_spill] sm:$0xff] %v12472_v17  ;;  %v4832_v38 = vand.u32 4294901760, %v4831_v11  ;;  %v12480_v54 = vand.u32 4294901760, %v12472_v17  ;;  %v12482_v36 = vadd.f32 %v5035_v57, %v4699_v18  ;;  %v15554_v18 = vld [vmem:[#allocation40_spill] sm:$0xff] }
 0x58c   : > { %v7931_v59 = vpop.eup %7930  ;;  %v4452_v24 = vadd.f32 %v4451_v51, %v4291_v8  ;;  %5235 = vmatmul.f32.gmra.mxu0 %v12102_v25  ;;  %5442 = vmatmul.f32.gmra.mxu1 %v15553_v5  ;;  %v3870_v57 = vadd.f32 %v12115_v40, %v3668_v44  ;;  %v6384_v25 = vsub.f32 %v12476_v52, %v14762_v45  ;;  %v15555_v45 = vld [vmem:[#allocation25_spill] sm:$0xff] }
 0x58d   : > { %15551 = vst [vmem:[#allocation74_spill] sm:$0xff] %v12480_v54  ;;  %v4540_v14 = vmul.f32 %v7931_v59, %v7931_v59  ;;  %4833 = vmatmul.f32.gmra.mxu2 %v4832_v38  ;;  %5106 = vmatmul.f32.gmra.mxu3 %v12480_v54  ;;  %v12492_v58 = vsub.f32 %v12472_v17, %v12480_v54 }
 0x58e   : > { %7932 = vtanh.f32 %v4452_v24  ;;  %v3423_v11 = vadd.f32 %v12078_v31, %v15554_v18  ;;  %v4088_v33 = vadd.f32 %v12091_v3, %v3870_v57  ;;  %v6385_v43 = vand.u32 4294901760, %v6384_v25  ;;  %v15558_v25 = vld [vmem:[#allocation89_spill] sm:$0xff] }
 0x58f   : > { %v4572_v51 = vmul.f32 %v7931_v59, %v4540_v14  ;;  %v14768_v0 = vand.u32 4294901760, %v12492_v58 }
 0x590   : > { %v4706_v8 = vpop.f32.mrf.mxu2  ;;  %v5043_v38 = vpop.f32.mrf.mxu3  ;;  %6386 = vmatpush.msra.mxu1 %v6385_v43 }
 0x591   : > { %v4707_v40 = vadd.f32 %v12358_v12, %v4706_v8  ;;  %v4294_v24 = vpop.f32.mrf.mxu0  ;;  %v4459_v44 = vpop.f32.mrf.mxu1  ;;  %v4839_v5 = vsub.f32 %v12492_v58, %v14768_v0  ;;  %v12508_v59 = vadd.f32 %v4572_v51, %v15555_v45  ;;  %v3672_v8 = vadd.f32 %v15558_v25, %v3423_v11 }
 0x592   : > { %v4295_v14 = vadd.f32 %v4294_v24, %v4088_v33 }
 0x593   : > { %15556 = vst [vmem:[#allocation99_spill] sm:$0xff] %v12508_v59  ;;  %v4840_v17 = vand.u32 4294901760, %v4839_v5  ;;  %v12511_v18 = vand.u32 4294901760, %v12508_v59  ;;  %v12513_v3 = vadd.f32 %v5039_v20, %v4707_v40  ;;  %v3875_v20 = vadd.f32 %v12145_v61, %v3672_v8  ;;  %v15561_v5 = vld [vmem:[#allocation17_spill] sm:$0xff] }
 0x594   : > { %v7933_v57 = vpop.eup %7932  ;;  %v4456_v54 = vadd.f32 %v4455_v1, %v4295_v14  ;;  %5240 = vmatmul.f32.gmra.mxu0 %v12128_v7  ;;  %5448 = vmatmul.f32.gmra.mxu1 %v15559_v46  ;;  %v6079_v7 = vld [vmem:[%s14345_s3 + $0x68] sm:$0xff]  ;;  %v15560_v1 = vld [vmem:[#allocation32_spill] sm:$0xff] }
 0x595   : > { %15557 = vst [vmem:[#allocation35_spill] sm:$0xff] %v12511_v18  ;;  %v4541_v0 = vmul.f32 %v7933_v57, %v7933_v57  ;;  %4841 = vmatmul.f32.gmra.mxu2 %v4840_v17  ;;  %5110 = vmatmul.f32.gmra.mxu3 %v12511_v18  ;;  %v12522_v45 = vsub.f32 %v12508_v59, %v12511_v18  ;;  %v12532_v40 = vand.u32 4294901760, %v6079_v7  ;;  %v15570_v18 = vand.u32 4294901760, %v12202_v35 }
 0x596   : > { %7934 = vtanh.f32 %v4456_v54  ;;  %v3431_v46 = vadd.f32 %v12078_v31, %v15560_v1  ;;  %v4094_v17 = vadd.f32 %v12121_v23, %v3875_v20 }
 0x597   : > { %v4573_v51 = vmul.f32 %v7933_v57, %v4541_v0  ;;  %v14769_v11 = vand.u32 4294901760, %v12522_v45  ;;  %6091 = vmatpush.msra.mxu0 %v12532_v40  ;;  %v12543_v23 = vsub.f32 %v6079_v7, %v12532_v40  ;;  %6814 = vmatpush.msrb.mxu3 %v12532_v40 }
 0x598   : > { %v4714_v33 = vpop.f32.mrf.mxu2  ;;  %v5047_v43 = vpop.f32.mrf.mxu3 }
 0x599   : > { %v4715_v24 = vadd.f32 %v12358_v12, %v4714_v33  ;;  %v4298_v61 = vpop.f32.mrf.mxu0  ;;  %v4463_v54 = vpop.f32.mrf.mxu1  ;;  %v4847_v0 = vsub.f32 %v12522_v45, %v14769_v11  ;;  %v12539_v14 = vadd.f32 %v4573_v51, %v15561_v5  ;;  %v15564_v33 = vld [vmem:[#allocation90_spill] sm:$0xff]  ;;  %v15565_v51 = vand.u32 4294901760, %v12176_v53  ;;  %6608 = vmatpush.msrb.mxu2 %v12543_v23 }
 0x59a   : > { %v4299_v57 = vadd.f32 %v4298_v61, %v4094_v17  ;;  %v3676_v11 = vadd.f32 %v15564_v33, %v3431_v46  ;;  %v14771_v7 = vand.u32 4294901760, %v12543_v23 }
 0x59b   : > { %15562 = vst [vmem:[#allocation18_spill] sm:$0xff] %v12539_v14  ;;  %v4848_v25 = vand.u32 4294901760, %v4847_v0  ;;  %v12547_v8 = vand.u32 4294901760, %v12539_v14  ;;  %v12549_v20 = vadd.f32 %v5043_v38, %v4715_v24  ;;  %v15566_v24 = vld [vmem:[#allocation12_spill] sm:$0xff] }
 0x59c   : > { %v7935_v1 = vpop.eup %7934  ;;  %v4460_v59 = vadd.f32 %v4459_v44, %v4299_v57  ;;  %5245 = vmatmul.f32.gmra.mxu0 %v12152_v13  ;;  %5454 = vmatmul.f32.gmra.mxu1 %v15565_v51  ;;  %v3880_v38 = vadd.f32 %v12179_v2, %v3676_v11  ;;  %v6390_v13 = vsub.f32 %v12543_v23, %v14771_v7  ;;  %v15567_v7 = vld [vmem:[#allocation37_spill] sm:$0xff] }
 0x59d   : > { %15563 = vst [vmem:[#allocation46_spill] sm:$0xff] %v12547_v8  ;;  %v4542_v17 = vmul.f32 %v7935_v1, %v7935_v1  ;;  %4849 = vmatmul.f32.gmra.mxu2 %v4848_v25  ;;  %5114 = vmatmul.f32.gmra.mxu3 %v12547_v8  ;;  %v12559_v61 = vsub.f32 %v12539_v14, %v12547_v8 }
 0x59e   : > { %7936 = vtanh.f32 %v4460_v59  ;;  %v3439_v0 = vadd.f32 %v12078_v31, %v15566_v24  ;;  %v4100_v5 = vadd.f32 %v12155_v60, %v3880_v38  ;;  %v6391_v33 = vand.u32 4294901760, %v6390_v13  ;;  %v15569_v13 = vld [vmem:[#allocation91_spill] sm:$0xff] }
 0x59f   : > { %v4574_v44 = vmul.f32 %v7935_v1, %v4542_v17  ;;  %v14777_v46 = vand.u32 4294901760, %v12559_v61 }
 0x5a0   : > { %v4722_v57 = vpop.f32.mrf.mxu2  ;;  %v5051_v25 = vpop.f32.mrf.mxu3  ;;  %6392 = vmatpush.msra.mxu1 %v6391_v33 }
 0x5a1   : > { %v4723_v2 = vadd.f32 %v12358_v12, %v4722_v57  ;;  %v4302_v59 = vpop.f32.mrf.mxu0  ;;  %v4467_v11 = vpop.f32.mrf.mxu1  ;;  %v4855_v51 = vsub.f32 %v12559_v61, %v14777_v46  ;;  %v12575_v1 = vadd.f32 %v4574_v44, %v15567_v7  ;;  %v3680_v57 = vadd.f32 %v15569_v13, %v3439_v0 }
 0x5a2   : > { %v4303_v17 = vadd.f32 %v4302_v59, %v4100_v5 }
 0x5a3   : > { %15568 = vst [vmem:[#allocation5_spill] sm:$0xff] %v12575_v1  ;;  %v4856_v14 = vand.u32 4294901760, %v4855_v51  ;;  %v12578_v24 = vand.u32 4294901760, %v12575_v1  ;;  %v12580_v60 = vadd.f32 %v5047_v43, %v4723_v2  ;;  %v3885_v43 = vadd.f32 %v12209_v28, %v3680_v57  ;;  %v15572_v51 = vld [vmem:[#allocation50_spill] sm:$0xff] }
 0x5a4   : > { %v7937_v38 = vpop.eup %7936  ;;  %v4464_v8 = vadd.f32 %v4463_v54, %v4303_v17  ;;  %5250 = vmatmul.f32.gmra.mxu0 %v12176_v53  ;;  %5460 = vmatmul.f32.gmra.mxu1 %v15570_v18  ;;  %v6078_v53 = vld [vmem:[%s14345_s3 + $0x60] sm:$0xff]  ;;  %v15571_v54 = vld [vmem:[#allocation19_spill] sm:$0xff] }
 0x5a5   : > { %v4543_v46 = vmul.f32 %v7937_v38, %v7937_v38  ;;  %4857 = vmatmul.f32.gmra.mxu2 %v4856_v14  ;;  %5118 = vmatmul.f32.gmra.mxu3 %v12578_v24  ;;  %v12589_v7 = vsub.f32 %v12575_v1, %v12578_v24  ;;  %v3447_v18 = vadd.f32 %v12078_v31, %v15571_v54  ;;  %v12599_v2 = vand.u32 4294901760, %v6078_v53 }
 0x5a6   : > { %7938 = vtanh.f32 %v4464_v8  ;;  %v4106_v14 = vadd.f32 %v12185_v63, %v3885_v43 }
 0x5a7   : > { %v4575_v44 = vmul.f32 %v7937_v38, %v4543_v46  ;;  %v14778_v0 = vand.u32 4294901760, %v12589_v7  ;;  %6093 = vmatpush.msra.mxu0 %v12599_v2  ;;  %v12610_v63 = vsub.f32 %v6078_v53, %v12599_v2  ;;  %6816 = vmatpush.msrb.mxu3 %v12599_v2 }
 0x5a8   : > { %v4730_v5 = vpop.f32.mrf.mxu2  ;;  %v5055_v33 = vpop.f32.mrf.mxu3 }
 0x5a9   : > { %v4731_v59 = vadd.f32 %v12358_v12, %v4730_v5  ;;  %v4306_v28 = vpop.f32.mrf.mxu0  ;;  %v4471_v8 = vpop.f32.mrf.mxu1  ;;  %v4863_v46 = vsub.f32 %v12589_v7, %v14778_v0  ;;  %v12606_v17 = vadd.f32 %v4575_v44, %v15572_v51  ;;  %v15575_v5 = vld [vmem:[#allocation93_spill] sm:$0xff]  ;;  %v15576_v44 = vand.u32 4294901760, %v12228_v37  ;;  %6611 = vmatpush.msrb.mxu2 %v12610_v63 }
 0x5aa   : > { %v4307_v38 = vadd.f32 %v4306_v28, %v4106_v14  ;;  %v3684_v0 = vadd.f32 %v15575_v5, %v3447_v18  ;;  %v14780_v53 = vand.u32 4294901760, %v12610_v63 }
 0x5ab   : > { %15573 = vst [vmem:[#allocation7_spill] sm:$0xff] %v12606_v17  ;;  %v4864_v13 = vand.u32 4294901760, %v4863_v46  ;;  %v12614_v57 = vand.u32 4294901760, %v12606_v17  ;;  %v12616_v43 = vadd.f32 %v5051_v25, %v4731_v59  ;;  %v15577_v59 = vld [vmem:[#allocation97_spill] sm:$0xff] }
 0x5ac   : > { %v7939_v54 = vpop.eup %7938  ;;  %v4468_v1 = vadd.f32 %v4467_v11, %v4307_v38  ;;  %5255 = vmatmul.f32.gmra.mxu0 %v12202_v35  ;;  %5466 = vmatmul.f32.gmra.mxu1 %v15576_v44  ;;  %v3890_v25 = vadd.f32 %v12241_v34, %v3684_v0  ;;  %v6396_v35 = vsub.f32 %v12610_v63, %v14780_v53  ;;  %v15578_v53 = vld [vmem:[#allocation23_spill] sm:$0xff] }
 0x5ad   : > { %15574 = vst [vmem:[#allocation44_spill] sm:$0xff] %v12614_v57  ;;  %v4544_v14 = vmul.f32 %v7939_v54, %v7939_v54  ;;  %4865 = vmatmul.f32.gmra.mxu2 %v4864_v13  ;;  %5122 = vmatmul.f32.gmra.mxu3 %v12614_v57  ;;  %v12626_v28 = vsub.f32 %v12606_v17, %v12614_v57  ;;  %v15581_v57 = vand.u32 4294901760, %v12255_v56 }
 0x5ae   : > { %7940 = vtanh.f32 %v4468_v1  ;;  %v3455_v46 = vadd.f32 %v12078_v31, %v15577_v59  ;;  %v4112_v51 = vadd.f32 %v12217_v21, %v3890_v25  ;;  %v6397_v5 = vand.u32 4294901760, %v6396_v35  ;;  %v15580_v35 = vld [vmem:[#allocation95_spill] sm:$0xff] }
 0x5af   : > { %v4576_v11 = vmul.f32 %v7939_v54, %v4544_v14  ;;  %v14784_v18 = vand.u32 4294901760, %v12626_v28 }
 0x5b0   : > { %v4738_v38 = vpop.f32.mrf.mxu2  ;;  %v5059_v13 = vpop.f32.mrf.mxu3  ;;  %6398 = vmatpush.msra.mxu1 %v6397_v5  ;;  %v3688_v59 = vadd.f32 %v15580_v35, %v3455_v46 }
 0x5b1   : > { %v4739_v34 = vadd.f32 %v12358_v12, %v4738_v38  ;;  %v4310_v1 = vpop.f32.mrf.mxu0  ;;  %v4475_v0 = vpop.f32.mrf.mxu1  ;;  %v4871_v44 = vsub.f32 %v12626_v28, %v14784_v18  ;;  %v12642_v54 = vadd.f32 %v4576_v11, %v15578_v53 }
 0x5b2   : > { %v4311_v14 = vadd.f32 %v4310_v1, %v4112_v51 }
 0x5b3   : > { %15579 = vst [vmem:[#allocation4_spill] sm:$0xff] %v12642_v54  ;;  %v4872_v17 = vand.u32 4294901760, %v4871_v44  ;;  %v12645_v31 = vand.u32 4294901760, %v12642_v54  ;;  %v12647_v21 = vadd.f32 %v5055_v33, %v4739_v34  ;;  %v3895_v33 = vadd.f32 %v12272_v4, %v3688_v59 }
 0x5b4   : > { %v7941_v25 = vpop.eup %7940  ;;  %v4472_v38 = vadd.f32 %v4471_v8, %v4311_v14  ;;  %5260 = vmatmul.f32.gmra.mxu0 %v12228_v37  ;;  %5472 = vmatmul.f32.gmra.mxu1 %v15581_v57  ;;  %v6077_v37 = vld [vmem:[%s14345_s3 + $0x58] sm:$0xff]  ;;  %v8049_v8 = vld [vmem:[%s14344_s2 + $0x2] ss:$0 sm:$0xff] }
 0x5b5   : > { %v4545_v18 = vmul.f32 %v7941_v25, %v7941_v25  ;;  %4873 = vmatmul.f32.gmra.mxu2 %v4872_v17  ;;  %5126 = vmatmul.f32.gmra.mxu3 %v12645_v31  ;;  %v12656_v53 = vsub.f32 %v12642_v54, %v12645_v31  ;;  %v3463_v17 = vadd.f32 %v8049_v8, %v11854_v16  ;;  %v12668_v34 = vand.u32 4294901760, %v6077_v37  ;;  %v15582_v14 = vld [vmem:[#allocation66_spill] sm:$0xff] }
 0x5b6   : > { %7942 = vtanh.f32 %v4472_v38  ;;  %v4118_v57 = vadd.f32 %v12247_v42, %v3895_v33 }
 0x5b7   : > { %v4577_v11 = vmul.f32 %v7941_v25, %v4545_v18  ;;  %v14785_v46 = vand.u32 4294901760, %v12656_v53  ;;  %6095 = vmatpush.msra.mxu0 %v12668_v34  ;;  %v12679_v16 = vsub.f32 %v6077_v37, %v12668_v34  ;;  %6818 = vmatpush.msrb.mxu3 %v12668_v34 }
 0x5b8   : > { %v4746_v51 = vpop.f32.mrf.mxu2  ;;  %v5063_v5 = vpop.f32.mrf.mxu3 }
 0x5b9   : > { %v4747_v4 = vadd.f32 %v12358_v12, %v4746_v51  ;;  %v4314_v18 = vpop.f32.mrf.mxu0  ;;  %v4479_v1 = vpop.f32.mrf.mxu1  ;;  %v4879_v44 = vsub.f32 %v12656_v53, %v14785_v46  ;;  %v12675_v25 = vadd.f32 %v4577_v11, %v15582_v14  ;;  %v15585_v51 = vld [vmem:[#allocation98_spill] sm:$0xff]  ;;  %v15586_v11 = vand.u32 4294901760, %v12280_v9  ;;  %6614 = vmatpush.msrb.mxu2 %v12679_v16 }
 0x5ba   : > { %v4315_v35 = vadd.f32 %v4314_v18, %v4118_v57  ;;  %v3692_v46 = vadd.f32 %v15585_v51, %v3463_v17  ;;  %v14787_v37 = vand.u32 4294901760, %v12679_v16  ;;  %v6076_v57 = vld [vmem:[%s14345_s3 + $0x50] sm:$0xff] }
 0x5bb   : > { %15583 = vst [vmem:[#allocation39_spill] sm:$0xff] %v12675_v25  ;;  %v4880_v42 = vand.u32 4294901760, %v4879_v44  ;;  %v12683_v59 = vand.u32 4294901760, %v12675_v25  ;;  %v12685_v38 = vadd.f32 %v5059_v13, %v4747_v4 }
 0x5bc   : > { %v7943_v33 = vpop.eup %7942  ;;  %v4476_v54 = vadd.f32 %v4475_v0, %v4315_v35  ;;  %5265 = vmatmul.f32.gmra.mxu0 %v12255_v56  ;;  %5478 = vmatmul.f32.gmra.mxu1 %v15586_v11  ;;  %v12700_v0 = vand.u32 4294901760, %v6076_v57  ;;  %v3900_v56 = vadd.f32 %v12308_v41, %v3692_v46  ;;  %v6402_v17 = vsub.f32 %v12679_v16, %v14787_v37  ;;  %v15587_v37 = vld [vmem:[#allocation51_spill] sm:$0xff] }
 0x5bd   : > { %15584 = vst [vmem:[#allocation79_spill] sm:$0xff] %v12683_v59  ;;  %v4546_v18 = vmul.f32 %v7943_v33, %v7943_v33  ;;  %4881 = vmatmul.f32.gmra.mxu2 %v4880_v42  ;;  %5130 = vmatmul.f32.gmra.mxu3 %v12683_v59  ;;  %v12698_v13 = vsub.f32 %v12675_v25, %v12683_v59  ;;  %v15591_v59 = vand.u32 4294901760, %v12305_v49 }
 0x5be   : > { %7944 = vtanh.f32 %v4476_v54  ;;  %6097 = vmatpush.msra.mxu0 %v12700_v0  ;;  %v12710_v14 = vsub.f32 %v6076_v57, %v12700_v0  ;;  %6820 = vmatpush.msrb.mxu3 %v12700_v0  ;;  %v3471_v35 = vadd.f32 %v8049_v8, %v11870_v26  ;;  %v4124_v41 = vadd.f32 %v12283_v27, %v3900_v56 }
 0x5bf   : > { %v4578_v4 = vmul.f32 %v7943_v33, %v4546_v18  ;;  %v14789_v44 = vand.u32 4294901760, %v12698_v13  ;;  %v6403_v42 = vand.u32 4294901760, %v6402_v17 }
 0x5c0   : > { %v4754_v54 = vpop.f32.mrf.mxu2  ;;  %v5067_v46 = vpop.f32.mrf.mxu3  ;;  %v14792_v25 = vand.u32 4294901760, %v12710_v14  ;;  %6617 = vmatpush.msrb.mxu2 %v12710_v14 }
 0x5c1   : > { %v4755_v51 = vadd.f32 %v12358_v12, %v4754_v54  ;;  %v4318_v11 = vpop.f32.mrf.mxu0  ;;  %v4483_v33 = vpop.f32.mrf.mxu1  ;;  %v4887_v18 = vsub.f32 %v12698_v13, %v14789_v44  ;;  %v12720_v57 = vadd.f32 %v4578_v4, %v15587_v37  ;;  %6404 = vmatpush.msra.mxu1 %v6403_v42  ;;  %v15590_v44 = vld [vmem:[#allocation38_spill] sm:$0xff] }
 0x5c2   : > { %v4319_v26 = vadd.f32 %v4318_v11, %v4124_v41  ;;  %v6408_v56 = vsub.f32 %v12710_v14, %v14792_v25  ;;  %v3696_v37 = vadd.f32 %v15590_v44, %v3471_v35 }
 0x5c3   : > { %15588 = vst [vmem:[#allocation30_spill] sm:$0xff] %v12720_v57  ;;  %v4888_v27 = vand.u32 4294901760, %v4887_v18  ;;  %v12725_v8 = vand.u32 4294901760, %v12720_v57  ;;  %v12730_v17 = vadd.f32 %v5063_v5, %v4755_v51 }
 0x5c4   : > { %v7945_v54 = vpop.eup %7944  ;;  %v4480_v4 = vadd.f32 %v4479_v1, %v4319_v26  ;;  %5270 = vmatmul.f32.gmra.mxu0 %v12280_v9  ;;  %5484 = vmatmul.f32.gmra.mxu1 %v15591_v59  ;;  %v6409_v11 = vand.u32 4294901760, %v6408_v56  ;;  %v3905_v5 = vadd.f32 %v12339_v50, %v3696_v37  ;;  %v15592_v56 = vld [vmem:[#allocation27_spill] sm:$0xff] }
 0x5c5   : > { %15589 = vst [vmem:[#allocation78_spill] sm:$0xff] %v12725_v8  ;;  %v4547_v41 = vmul.f32 %v7945_v54, %v7945_v54  ;;  %4889 = vmatmul.f32.gmra.mxu2 %v4888_v27  ;;  %5134 = vmatmul.f32.gmra.mxu3 %v12725_v8  ;;  %v12739_v42 = vsub.f32 %v12720_v57, %v12725_v8 }
 0x5c6   : > { %7946 = vtanh.f32 %v4480_v4  ;;  %6410 = vmatpush.msra.mxu1 %v6409_v11  ;;  %v4130_v9 = vadd.f32 %v12314_v48, %v3905_v5  ;;  %v15595_v11 = vand.u32 4294901760, %v12332_v6  ;;  %v6075_v5 = vld [vmem:[%s14345_s3 + $0x48] sm:$0xff] }
 0x5c7   : > { %v4579_v51 = vmul.f32 %v7945_v54, %v4547_v41  ;;  %v14793_v1 = vand.u32 4294901760, %v12739_v42 }
 0x5c8   : > { %v4762_v44 = vpop.f32.mrf.mxu2  ;;  %v5071_v59 = vpop.f32.mrf.mxu3 }
 0x5c9   : > { %v4763_v35 = vadd.f32 %v12358_v12, %v4762_v44  ;;  %v4322_v18 = vpop.f32.mrf.mxu0  ;;  %v5395_v26 = vpop.f32.mrf.mxu1  ;;  %v4895_v27 = vsub.f32 %v12739_v42, %v14793_v1  ;;  %v12749_v25 = vadd.f32 %v4579_v51, %v15592_v56 }
 0x5ca   : > { %v4323_v50 = vadd.f32 %v4322_v18, %v4130_v9 }
 0x5cb   : > { %15593 = vst [vmem:[#allocation81_spill] sm:$0xff] %v12749_v25  ;;  %v4896_v54 = vand.u32 4294901760, %v4895_v27  ;;  %v12752_v37 = vand.u32 4294901760, %v12749_v25  ;;  %v12754_v4 = vadd.f32 %v5067_v46, %v4763_v35  ;;  %v12767_v46 = vand.u32 4294901760, %v6075_v5 }
 0x5cc   : > { %v7947_v48 = vpop.eup %7946  ;;  %v4484_v41 = vadd.f32 %v4483_v33, %v4323_v50  ;;  %5275 = vmatmul.f32.gmra.mxu0 %v12305_v49  ;;  %5490 = vmatmul.f32.gmra.mxu1 %v15595_v11 }
 0x5cd   : > { %15594 = vst [vmem:[#allocation48_spill] sm:$0xff] %v12752_v37  ;;  %v4548_v51 = vmul.f32 %v7947_v48, %v7947_v48  ;;  %4897 = vmatmul.f32.gmra.mxu2 %v4896_v54  ;;  %5138 = vmatmul.f32.gmra.mxu3 %v12752_v37  ;;  %v12765_v9 = vsub.f32 %v12749_v25, %v12752_v37 }
 0x5ce   : > { %7948 = vtanh.f32 %v4484_v41  ;;  %6099 = vmatpush.msra.mxu0 %v12767_v46  ;;  %v12772_v44 = vsub.f32 %v6075_v5, %v12767_v46  ;;  %6822 = vmatpush.msrb.mxu3 %v12767_v46 }
 0x5cf   : > { %v4580_v33 = vmul.f32 %v7947_v48, %v4548_v51  ;;  %v14795_v49 = vand.u32 4294901760, %v12765_v9  ;;  %v15596_v48 = vld [vmem:[#allocation14_spill] sm:$0xff] }
 0x5d0   : > { %v4770_v35 = vpop.f32.mrf.mxu2  ;;  %v5075_v18 = vpop.f32.mrf.mxu3  ;;  %v14797_v11 = vand.u32 4294901760, %v12772_v44  ;;  %6620 = vmatpush.msrb.mxu2 %v12772_v44 }
 0x5d1   : > { %v4771_v27 = vadd.f32 %v12358_v12, %v4770_v35  ;;  %v5201_v56 = vpop.f32.mrf.mxu0  ;;  %v5401_v50 = vpop.f32.mrf.mxu1  ;;  %v4903_v54 = vsub.f32 %v12765_v9, %v14795_v49  ;;  %v12780_v41 = vadd.f32 %v4580_v33, %v15596_v48  ;;  %v15600_v33 = vand.u32 4294901760, %v12362_v19 }
 0x5d2   : > { %v5202_v5 = vadd.f32 %v5201_v56, %v12379_v22  ;;  %v6414_v35 = vsub.f32 %v12772_v44, %v14797_v11 }
 0x5d3   : > { %15597 = vst [vmem:[#allocation80_spill] sm:$0xff] %v12780_v41  ;;  %v4904_v51 = vand.u32 4294901760, %v4903_v54  ;;  %v12786_v1 = vand.u32 4294901760, %v12780_v41  ;;  %v12791_v25 = vadd.f32 %v5071_v59, %v4771_v27 }
 0x5d4   : > { %v7949_v49 = vpop.eup %7948  ;;  %5280 = vmatmul.f32.gmra.mxu0 %v12332_v6  ;;  %5496 = vmatmul.f32.gmra.mxu1 %v15600_v33  ;;  %v12796_v48 = vadd.f32 %v5395_v26, %v5202_v5  ;;  %v6415_v56 = vand.u32 4294901760, %v6414_v35 }
 0x5d5   : > { %15598 = vst [vmem:[#allocation83_spill] sm:$0xff] %v12786_v1  ;;  %v4549_v57 = vmul.f32 %v7949_v49, %v7949_v49  ;;  %4905 = vmatmul.f32.gmra.mxu2 %v4904_v51  ;;  %5142 = vmatmul.f32.gmra.mxu3 %v12786_v1  ;;  %v12801_v22 = vsub.f32 %v12780_v41, %v12786_v1  ;;  %v15601_v51 = vld [vmem:[#allocation28_spill] sm:$0xff] }
 0x5d6   : > { %15599 = vst [vmem:[#allocation36_spill] sm:$0xff] %v12791_v25  ;;  %6416 = vmatpush.msra.mxu1 %v6415_v56  ;;  %v15605_v56 = vand.u32 4294901760, %v12388_v55 }
 0x5d7   : > { %v4581_v54 = vmul.f32 %v7949_v49, %v4549_v57  ;;  %v14801_v59 = vand.u32 4294901760, %v12801_v22 }
 0x5d8   : > { %v4778_v27 = vpop.f32.mrf.mxu2  ;;  %v5079_v6 = vpop.f32.mrf.mxu3 }
 0x5d9   : > { %v4779_v11 = vadd.f32 %v12358_v12, %v4778_v27  ;;  %v5206_v33 = vpop.f32.mrf.mxu0  ;;  %v5407_v26 = vpop.f32.mrf.mxu1  ;;  %v4911_v5 = vsub.f32 %v12801_v22, %v14801_v59  ;;  %v12809_v37 = vadd.f32 %v4581_v54, %v15601_v51  ;;  %v6074_v27 = vld [vmem:[%s14345_s3 + $0x40] sm:$0xff] }
 0x5da   : > { %v5207_v41 = vadd.f32 %v5206_v33, %v12415_v29 }
 0x5db   : > { %15602 = vst [vmem:[#allocation82_spill] sm:$0xff] %v12809_v37  ;;  %v4912_v35 = vand.u32 4294901760, %v4911_v5  ;;  %v12813_v57 = vand.u32 4294901760, %v12809_v37  ;;  %v12815_v49 = vadd.f32 %v5075_v18, %v4779_v11  ;;  %v12830_v18 = vand.u32 4294901760, %v6074_v27 }
 0x5dc   : > { %5285 = vmatmul.f32.gmra.mxu0 %v12362_v19  ;;  %5502 = vmatmul.f32.gmra.mxu1 %v15605_v56  ;;  %v12823_v59 = vadd.f32 %v5401_v50, %v5207_v41 }
 0x5dd   : > { %15603 = vst [vmem:[#allocation10_spill] sm:$0xff] %v12813_v57  ;;  %4913 = vmatmul.f32.gmra.mxu2 %v4912_v35  ;;  %5146 = vmatmul.f32.gmra.mxu3 %v12813_v57  ;;  %v12828_v29 = vsub.f32 %v12809_v37, %v12813_v57  ;;  %v12835_v11 = vsub.f32 %v6074_v27, %v12830_v18 }
 0x5de   : > { %15604 = vst [vmem:[#allocation34_spill] sm:$0xff] %v12815_v49  ;;  %6101 = vmatpush.msra.mxu0 %v12830_v18  ;;  %6824 = vmatpush.msrb.mxu3 %v12830_v18 }
 0x5df   : > { %v14807_v19 = vand.u32 4294901760, %v12828_v29  ;;  %v14808_v35 = vand.u32 4294901760, %v12835_v11  ;;  %6623 = vmatpush.msrb.mxu2 %v12835_v11 }
 0x5e0   : > { %v4786_v50 = vpop.f32.mrf.mxu2  ;;  %v5083_v41 = vpop.f32.mrf.mxu3 }
 0x5e1   : > { %v4787_v54 = vadd.f32 %v12358_v12, %v4786_v50  ;;  %v5211_v33 = vpop.f32.mrf.mxu0  ;;  %v5413_v5 = vpop.f32.mrf.mxu1  ;;  %v4919_v51 = vsub.f32 %v12828_v29, %v14807_v19  ;;  %v6420_v37 = vsub.f32 %v12835_v11, %v14808_v35  ;;  %v15607_v50 = vand.u32 4294901760, %v12425_v62 }
 0x5e2   : > { %v5212_v56 = vadd.f32 %v5211_v33, %v12446_v32 }
 0x5e3   : > { %v4920_v27 = vand.u32 4294901760, %v4919_v51  ;;  %v12848_v57 = vadd.f32 %v5079_v6, %v4787_v54  ;;  %v6421_v19 = vand.u32 4294901760, %v6420_v37  ;;  %v6073_v37 = vld [vmem:[%s14345_s3 + $0x38] sm:$0xff] }
 0x5e4   : > { %5290 = vmatmul.f32.gmra.mxu0 %v12388_v55  ;;  %5508 = vmatmul.f32.gmra.mxu1 %v15607_v50  ;;  %v12853_v1 = vadd.f32 %v5407_v26, %v5212_v56  ;;  %v15609_v55 = vand.u32 4294901760, %v12455_v39 }
 0x5e5   : > { %15606 = vst [vmem:[#allocation84_spill] sm:$0xff] %v12848_v57  ;;  %4921 = vmatmul.f32.gmra.mxu2 %v4920_v27  ;;  %5810 = vmatmul.f32.vlgmr.msra.gmra.mxu3 %v11927_v15 }
 0x5e6   : > { %6422 = vmatpush.msra.mxu1 %v6421_v19  ;;  %v12870_v19 = vand.u32 4294901760, %v6073_v37 }
 0x5e8   : > { %v4794_v32 = vpop.f32.mrf.mxu2  ;;  %v5087_v33 = vpop.f32.mrf.mxu3  ;;  %6103 = vmatpush.msra.mxu0 %v12870_v19  ;;  %6826 = vmatpush.msrb.mxu3 %v12870_v19 }
 0x5e9   : > { %v4795_v51 = vadd.f32 %v12358_v12, %v4794_v32  ;;  %v5216_v49 = vpop.f32.mrf.mxu0  ;;  %v5419_v54 = vpop.f32.mrf.mxu1  ;;  %v15611_v32 = vand.u32 4294901760, %v12492_v58 }
 0x5ea   : > { %v5217_v6 = vadd.f32 %v5216_v49, %v12482_v36  ;;  %v12874_v36 = vsub.f32 %v6073_v37, %v12870_v19 }
 0x5eb   : > { %v12858_v35 = vadd.f32 %v5083_v41, %v4795_v51 }
 0x5ec   : > { %5295 = vmatmul.f32.gmra.mxu0 %v12425_v62  ;;  %5514 = vmatmul.f32.gmra.mxu1 %v15609_v55  ;;  %v12866_v26 = vadd.f32 %v5413_v5, %v5217_v6  ;;  %v14809_v5 = vand.u32 4294901760, %v12874_v36  ;;  %v15612_v55 = vld [vmem:[#allocation43_spill] sm:$0xff] }
 0x5ed   : > { %15608 = vst [vmem:[#allocation22_spill] sm:$0xff] %v12858_v35  ;;  %5649 = vmatmul.f32.vlgmr.msra.gmra.mxu2 %v11927_v15  ;;  %5814 = vmatmul.f32.gmra.mxu3 %v11951_v10 }
 0x5ee   : > { %6626 = vmatpush.msrb.mxu2 %v12874_v36  ;;  %v6426_v27 = vsub.f32 %v12874_v36, %v14809_v5 }
 0x5f0   : > { %v4802_v62 = vpop.f32.mrf.mxu2  ;;  %v5091_v49 = vpop.f32.mrf.mxu3  ;;  %v6427_v37 = vand.u32 4294901760, %v6426_v27  ;;  %v15615_v27 = vld [vmem:[#allocation56_spill] sm:$0xff] }
 0x5f1   : > { %v4803_v41 = vadd.f32 %v12358_v12, %v4802_v62  ;;  %v5221_v56 = vpop.f32.mrf.mxu0  ;;  %v5425_v6 = vpop.f32.mrf.mxu1 }
 0x5f2   : > { %v5222_v15 = vadd.f32 %v5221_v56, %v12513_v3  ;;  %6428 = vmatpush.msra.mxu1 %v6427_v37 }
 0x5f3   : > { %v12884_v50 = vadd.f32 %v5087_v33, %v4803_v41 }
 0x5f4   : > { %5300 = vmatmul.f32.gmra.mxu0 %v12455_v39  ;;  %5520 = vmatmul.f32.gmra.mxu1 %v15611_v32  ;;  %v12889_v51 = vadd.f32 %v5419_v54, %v5222_v15  ;;  %v15614_v54 = vand.u32 4294901760, %v12522_v45 }
 0x5f5   : > { %15610 = vst [vmem:[#allocation73_spill] sm:$0xff] %v12884_v50  ;;  %5653 = vmatmul.f32.gmra.mxu2 %v11951_v10  ;;  %5818 = vmatmul.f32.gmra.mxu3 %v15612_v55  ;;  %v6072_v10 = vld [vmem:[%s14345_s3 + $0x30] sm:$0xff] }
 0x5f6   : > { %v12907_v32 = vand.u32 4294901760, %v6072_v10 }
 0x5f8   : > { %v4810_v3 = vpop.f32.mrf.mxu2  ;;  %v5095_v62 = vpop.f32.mrf.mxu3  ;;  %6105 = vmatpush.msra.mxu0 %v12907_v32  ;;  %6828 = vmatpush.msrb.mxu3 %v12907_v32 }
 0x5f9   : > { %v4811_v56 = vadd.f32 %v12358_v12, %v4810_v3  ;;  %v5226_v33 = vpop.f32.mrf.mxu0 }
 0x5fa   : > { %v5227_v41 = vadd.f32 %v5226_v33, %v12549_v20  ;;  %v5431_v20 = vpop.f32.mrf.mxu1 }
 0x5fb   : > { %v12895_v39 = vadd.f32 %v5091_v49, %v4811_v56 }
 0x5fc   : > { %5305 = vmatmul.f32.gmra.mxu0 %v12492_v58  ;;  %5526 = vmatmul.f32.gmra.mxu1 %v15614_v54  ;;  %v12903_v15 = vadd.f32 %v5425_v6, %v5227_v41  ;;  %v12911_v58 = vsub.f32 %v6072_v10, %v12907_v32  ;;  %v15617_v54 = vand.u32 4294901760, %v12559_v61 }
 0x5fd   : > { %15613 = vst [vmem:[#allocation85_spill] sm:$0xff] %v12895_v39  ;;  %5657 = vmatmul.f32.gmra.mxu2 %v15612_v55  ;;  %5822 = vmatmul.f32.gmra.mxu3 %v15615_v27 }
 0x5fe   : > { %v14810_v56 = vand.u32 4294901760, %v12911_v58  ;;  %6629 = vmatpush.msrb.mxu2 %v12911_v58 }
 0x600   : > { %v4818_v49 = vpop.f32.mrf.mxu2  ;;  %v5099_v37 = vpop.f32.mrf.mxu3  ;;  %v6432_v33 = vsub.f32 %v12911_v58, %v14810_v56 }
 0x601   : > { %v4819_v3 = vadd.f32 %v12358_v12, %v4818_v49  ;;  %v5231_v6 = vpop.f32.mrf.mxu0  ;;  %v15618_v12 = vld [vmem:[#allocation45_spill] sm:$0xff] }
 0x602   : > { %v5232_v55 = vadd.f32 %v5231_v6, %v12580_v60  ;;  %v6433_v49 = vand.u32 4294901760, %v6432_v33  ;;  %v5437_v5 = vpop.f32.mrf.mxu1  ;;  %v6071_v33 = vld [vmem:[%s14345_s3 + $0x28] sm:$0xff] }
 0x603   : > { %v12921_v41 = vadd.f32 %v5095_v62, %v4819_v3  ;;  %v12933_v62 = vld [vmem:[%s14344_s2 + $0x3] ss:$0 sm:$0xff] }
 0x604   : > { %5310 = vmatmul.f32.gmra.mxu0 %v12522_v45  ;;  %5532 = vmatmul.f32.gmra.mxu1 %v15617_v54  ;;  %v12926_v10 = vadd.f32 %v5431_v20, %v5232_v55 }
 0x605   : > { %15616 = vst [vmem:[#allocation77_spill] sm:$0xff] %v12921_v41  ;;  %5661 = vmatmul.f32.gmra.mxu2 %v15615_v27  ;;  %5826 = vmatmul.f32.gmra.mxu3 %v15618_v12  ;;  %v15620_v27 = vand.u32 4294901760, %v12589_v7 }
 0x606   : > { %6434 = vmatpush.msra.mxu1 %v6433_v49  ;;  %v15621_v49 = vld [vmem:[#allocation72_spill] sm:$0xff] }
 0x608   : > { %v4826_v60 = vpop.f32.mrf.mxu2  ;;  %v5103_v6 = vpop.f32.mrf.mxu3 }
 0x609   : > { %v4827_v45 = vadd.f32 %v12933_v62, %v4826_v60  ;;  %v5236_v3 = vpop.f32.mrf.mxu0  ;;  %v12949_v60 = vand.u32 4294901760, %v6071_v33 }
 0x60a   : > { %v5237_v20 = vadd.f32 %v5236_v3, %v12616_v43 }
 0x60b   : > { %v12937_v55 = vadd.f32 %v5099_v37, %v4827_v45  ;;  %6107 = vmatpush.msra.mxu0 %v12949_v60  ;;  %v12953_v43 = vsub.f32 %v6071_v33, %v12949_v60  ;;  %6830 = vmatpush.msrb.mxu3 %v12949_v60  ;;  %v15624_v33 = vld [vmem:[#allocation75_spill] sm:$0xff] }
 0x60c   : > { %5315 = vmatmul.f32.gmra.mxu0 %v12559_v61  ;;  %5538 = vmatmul.f32.gmra.mxu1 %v15620_v27  ;;  %v12945_v54 = vadd.f32 %v5437_v5, %v5237_v20  ;;  %v15623_v27 = vand.u32 4294901760, %v12626_v28 }
 0x60d   : > { %15619 = vst [vmem:[#allocation54_spill] sm:$0xff] %v12937_v55  ;;  %5665 = vmatmul.f32.gmra.mxu2 %v15618_v12  ;;  %5830 = vmatmul.f32.gmra.mxu3 %v15621_v49  ;;  %v14811_v5 = vand.u32 4294901760, %v12953_v43  ;;  %v12959_v12 = vpop.f32.mrf.mxu1 }
 0x60e   : > { %6632 = vmatpush.msrb.mxu2 %v12953_v43 }
 0x60f   : > { %v6438_v3 = vsub.f32 %v12953_v43, %v14811_v5 }
 0x610   : > { %v4834_v61 = vpop.f32.mrf.mxu2  ;;  %v5107_v37 = vpop.f32.mrf.mxu3 }
 0x611   : > { %v4835_v45 = vadd.f32 %v12933_v62, %v4834_v61  ;;  %v6439_v61 = vand.u32 4294901760, %v6438_v3  ;;  %v12972_v39 = vpop.f32.mrf.mxu0 }
 0x613   : > { %v12964_v20 = vadd.f32 %v5103_v6, %v4835_v45  ;;  %6440 = vmatpush.msra.mxu1 %v6439_v61  ;;  %v6070_v6 = vld [vmem:[%s14345_s3 + $0x20] sm:$0xff]  ;;  %v15627_v45 = vld [vmem:[#allocation15_spill] sm:$0xff] }
 0x614   : > { %5320 = vmatmul.f32.gmra.mxu0 %v12589_v7  ;;  %5544 = vmatmul.f32.gmra.mxu1 %v15623_v27  ;;  %v15626_v7 = vand.u32 4294901760, %v12656_v53 }
 0x615   : > { %15622 = vst [vmem:[#allocation86_spill] sm:$0xff] %v12964_v20  ;;  %5669 = vmatmul.f32.gmra.mxu2 %v15621_v49  ;;  %5834 = vmatmul.f32.gmra.mxu3 %v15624_v33  ;;  %v12982_v49 = vpop.f32.mrf.mxu1 }
 0x618   : > { %v4842_v56 = vpop.f32.mrf.mxu2  ;;  %v5111_v55 = vpop.f32.mrf.mxu3 }
 0x619   : > { %v4843_v41 = vadd.f32 %v12933_v62, %v4842_v56  ;;  %v12986_v56 = vand.u32 4294901760, %v6070_v6 }
 0x61b   : > { %v12974_v5 = vadd.f32 %v5107_v37, %v4843_v41  ;;  %6109 = vmatpush.msra.mxu0 %v12986_v56  ;;  %v12990_v41 = vsub.f32 %v6070_v6, %v12986_v56  ;;  %6832 = vmatpush.msrb.mxu3 %v12986_v56  ;;  %v13004_v6 = vpop.f32.mrf.mxu0 }
 0x61c   : > { %5325 = vmatmul.f32.gmra.mxu0 %v12626_v28  ;;  %5550 = vmatmul.f32.gmra.mxu1 %v15626_v7  ;;  %v15629_v7 = vand.u32 4294901760, %v12698_v13 }
 0x61d   : > { %15625 = vst [vmem:[#allocation64_spill] sm:$0xff] %v12974_v5  ;;  %5673 = vmatmul.f32.gmra.mxu2 %v15624_v33  ;;  %5838 = vmatmul.f32.gmra.mxu3 %v15627_v45  ;;  %v14812_v27 = vand.u32 4294901760, %v12990_v41  ;;  %v13008_v20 = vpop.f32.mrf.mxu1 }
 0x61e   : > { %6635 = vmatpush.msrb.mxu2 %v12990_v41 }
 0x61f   : > { %v6444_v33 = vsub.f32 %v12990_v41, %v14812_v27 }
 0x620   : > { %v4850_v28 = vpop.f32.mrf.mxu2  ;;  %v5115_v37 = vpop.f32.mrf.mxu3 }
 0x621   : > { %v4851_v3 = vadd.f32 %v12933_v62, %v4850_v28  ;;  %v15630_v28 = vld [vmem:[#allocation33_spill] sm:$0xff]  ;;  %v6445_v5 = vand.u32 4294901760, %v6444_v33 }
 0x622   : > { %v15633_v33 = vld [vmem:[#allocation29_spill] sm:$0xff] }
 0x623   : > { %v12999_v61 = vadd.f32 %v5111_v55, %v4851_v3  ;;  %6446 = vmatpush.msra.mxu1 %v6445_v5 }
 0x624   : > { %5330 = vmatmul.f32.gmra.mxu0 %v12656_v53  ;;  %5556 = vmatmul.f32.gmra.mxu1 %v15629_v7  ;;  %v15632_v53 = vand.u32 4294901760, %v12739_v42  ;;  %v13023_v7 = vpop.f32.mrf.mxu0 }
 0x625   : > { %15628 = vst [vmem:[#allocation47_spill] sm:$0xff] %v12999_v61  ;;  %5677 = vmatmul.f32.gmra.mxu2 %v15627_v45  ;;  %5842 = vmatmul.f32.gmra.mxu3 %v15630_v28  ;;  %v6069_v45 = vld [vmem:[%s14345_s3 + $0x18] sm:$0xff]  ;;  %v15637_v61 = vld [vmem:[#allocation58_spill] sm:$0xff] }
 0x626   : > { %v13021_v5 = vand.u32 4294901760, %v6069_v45 }
 0x628   : > { %v4858_v50 = vpop.f32.mrf.mxu2  ;;  %v5119_v35 = vpop.f32.mrf.mxu3  ;;  %6111 = vmatpush.msra.mxu0 %v13021_v5  ;;  %6834 = vmatpush.msrb.mxu3 %v13021_v5 }
 0x629   : > { %v4859_v55 = vadd.f32 %v12933_v62, %v4858_v50  ;;  %v13027_v50 = vsub.f32 %v6069_v45, %v13021_v5  ;;  %v15636_v45 = vand.u32 4294901760, %v12765_v9 }
 0x62b   : > { %v13011_v3 = vadd.f32 %v5115_v37, %v4859_v55  ;;  %v13030_v55 = vpop.f32.mrf.mxu1  ;;  %6638 = vmatpush.msrb.mxu2 %v13027_v50 }
 0x62c   : > { %5335 = vmatmul.f32.gmra.mxu0 %v12698_v13  ;;  %5562 = vmatmul.f32.gmra.mxu1 %v15632_v53  ;;  %15634 = vst [vmem:[#allocation62_spill] sm:$0xff] %v13030_v55  ;;  %v13045_v55 = vpop.f32.mrf.mxu0 }
 0x62d   : > { %15631 = vst [vmem:[#allocation87_spill] sm:$0xff] %v13011_v3  ;;  %5681 = vmatmul.f32.gmra.mxu2 %v15630_v28  ;;  %5846 = vmatmul.f32.gmra.mxu3 %v15633_v33  ;;  %v14815_v28 = vand.u32 4294901760, %v13027_v50 }
 0x62e   : > { %15638 = vst [vmem:[#allocation88_spill] sm:$0xff] %v13045_v55 }
 0x62f   : > { %v6450_v27 = vsub.f32 %v13027_v50, %v14815_v28 }
 0x630   : > { %v4866_v13 = vpop.f32.mrf.mxu2  ;;  %v5123_v37 = vpop.f32.mrf.mxu3 }
 0x631   : > { %v4867_v53 = vadd.f32 %v12933_v62, %v4866_v13  ;;  %v6451_v13 = vand.u32 4294901760, %v6450_v27  ;;  %v15641_v27 = vand.u32 4294901760, %v12801_v22 }
 0x633   : > { %v13038_v3 = vadd.f32 %v5119_v35, %v4867_v53  ;;  %6452 = vmatpush.msra.mxu1 %v6451_v13  ;;  %v6068_v35 = vld [vmem:[%s14345_s3 + $0x10] sm:$0xff] }
 0x634   : > { %5340 = vmatmul.f32.gmra.mxu0 %v12739_v42  ;;  %5568 = vmatmul.f32.gmra.mxu1 %v15636_v45  ;;  %v13051_v42 = vpop.f32.mrf.mxu1  ;;  %v13053_v53 = vand.u32 4294901760, %v6068_v35 }
 0x635   : > { %15635 = vst [vmem:[#allocation16_spill] sm:$0xff] %v13038_v3  ;;  %5685 = vmatmul.f32.gmra.mxu2 %v15633_v33  ;;  %5850 = vmatmul.f32.gmra.mxu3 %v15637_v61  ;;  %v15642_v33 = vld [vmem:[#allocation59_spill] sm:$0xff] }
 0x636   : > { %15639 = vst [vmem:[#allocation40_spill] sm:$0xff] %v13051_v42  ;;  %6113 = vmatpush.msra.mxu0 %v13053_v53  ;;  %6836 = vmatpush.msrb.mxu3 %v13053_v53  ;;  %v15647_v42 = vld [vmem:[#allocation26_spill] sm:$0xff] }
 0x638   : > { %v4874_v57 = vpop.f32.mrf.mxu2  ;;  %v5127_v25 = vpop.f32.mrf.mxu3 }
 0x639   : > { %v4875_v8 = vadd.f32 %v12933_v62, %v4874_v57  ;;  %v13063_v57 = vsub.f32 %v6068_v35, %v13053_v53 }
 0x63b   : > { %v13055_v45 = vadd.f32 %v5123_v37, %v4875_v8  ;;  %v14816_v13 = vand.u32 4294901760, %v13063_v57  ;;  %6641 = vmatpush.msrb.mxu2 %v13063_v57 }
 0x63c   : > { %5345 = vmatmul.f32.gmra.mxu0 %v12765_v9  ;;  %5574 = vmatmul.f32.gmra.mxu1 %v15641_v27  ;;  %v13073_v27 = vpop.f32.mrf.mxu0  ;;  %v13080_v3 = vpop.f32.mrf.mxu1 }
 0x63d   : > { %15640 = vst [vmem:[#allocation25_spill] sm:$0xff] %v13055_v45  ;;  %5689 = vmatmul.f32.gmra.mxu2 %v15637_v61  ;;  %5854 = vmatmul.f32.gmra.mxu3 %v15642_v33  ;;  %v6456_v61 = vsub.f32 %v13063_v57, %v14816_v13  ;;  %v15645_v45 = vand.u32 4294901760, %v12828_v29 }
 0x63e   : > { %15643 = vst [vmem:[#allocation89_spill] sm:$0xff] %v13073_v27 }
 0x63f   : > { %v6457_v35 = vand.u32 4294901760, %v6456_v61  ;;  %15646 = vst [vmem:[#allocation17_spill] sm:$0xff] %v13080_v3 }
 0x640   : > { %v4882_v8 = vpop.f32.mrf.mxu2  ;;  %v5131_v9 = vpop.f32.mrf.mxu3 }
 0x641   : > { %v4883_v37 = vadd.f32 %v12933_v62, %v4882_v8  ;;  %6458 = vmatpush.msra.mxu1 %v6457_v35 }
 0x643   : > { %v13075_v28 = vadd.f32 %v5127_v25, %v4883_v37  ;;  %v6067_v25 = vld [vmem:[%s14345_s3 + $0x8] sm:$0xff] }
 0x644   : > { %5350 = vmatmul.f32.gmra.mxu0 %v12801_v22  ;;  %5580 = vmatmul.f32.gmra.mxu1 %v15645_v45  ;;  %v13088_v37 = vand.u32 4294901760, %v6067_v25  ;;  %v13093_v45 = vpop.f32.mrf.mxu0  ;;  %v13102_v35 = vpop.f32.mrf.mxu1 }
 0x645   : > { %15644 = vst [vmem:[#allocation32_spill] sm:$0xff] %v13075_v28  ;;  %5693 = vmatmul.f32.gmra.mxu2 %v15642_v33  ;;  %5858 = vmatmul.f32.gmra.mxu3 %v15647_v42  ;;  %v15650_v33 = vld [vmem:[#allocation6_spill] sm:$0xff] }
 0x646   : > { %15649 = vst [vmem:[#allocation12_spill] sm:$0xff] %v13093_v45  ;;  %v13098_v61 = vsub.f32 %v6067_v25, %v13088_v37  ;;  %6115 = vmatpush.msra.mxu0 %v13088_v37  ;;  %6838 = vmatpush.msrb.mxu3 %v13088_v37  ;;  %v15653_v28 = vld [vmem:[#allocation2_spill] sm:$0xff] }
 0x647   : > { %15651 = vst [vmem:[#allocation37_spill] sm:$0xff] %v13102_v35 }
 0x648   : > { %v4890_v8 = vpop.f32.mrf.mxu2  ;;  %v5135_v55 = vpop.f32.mrf.mxu3  ;;  %6644 = vmatpush.msrb.mxu2 %v13098_v61 }
 0x649   : > { %v4891_v13 = vadd.f32 %v12933_v62, %v4890_v8 }
 0x64b   : > { %v13090_v22 = vadd.f32 %v5131_v9, %v4891_v13  ;;  %v14817_v13 = vand.u32 4294901760, %v13098_v61 }
 0x64c   : > { %5355 = vmatmul.f32.gmra.mxu0 %v12828_v29  ;;  %v13114_v35 = vpop.f32.mrf.mxu0  ;;  %v13119_v27 = vpop.f32.mrf.mxu1 }
 0x64d   : > { %15648 = vst [vmem:[#allocation90_spill] sm:$0xff] %v13090_v22  ;;  %5697 = vmatmul.f32.gmra.mxu2 %v15647_v42  ;;  %5862 = vmatmul.f32.gmra.mxu3 %v15650_v33  ;;  %v6462_v42 = vsub.f32 %v13098_v61, %v14817_v13 }
 0x64e   : > { %15654 = vst [vmem:[#allocation19_spill] sm:$0xff] %v13114_v35 }
 0x64f   : > { %v6463_v25 = vand.u32 4294901760, %v6462_v42  ;;  %15655 = vst [vmem:[#allocation50_spill] sm:$0xff] %v13119_v27  ;;  %v15661_v27 = vand.u32 4294901760, %v12610_v63 }
 0x650   : > { %v4898_v29 = vpop.f32.mrf.mxu2  ;;  %v5139_v9 = vpop.f32.mrf.mxu3 }
 0x651   : > { %v4899_v8 = vadd.f32 %v12933_v62, %v4898_v29  ;;  %6464 = vmatpush.msra.mxu1 %v6463_v25  ;;  %v6066_v29 = vld [vmem:[%s14345_s3] sm:$0xff]  ;;  %v15658_v25 = vld [vmem:[#allocation52_spill] sm:$0xff] }
 0x652   : > { %v13122_v42 = vand.u32 4294901760, %v6066_v29 }
 0x653   : > { %v13110_v22 = vadd.f32 %v5135_v55, %v4899_v8  ;;  %v15657_v8 = vand.u32 4294901760, %v12409_v30 }
 0x654   : > { %6117 = vmatpush.msra.mxu0 %v13122_v42  ;;  %v13126_v55 = vsub.f32 %v6066_v29, %v13122_v42  ;;  %6840 = vmatpush.msrb.mxu3 %v13122_v42  ;;  %v13142_v30 = vpop.f32.mrf.mxu0  ;;  %v13147_v35 = vpop.f32.mrf.mxu1 }
 0x655   : > { %15652 = vst [vmem:[#allocation91_spill] sm:$0xff] %v13110_v22  ;;  %5701 = vmatmul.f32.gmra.mxu2 %v15650_v33  ;;  %5866 = vmatmul.f32.gmra.mxu3 %v15653_v28  ;;  %v15659_v22 = vand.u32 4294901760, %v12476_v52 }
 0x656   : > { %7037 = vmatpush.msrb.mxu0 %v15657_v8  ;;  %6647 = vmatpush.msrb.mxu2 %v13126_v55 }
 0x658   : > { %v4906_v3 = vpop.f32.mrf.mxu2  ;;  %v5143_v45 = vpop.f32.mrf.mxu3  ;;  %7041 = vmatpush.msrb.mxu0 %v15659_v22  ;;  %v15662_v22 = vld [vmem:[#allocation53_spill] sm:$0xff] }
 0x659   : > { %v4907_v13 = vadd.f32 %v12933_v62, %v4906_v3  ;;  %v6467_v3 = vand.u32 4294901760, %v13126_v55 }
 0x65b   : > { %v13128_v33 = vadd.f32 %v5139_v9, %v4907_v13  ;;  %v6468_v29 = vsub.f32 %v13126_v55, %v6467_v3  ;;  %v15663_v55 = vand.u32 4294901760, %v12679_v16  ;;  %v15667_v16 = vand.u32 4294901760, %v12835_v11 }
 0x65d   : > { %15656 = vst [vmem:[#allocation93_spill] sm:$0xff] %v13128_v33  ;;  %5705 = vmatmul.f32.gmra.mxu2 %v15653_v28  ;;  %5870 = vmatmul.f32.gmra.mxu3 %v15658_v25  ;;  %v15660_v33 = vand.u32 4294901760, %v12543_v23  ;;  %v6469_v8 = vand.u32 4294901760, %v6468_v29  ;;  %v15664_v23 = vld [vmem:[#allocation13_spill] sm:$0xff] }
 0x65f   : > { %7045 = vmatpush.msrb.mxu0 %v15660_v33  ;;  %6470 = vmatpush.msra.mxu1 %v6469_v8  ;;  %v15665_v33 = vand.u32 4294901760, %v12710_v14  ;;  %v15668_v14 = vand.u32 4294901760, %v12874_v36 }
 0x660   : > { %v4914_v13 = vpop.f32.mrf.mxu2  ;;  %v5147_v9 = vpop.f32.mrf.mxu3 }
 0x661   : > { %v4915_v28 = vadd.f32 %v12933_v62, %v4914_v13  ;;  %7049 = vmatpush.msrb.mxu0 %v15661_v27  ;;  %7228 = vmatpush.msrb.mxu1 %v15662_v22  ;;  %v15672_v13 = vand.u32 4294901760, %v12990_v41 }
 0x663   : > { %v13149_v52 = vadd.f32 %v5143_v45, %v4915_v28  ;;  %7053 = vmatpush.msrb.mxu0 %v15663_v55  ;;  %7230 = vmatpush.msrb.mxu1 %v12465_v47  ;;  %v15666_v45 = vand.u32 4294901760, %v12772_v44  ;;  %v15669_v44 = vld [vmem:[#allocation92_spill] sm:$0xff] }
 0x665   : > { %5709 = vmatmul.f32.gmra.mxu2 %v15658_v25  ;;  %5874 = vmatmul.f32.gmra.mxu3 %v15664_v23  ;;  %v13166_v25 = vpop.f32.mrf.mxu0 }
 0x666   : > { %7057 = vmatpush.msrb.mxu0 %v15665_v33  ;;  %7232 = vmatpush.msrb.mxu1 %v12532_v40  ;;  %v13173_v40 = vpop.f32.mrf.mxu1 }
 0x668   : > { %v4922_v63 = vpop.f32.mrf.mxu2  ;;  %v5811_v27 = vpop.f32.mrf.mxu3  ;;  %7061 = vmatpush.msrb.mxu0 %v15666_v45  ;;  %7234 = vmatpush.msrb.mxu1 %v12599_v2  ;;  %v15670_v2 = vand.u32 4294901760, %v12911_v58 }
 0x669   : > { %v4923_v29 = vadd.f32 %v12933_v62, %v4922_v63 }
 0x66a   : > { %7065 = vmatpush.msrb.mxu0 %v15667_v16  ;;  %7236 = vmatpush.msrb.mxu1 %v12668_v34  ;;  %v15671_v34 = vand.u32 4294901760, %v12953_v43 }
 0x66b   : > { %v13168_v47 = vadd.f32 %v5147_v9, %v4923_v29 }
 0x66c   : > { %7069 = vmatpush.msrb.mxu0 %v15668_v14  ;;  %7238 = vmatpush.msrb.mxu1 %v12700_v0  ;;  %v15673_v0 = vand.u32 4294901760, %v13027_v50  ;;  %v15680_v14 = vld [vmem:[#allocation57_spill] sm:$0xff] }
 0x66d   : > { %5713 = vmatmul.f32.gmra.mxu2 %v15664_v23  ;;  %5878 = vmatmul.f32.gmra.mxu3 %v15669_v44  ;;  %v13190_v58 = vpop.f32.mrf.mxu0 }
 0x66e   : > { %7073 = vmatpush.msrb.mxu0 %v15670_v2  ;;  %7240 = vmatpush.msrb.mxu1 %v12767_v46  ;;  %v15674_v46 = vld [vmem:[#allocation71_spill] sm:$0xff] }
 0x670   : > { %v5650_v11 = vpop.f32.mrf.mxu2  ;;  %v5815_v62 = vpop.f32.mrf.mxu3  ;;  %7077 = vmatpush.msrb.mxu0 %v15671_v34  ;;  %7242 = vmatpush.msrb.mxu1 %v12830_v18 }
 0x671   : > { %v5651_v36 = vadd.f32 %v5650_v11, %v12796_v48  ;;  %v15675_v48 = vand.u32 4294901760, %v13063_v57  ;;  %v13197_v18 = vpop.f32.mrf.mxu1  ;;  %v15677_v57 = vld [vmem:[#allocation76_spill] sm:$0xff] }
 0x672   : > { %7081 = vmatpush.msrb.mxu0 %v15672_v13  ;;  %7244 = vmatpush.msrb.mxu1 %v12870_v19  ;;  %v15676_v19 = vand.u32 4294901760, %v13098_v61  ;;  %v15678_v61 = vld [vmem:[#allocation55_spill] sm:$0xff] }
 0x673   : > { %v5812_v9 = vadd.f32 %v5811_v27, %v5651_v36 }
 0x674   : > { %7085 = vmatpush.msrb.mxu0 %v15673_v0  ;;  %7246 = vmatpush.msrb.mxu1 %v12907_v32 }
 0x675   : > { %7950 = vtanh.f32 %v5812_v9  ;;  %5717 = vmatmul.f32.gmra.mxu2 %v15669_v44  ;;  %5882 = vmatmul.f32.gmra.mxu3 %v15674_v46 }
 0x676   : > { %7089 = vmatpush.msrb.mxu0 %v15675_v48  ;;  %7248 = vmatpush.msrb.mxu1 %v12949_v60  ;;  %v13208_v60 = vpop.f32.mrf.mxu0  ;;  %v15681_v48 = vld [vmem:[#allocation74_spill] sm:$0xff] }
 0x678   : > { %v5654_v43 = vpop.f32.mrf.mxu2  ;;  %v5819_v41 = vpop.f32.mrf.mxu3  ;;  %7093 = vmatpush.msrb.mxu0 %v15676_v19  ;;  %7250 = vmatpush.msrb.mxu1 %v12986_v56 }
 0x679   : > { %v5655_v50 = vadd.f32 %v5654_v43, %v12823_v59 }
 0x67a   : > { %7097 = vmatpush.msrb.mxu0 %v6467_v3  ;;  %7252 = vmatpush.msrb.mxu1 %v13021_v5  ;;  %v13212_v3 = vpop.f32.mrf.mxu1 }
 0x67b   : > { %v7951_v28 = vpop.eup %7950  ;;  %v5816_v8 = vadd.f32 %v5815_v62, %v5655_v50 }
 0x67c   : > { %v5970_v32 = vmul.f32 %v7951_v28, %v7951_v28  ;;  %7254 = vmatpush.msrb.mxu1 %v13053_v53 }
 0x67d   : > { %7952 = vtanh.f32 %v5816_v8  ;;  %5721 = vmatmul.f32.gmra.mxu2 %v15674_v46  ;;  %5886 = vmatmul.f32.gmra.mxu3 %v15677_v57 }
 0x67e   : > { %v6002_v22 = vmul.f32 %v7951_v28, %v5970_v32  ;;  %7256 = vmatpush.msrb.mxu1 %v13088_v37  ;;  %v15679_v37 = vld [vmem:[#allocation65_spill] sm:$0xff]  ;;  %v13229_v2 = vpop.f32.mrf.mxu0 }
 0x67f   : > { %v15682_v28 = vld [vmem:[#allocation21_spill] sm:$0xff] }
 0x680   : > { %v6034_v59 = vadd.f32 %v6002_v22, %v15678_v61  ;;  %v5658_v55 = vpop.f32.mrf.mxu2  ;;  %v5823_v56 = vpop.f32.mrf.mxu3  ;;  %7258 = vmatpush.msrb.mxu1 %v13122_v42 }
 0x681   : > { %v5659_v5 = vadd.f32 %v5658_v55, %v12853_v1 }
 0x682   : > { %v13215_v23 = vand.u32 4294901760, %v6034_v59  ;;  %v13234_v13 = vpop.f32.mrf.mxu1 }
 0x683   : > { %v7953_v33 = vpop.eup %7952  ;;  %v5820_v63 = vadd.f32 %v5819_v41, %v5659_v5 }
 0x684   : > { %v5971_v27 = vmul.f32 %v7953_v33, %v7953_v33  ;;  %6472 = vmatmul.f32.vlgmr.msra.gmra.mxu1 %v13215_v23  ;;  %v13220_v53 = vsub.f32 %v6034_v59, %v13215_v23 }
 0x685   : > { %7954 = vtanh.f32 %v5820_v63  ;;  %5725 = vmatmul.f32.gmra.mxu2 %v15677_v57  ;;  %5890 = vmatmul.f32.gmra.mxu3 %v15679_v37 }
 0x686   : > { %v6003_v45 = vmul.f32 %v7953_v33, %v5971_v27  ;;  %v14826_v1 = vand.u32 4294901760, %v13220_v53  ;;  %v13250_v59 = vpop.f32.mrf.mxu0 }
 0x688   : > { %v5662_v29 = vpop.f32.mrf.mxu2  ;;  %v5827_v16 = vpop.f32.mrf.mxu3  ;;  %v6121_v42 = vsub.f32 %v13220_v53, %v14826_v1  ;;  %v6035_v44 = vadd.f32 %v6003_v45, %v15680_v14  ;;  %v15711_v1 = vld [vmem:[#allocation12_spill] sm:$0xff] }
 0x689   : > { %v5663_v11 = vadd.f32 %v5662_v29, %v12866_v26 }
 0x68a   : > { %v6122_v62 = vand.u32 4294901760, %v6121_v42  ;;  %v13232_v34 = vand.u32 4294901760, %v6035_v44  ;;  %v13256_v33 = vpop.f32.mrf.mxu1 }
 0x68b   : > { %v7955_v36 = vpop.eup %7954  ;;  %v5824_v9 = vadd.f32 %v5823_v56, %v5663_v11 }
 0x68c   : > { %v5972_v0 = vmul.f32 %v7955_v36, %v7955_v36  ;;  %6123 = vmatmul.f32.vlgmr.msra.gmra.mxu0 %v6122_v62  ;;  %6476 = vmatmul.f32.gmra.mxu1 %v13232_v34  ;;  %v13238_v46 = vsub.f32 %v6035_v44, %v13232_v34 }
 0x68d   : > { %7956 = vtanh.f32 %v5824_v9  ;;  %5729 = vmatmul.f32.gmra.mxu2 %v15679_v37  ;;  %5894 = vmatmul.f32.gmra.mxu3 %v15681_v48 }
 0x68e   : > { %v6004_v26 = vmul.f32 %v7955_v36, %v5972_v0  ;;  %v14824_v43 = vand.u32 4294901760, %v13238_v46 }
 0x690   : > { %v5666_v41 = vpop.f32.mrf.mxu2  ;;  %v5831_v19 = vpop.f32.mrf.mxu3  ;;  %v6129_v50 = vsub.f32 %v13238_v46, %v14824_v43  ;;  %v6036_v8 = vadd.f32 %v6004_v26, %v15682_v28  ;;  %v15686_v26 = vld [vmem:[#allocation46_spill] sm:$0xff] }
 0x691   : > { %v5667_v32 = vadd.f32 %v5666_v41, %v12889_v51  ;;  %v15683_v51 = vld [vmem:[#allocation35_spill] sm:$0xff] }
 0x692   : > { %v6130_v57 = vand.u32 4294901760, %v6129_v50  ;;  %v13248_v22 = vand.u32 4294901760, %v6036_v8  ;;  %v13277_v50 = vpop.f32.mrf.mxu1 }
 0x693   : > { %v7957_v61 = vpop.eup %7956  ;;  %v5828_v55 = vadd.f32 %v5827_v16, %v5667_v32  ;;  %v15684_v16 = vld [vmem:[#allocation42_spill] sm:$0xff]  ;;  %v15687_v32 = vld [vmem:[#allocation69_spill] sm:$0xff] }
 0x694   : > { %v5973_v56 = vmul.f32 %v7957_v61, %v7957_v61  ;;  %6131 = vmatmul.f32.gmra.mxu0 %v6130_v57  ;;  %6480 = vmatmul.f32.gmra.mxu1 %v13248_v22  ;;  %v13254_v5 = vsub.f32 %v6036_v8, %v13248_v22 }
 0x695   : > { %7958 = vtanh.f32 %v5828_v55  ;;  %5733 = vmatmul.f32.gmra.mxu2 %v15681_v48  ;;  %5898 = vmatmul.f32.gmra.mxu3 %v15683_v51  ;;  %v13272_v48 = vpop.f32.mrf.mxu0 }
 0x696   : > { %v6005_v63 = vmul.f32 %v7957_v61, %v5973_v56  ;;  %v14823_v27 = vand.u32 4294901760, %v13254_v5 }
 0x698   : > { %v5670_v37 = vpop.f32.mrf.mxu2  ;;  %v5835_v45 = vpop.f32.mrf.mxu3  ;;  %v6137_v29 = vsub.f32 %v13254_v5, %v14823_v27  ;;  %v6037_v42 = vadd.f32 %v6005_v63, %v15684_v16 }
 0x699   : > { %v5671_v14 = vadd.f32 %v5670_v37, %v12903_v15 }
 0x69a   : > { %v6138_v44 = vand.u32 4294901760, %v6137_v29  ;;  %v13266_v11 = vand.u32 4294901760, %v6037_v42 }
 0x69b   : > { %v7959_v62 = vpop.eup %7958  ;;  %v5832_v36 = vadd.f32 %v5831_v19, %v5671_v14 }
 0x69c   : > { %15685 = vst [vmem:[#allocation97_spill] sm:$0xff] %v13266_v11  ;;  %v5974_v9 = vmul.f32 %v7959_v62, %v7959_v62  ;;  %6139 = vmatmul.f32.gmra.mxu0 %v6138_v44  ;;  %6484 = vmatmul.f32.gmra.mxu1 %v13266_v11  ;;  %v13270_v0 = vsub.f32 %v6037_v42, %v13266_v11  ;;  %v15727_v11 = vld [vmem:[#allocation73_spill] sm:$0xff] }
 0x69d   : > { %7960 = vtanh.f32 %v5832_v36  ;;  %5737 = vmatmul.f32.gmra.mxu2 %v15683_v51  ;;  %5902 = vmatmul.f32.gmra.mxu3 %v15686_v26  ;;  %v13293_v42 = vpop.f32.mrf.mxu0 }
 0x69e   : > { %v6006_v15 = vmul.f32 %v7959_v62, %v5974_v9  ;;  %v14822_v41 = vand.u32 4294901760, %v13270_v0  ;;  %v15689_v62 = vld [vmem:[#allocation49_spill] sm:$0xff]  ;;  %v13299_v9 = vpop.f32.mrf.mxu1 }
 0x6a0   : > { %v5674_v19 = vpop.f32.mrf.mxu2  ;;  %v5839_v28 = vpop.f32.mrf.mxu3  ;;  %v6145_v8 = vsub.f32 %v13270_v0, %v14822_v41  ;;  %v6038_v57 = vadd.f32 %v6006_v15, %v15687_v32  ;;  %v5242_v32 = vadd.f32 %v12972_v39, %v12647_v21 }
 0x6a1   : > { %v5675_v61 = vadd.f32 %v5674_v19, %v12926_v10 }
 0x6a2   : > { %v6146_v55 = vand.u32 4294901760, %v6145_v8  ;;  %v13284_v56 = vand.u32 4294901760, %v6038_v57 }
 0x6a3   : > { %v7961_v51 = vpop.eup %7960  ;;  %v5836_v63 = vadd.f32 %v5835_v45, %v5675_v61 }
 0x6a4   : > { %15688 = vst [vmem:[#allocation23_spill] sm:$0xff] %v13284_v56  ;;  %v5975_v37 = vmul.f32 %v7961_v51, %v7961_v51  ;;  %6147 = vmatmul.f32.gmra.mxu0 %v6146_v55  ;;  %6488 = vmatmul.f32.gmra.mxu1 %v13284_v56  ;;  %v13288_v29 = vsub.f32 %v6038_v57, %v13284_v56 }
 0x6a5   : > { %7962 = vtanh.f32 %v5836_v63  ;;  %5741 = vmatmul.f32.gmra.mxu2 %v15686_v26  ;;  %5906 = vmatmul.f32.gmra.mxu3 %v12578_v24 }
 0x6a6   : > { %v6007_v16 = vmul.f32 %v7961_v51, %v5975_v37  ;;  %v14821_v10 = vand.u32 4294901760, %v13288_v29  ;;  %v15691_v51 = vld [vmem:[#allocation44_spill] sm:$0xff]  ;;  %v5444_v37 = vadd.f32 %v12959_v12, %v5242_v32 }
 0x6a8   : > { %v5678_v14 = vpop.f32.mrf.mxu2  ;;  %v5843_v44 = vpop.f32.mrf.mxu3  ;;  %v6153_v45 = vsub.f32 %v13288_v29, %v14821_v10  ;;  %v6039_v36 = vadd.f32 %v6007_v16, %v15689_v62 }
 0x6a9   : > { %v5679_v15 = vadd.f32 %v5678_v14, %v12945_v54 }
 0x6aa   : > { %v6154_v26 = vand.u32 4294901760, %v6153_v45  ;;  %v13302_v19 = vand.u32 4294901760, %v6039_v36  ;;  %v13318_v45 = vpop.f32.mrf.mxu0 }
 0x6ab   : > { %v7963_v8 = vpop.eup %7962  ;;  %v5840_v57 = vadd.f32 %v5839_v28, %v5679_v15  ;;  %v15692_v28 = vld [vmem:[#allocation24_spill] sm:$0xff] }
 0x6ac   : > { %15690 = vst [vmem:[#allocation95_spill] sm:$0xff] %v13302_v19  ;;  %v5976_v61 = vmul.f32 %v7963_v8, %v7963_v8  ;;  %6155 = vmatmul.f32.gmra.mxu0 %v6154_v26  ;;  %6492 = vmatmul.f32.gmra.mxu1 %v13302_v19  ;;  %v13308_v55 = vsub.f32 %v6039_v36, %v13302_v19  ;;  %v15722_v19 = vld [vmem:[#allocation22_spill] sm:$0xff] }
 0x6ad   : > { %7964 = vtanh.f32 %v5840_v57  ;;  %5745 = vmatmul.f32.gmra.mxu2 %v12578_v24  ;;  %5910 = vmatmul.f32.gmra.mxu3 %v15691_v51  ;;  %v5247_v26 = vadd.f32 %v13004_v6, %v12685_v38 }
 0x6ae   : > { %v6008_v54 = vmul.f32 %v7963_v8, %v5976_v61  ;;  %v14819_v63 = vand.u32 4294901760, %v13308_v55  ;;  %v13324_v8 = vpop.f32.mrf.mxu1 }
 0x6af   : > { %v5450_v38 = vadd.f32 %v12982_v49, %v5247_v26 }
 0x6b0   : > { %v5682_v16 = vpop.f32.mrf.mxu2  ;;  %v5847_v21 = vpop.f32.mrf.mxu3  ;;  %v6161_v39 = vsub.f32 %v13308_v55, %v14819_v63  ;;  %v6040_v14 = vadd.f32 %v6008_v54, %v15692_v28 }
 0x6b1   : > { %v5683_v62 = vadd.f32 %v5682_v16, %v5444_v37  ;;  %v15694_v16 = vld [vmem:[#allocation41_spill] sm:$0xff] }
 0x6b2   : > { %v6162_v36 = vand.u32 4294901760, %v6161_v39  ;;  %v13320_v24 = vand.u32 4294901760, %v6040_v14 }
 0x6b3   : > { %v7965_v15 = vpop.eup %7964  ;;  %v5844_v12 = vadd.f32 %v5843_v44, %v5683_v62 }
 0x6b4   : > { %15693 = vst [vmem:[#allocation66_spill] sm:$0xff] %v13320_v24  ;;  %v5977_v32 = vmul.f32 %v7965_v15, %v7965_v15  ;;  %6163 = vmatmul.f32.gmra.mxu0 %v6162_v36  ;;  %6496 = vmatmul.f32.gmra.mxu1 %v13320_v24  ;;  %v13328_v57 = vsub.f32 %v6040_v14, %v13320_v24 }
 0x6b5   : > { %7966 = vtanh.f32 %v5844_v12  ;;  %5749 = vmatmul.f32.gmra.mxu2 %v15691_v51  ;;  %5914 = vmatmul.f32.gmra.mxu3 %v12645_v31  ;;  %v5252_v36 = vadd.f32 %v13023_v7, %v12730_v17 }
 0x6b6   : > { %v6009_v61 = vmul.f32 %v7965_v15, %v5977_v32  ;;  %v14818_v54 = vand.u32 4294901760, %v13328_v57  ;;  %v13342_v15 = vpop.f32.mrf.mxu0  ;;  %v13348_v32 = vpop.f32.mrf.mxu1 }
 0x6b7   : > { %v5456_v7 = vadd.f32 %v13008_v20, %v5252_v36 }
 0x6b8   : > { %v5686_v6 = vpop.f32.mrf.mxu2  ;;  %v5851_v37 = vpop.f32.mrf.mxu3  ;;  %v6169_v44 = vsub.f32 %v13328_v57, %v14818_v54  ;;  %v6041_v39 = vadd.f32 %v6009_v61, %v15694_v16  ;;  %v15696_v61 = vld [vmem:[#allocation79_spill] sm:$0xff]  ;;  %v15697_v16 = vld [vmem:[#allocation9_spill] sm:$0xff]  ;;  %v15699_v54 = vld [vmem:[#allocation88_spill] sm:$0xff] }
 0x6b9   : > { %v5687_v28 = vadd.f32 %v5686_v6, %v5450_v38 }
 0x6ba   : > { %v6170_v14 = vand.u32 4294901760, %v6169_v44  ;;  %v13338_v62 = vand.u32 4294901760, %v6041_v39 }
 0x6bb   : > { %v7967_v51 = vpop.eup %7966  ;;  %v5848_v12 = vadd.f32 %v5847_v21, %v5687_v28 }
 0x6bc   : > { %15695 = vst [vmem:[#allocation98_spill] sm:$0xff] %v13338_v62  ;;  %v5978_v49 = vmul.f32 %v7967_v51, %v7967_v51  ;;  %6171 = vmatmul.f32.gmra.mxu0 %v6170_v14  ;;  %6500 = vmatmul.f32.gmra.mxu1 %v13338_v62  ;;  %v13346_v26 = vsub.f32 %v6041_v39, %v13338_v62 }
 0x6bd   : > { %7968 = vtanh.f32 %v5848_v12  ;;  %5753 = vmatmul.f32.gmra.mxu2 %v12645_v31  ;;  %5918 = vmatmul.f32.gmra.mxu3 %v15696_v61 }
 0x6be   : > { %v6010_v38 = vmul.f32 %v7967_v51, %v5978_v49  ;;  %v14820_v17 = vand.u32 4294901760, %v13346_v26  ;;  %v5257_v51 = vadd.f32 %v15699_v54, %v12754_v4  ;;  %v13366_v36 = vpop.f32.mrf.mxu0  ;;  %v15701_v4 = vld [vmem:[#allocation62_spill] sm:$0xff] }
 0x6c0   : > { %v5690_v21 = vpop.f32.mrf.mxu2  ;;  %v5855_v6 = vpop.f32.mrf.mxu3  ;;  %v6177_v44 = vsub.f32 %v13346_v26, %v14820_v17  ;;  %v6042_v39 = vadd.f32 %v6010_v38, %v15697_v16  ;;  %v15700_v38 = vld [vmem:[#allocation78_spill] sm:$0xff]  ;;  %v5462_v54 = vadd.f32 %v15701_v4, %v5257_v51 }
 0x6c1   : > { %v5691_v28 = vadd.f32 %v5690_v21, %v5456_v7 }
 0x6c2   : > { %v6178_v14 = vand.u32 4294901760, %v6177_v44  ;;  %v13358_v12 = vand.u32 4294901760, %v6042_v39  ;;  %v13371_v44 = vpop.f32.mrf.mxu1 }
 0x6c3   : > { %v7969_v31 = vpop.eup %7968  ;;  %v5852_v49 = vadd.f32 %v5851_v37, %v5691_v28  ;;  %v15702_v28 = vld [vmem:[#allocation8_spill] sm:$0xff] }
 0x6c4   : > { %15698 = vst [vmem:[#allocation51_spill] sm:$0xff] %v13358_v12  ;;  %v5979_v63 = vmul.f32 %v7969_v31, %v7969_v31  ;;  %6179 = vmatmul.f32.gmra.mxu0 %v6178_v14  ;;  %6504 = vmatmul.f32.gmra.mxu1 %v13358_v12  ;;  %v13364_v20 = vsub.f32 %v6042_v39, %v13358_v12 }
 0x6c5   : > { %7970 = vtanh.f32 %v5852_v49  ;;  %5757 = vmatmul.f32.gmra.mxu2 %v15696_v61  ;;  %5922 = vmatmul.f32.gmra.mxu3 %v15700_v38 }
 0x6c6   : > { %v6011_v7 = vmul.f32 %v7969_v31, %v5979_v63  ;;  %v14825_v21 = vand.u32 4294901760, %v13364_v20  ;;  %v15704_v63 = vld [vmem:[#allocation36_spill] sm:$0xff]  ;;  %v15705_v31 = vld [vmem:[#allocation89_spill] sm:$0xff] }
 0x6c7   : > { %v5262_v41 = vadd.f32 %v15705_v31, %v15704_v63 }
 0x6c8   : > { %v5694_v37 = vpop.f32.mrf.mxu2  ;;  %v5859_v16 = vpop.f32.mrf.mxu3  ;;  %v6185_v39 = vsub.f32 %v13364_v20, %v14825_v21  ;;  %v6043_v14 = vadd.f32 %v6011_v7, %v15702_v28  ;;  %v15706_v7 = vld [vmem:[#allocation48_spill] sm:$0xff] }
 0x6c9   : > { %v5695_v49 = vadd.f32 %v5694_v37, %v5462_v54  ;;  %v13389_v37 = vpop.f32.mrf.mxu0 }
 0x6ca   : > { %v6186_v17 = vand.u32 4294901760, %v6185_v39  ;;  %v13378_v61 = vand.u32 4294901760, %v6043_v14  ;;  %v15707_v39 = vld [vmem:[#allocation40_spill] sm:$0xff] }
 0x6cb   : > { %v7971_v10 = vpop.eup %7970  ;;  %v5856_v27 = vadd.f32 %v5855_v6, %v5695_v49  ;;  %v5468_v28 = vadd.f32 %v15707_v39, %v5262_v41 }
 0x6cc   : > { %15703 = vst [vmem:[#allocation38_spill] sm:$0xff] %v13378_v61  ;;  %v5980_v43 = vmul.f32 %v7971_v10, %v7971_v10  ;;  %6187 = vmatmul.f32.gmra.mxu0 %v6186_v17  ;;  %6508 = vmatmul.f32.gmra.mxu1 %v13378_v61  ;;  %v13384_v51 = vsub.f32 %v6043_v14, %v13378_v61  ;;  %v15708_v14 = vld [vmem:[#allocation11_spill] sm:$0xff] }
 0x6cd   : > { %7972 = vtanh.f32 %v5856_v27  ;;  %5761 = vmatmul.f32.gmra.mxu2 %v15700_v38  ;;  %5926 = vmatmul.f32.gmra.mxu3 %v15706_v7  ;;  %v13396_v27 = vpop.f32.mrf.mxu1 }
 0x6ce   : > { %v6012_v4 = vmul.f32 %v7971_v10, %v5980_v43  ;;  %v14831_v54 = vand.u32 4294901760, %v13384_v51  ;;  %v15710_v10 = vld [vmem:[#allocation34_spill] sm:$0xff] }
 0x6cf   : > { %v5267_v61 = vadd.f32 %v15711_v1, %v15710_v10 }
 0x6d0   : > { %v5698_v6 = vpop.f32.mrf.mxu2  ;;  %v5863_v49 = vpop.f32.mrf.mxu3  ;;  %v6193_v17 = vsub.f32 %v13384_v51, %v14831_v54  ;;  %v6044_v63 = vadd.f32 %v6012_v4, %v15708_v14  ;;  %v15712_v4 = vld [vmem:[#allocation83_spill] sm:$0xff] }
 0x6d1   : > { %v5699_v38 = vadd.f32 %v5698_v6, %v5468_v28 }
 0x6d2   : > { %v6194_v31 = vand.u32 4294901760, %v6193_v17  ;;  %v13398_v21 = vand.u32 4294901760, %v6044_v63  ;;  %v15713_v17 = vld [vmem:[#allocation17_spill] sm:$0xff] }
 0x6d3   : > { %v7973_v43 = vpop.eup %7972  ;;  %v5860_v12 = vadd.f32 %v5859_v16, %v5699_v38  ;;  %v5474_v14 = vadd.f32 %v15713_v17, %v5267_v61  ;;  %v15714_v38 = vld [vmem:[#allocation20_spill] sm:$0xff] }
 0x6d4   : > { %15709 = vst [vmem:[#allocation27_spill] sm:$0xff] %v13398_v21  ;;  %v5981_v41 = vmul.f32 %v7973_v43, %v7973_v43  ;;  %6195 = vmatmul.f32.gmra.mxu0 %v6194_v31  ;;  %6512 = vmatmul.f32.gmra.mxu1 %v13398_v21  ;;  %v13404_v39 = vsub.f32 %v6044_v63, %v13398_v21  ;;  %v13414_v63 = vpop.f32.mrf.mxu0 }
 0x6d5   : > { %7974 = vtanh.f32 %v5860_v12  ;;  %5765 = vmatmul.f32.gmra.mxu2 %v15706_v7  ;;  %5930 = vmatmul.f32.gmra.mxu3 %v15712_v4  ;;  %v13420_v24 = vpop.f32.mrf.mxu1 }
 0x6d6   : > { %v6013_v28 = vmul.f32 %v7973_v43, %v5981_v41  ;;  %v14838_v6 = vand.u32 4294901760, %v13404_v39  ;;  %v15716_v43 = vld [vmem:[#allocation84_spill] sm:$0xff]  ;;  %v15717_v41 = vld [vmem:[#allocation19_spill] sm:$0xff] }
 0x6d7   : > { %v5272_v62 = vadd.f32 %v15717_v41, %v15716_v43 }
 0x6d8   : > { %v5702_v54 = vpop.f32.mrf.mxu2  ;;  %v5867_v1 = vpop.f32.mrf.mxu3  ;;  %v6201_v16 = vsub.f32 %v13404_v39, %v14838_v6  ;;  %v6045_v31 = vadd.f32 %v6013_v28, %v15714_v38 }
 0x6d9   : > { %v5703_v12 = vadd.f32 %v5702_v54, %v5474_v14  ;;  %v15718_v54 = vld [vmem:[#allocation10_spill] sm:$0xff] }
 0x6da   : > { %v6202_v10 = vand.u32 4294901760, %v6201_v16  ;;  %v13416_v7 = vand.u32 4294901760, %v6045_v31  ;;  %v15719_v16 = vld [vmem:[#allocation37_spill] sm:$0xff] }
 0x6db   : > { %v7975_v21 = vpop.eup %7974  ;;  %v5864_v61 = vadd.f32 %v5863_v49, %v5703_v12  ;;  %v5480_v38 = vadd.f32 %v15719_v16, %v5272_v62  ;;  %v15720_v12 = vld [vmem:[#allocation60_spill] sm:$0xff] }
 0x6dc   : > { %15715 = vst [vmem:[#allocation14_spill] sm:$0xff] %v13416_v7  ;;  %v5982_v17 = vmul.f32 %v7975_v21, %v7975_v21  ;;  %6203 = vmatmul.f32.gmra.mxu0 %v6202_v10  ;;  %6516 = vmatmul.f32.gmra.mxu1 %v13416_v7  ;;  %v13424_v6 = vsub.f32 %v6045_v31, %v13416_v7 }
 0x6dd   : > { %7976 = vtanh.f32 %v5864_v61  ;;  %5769 = vmatmul.f32.gmra.mxu2 %v15712_v4  ;;  %5934 = vmatmul.f32.gmra.mxu3 %v15718_v54 }
 0x6de   : > { %v6014_v28 = vmul.f32 %v7975_v21, %v5982_v17  ;;  %v14845_v14 = vand.u32 4294901760, %v13424_v6  ;;  %v5277_v21 = vadd.f32 %v13142_v30, %v15722_v19  ;;  %v13438_v17 = vpop.f32.mrf.mxu0  ;;  %v15724_v19 = vld [vmem:[#allocation50_spill] sm:$0xff] }
 0x6e0   : > { %v5706_v43 = vpop.f32.mrf.mxu2  ;;  %v5871_v41 = vpop.f32.mrf.mxu3  ;;  %v6209_v49 = vsub.f32 %v13424_v6, %v14845_v14  ;;  %v6046_v10 = vadd.f32 %v6014_v28, %v15720_v12  ;;  %v15723_v28 = vand.u32 4294901760, %v13220_v53  ;;  %v15725_v12 = vld [vmem:[#allocation61_spill] sm:$0xff] }
 0x6e1   : > { %v5707_v31 = vadd.f32 %v5706_v43, %v5480_v38  ;;  %v13444_v14 = vpop.f32.mrf.mxu1 }
 0x6e2   : > { %v6210_v7 = vand.u32 4294901760, %v6209_v49  ;;  %v13434_v61 = vand.u32 4294901760, %v6046_v10 }
 0x6e3   : > { %v7977_v4 = vpop.eup %7976  ;;  %v5868_v56 = vadd.f32 %v5867_v1, %v5707_v31  ;;  %v5486_v1 = vadd.f32 %v15724_v19, %v5277_v21 }
 0x6e4   : > { %15721 = vst [vmem:[#allocation28_spill] sm:$0xff] %v13434_v61  ;;  %v5983_v62 = vmul.f32 %v7977_v4, %v7977_v4  ;;  %6211 = vmatmul.f32.gmra.mxu0 %v6210_v7  ;;  %6520 = vmatmul.f32.gmra.mxu1 %v13434_v61  ;;  %v13442_v16 = vsub.f32 %v6046_v10, %v13434_v61 }
 0x6e5   : > { %7978 = vtanh.f32 %v5868_v56  ;;  %5773 = vmatmul.f32.gmra.mxu2 %v15718_v54  ;;  %6844 = vmatmul.f32.vlgmr.msrb.gmra.mxu3 %v15723_v28 }
 0x6e6   : > { %v6015_v38 = vmul.f32 %v7977_v4, %v5983_v62  ;;  %v14850_v30 = vand.u32 4294901760, %v13442_v16  ;;  %v5282_v4 = vadd.f32 %v13166_v25, %v15727_v11  ;;  %v13463_v19 = vpop.f32.mrf.mxu0 }
 0x6e8   : > { %v5710_v43 = vpop.f32.mrf.mxu2  ;;  %v5875_v7 = vpop.f32.mrf.mxu3  ;;  %v6217_v49 = vsub.f32 %v13442_v16, %v14850_v30  ;;  %v6047_v10 = vadd.f32 %v6015_v38, %v15725_v12  ;;  %v15728_v38 = vand.u32 4294901760, %v13238_v46  ;;  %v5492_v11 = vadd.f32 %v13147_v35, %v5282_v4 }
 0x6e9   : > { %v5711_v31 = vadd.f32 %v5710_v43, %v5486_v1  ;;  %v13469_v25 = vpop.f32.mrf.mxu1  ;;  %v15731_v4 = vand.u32 4294901760, %v13254_v5 }
 0x6ea   : > { %v6218_v56 = vand.u32 4294901760, %v6217_v49  ;;  %v13455_v61 = vand.u32 4294901760, %v6047_v10 }
 0x6eb   : > { %v7979_v54 = vpop.eup %7978  ;;  %v5872_v62 = vadd.f32 %v5871_v41, %v5711_v31 }
 0x6ec   : > { %15726 = vst [vmem:[#allocation43_spill] sm:$0xff] %v13455_v61  ;;  %v5984_v28 = vmul.f32 %v7979_v54, %v7979_v54  ;;  %6219 = vmatmul.f32.gmra.mxu0 %v6218_v56  ;;  %6524 = vmatmul.f32.gmra.mxu1 %v13455_v61  ;;  %v13461_v21 = vsub.f32 %v6047_v10, %v13455_v61  ;;  %v15729_v10 = vld [vmem:[#allocation63_spill] sm:$0xff] }
 0x6ed   : > { %7980 = vtanh.f32 %v5872_v62  ;;  %6650 = vmatmul.f32.vlgmr.msrb.gmra.mxu2 %v13220_v53  ;;  %6850 = vmatmul.f32.gmra.mxu3 %v15728_v38 }
 0x6ee   : > { %v6016_v1 = vmul.f32 %v7979_v54, %v5984_v28  ;;  %v14853_v43 = vand.u32 4294901760, %v13461_v21  ;;  %v15730_v54 = vld [vmem:[#allocation85_spill] sm:$0xff] }
 0x6ef   : > { %v5287_v28 = vadd.f32 %v13190_v58, %v15730_v54 }
 0x6f0   : > { %v5714_v41 = vpop.f32.mrf.mxu2  ;;  %v5879_v49 = vpop.f32.mrf.mxu3  ;;  %v6225_v12 = vsub.f32 %v13461_v21, %v14853_v43  ;;  %v6048_v31 = vadd.f32 %v6016_v1, %v15729_v10 }
 0x6f1   : > { %v5715_v56 = vadd.f32 %v5714_v41, %v5492_v11  ;;  %v13488_v41 = vpop.f32.mrf.mxu0  ;;  %v5498_v58 = vadd.f32 %v13173_v40, %v5287_v28 }
 0x6f2   : > { %v6226_v53 = vand.u32 4294901760, %v6225_v12  ;;  %v13476_v62 = vand.u32 4294901760, %v6048_v31 }
 0x6f3   : > { %v7981_v38 = vpop.eup %7980  ;;  %v5876_v30 = vadd.f32 %v5875_v7, %v5715_v56  ;;  %v13495_v56 = vpop.f32.mrf.mxu1 }
 0x6f4   : > { %v5985_v61 = vmul.f32 %v7981_v38, %v7981_v38  ;;  %6227 = vmatmul.f32.gmra.mxu0 %v6226_v53  ;;  %6528 = vmatmul.f32.gmra.mxu1 %v13476_v62  ;;  %v13482_v35 = vsub.f32 %v6048_v31, %v13476_v62  ;;  %v15732_v31 = vld [vmem:[#allocation31_spill] sm:$0xff] }
 0x6f5   : > { %7982 = vtanh.f32 %v5876_v30  ;;  %6655 = vmatmul.f32.gmra.mxu2 %v13238_v46  ;;  %6856 = vmatmul.f32.gmra.mxu3 %v15731_v4 }
 0x6f6   : > { %v6017_v1 = vmul.f32 %v7981_v38, %v5985_v61  ;;  %v14854_v11 = vand.u32 4294901760, %v13482_v35  ;;  %v15733_v38 = vld [vmem:[#allocation77_spill] sm:$0xff] }
 0x6f7   : > { %v5292_v4 = vadd.f32 %v13208_v60, %v15733_v38 }
 0x6f8   : > { %v5718_v7 = vpop.f32.mrf.mxu2  ;;  %v5883_v12 = vpop.f32.mrf.mxu3  ;;  %v6233_v10 = vsub.f32 %v13482_v35, %v14854_v11  ;;  %v6049_v30 = vadd.f32 %v6017_v1, %v15732_v31  ;;  %v15734_v1 = vand.u32 4294901760, %v13270_v0 }
 0x6f9   : > { %v5719_v46 = vadd.f32 %v5718_v7, %v5498_v58 }
 0x6fa   : > { %v6234_v53 = vand.u32 4294901760, %v6233_v10  ;;  %v13497_v54 = vand.u32 4294901760, %v6049_v30  ;;  %v5504_v10 = vadd.f32 %v13197_v18, %v5292_v4 }
 0x6fb   : > { %v7983_v61 = vpop.eup %7982  ;;  %v5880_v43 = vadd.f32 %v5879_v49, %v5719_v46  ;;  %v15735_v46 = vld [vmem:[#allocation68_spill] sm:$0xff] }
 0x6fc   : > { %v5986_v40 = vmul.f32 %v7983_v61, %v7983_v61  ;;  %6235 = vmatmul.f32.gmra.mxu0 %v6234_v53  ;;  %6532 = vmatmul.f32.gmra.mxu1 %v13497_v54  ;;  %v13503_v28 = vsub.f32 %v6049_v30, %v13497_v54  ;;  %v13514_v53 = vpop.f32.mrf.mxu0 }
 0x6fd   : > { %7984 = vtanh.f32 %v5880_v43  ;;  %6660 = vmatmul.f32.gmra.mxu2 %v13254_v5  ;;  %6862 = vmatmul.f32.gmra.mxu3 %v15734_v1 }
 0x6fe   : > { %v6018_v58 = vmul.f32 %v7983_v61, %v5986_v40  ;;  %v14855_v7 = vand.u32 4294901760, %v13503_v28  ;;  %v15737_v40 = vld [vmem:[#allocation54_spill] sm:$0xff] }
 0x6ff   : > { %v5297_v18 = vadd.f32 %v13229_v2, %v15737_v40 }
 0x700   : > { %v5722_v60 = vpop.f32.mrf.mxu2  ;;  %v5887_v49 = vpop.f32.mrf.mxu3  ;;  %v6241_v31 = vsub.f32 %v13503_v28, %v14855_v7  ;;  %v6050_v30 = vadd.f32 %v6018_v58, %v15735_v46  ;;  %v15738_v58 = vand.u32 4294901760, %v13288_v29 }
 0x701   : > { %v5723_v43 = vadd.f32 %v5722_v60, %v5504_v10  ;;  %v13516_v5 = vpop.f32.mrf.mxu1 }
 0x702   : > { %v6242_v38 = vand.u32 4294901760, %v6241_v31  ;;  %v13518_v1 = vand.u32 4294901760, %v6050_v30  ;;  %v5510_v31 = vadd.f32 %v13212_v3, %v5297_v18 }
 0x703   : > { %v7985_v61 = vpop.eup %7984  ;;  %v5884_v4 = vadd.f32 %v5883_v12, %v5723_v43  ;;  %v15739_v43 = vld [vmem:[#allocation70_spill] sm:$0xff] }
 0x704   : > { %15736 = vst [vmem:[#allocation56_spill] sm:$0xff] %v13518_v1  ;;  %v5987_v11 = vmul.f32 %v7985_v61, %v7985_v61  ;;  %6243 = vmatmul.f32.gmra.mxu0 %v6242_v38  ;;  %6536 = vmatmul.f32.gmra.mxu1 %v13518_v1  ;;  %v13524_v7 = vsub.f32 %v6050_v30, %v13518_v1 }
 0x705   : > { %7986 = vtanh.f32 %v5884_v4  ;;  %6665 = vmatmul.f32.gmra.mxu2 %v13270_v0  ;;  %6868 = vmatmul.f32.gmra.mxu3 %v15738_v58 }
 0x706   : > { %v6019_v10 = vmul.f32 %v7985_v61, %v5987_v11  ;;  %v14858_v60 = vand.u32 4294901760, %v13524_v7  ;;  %v15741_v61 = vld [vmem:[#allocation86_spill] sm:$0xff] }
 0x707   : > { %v5302_v3 = vadd.f32 %v13250_v59, %v15741_v61 }
 0x708   : > { %v5726_v2 = vpop.f32.mrf.mxu2  ;;  %v5891_v12 = vpop.f32.mrf.mxu3  ;;  %v6249_v46 = vsub.f32 %v13524_v7, %v14858_v60  ;;  %v6051_v30 = vadd.f32 %v6019_v10, %v15739_v43  ;;  %v15742_v10 = vand.u32 4294901760, %v13308_v55 }
 0x709   : > { %v5727_v38 = vadd.f32 %v5726_v2, %v5510_v31  ;;  %v13535_v40 = vpop.f32.mrf.mxu0  ;;  %v13537_v0 = vpop.f32.mrf.mxu1 }
 0x70a   : > { %v6250_v4 = vand.u32 4294901760, %v6249_v46  ;;  %v13539_v58 = vand.u32 4294901760, %v6051_v30  ;;  %v5516_v46 = vadd.f32 %v13234_v13, %v5302_v3 }
 0x70b   : > { %v7987_v11 = vpop.eup %7986  ;;  %v5888_v18 = vadd.f32 %v5887_v49, %v5727_v38  ;;  %v15743_v38 = vld [vmem:[#allocation67_spill] sm:$0xff] }
 0x70c   : > { %15740 = vst [vmem:[#allocation45_spill] sm:$0xff] %v13539_v58  ;;  %v5988_v1 = vmul.f32 %v7987_v11, %v7987_v11  ;;  %6251 = vmatmul.f32.gmra.mxu0 %v6250_v4  ;;  %6540 = vmatmul.f32.gmra.mxu1 %v13539_v58  ;;  %v13545_v60 = vsub.f32 %v6051_v30, %v13539_v58 }
 0x70d   : > { %7988 = vtanh.f32 %v5888_v18  ;;  %6670 = vmatmul.f32.gmra.mxu2 %v13288_v29  ;;  %6874 = vmatmul.f32.gmra.mxu3 %v15742_v10 }
 0x70e   : > { %v6020_v31 = vmul.f32 %v7987_v11, %v5988_v1  ;;  %v14861_v2 = vand.u32 4294901760, %v13545_v60  ;;  %v15745_v11 = vld [vmem:[#allocation64_spill] sm:$0xff] }
 0x70f   : > { %v5307_v13 = vadd.f32 %v13272_v48, %v15745_v11 }
 0x710   : > { %v5730_v59 = vpop.f32.mrf.mxu2  ;;  %v5895_v49 = vpop.f32.mrf.mxu3  ;;  %v6257_v43 = vsub.f32 %v13545_v60, %v14861_v2  ;;  %v6052_v30 = vadd.f32 %v6020_v31, %v15743_v38  ;;  %v15746_v31 = vand.u32 4294901760, %v13328_v57 }
 0x711   : > { %v5731_v4 = vadd.f32 %v5730_v59, %v5516_v46  ;;  %v13556_v61 = vpop.f32.mrf.mxu0  ;;  %v13558_v29 = vpop.f32.mrf.mxu1 }
 0x712   : > { %v6258_v18 = vand.u32 4294901760, %v6257_v43  ;;  %v13560_v10 = vand.u32 4294901760, %v6052_v30  ;;  %v5522_v43 = vadd.f32 %v13256_v33, %v5307_v13 }
 0x713   : > { %v7989_v1 = vpop.eup %7988  ;;  %v5892_v3 = vadd.f32 %v5891_v12, %v5731_v4  ;;  %v15747_v4 = vld [vmem:[#allocation96_spill] sm:$0xff] }
 0x714   : > { %15744 = vst [vmem:[#allocation72_spill] sm:$0xff] %v13560_v10  ;;  %v5989_v58 = vmul.f32 %v7989_v1, %v7989_v1  ;;  %6259 = vmatmul.f32.gmra.mxu0 %v6258_v18  ;;  %6544 = vmatmul.f32.gmra.mxu1 %v13560_v10  ;;  %v13566_v2 = vsub.f32 %v6052_v30, %v13560_v10 }
 0x715   : > { %7990 = vtanh.f32 %v5892_v3  ;;  %6675 = vmatmul.f32.gmra.mxu2 %v13308_v55  ;;  %6880 = vmatmul.f32.gmra.mxu3 %v15746_v31 }
 0x716   : > { %v6021_v46 = vmul.f32 %v7989_v1, %v5989_v58  ;;  %v14864_v59 = vand.u32 4294901760, %v13566_v2  ;;  %v15749_v1 = vld [vmem:[#allocation47_spill] sm:$0xff] }
 0x717   : > { %v5312_v33 = vadd.f32 %v13293_v42, %v15749_v1 }
 0x718   : > { %v5734_v48 = vpop.f32.mrf.mxu2  ;;  %v5899_v12 = vpop.f32.mrf.mxu3  ;;  %v6265_v38 = vsub.f32 %v13566_v2, %v14864_v59  ;;  %v6053_v30 = vadd.f32 %v6021_v46, %v15747_v4  ;;  %v15750_v46 = vand.u32 4294901760, %v13346_v26 }
 0x719   : > { %v5735_v18 = vadd.f32 %v5734_v48, %v5522_v43  ;;  %v13577_v11 = vpop.f32.mrf.mxu0  ;;  %v13579_v55 = vpop.f32.mrf.mxu1 }
 0x71a   : > { %v6266_v3 = vand.u32 4294901760, %v6265_v38  ;;  %v13581_v31 = vand.u32 4294901760, %v6053_v30  ;;  %v5528_v38 = vadd.f32 %v13277_v50, %v5312_v33 }
 0x71b   : > { %v7991_v58 = vpop.eup %7990  ;;  %v5896_v13 = vadd.f32 %v5895_v49, %v5735_v18  ;;  %v15751_v18 = vld [vmem:[#allocation94_spill] sm:$0xff] }
 0x71c   : > { %15748 = vst [vmem:[#allocation75_spill] sm:$0xff] %v13581_v31  ;;  %v5990_v10 = vmul.f32 %v7991_v58, %v7991_v58  ;;  %6267 = vmatmul.f32.gmra.mxu0 %v6266_v3  ;;  %6548 = vmatmul.f32.gmra.mxu1 %v13581_v31  ;;  %v13587_v59 = vsub.f32 %v6053_v30, %v13581_v31 }
 0x71d   : > { %7992 = vtanh.f32 %v5896_v13  ;;  %6680 = vmatmul.f32.gmra.mxu2 %v13328_v57  ;;  %6886 = vmatmul.f32.gmra.mxu3 %v15750_v46 }
 0x71e   : > { %v6022_v43 = vmul.f32 %v7991_v58, %v5990_v10  ;;  %v14867_v48 = vand.u32 4294901760, %v13587_v59  ;;  %v15753_v58 = vld [vmem:[#allocation87_spill] sm:$0xff] }
 0x71f   : > { %v5317_v50 = vadd.f32 %v13318_v45, %v15753_v58 }
 0x720   : > { %v5738_v42 = vpop.f32.mrf.mxu2  ;;  %v5903_v49 = vpop.f32.mrf.mxu3  ;;  %v6273_v4 = vsub.f32 %v13587_v59, %v14867_v48  ;;  %v6054_v30 = vadd.f32 %v6022_v43, %v15751_v18  ;;  %v15754_v43 = vand.u32 4294901760, %v13364_v20 }
 0x721   : > { %v5739_v3 = vadd.f32 %v5738_v42, %v5528_v38  ;;  %v13598_v1 = vpop.f32.mrf.mxu0  ;;  %v13600_v57 = vpop.f32.mrf.mxu1 }
 0x722   : > { %v6274_v13 = vand.u32 4294901760, %v6273_v4  ;;  %v13602_v46 = vand.u32 4294901760, %v6054_v30  ;;  %v5534_v4 = vadd.f32 %v13299_v9, %v5317_v50 }
 0x723   : > { %v7993_v10 = vpop.eup %7992  ;;  %v5900_v33 = vadd.f32 %v5899_v12, %v5739_v3  ;;  %v15755_v3 = vld [vmem:[#allocation3_spill] sm:$0xff] }
 0x724   : > { %15752 = vst [vmem:[#allocation15_spill] sm:$0xff] %v13602_v46  ;;  %v5991_v31 = vmul.f32 %v7993_v10, %v7993_v10  ;;  %6275 = vmatmul.f32.gmra.mxu0 %v6274_v13  ;;  %6552 = vmatmul.f32.gmra.mxu1 %v13602_v46  ;;  %v13608_v48 = vsub.f32 %v6054_v30, %v13602_v46 }
 0x725   : > { %7994 = vtanh.f32 %v5900_v33  ;;  %6685 = vmatmul.f32.gmra.mxu2 %v13346_v26  ;;  %6892 = vmatmul.f32.gmra.mxu3 %v15754_v43 }
 0x726   : > { %v6023_v38 = vmul.f32 %v7993_v10, %v5991_v31  ;;  %v14870_v42 = vand.u32 4294901760, %v13608_v48  ;;  %v15757_v10 = vld [vmem:[#allocation16_spill] sm:$0xff] }
 0x727   : > { %v5322_v9 = vadd.f32 %v13342_v15, %v15757_v10 }
 0x728   : > { %v5742_v45 = vpop.f32.mrf.mxu2  ;;  %v5907_v12 = vpop.f32.mrf.mxu3  ;;  %v6281_v18 = vsub.f32 %v13608_v48, %v14870_v42  ;;  %v6055_v30 = vadd.f32 %v6023_v38, %v15755_v3  ;;  %v15758_v38 = vand.u32 4294901760, %v13384_v51 }
 0x729   : > { %v5743_v13 = vadd.f32 %v5742_v45, %v5534_v4  ;;  %v13619_v58 = vpop.f32.mrf.mxu0  ;;  %v13621_v26 = vpop.f32.mrf.mxu1 }
 0x72a   : > { %v6282_v33 = vand.u32 4294901760, %v6281_v18  ;;  %v13623_v43 = vand.u32 4294901760, %v6055_v30  ;;  %v5540_v18 = vadd.f32 %v13324_v8, %v5322_v9 }
 0x72b   : > { %v7995_v31 = vpop.eup %7994  ;;  %v5904_v50 = vadd.f32 %v5903_v49, %v5743_v13  ;;  %v15759_v13 = vld [vmem:[#allocation99_spill] sm:$0xff] }
 0x72c   : > { %15756 = vst [vmem:[#allocation33_spill] sm:$0xff] %v13623_v43  ;;  %v5992_v46 = vmul.f32 %v7995_v31, %v7995_v31  ;;  %6283 = vmatmul.f32.gmra.mxu0 %v6282_v33  ;;  %6556 = vmatmul.f32.gmra.mxu1 %v13623_v43  ;;  %v13629_v42 = vsub.f32 %v6055_v30, %v13623_v43 }
 0x72d   : > { %7996 = vtanh.f32 %v5904_v50  ;;  %6690 = vmatmul.f32.gmra.mxu2 %v13364_v20  ;;  %6898 = vmatmul.f32.gmra.mxu3 %v15758_v38 }
 0x72e   : > { %v6024_v4 = vmul.f32 %v7995_v31, %v5992_v46  ;;  %v14873_v45 = vand.u32 4294901760, %v13629_v42  ;;  %v15761_v31 = vld [vmem:[#allocation25_spill] sm:$0xff] }
 0x72f   : > { %v5327_v8 = vadd.f32 %v13366_v36, %v15761_v31 }
 0x730   : > { %v5746_v15 = vpop.f32.mrf.mxu2  ;;  %v5911_v49 = vpop.f32.mrf.mxu3  ;;  %v6289_v3 = vsub.f32 %v13629_v42, %v14873_v45  ;;  %v6056_v30 = vadd.f32 %v6024_v4, %v15759_v13  ;;  %v15762_v4 = vand.u32 4294901760, %v13404_v39 }
 0x731   : > { %v5747_v33 = vadd.f32 %v5746_v15, %v5540_v18  ;;  %v13640_v10 = vpop.f32.mrf.mxu0  ;;  %v13642_v20 = vpop.f32.mrf.mxu1 }
 0x732   : > { %v6290_v50 = vand.u32 4294901760, %v6289_v3  ;;  %v13644_v38 = vand.u32 4294901760, %v6056_v30  ;;  %v5546_v3 = vadd.f32 %v13348_v32, %v5327_v8 }
 0x733   : > { %v7997_v46 = vpop.eup %7996  ;;  %v5908_v9 = vadd.f32 %v5907_v12, %v5747_v33  ;;  %v15763_v33 = vld [vmem:[#allocation18_spill] sm:$0xff] }
 0x734   : > { %15760 = vst [vmem:[#allocation29_spill] sm:$0xff] %v13644_v38  ;;  %v5993_v43 = vmul.f32 %v7997_v46, %v7997_v46  ;;  %6291 = vmatmul.f32.gmra.mxu0 %v6290_v50  ;;  %6560 = vmatmul.f32.gmra.mxu1 %v13644_v38  ;;  %v13650_v45 = vsub.f32 %v6056_v30, %v13644_v38 }
 0x735   : > { %7998 = vtanh.f32 %v5908_v9  ;;  %6695 = vmatmul.f32.gmra.mxu2 %v13384_v51  ;;  %6904 = vmatmul.f32.gmra.mxu3 %v15762_v4 }
 0x736   : > { %v6025_v18 = vmul.f32 %v7997_v46, %v5993_v43  ;;  %v14876_v15 = vand.u32 4294901760, %v13650_v45  ;;  %v15765_v46 = vld [vmem:[#allocation32_spill] sm:$0xff] }
 0x737   : > { %v5332_v32 = vadd.f32 %v13389_v37, %v15765_v46 }
 0x738   : > { %v5750_v36 = vpop.f32.mrf.mxu2  ;;  %v5915_v12 = vpop.f32.mrf.mxu3  ;;  %v6297_v13 = vsub.f32 %v13650_v45, %v14876_v15  ;;  %v6057_v30 = vadd.f32 %v6025_v18, %v15763_v33  ;;  %v15766_v18 = vand.u32 4294901760, %v13424_v6 }
 0x739   : > { %v5751_v50 = vadd.f32 %v5750_v36, %v5546_v3  ;;  %v13661_v31 = vpop.f32.mrf.mxu0  ;;  %v13663_v51 = vpop.f32.mrf.mxu1 }
 0x73a   : > { %v6298_v9 = vand.u32 4294901760, %v6297_v13  ;;  %v13665_v4 = vand.u32 4294901760, %v6057_v30  ;;  %v5552_v13 = vadd.f32 %v13371_v44, %v5332_v32 }
 0x73b   : > { %v7999_v43 = vpop.eup %7998  ;;  %v5912_v8 = vadd.f32 %v5911_v49, %v5751_v50  ;;  %v15767_v50 = vld [vmem:[#allocation5_spill] sm:$0xff] }
 0x73c   : > { %15764 = vst [vmem:[#allocation58_spill] sm:$0xff] %v13665_v4  ;;  %v5994_v38 = vmul.f32 %v7999_v43, %v7999_v43  ;;  %6299 = vmatmul.f32.gmra.mxu0 %v6298_v9  ;;  %6564 = vmatmul.f32.gmra.mxu1 %v13665_v4  ;;  %v13671_v15 = vsub.f32 %v6057_v30, %v13665_v4 }
 0x73d   : > { %8000 = vtanh.f32 %v5912_v8  ;;  %6700 = vmatmul.f32.gmra.mxu2 %v13404_v39  ;;  %6910 = vmatmul.f32.gmra.mxu3 %v15766_v18 }
 0x73e   : > { %v6026_v3 = vmul.f32 %v7999_v43, %v5994_v38  ;;  %v14879_v36 = vand.u32 4294901760, %v13671_v15  ;;  %v15769_v43 = vld [vmem:[#allocation90_spill] sm:$0xff] }
 0x73f   : > { %v5337_v44 = vadd.f32 %v13414_v63, %v15769_v43 }
 0x740   : > { %v5754_v37 = vpop.f32.mrf.mxu2  ;;  %v5919_v49 = vpop.f32.mrf.mxu3  ;;  %v6305_v33 = vsub.f32 %v13671_v15, %v14879_v36  ;;  %v6058_v30 = vadd.f32 %v6026_v3, %v15767_v50  ;;  %v15770_v3 = vand.u32 4294901760, %v13442_v16 }
 0x741   : > { %v5755_v9 = vadd.f32 %v5754_v37, %v5552_v13  ;;  %v13682_v46 = vpop.f32.mrf.mxu0  ;;  %v13684_v39 = vpop.f32.mrf.mxu1 }
 0x742   : > { %v6306_v8 = vand.u32 4294901760, %v6305_v33  ;;  %v13686_v18 = vand.u32 4294901760, %v6058_v30  ;;  %v5558_v33 = vadd.f32 %v13396_v27, %v5337_v44 }
 0x743   : > { %v8001_v38 = vpop.eup %8000  ;;  %v5916_v32 = vadd.f32 %v5915_v12, %v5755_v9  ;;  %v15771_v9 = vld [vmem:[#allocation7_spill] sm:$0xff] }
 0x744   : > { %15768 = vst [vmem:[#allocation59_spill] sm:$0xff] %v13686_v18  ;;  %v5995_v4 = vmul.f32 %v8001_v38, %v8001_v38  ;;  %6307 = vmatmul.f32.gmra.mxu0 %v6306_v8  ;;  %6568 = vmatmul.f32.gmra.mxu1 %v13686_v18  ;;  %v13692_v36 = vsub.f32 %v6058_v30, %v13686_v18 }
 0x745   : > { %8002 = vtanh.f32 %v5916_v32  ;;  %6705 = vmatmul.f32.gmra.mxu2 %v13424_v6  ;;  %6916 = vmatmul.f32.gmra.mxu3 %v15770_v3 }
 0x746   : > { %v6027_v13 = vmul.f32 %v8001_v38, %v5995_v4  ;;  %v14882_v37 = vand.u32 4294901760, %v13692_v36  ;;  %v15773_v38 = vld [vmem:[#allocation91_spill] sm:$0xff] }
 0x747   : > { %v5342_v27 = vadd.f32 %v13438_v17, %v15773_v38 }
 0x748   : > { %v5758_v63 = vpop.f32.mrf.mxu2  ;;  %v5923_v12 = vpop.f32.mrf.mxu3  ;;  %v6313_v50 = vsub.f32 %v13692_v36, %v14882_v37  ;;  %v6059_v30 = vadd.f32 %v6027_v13, %v15771_v9  ;;  %v15774_v13 = vand.u32 4294901760, %v13461_v21 }
 0x749   : > { %v5759_v8 = vadd.f32 %v5758_v63, %v5558_v33  ;;  %v13703_v43 = vpop.f32.mrf.mxu0  ;;  %v13705_v6 = vpop.f32.mrf.mxu1 }
 0x74a   : > { %v6314_v32 = vand.u32 4294901760, %v6313_v50  ;;  %v13707_v3 = vand.u32 4294901760, %v6059_v30  ;;  %v5564_v50 = vadd.f32 %v13420_v24, %v5342_v27 }
 0x74b   : > { %v8003_v4 = vpop.eup %8002  ;;  %v5920_v44 = vadd.f32 %v5919_v49, %v5759_v8  ;;  %v15775_v8 = vld [vmem:[#allocation4_spill] sm:$0xff] }
 0x74c   : > { %15772 = vst [vmem:[#allocation26_spill] sm:$0xff] %v13707_v3  ;;  %v5996_v18 = vmul.f32 %v8003_v4, %v8003_v4  ;;  %6315 = vmatmul.f32.gmra.mxu0 %v6314_v32  ;;  %6572 = vmatmul.f32.gmra.mxu1 %v13707_v3  ;;  %v13713_v37 = vsub.f32 %v6059_v30, %v13707_v3 }
 0x74d   : > { %8004 = vtanh.f32 %v5920_v44  ;;  %6710 = vmatmul.f32.gmra.mxu2 %v13442_v16  ;;  %6922 = vmatmul.f32.gmra.mxu3 %v15774_v13 }
 0x74e   : > { %v6028_v33 = vmul.f32 %v8003_v4, %v5996_v18  ;;  %v14885_v63 = vand.u32 4294901760, %v13713_v37  ;;  %v15776_v4 = vld [vmem:[#allocation93_spill] sm:$0xff] }
 0x74f   : > { %v5347_v24 = vadd.f32 %v13463_v19, %v15776_v4 }
 0x750   : > { %v5762_v17 = vpop.f32.mrf.mxu2  ;;  %v5927_v49 = vpop.f32.mrf.mxu3  ;;  %v6321_v9 = vsub.f32 %v13713_v37, %v14885_v63  ;;  %v6060_v30 = vadd.f32 %v6028_v33, %v15775_v8  ;;  %v15777_v33 = vand.u32 4294901760, %v13482_v35 }
 0x751   : > { %v5763_v32 = vadd.f32 %v5762_v17, %v5564_v50  ;;  %v13724_v38 = vpop.f32.mrf.mxu0  ;;  %v13726_v16 = vpop.f32.mrf.mxu1 }
 0x752   : > { %v6322_v44 = vand.u32 4294901760, %v6321_v9  ;;  %v13728_v13 = vand.u32 4294901760, %v6060_v30  ;;  %v5570_v9 = vadd.f32 %v13444_v14, %v5347_v24  ;;  %v5352_v14 = vadd.f32 %v13488_v41, %v13149_v52 }
 0x753   : > { %v8005_v18 = vpop.eup %8004  ;;  %v5924_v27 = vadd.f32 %v5923_v12, %v5763_v32  ;;  %v15778_v32 = vld [vmem:[#allocation39_spill] sm:$0xff] }
 0x754   : > { %v5997_v3 = vmul.f32 %v8005_v18, %v8005_v18  ;;  %6323 = vmatmul.f32.gmra.mxu0 %v6322_v44  ;;  %6576 = vmatmul.f32.gmra.mxu1 %v13728_v13  ;;  %v13734_v63 = vsub.f32 %v6060_v30, %v13728_v13 }
 0x755   : > { %8006 = vtanh.f32 %v5924_v27  ;;  %6715 = vmatmul.f32.gmra.mxu2 %v13461_v21  ;;  %6928 = vmatmul.f32.gmra.mxu3 %v15777_v33 }
 0x756   : > { %v6029_v50 = vmul.f32 %v8005_v18, %v5997_v3  ;;  %v14886_v17 = vand.u32 4294901760, %v13734_v63 }
 0x758   : > { %v5766_v19 = vpop.f32.mrf.mxu2  ;;  %v5931_v12 = vpop.f32.mrf.mxu3  ;;  %v6329_v8 = vsub.f32 %v13734_v63, %v14886_v17  ;;  %v6061_v30 = vadd.f32 %v6029_v50, %v15778_v32  ;;  %v15779_v50 = vand.u32 4294901760, %v13503_v28  ;;  %v15780_v32 = vld [vmem:[#allocation30_spill] sm:$0xff] }
 0x759   : > { %v5767_v44 = vadd.f32 %v5766_v19, %v5570_v9  ;;  %v13745_v4 = vpop.f32.mrf.mxu0  ;;  %v13747_v21 = vpop.f32.mrf.mxu1 }
 0x75a   : > { %v6330_v27 = vand.u32 4294901760, %v6329_v8  ;;  %v13749_v33 = vand.u32 4294901760, %v6061_v30  ;;  %v5576_v8 = vadd.f32 %v13469_v25, %v5352_v14  ;;  %v5357_v25 = vadd.f32 %v13514_v53, %v13168_v47  ;;  %v13785_v47 = vld [vmem:[%s14346_s4] ss:$0 sm:$0xff] }
 0x75b   : > { %v8007_v3 = vpop.eup %8006  ;;  %v5928_v18 = vadd.f32 %v5927_v49, %v5767_v44 }
 0x75c   : > { %v5998_v24 = vmul.f32 %v8007_v3, %v8007_v3  ;;  %6331 = vmatmul.f32.gmra.mxu0 %v6330_v27  ;;  %6580 = vmatmul.f32.gmra.mxu1 %v13749_v33  ;;  %v13755_v17 = vsub.f32 %v6061_v30, %v13749_v33  ;;  %v5582_v53 = vadd.f32 %v13495_v56, %v5357_v25 }
 0x75d   : > { %8008 = vtanh.f32 %v5928_v18  ;;  %6720 = vmatmul.f32.gmra.mxu2 %v13482_v35  ;;  %6934 = vmatmul.f32.gmra.mxu3 %v15779_v50  ;;  %v6125_v56 = vadd.f32 %v13785_v47, %v13535_v40 }
 0x75e   : > { %v6030_v9 = vmul.f32 %v8007_v3, %v5998_v24  ;;  %v14887_v19 = vand.u32 4294901760, %v13755_v17 }
 0x760   : > { %v5770_v52 = vpop.f32.mrf.mxu2  ;;  %v5935_v41 = vpop.f32.mrf.mxu3  ;;  %v6337_v49 = vsub.f32 %v13755_v17, %v14887_v19  ;;  %v6062_v30 = vadd.f32 %v6030_v9, %v15780_v32  ;;  %v15782_v9 = vand.u32 4294901760, %v13524_v7 }
 0x761   : > { %v5771_v44 = vadd.f32 %v5770_v52, %v5576_v8  ;;  %v13766_v27 = vpop.f32.mrf.mxu0  ;;  %v13768_v35 = vpop.f32.mrf.mxu1 }
 0x762   : > { %v6338_v18 = vand.u32 4294901760, %v6337_v49  ;;  %v13770_v50 = vand.u32 4294901760, %v6062_v30 }
 0x763   : > { %v8009_v3 = vpop.eup %8008  ;;  %v5932_v14 = vadd.f32 %v5931_v12, %v5771_v44 }
 0x764   : > { %15781 = vst [vmem:[#allocation6_spill] sm:$0xff] %v13770_v50  ;;  %v5999_v24 = vmul.f32 %v8009_v3, %v8009_v3  ;;  %6339 = vmatmul.f32.gmra.mxu0 %v6338_v18  ;;  %6584 = vmatmul.f32.gmra.mxu1 %v13770_v50  ;;  %v13776_v19 = vsub.f32 %v6062_v30, %v13770_v50 }
 0x765   : > { %8010 = vtanh.f32 %v5932_v14  ;;  %6725 = vmatmul.f32.gmra.mxu2 %v13503_v28  ;;  %6940 = vmatmul.f32.gmra.mxu3 %v15782_v9  ;;  %v15783_v28 = vld [vmem:[#allocation81_spill] sm:$0xff] }
 0x766   : > { %v6031_v8 = vmul.f32 %v8009_v3, %v5999_v24  ;;  %v14890_v52 = vand.u32 4294901760, %v13776_v19 }
 0x768   : > { %v5774_v12 = vpop.f32.mrf.mxu2  ;;  %v6845_v49 = vpop.f32.mrf.mxu3  ;;  %v6345_v32 = vsub.f32 %v13776_v19, %v14890_v52  ;;  %v6063_v30 = vadd.f32 %v6031_v8, %v15783_v28  ;;  %v15785_v8 = vand.u32 4294901760, %v13545_v60 }
 0x769   : > { %v5775_v44 = vadd.f32 %v5774_v12, %v5582_v53  ;;  %v13792_v18 = vpop.f32.mrf.mxu0  ;;  %v13794_v3 = vpop.f32.mrf.mxu1 }
 0x76a   : > { %v6346_v14 = vand.u32 4294901760, %v6345_v32  ;;  %v13796_v24 = vand.u32 4294901760, %v6063_v30  ;;  %v6474_v32 = vadd.f32 %v13516_v5, %v6125_v56  ;;  %v6133_v5 = vadd.f32 %v13785_v47, %v13556_v61 }
 0x76b   : > { %v8011_v9 = vpop.eup %8010  ;;  %v5936_v25 = vadd.f32 %v5935_v41, %v5775_v44  ;;  %v15786_v44 = vld [vmem:[#allocation80_spill] sm:$0xff] }
 0x76c   : > { %15784 = vst [vmem:[#allocation2_spill] sm:$0xff] %v13796_v24  ;;  %v6000_v50 = vmul.f32 %v8011_v9, %v8011_v9  ;;  %6347 = vmatmul.f32.gmra.mxu0 %v6346_v14  ;;  %6588 = vmatmul.f32.gmra.mxu1 %v13796_v24  ;;  %v13802_v52 = vsub.f32 %v6063_v30, %v13796_v24 }
 0x76d   : > { %8012 = vtanh.f32 %v5936_v25  ;;  %6730 = vmatmul.f32.gmra.mxu2 %v13524_v7  ;;  %6946 = vmatmul.f32.gmra.mxu3 %v15785_v8 }
 0x76e   : > { %v6032_v53 = vmul.f32 %v8011_v9, %v6000_v50  ;;  %v14893_v12 = vand.u32 4294901760, %v13802_v52 }
 0x770   : > { %v6651_v40 = vpop.f32.mrf.mxu2  ;;  %v6851_v41 = vpop.f32.mrf.mxu3  ;;  %v6353_v28 = vsub.f32 %v13802_v52, %v14893_v12  ;;  %v6064_v30 = vadd.f32 %v6032_v53, %v15786_v44  ;;  %v6478_v44 = vadd.f32 %v13537_v0, %v6133_v5 }
 0x771   : > { %v6652_v14 = vadd.f32 %v6651_v40, %v6474_v32  ;;  %v13813_v25 = vpop.f32.mrf.mxu0  ;;  %v13815_v7 = vpop.f32.mrf.mxu1  ;;  %v15789_v32 = vand.u32 4294901760, %v13566_v2 }
 0x772   : > { %15787 = vst [vmem:[#allocation52_spill] sm:$0xff] %v13815_v7  ;;  %v6354_v24 = vand.u32 4294901760, %v6353_v28  ;;  %v13817_v8 = vand.u32 4294901760, %v6064_v30 }
 0x773   : > { %v8013_v50 = vpop.eup %8012  ;;  %v13821_v9 = vadd.f32 %v6845_v49, %v6652_v14  ;;  %v15790_v14 = vld [vmem:[#allocation82_spill] sm:$0xff] }
 0x774   : > { %15788 = vst [vmem:[#allocation53_spill] sm:$0xff] %v13817_v8  ;;  %v6001_v56 = vmul.f32 %v8013_v50, %v8013_v50  ;;  %6355 = vmatmul.f32.gmra.mxu0 %v6354_v24  ;;  %6592 = vmatmul.f32.gmra.mxu1 %v13817_v8  ;;  %v13825_v53 = vsub.f32 %v6064_v30, %v13817_v8 }
 0x775   : > { %6735 = vmatmul.f32.gmra.mxu2 %v13545_v60  ;;  %6952 = vmatmul.f32.gmra.mxu3 %v15789_v32 }
 0x776   : > { %v6033_v40 = vmul.f32 %v8013_v50, %v6001_v56  ;;  %v6360_v28 = vand.u32 4294901760, %v13825_v53  ;;  %v6141_v50 = vadd.f32 %v13785_v47, %v13577_v11  ;;  %v15791_v56 = vand.u32 4294901760, %v13587_v59 }
 0x778   : > { %v6656_v61 = vpop.f32.mrf.mxu2  ;;  %v6857_v49 = vpop.f32.mrf.mxu3  ;;  %v6361_v24 = vsub.f32 %v13825_v53, %v6360_v28  ;;  %v6065_v12 = vadd.f32 %v6033_v40, %v15790_v14 }
 0x779   : > { %v6657_v30 = vadd.f32 %v6656_v61, %v6478_v44  ;;  %v13836_v8 = vpop.f32.mrf.mxu0  ;;  %v13838_v60 = vpop.f32.mrf.mxu1  ;;  %v6482_v44 = vadd.f32 %v13558_v29, %v6141_v50  ;;  %v15792_v29 = vand.u32 4294901760, %v13608_v48 }
 0x77a   : > { %v6362_v7 = vand.u32 4294901760, %v6361_v24  ;;  %v13840_v32 = vand.u32 4294901760, %v6065_v12 }
 0x77b   : > { %v13844_v0 = vadd.f32 %v6851_v41, %v6657_v30 }
 0x77c   : > { %6363 = vmatmul.f32.gmra.mxu0 %v6362_v7  ;;  %6596 = vmatmul.f32.gmra.mxu1 %v13840_v32  ;;  %v13848_v5 = vsub.f32 %v6065_v12, %v13840_v32 }
 0x77d   : > { %6740 = vmatmul.f32.gmra.mxu2 %v13566_v2  ;;  %6958 = vmatmul.f32.gmra.mxu3 %v15791_v56  ;;  %v6149_v2 = vadd.f32 %v13785_v47, %v13598_v1  ;;  %v6157_v1 = vadd.f32 %v13785_v47, %v13619_v58  ;;  %v6165_v58 = vadd.f32 %v13785_v47, %v13640_v10 }
 0x77e   : > { %v6368_v40 = vand.u32 4294901760, %v13848_v5  ;;  %v6173_v10 = vadd.f32 %v13785_v47, %v13661_v31  ;;  %v6181_v31 = vadd.f32 %v13785_v47, %v13682_v46 }
 0x77f   : > { %v6486_v50 = vadd.f32 %v13579_v55, %v6149_v2  ;;  %v6490_v55 = vadd.f32 %v13600_v57, %v6157_v1  ;;  %v6494_v57 = vadd.f32 %v13621_v26, %v6165_v58 }
 0x780   : > { %v6661_v61 = vpop.f32.mrf.mxu2  ;;  %v6369_v11 = vsub.f32 %v13848_v5, %v6368_v40  ;;  %v6863_v12 = vpop.f32.mrf.mxu3  ;;  %v6498_v26 = vadd.f32 %v13642_v20, %v6173_v10  ;;  %v15798_v20 = vand.u32 4294901760, %v13692_v36 }
 0x781   : > { %v6662_v41 = vadd.f32 %v6661_v61, %v6482_v44  ;;  %v13858_v7 = vpop.f32.mrf.mxu0  ;;  %v13860_v24 = vpop.f32.mrf.mxu1 }
 0x782   : > { %v6370_v14 = vand.u32 4294901760, %v6369_v11 }
 0x783   : > { %v13864_v30 = vadd.f32 %v6857_v49, %v6662_v41 }
 0x784   : > { %6371 = vmatmul.f32.gmra.mxu0 %v6370_v14  ;;  %7260 = vmatmul.f32.vlgmr.msrb.gmra.mxu1 %v13215_v23 }
 0x785   : > { %6745 = vmatmul.f32.gmra.mxu2 %v13587_v59  ;;  %6964 = vmatmul.f32.gmra.mxu3 %v15792_v29  ;;  %v15793_v59 = vand.u32 4294901760, %v13629_v42 }
 0x788   : > { %v6666_v56 = vpop.f32.mrf.mxu2  ;;  %v6869_v41 = vpop.f32.mrf.mxu3 }
 0x789   : > { %v6667_v44 = vadd.f32 %v6666_v56, %v6486_v50  ;;  %v13871_v61 = vpop.f32.mrf.mxu0  ;;  %v13873_v11 = vpop.f32.mrf.mxu1 }
 0x78b   : > { %v13877_v49 = vadd.f32 %v6863_v12, %v6667_v44 }
 0x78c   : > { %7099 = vmatmul.f32.vlgmr.msrb.gmra.mxu0 %v13215_v23  ;;  %7264 = vmatmul.f32.gmra.mxu1 %v13232_v34  ;;  %v15794_v23 = vand.u32 4294901760, %v13650_v45 }
 0x78d   : > { %6750 = vmatmul.f32.gmra.mxu2 %v13608_v48  ;;  %6970 = vmatmul.f32.gmra.mxu3 %v15793_v59 }
 0x790   : > { %v6671_v14 = vpop.f32.mrf.mxu2  ;;  %v6875_v48 = vpop.f32.mrf.mxu3 }
 0x791   : > { %v6672_v2 = vadd.f32 %v6671_v14, %v6490_v55  ;;  %v13885_v29 = vpop.f32.mrf.mxu0  ;;  %v13887_v50 = vpop.f32.mrf.mxu1 }
 0x793   : > { %v13891_v12 = vadd.f32 %v6869_v41, %v6672_v2  ;;  %v15796_v41 = vand.u32 4294901760, %v13671_v15 }
 0x794   : > { %7103 = vmatmul.f32.gmra.mxu0 %v13232_v34  ;;  %7268 = vmatmul.f32.gmra.mxu1 %v13248_v22 }
 0x795   : > { %6755 = vmatmul.f32.gmra.mxu2 %v13629_v42  ;;  %6976 = vmatmul.f32.gmra.mxu3 %v15794_v23  ;;  %v15795_v42 = vld [vmem:[#allocation97_spill] sm:$0xff] }
 0x798   : > { %v6676_v56 = vpop.f32.mrf.mxu2  ;;  %v6881_v55 = vpop.f32.mrf.mxu3 }
 0x799   : > { %v6677_v44 = vadd.f32 %v6676_v56, %v6494_v57  ;;  %v13899_v1 = vpop.f32.mrf.mxu0  ;;  %v13901_v59 = vpop.f32.mrf.mxu1 }
 0x79b   : > { %v13905_v34 = vadd.f32 %v6875_v48, %v6677_v44  ;;  %v6502_v48 = vadd.f32 %v13663_v51, %v6181_v31 }
 0x79c   : > { %7107 = vmatmul.f32.gmra.mxu0 %v13248_v22  ;;  %7272 = vmatmul.f32.gmra.mxu1 %v15795_v42 }
 0x79d   : > { %6760 = vmatmul.f32.gmra.mxu2 %v13650_v45  ;;  %6982 = vmatmul.f32.gmra.mxu3 %v15796_v41  ;;  %v15797_v45 = vld [vmem:[#allocation23_spill] sm:$0xff] }
 0x7a0   : > { %v6681_v14 = vpop.f32.mrf.mxu2  ;;  %v6887_v46 = vpop.f32.mrf.mxu3 }
 0x7a1   : > { %v6682_v2 = vadd.f32 %v6681_v14, %v6498_v26  ;;  %v13913_v58 = vpop.f32.mrf.mxu0  ;;  %v13915_v23 = vpop.f32.mrf.mxu1  ;;  %v15802_v14 = vand.u32 4294901760, %v13734_v63 }
 0x7a3   : > { %v13919_v22 = vadd.f32 %v6881_v55, %v6682_v2  ;;  %v15801_v55 = vld [vmem:[#allocation66_spill] sm:$0xff] }
 0x7a4   : > { %7111 = vmatmul.f32.gmra.mxu0 %v15795_v42  ;;  %7276 = vmatmul.f32.gmra.mxu1 %v15797_v45  ;;  %v15799_v42 = vld [vmem:[#allocation95_spill] sm:$0xff] }
 0x7a5   : > { %6765 = vmatmul.f32.gmra.mxu2 %v13671_v15  ;;  %6988 = vmatmul.f32.gmra.mxu3 %v15798_v20  ;;  %v15800_v15 = vand.u32 4294901760, %v13713_v37 }
 0x7a8   : > { %v6686_v57 = vpop.f32.mrf.mxu2 }
 0x7a9   : > { %v6687_v56 = vadd.f32 %v6686_v57, %v6502_v48  ;;  %v13927_v44 = vpop.f32.mrf.mxu0  ;;  %v13929_v10 = vpop.f32.mrf.mxu1  ;;  %v15808_v57 = vand.u32 4294901760, %v13776_v19 }
 0x7ab   : > { %v13931_v41 = vadd.f32 %v6887_v46, %v6687_v56 }
 0x7ac   : > { %7115 = vmatmul.f32.gmra.mxu0 %v15797_v45  ;;  %7280 = vmatmul.f32.gmra.mxu1 %v15799_v42  ;;  %v15805_v45 = vand.u32 4294901760, %v13755_v17 }
 0x7ad   : > { %6770 = vmatmul.f32.gmra.mxu2 %v13692_v36  ;;  %6994 = vmatmul.f32.gmra.mxu3 %v15800_v15  ;;  %v15804_v36 = vld [vmem:[#allocation98_spill] sm:$0xff] }
 0x7b1   : > { %v13938_v26 = vpop.f32.mrf.mxu0  ;;  %v13940_v51 = vpop.f32.mrf.mxu1 }
 0x7b4   : > { %7119 = vmatmul.f32.gmra.mxu0 %v15799_v42  ;;  %7284 = vmatmul.f32.gmra.mxu1 %v15801_v55  ;;  %v15812_v42 = vand.u32 4294901760, %v13802_v52 }
 0x7b5   : > { %6775 = vmatmul.f32.gmra.mxu2 %v13713_v37  ;;  %7000 = vmatmul.f32.gmra.mxu3 %v15802_v14  ;;  %v15807_v37 = vld [vmem:[#allocation51_spill] sm:$0xff] }
 0x7b9   : > { %v13947_v2 = vpop.f32.mrf.mxu0  ;;  %v13949_v31 = vpop.f32.mrf.mxu1 }
 0x7ba   : > { %15803 = vst [vmem:[#allocation13_spill] sm:$0xff] %v13949_v31  ;;  %v8058_v31 = vld [vmem:[%s8227_s20 + $0x38] sm:$0xff] }
 0x7bc   : > { %7123 = vmatmul.f32.gmra.mxu0 %v15801_v55  ;;  %7288 = vmatmul.f32.gmra.mxu1 %v15804_v36 }
 0x7bd   : > { %6780 = vmatmul.f32.gmra.mxu2 %v13734_v63  ;;  %7006 = vmatmul.f32.gmra.mxu3 %v15805_v45  ;;  %v15811_v63 = vld [vmem:[#allocation38_spill] sm:$0xff] }
 0x7c1   : > { %v13956_v20 = vpop.f32.mrf.mxu0  ;;  %v13958_v48 = vpop.f32.mrf.mxu1 }
 0x7c2   : > { %15806 = vst [vmem:[#allocation92_spill] sm:$0xff] %v13958_v48  ;;  %v8056_v48 = vld [vmem:[%s8227_s20 + $0x28] sm:$0xff] }
 0x7c4   : > { %7127 = vmatmul.f32.gmra.mxu0 %v15804_v36  ;;  %7292 = vmatmul.f32.gmra.mxu1 %v15807_v37 }
 0x7c5   : > { %6785 = vmatmul.f32.gmra.mxu2 %v13755_v17  ;;  %7012 = vmatmul.f32.gmra.mxu3 %v15808_v57  ;;  %v15815_v17 = vld [vmem:[#allocation27_spill] sm:$0xff] }
 0x7c9   : > { %v13965_v56 = vpop.f32.mrf.mxu0  ;;  %v13967_v46 = vpop.f32.mrf.mxu1 }
 0x7ca   : > { %15809 = vst [vmem:[#allocation71_spill] sm:$0xff] %v13965_v56  ;;  %v8057_v56 = vld [vmem:[%s8227_s20 + $0x30] sm:$0xff] }
 0x7cb   : > { %15810 = vst [vmem:[#allocation76_spill] sm:$0xff] %v13967_v46  ;;  %v8053_v46 = vld [vmem:[%s8227_s20 + $0x10] sm:$0xff] }
 0x7cc   : > { %7131 = vmatmul.f32.gmra.mxu0 %v15807_v37  ;;  %7296 = vmatmul.f32.gmra.mxu1 %v15811_v63 }
 0x7cd   : > { %6790 = vmatmul.f32.gmra.mxu2 %v13776_v19  ;;  %7018 = vmatmul.f32.gmra.mxu3 %v15812_v42  ;;  %v15818_v19 = vld [vmem:[#allocation14_spill] sm:$0xff] }
 0x7d1   : > { %v13974_v15 = vpop.f32.mrf.mxu0  ;;  %v13976_v55 = vpop.f32.mrf.mxu1 }
 0x7d2   : > { %15813 = vst [vmem:[#allocation55_spill] sm:$0xff] %v13974_v15  ;;  %v8054_v15 = vld [vmem:[%s8227_s20 + $0x18] sm:$0xff] }
 0x7d3   : > { %15814 = vst [vmem:[#allocation65_spill] sm:$0xff] %v13976_v55  ;;  %v14047_v55 = vpop.f32.mrf.mxu3 }
 0x7d4   : > { %7135 = vmatmul.f32.gmra.mxu0 %v15811_v63  ;;  %7300 = vmatmul.f32.gmra.mxu1 %v15815_v17 }
 0x7d5   : > { %6795 = vmatmul.f32.gmra.mxu2 %v13802_v52  ;;  %7024 = vmatmul.f32.gmra.mxu3 %v6360_v28  ;;  %v15821_v52 = vld [vmem:[#allocation28_spill] sm:$0xff] }
 0x7d9   : > { %v13983_v14 = vpop.f32.mrf.mxu0  ;;  %v13985_v36 = vpop.f32.mrf.mxu1 }
 0x7da   : > { %15816 = vst [vmem:[#allocation57_spill] sm:$0xff] %v13983_v14 }
 0x7db   : > { %15817 = vst [vmem:[#allocation74_spill] sm:$0xff] %v13985_v36 }
 0x7dc   : > { %7139 = vmatmul.f32.gmra.mxu0 %v15815_v17  ;;  %7304 = vmatmul.f32.gmra.mxu1 %v15818_v19  ;;  %v7388_v17 = vlaneseq }
 0x7dd   : > { %6800 = vmatmul.f32.gmra.mxu2 %v13825_v53  ;;  %7030 = vmatmul.f32.gmra.mxu3 %v6368_v40  ;;  %v15824_v53 = vld [vmem:[#allocation43_spill] sm:$0xff] }
 0x7e1   : > { %v13992_v45 = vpop.f32.mrf.mxu0  ;;  %v13994_v37 = vpop.f32.mrf.mxu1 }
 0x7e2   : > { %15819 = vst [vmem:[#allocation21_spill] sm:$0xff] %v13992_v45 }
 0x7e3   : > { %15820 = vst [vmem:[#allocation35_spill] sm:$0xff] %v13994_v37 }
 0x7e4   : > { %7143 = vmatmul.f32.gmra.mxu0 %v15818_v19  ;;  %7308 = vmatmul.f32.gmra.mxu1 %v15821_v52  ;;  %v7389_v19 = vand.u32 127, %v7388_v17 }
 0x7e5   : > { %6805 = vmatmul.f32.gmra.mxu2 %v13848_v5 }
 0x7e9   : > { %v13999_v28 = vpop.f32.mrf.mxu0  ;;  %v14001_v57 = vpop.f32.mrf.mxu1 }
 0x7ea   : > { %15822 = vst [vmem:[#allocation42_spill] sm:$0xff] %v13999_v28 }
 0x7eb   : > { %15823 = vst [vmem:[#allocation46_spill] sm:$0xff] %v14001_v57 }
 0x7ec   : > { %7147 = vmatmul.f32.gmra.mxu0 %v15821_v52  ;;  %7312 = vmatmul.f32.gmra.mxu1 %v15824_v53 }
 0x7f1   : > { %v14005_v63 = vpop.f32.mrf.mxu0  ;;  %v14007_v40 = vpop.f32.mrf.mxu1 }
 0x7f2   : > { %15825 = vst [vmem:[#allocation69_spill] sm:$0xff] %v14005_v63  ;;  %v8051_v63 = vld [vmem:[%s8227_s20] sm:$0xff] }
 0x7f3   : > { %15826 = vst [vmem:[#allocation49_spill] sm:$0xff] %v14007_v40  ;;  %v7394_v40 = vand.u32 31, %v7389_v19 }
 0x7f4   : > { %7151 = vmatmul.f32.gmra.mxu0 %v15824_v53  ;;  %7316 = vmatmul.f32.gmra.mxu1 %v13476_v62  ;;  %v15830_v53 = vld [vmem:[#allocation56_spill] sm:$0xff] }
 0x7f5   : > { %vm14021_vm0 = vcmp.eq.s32.totalorder %v7394_v40, 0 }
 0x7f9   : > { %v14011_v42 = vpop.f32.mrf.mxu0  ;;  %v14013_v5 = vpop.f32.mrf.mxu1 }
 0x7fa   : > { %15827 = vst [vmem:[#allocation44_spill] sm:$0xff] %v14011_v42 }
 0x7fb   : > { %15828 = vst [vmem:[#allocation24_spill] sm:$0xff] %v14013_v5 }
 0x7fc   : > { %7155 = vmatmul.f32.gmra.mxu0 %v13476_v62  ;;  %7320 = vmatmul.f32.gmra.mxu1 %v13497_v54  ;;  %v7403_v62 = vsel %vm14021_vm0, %v8051_v63, 0.0  ;;  %v8052_v63 = vld [vmem:[%s8227_s20 + $0x8] sm:$0xff] }
 0x7fd   : > { %v7467_v28 = vsub.f32 1.0, %v7403_v62 }
 0x801   : > { %v14017_v52 = vpop.f32.mrf.mxu0  ;;  %v7261_v57 = vpop.f32.mrf.mxu1 }
 0x802   : > { %15829 = vst [vmem:[#allocation41_spill] sm:$0xff] %v14017_v52 }
 0x804   : > { %7159 = vmatmul.f32.gmra.mxu0 %v13497_v54  ;;  %7324 = vmatmul.f32.gmra.mxu1 %v15830_v53  ;;  %v15833_v54 = vld [vmem:[#allocation45_spill] sm:$0xff] }
 0x809   : > { %v7100_v5 = vpop.f32.mrf.mxu0  ;;  %v7265_v17 = vpop.f32.mrf.mxu1 }
 0x80a   : > { %v7101_v52 = vadd.f32 %v7100_v5, %v13821_v9  ;;  %v7404_v9 = vsel %vm14021_vm0, %v8052_v63, 0.0  ;;  %v14041_v5 = vpop.f32.mrf.mxu2 }
 0x80c   : > { %v7262_v37 = vadd.f32 %v7261_v57, %v7101_v52  ;;  %7163 = vmatmul.f32.gmra.mxu0 %v15830_v53  ;;  %7328 = vmatmul.f32.gmra.mxu1 %v15833_v54  ;;  %v7468_v53 = vsub.f32 1.0, %v7404_v9 }
 0x80e   : > { %v7435_v19 = vmul.f32 %v7403_v62, %v7262_v37 }
 0x810   : > { %v7499_v36 = vmul.f32 %v7467_v28, %v7435_v19  ;;  %v15834_v19 = vld [vmem:[#allocation72_spill] sm:$0xff] }
 0x811   : > { %v7104_v40 = vpop.f32.mrf.mxu0  ;;  %v7269_v57 = vpop.f32.mrf.mxu1 }
 0x812   : > { %v7531_v52 = vadd.f32 %v7499_v36, %v7403_v62  ;;  %v7105_v37 = vadd.f32 %v7104_v40, %v13844_v0  ;;  %v7405_v36 = vsel %vm14021_vm0, %v8053_v46, 0.0  ;;  %v7406_v46 = vsel %vm14021_vm0, %v8054_v15, 0.0  ;;  %v8055_v15 = vld [vmem:[%s8227_s20 + $0x20] sm:$0xff] }
 0x814   : > { %7563 = vst [vmem:[%s14036_s12] sm:$0xff] %v7531_v52  ;;  %v7266_v28 = vadd.f32 %v7265_v17, %v7105_v37  ;;  %7167 = vmatmul.f32.gmra.mxu0 %v15833_v54  ;;  %7332 = vmatmul.f32.gmra.mxu1 %v15834_v19  ;;  %v14053_v17 = vpop.f32.mrf.mxu2  ;;  %v7469_v52 = vsub.f32 1.0, %v7405_v36  ;;  %v15835_v37 = vld [vmem:[#allocation75_spill] sm:$0xff] }
 0x816   : > { %v7436_v45 = vmul.f32 %v7404_v9, %v7266_v28 }
 0x818   : > { %v7500_v14 = vmul.f32 %v7468_v53, %v7436_v45 }
 0x819   : > { %v7108_v63 = vpop.f32.mrf.mxu0  ;;  %v7273_v62 = vpop.f32.mrf.mxu1 }
 0x81a   : > { %v7532_v0 = vadd.f32 %v7500_v14, %v7404_v9  ;;  %v7109_v40 = vadd.f32 %v7108_v63, %v13864_v30  ;;  %v14061_v30 = vpop.f32.mrf.mxu3 }
 0x81c   : > { %7564 = vst [vmem:[%s14036_s12 + $0x8] sm:$0xff] %v7532_v0  ;;  %v7270_v54 = vadd.f32 %v7269_v57, %v7109_v40  ;;  %7171 = vmatmul.f32.gmra.mxu0 %v15834_v19  ;;  %7336 = vmatmul.f32.gmra.mxu1 %v15835_v37  ;;  %v7470_v19 = vsub.f32 1.0, %v7406_v46  ;;  %v15836_v0 = vld [vmem:[#allocation15_spill] sm:$0xff]  ;;  %v14067_v40 = vpop.f32.mrf.mxu2 }
 0x81e   : > { %v7437_v45 = vmul.f32 %v7405_v36, %v7270_v54 }
 0x820   : > { %v7501_v28 = vmul.f32 %v7469_v52, %v7437_v45 }
 0x821   : > { %v7112_v53 = vpop.f32.mrf.mxu0  ;;  %v7277_v14 = vpop.f32.mrf.mxu1 }
 0x822   : > { %v7533_v9 = vadd.f32 %v7501_v28, %v7405_v36  ;;  %v7113_v63 = vadd.f32 %v7112_v53, %v13877_v49  ;;  %v7407_v36 = vsel %vm14021_vm0, %v8055_v15, 0.0 }
 0x824   : > { %7565 = vst [vmem:[%s14036_s12 + $0x10] sm:$0xff] %v7533_v9  ;;  %v7274_v57 = vadd.f32 %v7273_v62, %v7113_v63  ;;  %7175 = vmatmul.f32.gmra.mxu0 %v15835_v37  ;;  %7340 = vmatmul.f32.gmra.mxu1 %v15836_v0  ;;  %v14073_v62 = vpop.f32.mrf.mxu3  ;;  %v7471_v9 = vsub.f32 1.0, %v7407_v36  ;;  %v15837_v63 = vld [vmem:[#allocation33_spill] sm:$0xff] }
 0x826   : > { %v7438_v54 = vmul.f32 %v7406_v46, %v7274_v57 }
 0x828   : > { %v7502_v52 = vmul.f32 %v7470_v19, %v7438_v54  ;;  %v14078_v19 = vpop.f32.mrf.mxu2 }
 0x829   : > { %v7116_v45 = vpop.f32.mrf.mxu0  ;;  %v7281_v28 = vpop.f32.mrf.mxu1 }
 0x82a   : > { %v7534_v49 = vadd.f32 %v7502_v52, %v7406_v46  ;;  %v7117_v53 = vadd.f32 %v7116_v45, %v13891_v12  ;;  %v7408_v12 = vsel %vm14021_vm0, %v8056_v48, 0.0  ;;  %v7409_v48 = vsel %vm14021_vm0, %v8057_v56, 0.0 }
 0x82c   : > { %7566 = vst [vmem:[%s14036_s12 + $0x18] sm:$0xff] %v7534_v49  ;;  %v7278_v37 = vadd.f32 %v7277_v14, %v7117_v53  ;;  %7179 = vmatmul.f32.gmra.mxu0 %v15836_v0  ;;  %7344 = vmatmul.f32.gmra.mxu1 %v15837_v63  ;;  %v7472_v0 = vsub.f32 1.0, %v7408_v12  ;;  %v15838_v49 = vld [vmem:[#allocation29_spill] sm:$0xff]  ;;  %v14087_v53 = vpop.f32.mrf.mxu3 }
 0x82e   : > { %v7439_v57 = vmul.f32 %v7407_v36, %v7278_v37 }
 0x830   : > { %v7503_v54 = vmul.f32 %v7471_v9, %v7439_v57 }
 0x831   : > { %v7120_v15 = vpop.f32.mrf.mxu0  ;;  %v7285_v46 = vpop.f32.mrf.mxu1 }
 0x832   : > { %v7535_v52 = vadd.f32 %v7503_v54, %v7407_v36  ;;  %v7121_v45 = vadd.f32 %v7120_v15, %v13905_v34  ;;  %v14092_v34 = vpop.f32.mrf.mxu2  ;;  %v7473_v15 = vsub.f32 1.0, %v7409_v48 }
 0x834   : > { %7567 = vst [vmem:[%s14036_s12 + $0x20] sm:$0xff] %v7535_v52  ;;  %v7282_v14 = vadd.f32 %v7281_v28, %v7121_v45  ;;  %7183 = vmatmul.f32.gmra.mxu0 %v15837_v63  ;;  %7348 = vmatmul.f32.gmra.mxu1 %v15838_v49  ;;  %v15839_v52 = vld [vmem:[#allocation58_spill] sm:$0xff]  ;;  %v6189_v45 = vadd.f32 %v13785_v47, %v13703_v43 }
 0x836   : > { %v7440_v37 = vmul.f32 %v7408_v12, %v7282_v14 }
 0x838   : > { %v7504_v9 = vmul.f32 %v7472_v0, %v7440_v37  ;;  %v14100_v0 = vpop.f32.mrf.mxu3 }
 0x839   : > { %v7124_v57 = vpop.f32.mrf.mxu0  ;;  %v7289_v36 = vpop.f32.mrf.mxu1 }
 0x83a   : > { %v7536_v54 = vadd.f32 %v7504_v9, %v7408_v12  ;;  %v7125_v28 = vadd.f32 %v7124_v57, %v13919_v22  ;;  %v7410_v22 = vsel %vm14021_vm0, %v8058_v31, 0.0  ;;  %v6197_v31 = vadd.f32 %v13785_v47, %v13724_v38 }
 0x83c   : > { %7568 = vst [vmem:[%s14036_s12 + $0x28] sm:$0xff] %v7536_v54  ;;  %v7286_v63 = vadd.f32 %v7285_v46, %v7125_v28  ;;  %7187 = vmatmul.f32.gmra.mxu0 %v15838_v49  ;;  %7352 = vmatmul.f32.gmra.mxu1 %v15839_v52  ;;  %v6506_v46 = vadd.f32 %v13684_v39, %v6189_v45  ;;  %v14108_v54 = vpop.f32.mrf.mxu2  ;;  %v7474_v28 = vsub.f32 1.0, %v7410_v22  ;;  %v8059_v45 = vld [vmem:[%s8227_s20 + $0x40] sm:$0xff] }
 0x83e   : > { %v7441_v14 = vmul.f32 %v7409_v48, %v7286_v63  ;;  %v6692_v57 = vadd.f32 %v14041_v5, %v6506_v46  ;;  %v15840_v63 = vld [vmem:[#allocation59_spill] sm:$0xff]  ;;  %v7411_v5 = vsel %vm14021_vm0, %v8059_v45, 0.0 }
 0x840   : > { %v7505_v56 = vmul.f32 %v7473_v15, %v7441_v14 }
 0x841   : > { %v7128_v37 = vpop.f32.mrf.mxu0  ;;  %v7293_v12 = vpop.f32.mrf.mxu1 }
 0x842   : > { %v7537_v9 = vadd.f32 %v7505_v56, %v7409_v48  ;;  %v7129_v49 = vadd.f32 %v7128_v37, %v13931_v41  ;;  %v6894_v48 = vadd.f32 %v14047_v55, %v6692_v57  ;;  %v14120_v56 = vpop.f32.mrf.mxu3  ;;  %v15841_v55 = vld [vmem:[#allocation26_spill] sm:$0xff] }
 0x844   : > { %7569 = vst [vmem:[%s14036_s12 + $0x30] sm:$0xff] %v7537_v9  ;;  %v7290_v43 = vadd.f32 %v7289_v36, %v7129_v49  ;;  %7191 = vmatmul.f32.gmra.mxu0 %v15839_v52  ;;  %7356 = vmatmul.f32.gmra.mxu1 %v15840_v63  ;;  %v6510_v36 = vadd.f32 %v13705_v6, %v6197_v31  ;;  %v7475_v9 = vsub.f32 1.0, %v7411_v5  ;;  %v14128_v57 = vpop.f32.mrf.mxu2  ;;  %v8060_v31 = vld [vmem:[%s8227_s20 + $0x48] sm:$0xff] }
 0x845   : > { %v6205_v49 = vadd.f32 %v13785_v47, %v13745_v4 }
 0x846   : > { %v7442_v15 = vmul.f32 %v7410_v22, %v7290_v43  ;;  %v6697_v46 = vadd.f32 %v14053_v17, %v6510_v36  ;;  %v7412_v17 = vsel %vm14021_vm0, %v8060_v31, 0.0 }
 0x847   : > { %v7476_v45 = vsub.f32 1.0, %v7412_v17 }
 0x848   : > { %v7506_v39 = vmul.f32 %v7474_v28, %v7442_v15 }
 0x849   : > { %v7132_v41 = vpop.f32.mrf.mxu0  ;;  %v7297_v14 = vpop.f32.mrf.mxu1 }
 0x84a   : > { %v7538_v52 = vadd.f32 %v7506_v39, %v7410_v22  ;;  %v7133_v37 = vadd.f32 %v7132_v41, %v6894_v48  ;;  %v6900_v22 = vadd.f32 %v14061_v30, %v6697_v46  ;;  %v14136_v4 = vpop.f32.mrf.mxu3  ;;  %v6213_v30 = vadd.f32 %v13785_v47, %v13766_v27 }
 0x84c   : > { %7570 = vst [vmem:[%s14036_s12 + $0x38] sm:$0xff] %v7538_v52  ;;  %v7294_v38 = vadd.f32 %v7293_v12, %v7133_v37  ;;  %7195 = vmatmul.f32.gmra.mxu0 %v15840_v63  ;;  %7360 = vmatmul.f32.gmra.mxu1 %v15841_v55  ;;  %v6514_v63 = vadd.f32 %v13726_v16, %v6205_v49  ;;  %v14143_v16 = vpop.f32.mrf.mxu2  ;;  %v8061_v37 = vld [vmem:[%s8227_s20 + $0x50] sm:$0xff] }
 0x84e   : > { %v7443_v6 = vmul.f32 %v7411_v5, %v7294_v38  ;;  %v6702_v48 = vadd.f32 %v14067_v40, %v6514_v63  ;;  %v6518_v38 = vadd.f32 %v13747_v21, %v6213_v30 }
 0x850   : > { %v7507_v43 = vmul.f32 %v7475_v9, %v7443_v6  ;;  %v6906_v52 = vadd.f32 %v14073_v62, %v6702_v48  ;;  %v6707_v49 = vadd.f32 %v14078_v19, %v6518_v38  ;;  %v6221_v62 = vadd.f32 %v13785_v47, %v13792_v18 }
 0x851   : > { %v7136_v28 = vpop.f32.mrf.mxu0  ;;  %v7301_v12 = vpop.f32.mrf.mxu1 }
 0x852   : > { %v7539_v15 = vadd.f32 %v7507_v43, %v7411_v5  ;;  %v7137_v39 = vadd.f32 %v7136_v28, %v6900_v22  ;;  %v14156_v43 = vpop.f32.mrf.mxu3  ;;  %v6912_v21 = vadd.f32 %v14087_v53, %v6707_v49  ;;  %v15842_v53 = vld [vmem:[#allocation6_spill] sm:$0xff]  ;;  %v6237_v49 = vadd.f32 %v13785_v47, %v13836_v8 }
 0x854   : > { %7571 = vst [vmem:[%s14036_s12 + $0x40] sm:$0xff] %v7539_v15  ;;  %v7298_v41 = vadd.f32 %v7297_v14, %v7137_v39  ;;  %7199 = vmatmul.f32.gmra.mxu0 %v15841_v55  ;;  %7364 = vmatmul.f32.gmra.mxu1 %v13728_v13  ;;  %v7413_v14 = vsel %vm14021_vm0, %v8061_v37, 0.0  ;;  %v14163_v63 = vpop.f32.mrf.mxu2 }
 0x855   : > { %v7477_v6 = vsub.f32 1.0, %v7413_v14 }
 0x856   : > { %v7444_v36 = vmul.f32 %v7412_v17, %v7298_v41 }
 0x858   : > { %v7508_v5 = vmul.f32 %v7476_v45, %v7444_v36  ;;  %v6229_v45 = vadd.f32 %v13785_v47, %v13813_v25 }
 0x859   : > { %v7140_v40 = vpop.f32.mrf.mxu0  ;;  %v7305_v46 = vpop.f32.mrf.mxu1 }
 0x85a   : > { %v7540_v9 = vadd.f32 %v7508_v5, %v7412_v17  ;;  %v7141_v55 = vadd.f32 %v7140_v40, %v6906_v52  ;;  %v8062_v17 = vld [vmem:[%s8227_s20 + $0x58] sm:$0xff]  ;;  %v8063_v40 = vld [vmem:[%s8227_s20 + $0x60] sm:$0xff] }
 0x85b   : > { %v7414_v19 = vsel %vm14021_vm0, %v8062_v17, 0.0 }
 0x85c   : > { %7572 = vst [vmem:[%s14036_s12 + $0x48] sm:$0xff] %v7540_v9  ;;  %v7302_v27 = vadd.f32 %v7301_v12, %v7141_v55  ;;  %7203 = vmatmul.f32.gmra.mxu0 %v13728_v13  ;;  %7368 = vmatmul.f32.gmra.mxu1 %v13749_v33  ;;  %v6522_v13 = vadd.f32 %v13768_v35, %v6221_v62  ;;  %v7478_v41 = vsub.f32 1.0, %v7414_v19  ;;  %v14171_v35 = vpop.f32.mrf.mxu3  ;;  %v14179_v25 = vpop.f32.mrf.mxu2 }
 0x85e   : > { %v7445_v22 = vmul.f32 %v7413_v14, %v7302_v27  ;;  %v6712_v18 = vadd.f32 %v14092_v34, %v6522_v13  ;;  %v7415_v34 = vsel %vm14021_vm0, %v8063_v40, 0.0 }
 0x85f   : > { %v7479_v55 = vsub.f32 1.0, %v7415_v34 }
 0x860   : > { %v7509_v28 = vmul.f32 %v7477_v6, %v7445_v22  ;;  %v6918_v5 = vadd.f32 %v14100_v0, %v6712_v18  ;;  %v15843_v0 = vld [vmem:[#allocation2_spill] sm:$0xff]  ;;  %v8064_v22 = vld [vmem:[%s8227_s20 + $0x68] sm:$0xff] }
 0x861   : > { %v7144_v31 = vpop.f32.mrf.mxu0  ;;  %v7309_v12 = vpop.f32.mrf.mxu1 }
 0x862   : > { %v7541_v15 = vadd.f32 %v7509_v28, %v7413_v14  ;;  %v7145_v39 = vadd.f32 %v7144_v31, %v6912_v21  ;;  %v15844_v21 = vld [vmem:[#allocation52_spill] sm:$0xff] }
 0x863   : > { %v6530_v31 = vadd.f32 %v15844_v21, %v6237_v49 }
 0x864   : > { %7573 = vst [vmem:[%s14036_s12 + $0x50] sm:$0xff] %v7541_v15  ;;  %v7306_v48 = vadd.f32 %v7305_v46, %v7145_v39  ;;  %7207 = vmatmul.f32.gmra.mxu0 %v13749_v33  ;;  %7372 = vmatmul.f32.gmra.mxu1 %v15842_v53  ;;  %v6526_v33 = vadd.f32 %v13794_v3, %v6229_v45  ;;  %v14191_v17 = vpop.f32.mrf.mxu3  ;;  %v14199_v18 = vpop.f32.mrf.mxu2 }
 0x865   : > { %v6722_v13 = vadd.f32 %v14128_v57, %v6530_v31  ;;  %v6245_v39 = vadd.f32 %v13785_v47, %v13858_v7 }
 0x866   : > { %v7446_v30 = vmul.f32 %v7414_v19, %v7306_v48  ;;  %v6717_v38 = vadd.f32 %v14108_v54, %v6526_v33  ;;  %v7416_v54 = vsel %vm14021_vm0, %v8064_v22, 0.0 }
 0x867   : > { %v7480_v15 = vsub.f32 1.0, %v7416_v54 }
 0x868   : > { %v7510_v36 = vmul.f32 %v7478_v41, %v7446_v30  ;;  %v6924_v3 = vadd.f32 %v14120_v56, %v6717_v38  ;;  %v15845_v56 = vld [vmem:[#allocation53_spill] sm:$0xff]  ;;  %v8065_v30 = vld [vmem:[%s8227_s20 + $0x70] sm:$0xff] }
 0x869   : > { %v7148_v52 = vpop.f32.mrf.mxu0  ;;  %v7313_v37 = vpop.f32.mrf.mxu1  ;;  %v7417_v57 = vsel %vm14021_vm0, %v8065_v30, 0.0  ;;  %v8068_v30 = vld [vmem:[%s8227_s20 + $0x88] sm:$0xff] }
 0x86a   : > { %v7542_v14 = vadd.f32 %v7510_v36, %v7414_v19  ;;  %v7149_v46 = vadd.f32 %v7148_v52, %v6918_v5  ;;  %v6534_v5 = vadd.f32 %v13838_v60, %v6245_v39  ;;  %v7481_v33 = vsub.f32 1.0, %v7417_v57 }
 0x86c   : > { %7574 = vst [vmem:[%s14036_s12 + $0x58] sm:$0xff] %v7542_v14  ;;  %v7310_v9 = vadd.f32 %v7309_v12, %v7149_v46  ;;  %7211 = vmatmul.f32.gmra.mxu0 %v15842_v53  ;;  %7376 = vmatmul.f32.gmra.mxu1 %v15843_v0  ;;  %v6930_v53 = vadd.f32 %v14136_v4, %v6722_v13  ;;  %v6953_v7 = vpop.f32.mrf.mxu3  ;;  %v6746_v46 = vpop.f32.mrf.mxu2 }
 0x86d   : > { %v6253_v4 = vadd.f32 %v13785_v47, %v13871_v61 }
 0x86e   : > { %v7447_v27 = vmul.f32 %v7415_v34, %v7310_v9 }
 0x86f   : > { %v6538_v49 = vadd.f32 %v13860_v24, %v6253_v4  ;;  %v8067_v24 = vld [vmem:[%s8227_s20 + $0x80] sm:$0xff] }
 0x870   : > { %v7511_v6 = vmul.f32 %v7479_v55, %v7447_v27  ;;  %v8066_v55 = vld [vmem:[%s8227_s20 + $0x78] sm:$0xff] }
 0x871   : > { %v7152_v62 = vpop.f32.mrf.mxu0  ;;  %v7317_v28 = vpop.f32.mrf.mxu1 }
 0x872   : > { %v7543_v19 = vadd.f32 %v7511_v6, %v7415_v34  ;;  %v7153_v12 = vadd.f32 %v7152_v62, %v6924_v3  ;;  %v6727_v34 = vadd.f32 %v14143_v16, %v6534_v5  ;;  %v7418_v16 = vsel %vm14021_vm0, %v8066_v55, 0.0 }
 0x873   : > { %v6732_v3 = vadd.f32 %v14163_v63, %v6538_v49  ;;  %v7482_v62 = vsub.f32 1.0, %v7418_v16 }
 0x874   : > { %7575 = vst [vmem:[%s14036_s12 + $0x60] sm:$0xff] %v7543_v19  ;;  %v7314_v8 = vadd.f32 %v7313_v37, %v7153_v12  ;;  %7215 = vmatmul.f32.gmra.mxu0 %v15843_v0  ;;  %7380 = vmatmul.f32.gmra.mxu1 %v15845_v56  ;;  %v6936_v38 = vadd.f32 %v14156_v43, %v6727_v34  ;;  %v6959_v22 = vpop.f32.mrf.mxu3  ;;  %v7419_v19 = vsel %vm14021_vm0, %v8067_v24, 0.0  ;;  %v6751_v13 = vpop.f32.mrf.mxu2 }
 0x875   : > { %v6261_v43 = vadd.f32 %v13785_v47, %v13885_v29  ;;  %v6942_v21 = vadd.f32 %v14171_v35, %v6732_v3  ;;  %v6269_v35 = vadd.f32 %v13785_v47, %v13899_v1 }
 0x876   : > { %v7448_v48 = vmul.f32 %v7416_v54, %v7314_v8 }
 0x877   : > { %v6542_v12 = vadd.f32 %v13873_v11, %v6261_v43  ;;  %v7420_v11 = vsel %vm14021_vm0, %v8068_v30, 0.0  ;;  %v8070_v43 = vld [vmem:[%s8227_s20 + $0x98] sm:$0xff] }
 0x878   : > { %v7512_v41 = vmul.f32 %v7480_v15, %v7448_v48  ;;  %v7484_v34 = vsub.f32 1.0, %v7420_v11 }
 0x879   : > { %v7156_v45 = vpop.f32.mrf.mxu0  ;;  %v7321_v36 = vpop.f32.mrf.mxu1  ;;  %v6737_v15 = vadd.f32 %v14179_v25, %v6542_v12  ;;  %v6546_v25 = vadd.f32 %v13887_v50, %v6269_v35 }
 0x87a   : > { %v7544_v52 = vadd.f32 %v7512_v41, %v7416_v54  ;;  %v7157_v40 = vadd.f32 %v7156_v45, %v6930_v53 }
 0x87b   : > { %v6948_v53 = vadd.f32 %v14191_v17, %v6737_v15  ;;  %v6277_v17 = vadd.f32 %v13785_v47, %v13913_v58 }
 0x87c   : > { %7576 = vst [vmem:[%s14036_s12 + $0x68] sm:$0xff] %v7544_v52  ;;  %v7318_v37 = vadd.f32 %v7317_v28, %v7157_v40  ;;  %7219 = vmatmul.f32.gmra.mxu0 %v15845_v56  ;;  %7384 = vmatmul.f32.gmra.mxu1 %v13840_v32  ;;  %v7483_v56 = vsub.f32 1.0, %v7419_v19  ;;  %v6965_v48 = vpop.f32.mrf.mxu3  ;;  %v6742_v52 = vadd.f32 %v14199_v18, %v6546_v25  ;;  %v6756_v40 = vpop.f32.mrf.mxu2  ;;  %v8073_v25 = vld [vmem:[%s8227_s20 + $0xa8] sm:$0xff] }
 0x87d   : > { %v6550_v18 = vadd.f32 %v13901_v59, %v6277_v17  ;;  %v7422_v59 = vsel %vm14021_vm0, %v8070_v43, 0.0 }
 0x87e   : > { %v7449_v14 = vmul.f32 %v7417_v57, %v7318_v37  ;;  %v6954_v4 = vadd.f32 %v6953_v7, %v6742_v52  ;;  %v6285_v7 = vadd.f32 %v13785_v47, %v13927_v44 }
 0x880   : > { %v7513_v60 = vmul.f32 %v7481_v33, %v7449_v14 }
 0x881   : > { %v7160_v9 = vpop.f32.mrf.mxu0  ;;  %v7325_v0 = vpop.f32.mrf.mxu1 }
 0x882   : > { %v7545_v27 = vadd.f32 %v7513_v60, %v7417_v57  ;;  %v7161_v6 = vadd.f32 %v7160_v9, %v6936_v38  ;;  %v8069_v60 = vld [vmem:[%s8227_s20 + $0x90] sm:$0xff] }
 0x883   : > { %v7421_v50 = vsel %vm14021_vm0, %v8069_v60, 0.0 }
 0x884   : > { %7577 = vst [vmem:[%s14036_s12 + $0x70] sm:$0xff] %v7545_v27  ;;  %v7322_v61 = vadd.f32 %v7321_v36, %v7161_v6  ;;  %7223 = vmatmul.f32.gmra.mxu0 %v13840_v32  ;;  %v6971_v9 = vpop.f32.mrf.mxu3  ;;  %v7485_v58 = vsub.f32 1.0, %v7421_v50  ;;  %v6761_v27 = vpop.f32.mrf.mxu2 }
 0x886   : > { %v7450_v54 = vmul.f32 %v7418_v16, %v7322_v61 }
 0x888   : > { %v7514_v28 = vmul.f32 %v7482_v62, %v7450_v54 }
 0x889   : > { %v7164_v31 = vpop.f32.mrf.mxu0  ;;  %v7329_v63 = vpop.f32.mrf.mxu1 }
 0x88a   : > { %v7546_v8 = vadd.f32 %v7514_v28, %v7418_v16  ;;  %v7165_v32 = vadd.f32 %v7164_v31, %v6942_v21 }
 0x88c   : > { %7578 = vst [vmem:[%s14036_s12 + $0x78] sm:$0xff] %v7546_v8  ;;  %v7326_v29 = vadd.f32 %v7325_v0, %v7165_v32  ;;  %v6747_v0 = vadd.f32 %v6746_v46, %v6550_v18  ;;  %v6554_v46 = vadd.f32 %v13915_v23, %v6285_v7  ;;  %v6977_v24 = vpop.f32.mrf.mxu3  ;;  %v6766_v12 = vpop.f32.mrf.mxu2  ;;  %v8074_v18 = vld [vmem:[%s8227_s20 + $0xb0] sm:$0xff] }
 0x88e   : > { %v7451_v39 = vmul.f32 %v7419_v19, %v7326_v29  ;;  %v6960_v61 = vadd.f32 %v6959_v22, %v6747_v0  ;;  %v6752_v31 = vadd.f32 %v6751_v13, %v6554_v46  ;;  %v6293_v22 = vadd.f32 %v13785_v47, %v13938_v26  ;;  %v8071_v29 = vld [vmem:[%s8227_s20 + $0xa0] sm:$0xff] }
 0x88f   : > { %v7423_v23 = vsel %vm14021_vm0, %v8071_v29, 0.0  ;;  %v14262_v47 = vld [vmem:[%s14346_s4] ss:$0 sm:$0xff] }
 0x890   : > { %v7515_v41 = vmul.f32 %v7483_v56, %v7451_v39  ;;  %v6966_v32 = vadd.f32 %v6965_v48, %v6752_v31  ;;  %v6558_v13 = vadd.f32 %v13929_v10, %v6293_v22  ;;  %v6301_v26 = vadd.f32 %v14262_v47, %v13947_v2 }
 0x891   : > { %v7168_v45 = vpop.f32.mrf.mxu0  ;;  %v7333_v57 = vpop.f32.mrf.mxu1 }
 0x892   : > { %v7547_v36 = vadd.f32 %v7515_v41, %v7419_v19  ;;  %v7169_v5 = vadd.f32 %v7168_v45, %v6948_v53  ;;  %v7486_v19 = vsub.f32 1.0, %v7422_v59  ;;  %v6757_v41 = vadd.f32 %v6756_v40, %v6558_v13 }
 0x893   : > { %v7487_v45 = vsub.f32 1.0, %v7423_v23  ;;  %v6562_v52 = vadd.f32 %v13940_v51, %v6301_v26  ;;  %v7425_v51 = vsel %vm14021_vm0, %v8074_v18, 0.0 }
 0x894   : > { %7579 = vst [vmem:[%s14036_s12 + $0x80] sm:$0xff] %v7547_v36  ;;  %v7330_v1 = vadd.f32 %v7329_v63, %v7169_v5  ;;  %v6983_v48 = vpop.f32.mrf.mxu3  ;;  %v7424_v36 = vsel %vm14021_vm0, %v8073_v25, 0.0  ;;  %v6771_v40 = vpop.f32.mrf.mxu2  ;;  %v15851_v25 = vld [vmem:[#allocation57_spill] sm:$0xff] }
 0x895   : > { %v6762_v17 = vadd.f32 %v6761_v27, %v6562_v52  ;;  %v7488_v2 = vsub.f32 1.0, %v7424_v36  ;;  %v7489_v27 = vsub.f32 1.0, %v7425_v51 }
 0x896   : > { %v7452_v37 = vmul.f32 %v7420_v11, %v7330_v1 }
 0x898   : > { %v7516_v33 = vmul.f32 %v7484_v34, %v7452_v37 }
 0x899   : > { %v7172_v14 = vpop.f32.mrf.mxu0  ;;  %v7337_v38 = vpop.f32.mrf.mxu1 }
 0x89a   : > { %v7548_v55 = vadd.f32 %v7516_v33, %v7420_v11  ;;  %v7173_v16 = vadd.f32 %v7172_v14, %v6954_v4  ;;  %v6309_v33 = vadd.f32 %v14262_v47, %v13956_v20 }
 0x89c   : > { %7580 = vst [vmem:[%s14036_s12 + $0x88] sm:$0xff] %v7548_v55  ;;  %v7334_v49 = vadd.f32 %v7333_v57, %v7173_v16  ;;  %v6972_v57 = vadd.f32 %v6971_v9, %v6757_v41  ;;  %v6989_v14 = vpop.f32.mrf.mxu3  ;;  %v15846_v55 = vld [vmem:[#allocation13_spill] sm:$0xff]  ;;  %v6776_v7 = vpop.f32.mrf.mxu2 }
 0x89d   : > { %v6566_v16 = vadd.f32 %v15846_v55, %v6309_v33  ;;  %v15852_v33 = vld [vmem:[#allocation65_spill] sm:$0xff] }
 0x89e   : > { %v7453_v6 = vmul.f32 %v7421_v50, %v7334_v49 }
 0x8a0   : > { %v7517_v3 = vmul.f32 %v7485_v58, %v7453_v6  ;;  %v6767_v58 = vadd.f32 %v6766_v12, %v6566_v16  ;;  %v15847_v6 = vld [vmem:[#allocation71_spill] sm:$0xff] }
 0x8a1   : > { %v7176_v62 = vpop.f32.mrf.mxu0  ;;  %v7341_v54 = vpop.f32.mrf.mxu1 }
 0x8a2   : > { %v7549_v28 = vadd.f32 %v7517_v3, %v7421_v50  ;;  %v7177_v21 = vadd.f32 %v7176_v62, %v6960_v61  ;;  %v6978_v50 = vadd.f32 %v6977_v24, %v6762_v17  ;;  %v6317_v3 = vadd.f32 %v14262_v47, %v15847_v6  ;;  %v8077_v17 = vld [vmem:[%s8227_s20 + $0xc8] sm:$0xff] }
 0x8a3   : > { %v6984_v43 = vadd.f32 %v6983_v48, %v6767_v58 }
 0x8a4   : > { %7581 = vst [vmem:[%s14036_s12 + $0x90] sm:$0xff] %v7549_v28  ;;  %v7338_v44 = vadd.f32 %v7337_v38, %v7177_v21  ;;  %v15848_v21 = vld [vmem:[#allocation92_spill] sm:$0xff] }
 0x8a5   : > { %v6570_v31 = vadd.f32 %v15848_v21, %v6317_v3 }
 0x8a6   : > { %v7454_v63 = vmul.f32 %v7422_v59, %v7338_v44 }
 0x8a7   : > { %v6772_v22 = vadd.f32 %v6771_v40, %v6570_v31 }
 0x8a8   : > { %v7518_v8 = vmul.f32 %v7486_v19, %v7454_v63  ;;  %v6995_v19 = vpop.f32.mrf.mxu3 }
 0x8a9   : > { %v7180_v15 = vpop.f32.mrf.mxu0  ;;  %v7345_v56 = vpop.f32.mrf.mxu1 }
 0x8aa   : > { %v7550_v35 = vadd.f32 %v7518_v8, %v7422_v59  ;;  %v7181_v39 = vadd.f32 %v7180_v15, %v6966_v32  ;;  %v15849_v8 = vld [vmem:[#allocation55_spill] sm:$0xff]  ;;  %v6781_v15 = vpop.f32.mrf.mxu2 }
 0x8ab   : > { %v6325_v32 = vadd.f32 %v14262_v47, %v15849_v8  ;;  %v15856_v8 = vld [vmem:[#allocation35_spill] sm:$0xff] }
 0x8ac   : > { %7582 = vst [vmem:[%s14036_s12 + $0x98] sm:$0xff] %v7550_v35  ;;  %v7342_v53 = vadd.f32 %v7341_v54, %v7181_v39  ;;  %v8075_v54 = vld [vmem:[%s8227_s20 + $0xb8] sm:$0xff]  ;;  %v8076_v35 = vld [vmem:[%s8227_s20 + $0xc0] sm:$0xff] }
 0x8ad   : > { %v7426_v46 = vsel %vm14021_vm0, %v8075_v54, 0.0  ;;  %v7427_v39 = vsel %vm14021_vm0, %v8076_v35, 0.0 }
 0x8ae   : > { %v7455_v30 = vmul.f32 %v7423_v23, %v7342_v53  ;;  %v7490_v12 = vsub.f32 1.0, %v7426_v46  ;;  %v15850_v53 = vld [vmem:[#allocation76_spill] sm:$0xff] }
 0x8b0   : > { %v7519_v11 = vmul.f32 %v7487_v45, %v7455_v30  ;;  %v6574_v45 = vadd.f32 %v15850_v53, %v6325_v32 }
 0x8b1   : > { %v7184_v10 = vpop.f32.mrf.mxu0  ;;  %v7349_v5 = vpop.f32.mrf.mxu1 }
 0x8b2   : > { %v7551_v1 = vadd.f32 %v7519_v11, %v7423_v23  ;;  %v7185_v34 = vadd.f32 %v7184_v10, %v6972_v57  ;;  %v6777_v30 = vadd.f32 %v6776_v7, %v6574_v45  ;;  %v7491_v57 = vsub.f32 1.0, %v7427_v39  ;;  %v7001_v10 = vpop.f32.mrf.mxu3  ;;  %v6786_v52 = vpop.f32.mrf.mxu2  ;;  %v8078_v7 = vld [vmem:[%s8227_s20 + $0xd0] sm:$0xff] }
 0x8b4   : > { %7583 = vst [vmem:[%s14036_s12 + $0xa0] sm:$0xff] %v7551_v1  ;;  %v7346_v37 = vadd.f32 %v7345_v56, %v7185_v34  ;;  %v6990_v56 = vadd.f32 %v6989_v14, %v6772_v22  ;;  %v6996_v1 = vadd.f32 %v6995_v19, %v6777_v30 }
 0x8b6   : > { %v7456_v4 = vmul.f32 %v7424_v36, %v7346_v37  ;;  %v7428_v37 = vsel %vm14021_vm0, %v8077_v17, 0.0  ;;  %v15859_v17 = vld [vmem:[#allocation44_spill] sm:$0xff] }
 0x8b7   : > { %v7492_v18 = vsub.f32 1.0, %v7428_v37 }
 0x8b8   : > { %v7520_v60 = vmul.f32 %v7488_v2, %v7456_v4 }
 0x8b9   : > { %v7188_v38 = vpop.f32.mrf.mxu0  ;;  %v7353_v9 = vpop.f32.mrf.mxu1 }
 0x8ba   : > { %v7552_v0 = vadd.f32 %v7520_v60, %v7424_v36  ;;  %v7189_v49 = vadd.f32 %v7188_v38, %v6978_v50  ;;  %v6333_v36 = vadd.f32 %v14262_v47, %v15851_v25  ;;  %v7007_v16 = vpop.f32.mrf.mxu3  ;;  %v6791_v3 = vpop.f32.mrf.mxu2 }
 0x8bc   : > { %7584 = vst [vmem:[%s14036_s12 + $0xa8] sm:$0xff] %v7552_v0  ;;  %v7350_v20 = vadd.f32 %v7349_v5, %v7189_v49  ;;  %v6578_v4 = vadd.f32 %v15852_v33, %v6333_v36 }
 0x8be   : > { %v7457_v61 = vmul.f32 %v7425_v51, %v7350_v20  ;;  %v6782_v50 = vadd.f32 %v6781_v15, %v6578_v4  ;;  %v7429_v20 = vsel %vm14021_vm0, %v8078_v7, 0.0 }
 0x8c0   : > { %v7521_v62 = vmul.f32 %v7489_v27, %v7457_v61  ;;  %v7002_v49 = vadd.f32 %v7001_v10, %v6782_v50  ;;  %v15854_v27 = vld [vmem:[#allocation74_spill] sm:$0xff] }
 0x8c1   : > { %v7192_v59 = vpop.f32.mrf.mxu0  ;;  %v7357_v28 = vpop.f32.mrf.mxu1  ;;  %v15858_v10 = vld [vmem:[#allocation46_spill] sm:$0xff] }
 0x8c2   : > { %v7553_v24 = vadd.f32 %v7521_v62, %v7425_v51  ;;  %v7193_v44 = vadd.f32 %v7192_v59, %v6984_v43  ;;  %v15853_v51 = vld [vmem:[#allocation21_spill] sm:$0xff]  ;;  %v7013_v19 = vpop.f32.mrf.mxu3 }
 0x8c4   : > { %7585 = vst [vmem:[%s14036_s12 + $0xb0] sm:$0xff] %v7553_v24  ;;  %v7354_v63 = vadd.f32 %v7353_v9, %v7193_v44  ;;  %v6341_v9 = vadd.f32 %v14262_v47, %v15853_v51  ;;  %v15860_v51 = vld [vmem:[#allocation49_spill] sm:$0xff] }
 0x8c6   : > { %v7458_v29 = vmul.f32 %v7426_v46, %v7354_v63  ;;  %v6582_v6 = vadd.f32 %v15854_v27, %v6341_v9  ;;  %v8079_v63 = vld [vmem:[%s8227_s20 + $0xd8] sm:$0xff] }
 0x8c8   : > { %v7522_v23 = vmul.f32 %v7490_v12, %v7458_v29  ;;  %v6787_v59 = vadd.f32 %v6786_v52, %v6582_v6  ;;  %v7430_v12 = vsel %vm14021_vm0, %v8079_v63, 0.0 }
 0x8c9   : > { %v7196_v13 = vpop.f32.mrf.mxu0  ;;  %v7361_v41 = vpop.f32.mrf.mxu1  ;;  %v7494_v35 = vsub.f32 1.0, %v7430_v12 }
 0x8ca   : > { %v7554_v26 = vadd.f32 %v7522_v23, %v7426_v46  ;;  %v7197_v48 = vadd.f32 %v7196_v13, %v6990_v56  ;;  %v7493_v46 = vsub.f32 1.0, %v7429_v20  ;;  %v7008_v44 = vadd.f32 %v7007_v16, %v6787_v59  ;;  %v6796_v56 = vpop.f32.mrf.mxu2  ;;  %v7019_v52 = vpop.f32.mrf.mxu3 }
 0x8cc   : > { %7586 = vst [vmem:[%s14036_s12 + $0xb8] sm:$0xff] %v7554_v26  ;;  %v7358_v11 = vadd.f32 %v7357_v28, %v7197_v48  ;;  %v15855_v28 = vld [vmem:[#allocation42_spill] sm:$0xff] }
 0x8cd   : > { %v6349_v21 = vadd.f32 %v14262_v47, %v15855_v28  ;;  %v15862_v28 = vld [vmem:[#allocation24_spill] sm:$0xff] }
 0x8ce   : > { %v7459_v5 = vmul.f32 %v7427_v39, %v7358_v11  ;;  %v8080_v11 = vld [vmem:[%s8227_s20 + $0xe0] sm:$0xff] }
 0x8cf   : > { %v6586_v32 = vadd.f32 %v15856_v8, %v6349_v21 }
 0x8d0   : > { %v7523_v40 = vmul.f32 %v7491_v57, %v7459_v5  ;;  %v7431_v57 = vsel %vm14021_vm0, %v8080_v11, 0.0 }
 0x8d1   : > { %v7200_v34 = vpop.f32.mrf.mxu0  ;;  %v7365_v2 = vpop.f32.mrf.mxu1  ;;  %v6792_v23 = vadd.f32 %v6791_v3, %v6586_v32 }
 0x8d2   : > { %v7555_v14 = vadd.f32 %v7523_v40, %v7427_v39  ;;  %v7201_v60 = vadd.f32 %v7200_v34, %v6996_v1  ;;  %v7495_v34 = vsub.f32 1.0, %v7431_v57  ;;  %v7025_v7 = vpop.f32.mrf.mxu3 }
 0x8d3   : > { %v7014_v48 = vadd.f32 %v7013_v19, %v6792_v23 }
 0x8d4   : > { %7587 = vst [vmem:[%s14036_s12 + $0xc0] sm:$0xff] %v7555_v14  ;;  %v7362_v38 = vadd.f32 %v7361_v41, %v7201_v60  ;;  %v15857_v41 = vld [vmem:[#allocation69_spill] sm:$0xff] }
 0x8d5   : > { %v6357_v53 = vadd.f32 %v14262_v47, %v15857_v41 }
 0x8d6   : > { %v7460_v55 = vmul.f32 %v7428_v37, %v7362_v38  ;;  %v8081_v38 = vld [vmem:[%s8227_s20 + $0xe8] sm:$0xff] }
 0x8d7   : > { %v6590_v25 = vadd.f32 %v15858_v10, %v6357_v53 }
 0x8d8   : > { %v7524_v0 = vmul.f32 %v7492_v18, %v7460_v55  ;;  %v7432_v18 = vsel %vm14021_vm0, %v8081_v38, 0.0 }
 0x8d9   : > { %v7204_v58 = vpop.f32.mrf.mxu0  ;;  %v7369_v43 = vpop.f32.mrf.mxu1  ;;  %v6797_v40 = vadd.f32 %v6796_v56, %v6590_v25 }
 0x8da   : > { %v7556_v61 = vadd.f32 %v7524_v0, %v7428_v37  ;;  %v7205_v62 = vadd.f32 %v7204_v58, %v7002_v49  ;;  %v6365_v37 = vadd.f32 %v14262_v47, %v15859_v17  ;;  %v7496_v58 = vsub.f32 1.0, %v7432_v18  ;;  %v7031_v63 = vpop.f32.mrf.mxu3 }
 0x8db   : > { %v7020_v60 = vadd.f32 %v7019_v52, %v6797_v40 }
 0x8dc   : > { %7588 = vst [vmem:[%s14036_s12 + $0xc8] sm:$0xff] %v7556_v61  ;;  %v7366_v54 = vadd.f32 %v7365_v2, %v7205_v62  ;;  %v6801_v2 = vpop.f32.mrf.mxu2  ;;  %v6594_v9 = vadd.f32 %v15860_v51, %v6365_v37 }
 0x8de   : > { %v7461_v31 = vmul.f32 %v7429_v20, %v7366_v54  ;;  %v6802_v0 = vadd.f32 %v6801_v2, %v6594_v9  ;;  %v8082_v54 = vld [vmem:[%s8227_s20 + $0xf0] sm:$0xff] }
 0x8e0   : > { %v7525_v24 = vmul.f32 %v7493_v46, %v7461_v31  ;;  %v7026_v62 = vadd.f32 %v7025_v7, %v6802_v0  ;;  %v7433_v46 = vsel %vm14021_vm0, %v8082_v54, 0.0 }
 0x8e1   : > { %v7208_v22 = vpop.f32.mrf.mxu0  ;;  %v7373_v39 = vpop.f32.mrf.mxu1 }
 0x8e2   : > { %v7557_v15 = vadd.f32 %v7525_v24, %v7429_v20  ;;  %v7209_v29 = vadd.f32 %v7208_v22, %v7008_v44  ;;  %v15861_v20 = vld [vmem:[#allocation41_spill] sm:$0xff] }
 0x8e3   : > { %v6373_v27 = vadd.f32 %v14262_v47, %v15861_v20  ;;  %v7497_v47 = vsub.f32 1.0, %v7433_v46 }
 0x8e4   : > { %7589 = vst [vmem:[%s14036_s12 + $0xd0] sm:$0xff] %v7557_v15  ;;  %v7370_v13 = vadd.f32 %v7369_v43, %v7209_v29  ;;  %v6806_v3 = vpop.f32.mrf.mxu2  ;;  %v8083_v15 = vld [vmem:[%s8227_s20 + $0xf8] sm:$0xff] }
 0x8e5   : > { %v6598_v21 = vadd.f32 %v15862_v28, %v6373_v27  ;;  %v7434_v29 = vsel %vm14021_vm0, %v8083_v15, 0.0 }
 0x8e6   : > { %v7462_v45 = vmul.f32 %v7430_v12, %v7370_v13 }
 0x8e7   : > { %v6807_v44 = vadd.f32 %v6806_v3, %v6598_v21 }
 0x8e8   : > { %v7526_v26 = vmul.f32 %v7494_v35, %v7462_v45 }
 0x8e9   : > { %v7212_v30 = vpop.f32.mrf.mxu0  ;;  %v7377_v4 = vpop.f32.mrf.mxu1  ;;  %v7032_v8 = vadd.f32 %v7031_v63, %v6807_v44 }
 0x8ea   : > { %v7558_v36 = vadd.f32 %v7526_v26, %v7430_v12  ;;  %v7213_v5 = vadd.f32 %v7212_v30, %v7014_v48 }
 0x8ec   : > { %7590 = vst [vmem:[%s14036_s12 + $0xd8] sm:$0xff] %v7558_v36  ;;  %v7374_v1 = vadd.f32 %v7373_v39, %v7213_v5  ;;  %v7498_v39 = vsub.f32 1.0, %v7434_v29 }
 0x8ee   : > { %v7463_v33 = vmul.f32 %v7431_v57, %v7374_v1 }
 0x8f0   : > { %v7527_v14 = vmul.f32 %v7495_v34, %v7463_v33 }
 0x8f1   : > { %v7216_v50 = vpop.f32.mrf.mxu0  ;;  %v7381_v43 = vpop.f32.mrf.mxu1 }
 0x8f2   : > { %v7559_v55 = vadd.f32 %v7527_v14, %v7431_v57  ;;  %v7217_v16 = vadd.f32 %v7216_v50, %v7020_v60 }
 0x8f4   : > { %7591 = vst [vmem:[%s14036_s12 + $0xe0] sm:$0xff] %v7559_v55  ;;  %v7378_v49 = vadd.f32 %v7377_v4, %v7217_v16 }
 0x8f6   : > { %v7464_v6 = vmul.f32 %v7432_v18, %v7378_v49 }
 0x8f8   : > { %v7528_v61 = vmul.f32 %v7496_v58, %v7464_v6 }
 0x8f9   : > { %v7220_v59 = vpop.f32.mrf.mxu0  ;;  %v7385_v13 = vpop.f32.mrf.mxu1 }
 0x8fa   : > { %v7560_v31 = vadd.f32 %v7528_v61, %v7432_v18  ;;  %v7221_v24 = vadd.f32 %v7220_v59, %v7026_v62 }
 0x8fc   : > { %7592 = vst [vmem:[%s14036_s12 + $0xe8] sm:$0xff] %v7560_v31  ;;  %v7382_v19 = vadd.f32 %v7381_v43, %v7221_v24 }
 0x8fe   : > { %v7465_v22 = vmul.f32 %v7433_v46, %v7382_v19 }
 0x900   : > { %v7529_v12 = vmul.f32 %v7497_v47, %v7465_v22 }
 0x901   : > { %v7224_v32 = vpop.f32.mrf.mxu0 }
 0x902   : > { %v7561_v23 = vadd.f32 %v7529_v12, %v7433_v46  ;;  %v7225_v56 = vadd.f32 %v7224_v32, %v7032_v8 }
 0x904   : > { %7593 = vst [vmem:[%s14036_s12 + $0xf0] sm:$0xff] %v7561_v23  ;;  %v7386_v35 = vadd.f32 %v7385_v13, %v7225_v56 }
 0x906   : > { %v7466_v41 = vmul.f32 %v7434_v29, %v7386_v35 }
 0x908   : > { %v7530_v53 = vmul.f32 %v7498_v39, %v7466_v41 }
 0x90a   : > { %v7562_v45 = vadd.f32 %v7530_v53, %v7434_v29 }
 0x90c   : > { %7594 = vst [vmem:[%s14036_s12 + $0xf8] sm:$0xff] %v7562_v45 }
 0x90d PF: > { %s15_s18 = sadd.s32 1, %s8090_s18  }
 0x90e   : > { %p12_p4 = scmp.ge.s32.totalorder %s15_s18, 4  }
 0x910   :  { %14 = sbr.rel (!%p12_p4) target bundleno = 1 (0x1), region = 76 }

</bundles_post_ra>
